<compile_context>
chip_gen: v7x
topology: tpu7x:2x2x1
jax: 0.10.0
libtpu: 0.0.40
codegen_flags: <defaults>
</compile_context>

<pallas_src>
import functools

import jax
import jax.numpy as jnp
from jax import lax
from jax.experimental import pallas as pl
from jax.experimental.pallas import tpu as pltpu

# ----------------------------- model sizes -----------------------------------
HEADS = 4
HIDDEN = 16                 # hidden_dim in the PyTorch script
INPUT_DIM = 4               # x.size(1) from the dataset
OUTPUT_DIM = 5              # y.size(0); fc_out emits OUTPUT_DIM - 1
N = 3                       # nodes per graph (dataset truncates to 3 nodes)
K = HEADS * HIDDEN          # concat width of each GATConv
OUT_LANES = 128             # lane-dense padded output slab


# ------------------------------ Pallas kernel --------------------------------
def gnn_kernel(x_ref, guid_ref, adj_ref,
               w1_ref, att1_ref, b1_ref,
               w2_ref, att2_ref, b2_ref,
               wg_ref, bg_ref, wq_ref, bq_ref, wo_ref, bo_ref,
               out_ref, *, mm_dtype):
    f32 = jnp.float32
    GN = x_ref.shape[0]          # nodes in this block (G graphs x N nodes)
    G = out_ref.shape[0]         # graphs in this block
    n_nodes = GN // G            # nodes per graph
    NP = adj_ref.shape[0]        # padded per-graph adjacency size (>= n_nodes)

    def mm(a, b):                # MXU matmul, f32 accumulate
        return jnp.dot(a.astype(mm_dtype), b.astype(mm_dtype),
                       preferred_element_type=f32)

    # --- block-diagonal attention mask + pool matrix, built from iotas --------
    # (no O(GN^2) HBM->VMEM DMA; pure compares + two tiny exact-f32 matmuls)
    nid = lax.broadcasted_iota(jnp.int32, (GN, G), 0)
    gid = lax.broadcasted_iota(jnp.int32, (GN, G), 1)
    g_oh = ((nid >= gid * n_nodes) & (nid < (gid + 1) * n_nodes)).astype(f32)   # [GN, G]
    same_graph = lax.dot_general(g_oh, g_oh, (((1,), (1,)), ((), ())),
                                 preferred_element_type=f32) > 0.5              # [GN, GN]

    gstart = (lax.broadcasted_iota(jnp.int32, (G, 1), 0) * n_nodes).astype(f32)  # [G, 1]
    start_i = jnp.dot(g_oh, gstart, preferred_element_type=f32)                  # [GN, 1]
    node_f = lax.broadcasted_iota(jnp.int32, (GN, 1), 0).astype(f32)
    local_i = node_f - start_i                                                    # node index mod N
    aidx = lax.broadcasted_iota(jnp.int32, (GN, NP), 1).astype(f32)
    loc_oh = (local_i == aidx).astype(f32)                                        # [GN, NP] one-hot
    adj_rows = jnp.dot(loc_oh, adj_ref[...], preferred_element_type=f32)          # adj[i%N, :]
    adj_full = lax.dot_general(adj_rows, loc_oh, (((1,), (1,)), ((), ())),
                               preferred_element_type=f32)                        # adj[i%N, j%N]
    mask = (same_graph & (adj_full > 0.5))[None, :, :]                            # [1, GN, GN]

    pg = lax.broadcasted_iota(jnp.int32, (G, GN), 0)
    pn = lax.broadcasted_iota(jnp.int32, (G, GN), 1)
    pool = jnp.where((pn >= pg * n_nodes) & (pn < (pg + 1) * n_nodes),
                     1.0 / n_nodes, 0.0)                                          # [G, GN]

    def elu(v):
        return jnp.where(v > 0, v, jnp.exp(jnp.minimum(v, 0.0)) - 1.0)

    def gat_layer(xin, w_ref, att_ref, b_ref):
        heads = att_ref.shape[0] // 2
        hidden = att_ref.shape[1] // heads
        H = mm(xin, w_ref[...])                                                   # [GN, K]
        # fused src/dst attention logits: one small MXU pass for both
        logits = lax.dot_general(att_ref[...].astype(mm_dtype), H.astype(mm_dtype),
                                 (((1,), (1,)), ((), ())),
                                 preferred_element_type=f32)                      # [2*heads, GN]
        es = logits[:heads]                                                       # source logits
        ed = logits[heads:]                                                       # target logits
        z = ed[:, :, None] + es[:, None, :]                                       # [heads, GN, GN]
        z = jnp.where(z > 0, z, 0.2 * z)                                          # leaky_relu(0.2)
        z = jnp.where(mask, z, -1e30)
        z = z - jnp.max(z, axis=-1, keepdims=True)
        p = jnp.exp(z)                        # masked entries underflow to exactly 0
        denom = jnp.maximum(jnp.sum(p, axis=-1, keepdims=True), 1e-30)
        alpha = p / denom                                                         # [heads, GN, GN]
        # per-head neighbourhood aggregation: exactly-useful MXU work
        outs = [mm(alpha[h], H[:, h * hidden:(h + 1) * hidden]) for h in range(heads)]
        return jnp.concatenate(outs, axis=1) + b_ref[...]                         # [GN, K]

    # --- GAT layer 1 + ELU, GAT layer 2 + ELU ---
    h1 = elu(gat_layer(x_ref[...], w1_ref, att1_ref, b1_ref))
    h2 = elu(gat_layer(h1, w2_ref, att2_ref, b2_ref))

    # --- global_mean_pool + fc_gnn + fc_guidance(ReLU) + fc_out ---
    pooled = mm(pool, h2)                                                         # [G, K]
    x_gnn = mm(pooled, wg_ref[...]) + bg_ref[...]                                 # [G, HIDDEN]
    x_guid = jnp.maximum(guid_ref[...] * wq_ref[...] + bq_ref[...], 0.0)          # [G, HIDDEN]
    comb = x_gnn + x_guid
    out_ref[...] = mm(comb, wo_ref[...]) + bo_ref[...]                            # [G, OUT_LANES]


# ------------------------------- wrapper --------------------------------------
def gnn_forward(x, adj, guidance, params, graphs_per_block=None,
                compute_dtype=jnp.float32):
    """x: [B, N, Fin] node features, adj: [N, N] per-graph adjacency
    (adj[i, j] = 1 iff edge j->i, incl. self-loops), guidance: [B, 1].
    compute_dtype=jnp.bfloat16 is a valid speed/VMEM knob on v6e/v7x only."""
    Bn, Nn, Fin = x.shape
    G = Bn if graphs_per_block is None else graphs_per_block
    assert Bn % G == 0, "batch must be divisible by graphs_per_block"
    num_blocks = Bn // G
    if num_blocks > 1:
        assert G % 8 == 0, ("graphs_per_block must be a multiple of 8 when the "
                            "grid has more than one step ((8,128) sublane rule)")
    GN = G * Nn
    out_dim = params['wo'].shape[1]

    # Pad the layer-1 contraction up to sublane granularity (zeros => same math).
    Fp = max(8, -(-Fin // 8) * 8)
    x_flat = jnp.pad(x.reshape(Bn * Nn, Fin).astype(jnp.float32),
                     ((0, 0), (0, Fp - Fin)))
    w1p = jnp.pad(params['w1'].astype(jnp.float32), ((0, Fp - Fin), (0, 0)))

    # Tiny per-graph adjacency, padded to 8x8; block-diag mask is built in-kernel.
    NP = 8
    adj_pad = jnp.zeros((NP, NP), jnp.float32).at[:Nn, :Nn].set(adj.astype(jnp.float32))

    # Lane-dense output slab: pad fc_out to 128 columns, slice outside the kernel.
    wo_pad = jnp.pad(params['wo'].astype(jnp.float32), ((0, 0), (0, OUT_LANES - out_dim)))
    bo_pad = jnp.pad(params['bo'].astype(jnp.float32), ((0, 0), (0, OUT_LANES - out_dim)))

    weights = (w1p, params['att1'], params['b1'],
               params['w2'], params['att2'], params['b2'],
               params['wg'], params['bg'], params['wq'], params['bq'],
               wo_pad, bo_pad)

    def resident(arr):   # whole array resident in VMEM for every grid step
        idx = (0,) * arr.ndim
        return pl.BlockSpec(arr.shape, lambda i, _idx=idx: _idx)

    in_specs = [
        pl.BlockSpec((GN, Fp), lambda i: (i, 0)),        # node features, tiled over graph blocks
        pl.BlockSpec((G, 1), lambda i: (i, 0)),          # guidance, tiled over graph blocks
        resident(adj_pad),                               # tiny per-graph adjacency
    ] + [resident(w) for w in weights]                   # all weights stay resident

    kernel = functools.partial(gnn_kernel, mm_dtype=compute_dtype)

    out_padded = pl.pallas_call(
        kernel,
        grid=(num_blocks,),
        in_specs=in_specs,
        out_specs=pl.BlockSpec((G, OUT_LANES), lambda i: (i, 0)),
        out_shape=jax.ShapeDtypeStruct((Bn, OUT_LANES), jnp.float32),
        compiler_params=pltpu.CompilerParams(
            dimension_semantics=("parallel",),           # blocks shard across v7x's 2 TCs
            vmem_limit_bytes=32 * 1024 * 1024),
    )(x_flat, guidance.reshape(-1, 1).astype(jnp.float32), adj_pad, *weights)
    return out_padded[:, :out_dim]


# ------------------------------ parameter setup ------------------------------
def expand_heads(a, heads, hid):
    """[heads, hid] -> [heads, heads*hid] with each row placed in its head block."""
    eye = jnp.eye(heads, dtype=a.dtype)
    return jnp.einsum('hg,hd->hgd', eye, a).reshape(heads, heads * hid)


def init_params(key):
    keys = jax.random.split(key, 16)
    s = 0.1
    w1 = s * jax.random.normal(keys[0], (INPUT_DIM, K), jnp.float32)
    a_src1 = s * jax.random.normal(keys[1], (HEADS, HIDDEN), jnp.float32)
    a_dst1 = s * jax.random.normal(keys[2], (HEADS, HIDDEN), jnp.float32)
    b1 = s * jax.random.normal(keys[3], (1, K), jnp.float32)
    w2 = s * jax.random.normal(keys[4], (K, K), jnp.float32)
    a_src2 = s * jax.random.normal(keys[5], (HEADS, HIDDEN), jnp.float32)
    a_dst2 = s * jax.random.normal(keys[6], (HEADS, HIDDEN), jnp.float32)
    b2 = s * jax.random.normal(keys[7], (1, K), jnp.float32)
    wg = s * jax.random.normal(keys[8], (K, HIDDEN), jnp.float32)
    bg = s * jax.random.normal(keys[9], (1, HIDDEN), jnp.float32)
    wq = s * jax.random.normal(keys[10], (1, HIDDEN), jnp.float32)
    bq = s * jax.random.normal(keys[11], (1, HIDDEN), jnp.float32)
    wo = s * jax.random.normal(keys[12], (HIDDEN, OUTPUT_DIM - 1), jnp.float32)
    bo = s * jax.random.normal(keys[13], (1, OUTPUT_DIM - 1), jnp.float32)
    att1 = jnp.concatenate([expand_heads(a_src1, HEADS, HIDDEN),
                            expand_heads(a_dst1, HEADS, HIDDEN)], axis=0)   # [2*heads, K]
    att2 = jnp.concatenate([expand_heads(a_src2, HEADS, HIDDEN),
                            expand_heads(a_dst2, HEADS, HIDDEN)], axis=0)
    return dict(
        w1=w1, att1=att1, b1=b1, w2=w2, att2=att2, b2=b2,
        a_src1=a_src1, a_dst1=a_dst1, a_src2=a_src2, a_dst2=a_dst2,   # raw vectors (reference)
        wg=wg, bg=bg, wq=wq, bq=bq, wo=wo, bo=bo,
    )


# ------------------------- pure-JAX reference (checking) ----------------------
def reference_forward(x, adj, guidance, params):
    heads, hidden = HEADS, HIDDEN
    mask = adj > 0.0                                          # [N, N], adj[i, j]: edge j -> i

    def gat(xn, w, a_src, a_dst, b):
        H = xn @ w                                            # [N, heads*hidden]
        Hh = H.reshape(xn.shape[0], heads, hidden)
        es = jnp.einsum('jhd,hd->hj', Hh, a_src)
        ed = jnp.einsum('ihd,hd->hi', Hh, a_dst)
        z = ed[:, :, None] + es[:, None, :]
        z = jnp.where(z > 0, z, 0.2 * z)
        z = jnp.where(mask[None], z, -1e30)
        z = z - z.max(-1, keepdims=True)
        p = jnp.exp(z)
        alpha = p / jnp.maximum(p.sum(-1, keepdims=True), 1e-30)
        out = jnp.einsum('hij,jhd->ihd', alpha, Hh).reshape(xn.shape[0], heads * hidden)
        return out + b

    def elu(v):
        return jnp.where(v > 0, v, jnp.exp(jnp.minimum(v, 0.0)) - 1.0)

    def per_graph(xn):
        h1 = elu(gat(xn, params['w1'], params['a_src1'], params['a_dst1'], params['b1'][0]))
        h2 = elu(gat(h1, params['w2'], params['a_src2'], params['a_dst2'], params['b2'][0]))
        return h2.mean(axis=0)

    pooled = jax.vmap(per_graph)(x)                           # [B, K]
    x_gnn = pooled @ params['wg'] + params['bg']
    x_guid = jnp.maximum(guidance @ params['wq'] + params['bq'], 0.0)
    return (x_gnn + x_guid) @ params['wo'] + params['bo']


if __name__ == "__main__":
    key = jax.random.PRNGKey(0)
    kx, kg, kp = jax.random.split(key, 3)

    # 80 graphs x 3 nodes x 4 features: still tiny data, but large enough that
    # each grid step sees GN = 120 nodes (full (8,128) tiles) and there are
    # 2 parallel steps (one per TensorCore on v7x).
    B = 80
    GPB = 40
    x = jax.random.uniform(kx, (B, N, INPUT_DIM), jnp.float32)
    guidance = jax.random.uniform(kg, (B, 1), jnp.float32)
    # dataset edge_index = [[0,0,1],[1,2,2]] + self loops; adj[target, source]
    adj = jnp.array([[1.0, 0.0, 0.0],
                     [1.0, 1.0, 0.0],
                     [1.0, 1.0, 1.0]], dtype=jnp.float32)
    params = init_params(kp)

    fwd = jax.jit(functools.partial(gnn_forward, graphs_per_block=GPB))
    out = fwd(x, adj, guidance, params)
    jax.block_until_ready(out)
    assert out.shape == (B, OUTPUT_DIM - 1)

    with jax.default_matmul_precision("highest"):
        ref = reference_forward(x, adj, guidance, params)
    max_err = float(jnp.max(jnp.abs(out - ref)))
    assert max_err < 2e-3, f"kernel/reference mismatch, max abs err = {max_err}"

    print("KERNEL_OK")
</pallas_src>

<mosaic_0001>
module attributes {stable_mosaic.version = 11 : i64} {
  func.func @gnn_kernel(%arg0: i32, %arg1: memref<120x8xf32, #tpu.memory_space<vmem>>, %arg2: memref<40x1xf32, #tpu.memory_space<vmem>>, %arg3: memref<8x8xf32, #tpu.memory_space<vmem>>, %arg4: memref<8x64xf32, #tpu.memory_space<vmem>>, %arg5: memref<8x64xf32, #tpu.memory_space<vmem>>, %arg6: memref<1x64xf32, #tpu.memory_space<vmem>>, %arg7: memref<64x64xf32, #tpu.memory_space<vmem>>, %arg8: memref<8x64xf32, #tpu.memory_space<vmem>>, %arg9: memref<1x64xf32, #tpu.memory_space<vmem>>, %arg10: memref<64x16xf32, #tpu.memory_space<vmem>>, %arg11: memref<1x16xf32, #tpu.memory_space<vmem>>, %arg12: memref<1x16xf32, #tpu.memory_space<vmem>>, %arg13: memref<1x16xf32, #tpu.memory_space<vmem>>, %arg14: memref<16x128xf32, #tpu.memory_space<vmem>>, %arg15: memref<1x128xf32, #tpu.memory_space<vmem>>, %arg16: memref<40x128xf32, #tpu.memory_space<vmem>>) attributes {dimension_semantics = [#tpu.dimension_semantics<parallel>], iteration_bounds = array<i64: 2>, scalar_prefetch = 0 : i64, scratch_operands = 0 : i64, tpu.core_type = #tpu.core_type<tc>, window_params = [{transform_indices = @transform_0, window_bounds = array<i64: 120, 8>}, {transform_indices = @transform_1, window_bounds = array<i64: 40, 1>}, {pipeline_mode = #tpu.pipeline_mode<synchronous>, transform_indices = @transform_2, window_bounds = array<i64: 8, 8>}, {pipeline_mode = #tpu.pipeline_mode<synchronous>, transform_indices = @transform_3, window_bounds = array<i64: 8, 64>}, {pipeline_mode = #tpu.pipeline_mode<synchronous>, transform_indices = @transform_4, window_bounds = array<i64: 8, 64>}, {pipeline_mode = #tpu.pipeline_mode<synchronous>, transform_indices = @transform_5, window_bounds = array<i64: 1, 64>}, {pipeline_mode = #tpu.pipeline_mode<synchronous>, transform_indices = @transform_6, window_bounds = array<i64: 64, 64>}, {pipeline_mode = #tpu.pipeline_mode<synchronous>, transform_indices = @transform_7, window_bounds = array<i64: 8, 64>}, {pipeline_mode = #tpu.pipeline_mode<synchronous>, transform_indices = @transform_8, window_bounds = array<i64: 1, 64>}, {pipeline_mode = #tpu.pipeline_mode<synchronous>, transform_indices = @transform_9, window_bounds = array<i64: 64, 16>}, {pipeline_mode = #tpu.pipeline_mode<synchronous>, transform_indices = @transform_10, window_bounds = array<i64: 1, 16>}, {pipeline_mode = #tpu.pipeline_mode<synchronous>, transform_indices = @transform_11, window_bounds = array<i64: 1, 16>}, {pipeline_mode = #tpu.pipeline_mode<synchronous>, transform_indices = @transform_12, window_bounds = array<i64: 1, 16>}, {pipeline_mode = #tpu.pipeline_mode<synchronous>, transform_indices = @transform_13, window_bounds = array<i64: 16, 128>}, {pipeline_mode = #tpu.pipeline_mode<synchronous>, transform_indices = @transform_14, window_bounds = array<i64: 1, 128>}, {transform_indices = @transform_15, window_bounds = array<i64: 40, 128>}]} {
    %0 = tpu.iota {dimensions = array<i32: 0>} : vector<120x40xi32>
    %1 = tpu.iota {dimensions = array<i32: 1>} : vector<120x40xi32>
    %c3_i32 = arith.constant 3 : i32
    %2 = vector.broadcast %c3_i32 : i32 to vector<120x40xi32>
    %3 = arith.muli %1, %2 : vector<120x40xi32>
    %4 = arith.cmpi sge, %0, %3 : vector<120x40xi32>
    %c1_i32 = arith.constant 1 : i32
    %5 = vector.broadcast %c1_i32 : i32 to vector<120x40xi32>
    %6 = arith.addi %1, %5 : vector<120x40xi32>
    %c3_i32_0 = arith.constant 3 : i32
    %7 = vector.broadcast %c3_i32_0 : i32 to vector<120x40xi32>
    %8 = arith.muli %6, %7 : vector<120x40xi32>
    %9 = arith.cmpi slt, %0, %8 : vector<120x40xi32>
    %10 = arith.andi %4, %9 : vector<120x40xi1>
    %11 = arith.extui %10 : vector<120x40xi1> to vector<120x40xi32>
    %12 = arith.sitofp %11 : vector<120x40xi32> to vector<120x40xf32>
    %cst = arith.constant dense<0.000000e+00> : vector<120x120xf32>
    %13 = tpu.matmul %12, %12, %cst {dimension_numbers = #tpu.dot_dimension_numbers<[1], [1], [0], [0], [0, 0, 1, 0], [], []>} : vector<120x40xf32>, vector<120x40xf32>, vector<120x120xf32> -> vector<120x120xf32>
    %cst_1 = arith.constant 5.000000e-01 : f32
    %14 = vector.broadcast %cst_1 : f32 to vector<120x120xf32>
    %15 = arith.cmpf ogt, %13, %14 : vector<120x120xf32>
    %16 = tpu.iota {dimensions = array<i32: 0>} : vector<40x1xi32>
    %c3_i32_2 = arith.constant 3 : i32
    %17 = vector.broadcast %c3_i32_2 : i32 to vector<40x1xi32>
    %18 = arith.muli %16, %17 : vector<40x1xi32>
    %19 = arith.sitofp %18 : vector<40x1xi32> to vector<40x1xf32>
    %cst_3 = arith.constant dense<0.000000e+00> : vector<120x1xf32>
    %20 = tpu.matmul %12, %19, %cst_3 {dimension_numbers = #tpu.dot_dimension_numbers<[1], [0], [0], [1], [0, 0, 1, 1], [], []>} : vector<120x40xf32>, vector<40x1xf32>, vector<120x1xf32> -> vector<120x1xf32>
    %21 = tpu.iota {dimensions = array<i32: 0>} : vector<120x1xi32>
    %22 = arith.sitofp %21 : vector<120x1xi32> to vector<120x1xf32>
    %23 = arith.subf %22, %20 : vector<120x1xf32>
    %24 = tpu.iota {dimensions = array<i32: 1>} : vector<120x8xi32>
    %25 = arith.sitofp %24 : vector<120x8xi32> to vector<120x8xf32>
    %26 = vector.broadcast %23 : vector<120x1xf32> to vector<120x8xf32>
    %27 = arith.cmpf oeq, %26, %25 : vector<120x8xf32>
    %28 = arith.extui %27 : vector<120x8xi1> to vector<120x8xi32>
    %29 = arith.sitofp %28 : vector<120x8xi32> to vector<120x8xf32>
    %c0 = arith.constant 0 : index
    %c0_4 = arith.constant 0 : index
    %30 = vector.load %arg3[%c0, %c0_4] : memref<8x8xf32, #tpu.memory_space<vmem>>, vector<8x8xf32>
    %cst_5 = arith.constant dense<0.000000e+00> : vector<120x8xf32>
    %31 = tpu.matmul %29, %30, %cst_5 {dimension_numbers = #tpu.dot_dimension_numbers<[1], [0], [0], [1], [0, 0, 1, 1], [], []>} : vector<120x8xf32>, vector<8x8xf32>, vector<120x8xf32> -> vector<120x8xf32>
    %cst_6 = arith.constant dense<0.000000e+00> : vector<120x120xf32>
    %32 = tpu.matmul %31, %29, %cst_6 {dimension_numbers = #tpu.dot_dimension_numbers<[1], [1], [0], [0], [0, 0, 1, 0], [], []>} : vector<120x8xf32>, vector<120x8xf32>, vector<120x120xf32> -> vector<120x120xf32>
    %cst_7 = arith.constant 5.000000e-01 : f32
    %33 = vector.broadcast %cst_7 : f32 to vector<120x120xf32>
    %34 = arith.cmpf ogt, %32, %33 : vector<120x120xf32>
    %35 = arith.andi %15, %34 : vector<120x120xi1>
    %36 = vector.shape_cast %35 : vector<120x120xi1> to vector<1x120x120xi1>
    %37 = tpu.iota {dimensions = array<i32: 0>} : vector<40x120xi32>
    %38 = tpu.iota {dimensions = array<i32: 1>} : vector<40x120xi32>
    %c3_i32_8 = arith.constant 3 : i32
    %39 = vector.broadcast %c3_i32_8 : i32 to vector<40x120xi32>
    %40 = arith.muli %37, %39 : vector<40x120xi32>
    %41 = arith.cmpi sge, %38, %40 : vector<40x120xi32>
    %c1_i32_9 = arith.constant 1 : i32
    %42 = vector.broadcast %c1_i32_9 : i32 to vector<40x120xi32>
    %43 = arith.addi %37, %42 : vector<40x120xi32>
    %c3_i32_10 = arith.constant 3 : i32
    %44 = vector.broadcast %c3_i32_10 : i32 to vector<40x120xi32>
    %45 = arith.muli %43, %44 : vector<40x120xi32>
    %46 = arith.cmpi slt, %38, %45 : vector<40x120xi32>
    %47 = arith.andi %41, %46 : vector<40x120xi1>
    %cst_11 = arith.constant 0.333333343 : f32
    %cst_12 = arith.constant 0.000000e+00 : f32
    %48 = vector.broadcast %cst_11 : f32 to vector<40x120xf32>
    %49 = vector.broadcast %cst_12 : f32 to vector<40x120xf32>
    %50 = arith.select %47, %48, %49 : vector<40x120xi1>, vector<40x120xf32>
    %c0_13 = arith.constant 0 : index
    %c0_14 = arith.constant 0 : index
    %51 = vector.load %arg1[%c0_13, %c0_14] : memref<120x8xf32, #tpu.memory_space<vmem>>, vector<120x8xf32>
    %c0_15 = arith.constant 0 : index
    %c0_16 = arith.constant 0 : index
    %52 = vector.load %arg4[%c0_15, %c0_16] : memref<8x64xf32, #tpu.memory_space<vmem>>, vector<8x64xf32>
    %cst_17 = arith.constant dense<0.000000e+00> : vector<120x64xf32>
    %53 = tpu.matmul %51, %52, %cst_17 {dimension_numbers = #tpu.dot_dimension_numbers<[1], [0], [0], [1], [0, 0, 1, 1], [], []>} : vector<120x8xf32>, vector<8x64xf32>, vector<120x64xf32> -> vector<120x64xf32>
    %c0_18 = arith.constant 0 : index
    %c0_19 = arith.constant 0 : index
    %54 = vector.load %arg5[%c0_18, %c0_19] : memref<8x64xf32, #tpu.memory_space<vmem>>, vector<8x64xf32>
    %cst_20 = arith.constant dense<0.000000e+00> : vector<8x120xf32>
    %55 = tpu.matmul %54, %53, %cst_20 {dimension_numbers = #tpu.dot_dimension_numbers<[1], [1], [0], [0], [0, 0, 1, 0], [], []>} : vector<8x64xf32>, vector<120x64xf32>, vector<8x120xf32> -> vector<8x120xf32>
    %56 = vector.extract_strided_slice %55 {offsets = [0, 0], sizes = [4, 120], strides = [1, 1]} : vector<8x120xf32> to vector<4x120xf32>
    %57 = vector.extract_strided_slice %55 {offsets = [4, 0], sizes = [4, 120], strides = [1, 1]} : vector<8x120xf32> to vector<4x120xf32>
    %58 = vector.shape_cast %57 : vector<4x120xf32> to vector<4x120x1xf32>
    %59 = vector.shape_cast %56 : vector<4x120xf32> to vector<4x1x120xf32>
    %60 = vector.broadcast %58 : vector<4x120x1xf32> to vector<4x120x120xf32>
    %61 = vector.broadcast %59 : vector<4x1x120xf32> to vector<4x120x120xf32>
    %62 = arith.addf %60, %61 : vector<4x120x120xf32>
    %cst_21 = arith.constant 0.000000e+00 : f32
    %63 = vector.broadcast %cst_21 : f32 to vector<4x120x120xf32>
    %64 = arith.cmpf ogt, %62, %63 : vector<4x120x120xf32>
    %cst_22 = arith.constant 2.000000e-01 : f32
    %65 = vector.broadcast %cst_22 : f32 to vector<4x120x120xf32>
    %66 = arith.mulf %65, %62 : vector<4x120x120xf32>
    %67 = arith.select %64, %62, %66 : vector<4x120x120xi1>, vector<4x120x120xf32>
    %cst_23 = arith.constant -1.000000e+30 : f32
    %68 = vector.shape_cast %36 : vector<1x120x120xi1> to vector<1x120x120xi1>
    %69 = vector.broadcast %68 : vector<1x120x120xi1> to vector<4x120x120xi1>
    %70 = vector.broadcast %cst_23 : f32 to vector<4x120x120xf32>
    %71 = arith.select %69, %67, %70 : vector<4x120x120xi1>, vector<4x120x120xf32>
    %cst_24 = arith.constant dense<0xFF800000> : vector<4x120xf32>
    %72 = vector.multi_reduction <maximumf>, %71, %cst_24 [2] : vector<4x120x120xf32> to vector<4x120xf32>
    %73 = vector.shape_cast %72 : vector<4x120xf32> to vector<4x120x1xf32>
    %74 = vector.broadcast %73 : vector<4x120x1xf32> to vector<4x120x120xf32>
    %75 = arith.subf %71, %74 : vector<4x120x120xf32>
    %76 = math.exp %75 : vector<4x120x120xf32>
    %cst_25 = arith.constant dense<0.000000e+00> : vector<4x120xf32>
    %77 = vector.multi_reduction <add>, %76, %cst_25 [2] : vector<4x120x120xf32> to vector<4x120xf32>
    %78 = vector.shape_cast %77 : vector<4x120xf32> to vector<4x120x1xf32>
    %cst_26 = arith.constant 1.000000e-30 : f32
    %79 = vector.broadcast %cst_26 : f32 to vector<4x120x1xf32>
    %80 = arith.maximumf %78, %79 : vector<4x120x1xf32>
    %81 = vector.broadcast %80 : vector<4x120x1xf32> to vector<4x120x120xf32>
    %82 = arith.divf %76, %81 : vector<4x120x120xf32>
    %83 = vector.extract_strided_slice %82 {offsets = [0, 0, 0], sizes = [1, 120, 120], strides = [1, 1, 1]} : vector<4x120x120xf32> to vector<1x120x120xf32>
    %84 = vector.shape_cast %83 : vector<1x120x120xf32> to vector<120x120xf32>
    %85 = vector.extract_strided_slice %53 {offsets = [0, 0], sizes = [120, 16], strides = [1, 1]} : vector<120x64xf32> to vector<120x16xf32>
    %cst_27 = arith.constant dense<0.000000e+00> : vector<120x16xf32>
    %86 = tpu.matmul %84, %85, %cst_27 {dimension_numbers = #tpu.dot_dimension_numbers<[1], [0], [0], [1], [0, 0, 1, 1], [], []>} : vector<120x120xf32>, vector<120x16xf32>, vector<120x16xf32> -> vector<120x16xf32>
    %87 = vector.extract_strided_slice %82 {offsets = [1, 0, 0], sizes = [1, 120, 120], strides = [1, 1, 1]} : vector<4x120x120xf32> to vector<1x120x120xf32>
    %88 = vector.shape_cast %87 : vector<1x120x120xf32> to vector<120x120xf32>
    %89 = vector.extract_strided_slice %53 {offsets = [0, 16], sizes = [120, 16], strides = [1, 1]} : vector<120x64xf32> to vector<120x16xf32>
    %cst_28 = arith.constant dense<0.000000e+00> : vector<120x16xf32>
    %90 = tpu.matmul %88, %89, %cst_28 {dimension_numbers = #tpu.dot_dimension_numbers<[1], [0], [0], [1], [0, 0, 1, 1], [], []>} : vector<120x120xf32>, vector<120x16xf32>, vector<120x16xf32> -> vector<120x16xf32>
    %91 = vector.extract_strided_slice %82 {offsets = [2, 0, 0], sizes = [1, 120, 120], strides = [1, 1, 1]} : vector<4x120x120xf32> to vector<1x120x120xf32>
    %92 = vector.shape_cast %91 : vector<1x120x120xf32> to vector<120x120xf32>
    %93 = vector.extract_strided_slice %53 {offsets = [0, 32], sizes = [120, 16], strides = [1, 1]} : vector<120x64xf32> to vector<120x16xf32>
    %cst_29 = arith.constant dense<0.000000e+00> : vector<120x16xf32>
    %94 = tpu.matmul %92, %93, %cst_29 {dimension_numbers = #tpu.dot_dimension_numbers<[1], [0], [0], [1], [0, 0, 1, 1], [], []>} : vector<120x120xf32>, vector<120x16xf32>, vector<120x16xf32> -> vector<120x16xf32>
    %95 = vector.extract_strided_slice %82 {offsets = [3, 0, 0], sizes = [1, 120, 120], strides = [1, 1, 1]} : vector<4x120x120xf32> to vector<1x120x120xf32>
    %96 = vector.shape_cast %95 : vector<1x120x120xf32> to vector<120x120xf32>
    %97 = vector.extract_strided_slice %53 {offsets = [0, 48], sizes = [120, 16], strides = [1, 1]} : vector<120x64xf32> to vector<120x16xf32>
    %cst_30 = arith.constant dense<0.000000e+00> : vector<120x16xf32>
    %98 = tpu.matmul %96, %97, %cst_30 {dimension_numbers = #tpu.dot_dimension_numbers<[1], [0], [0], [1], [0, 0, 1, 1], [], []>} : vector<120x120xf32>, vector<120x16xf32>, vector<120x16xf32> -> vector<120x16xf32>
    %99 = tpu.concatenate %86, %90, %94, %98 in 1 : vector<120x16xf32>, vector<120x16xf32>, vector<120x16xf32>, vector<120x16xf32> -> vector<120x64xf32>
    %c0_31 = arith.constant 0 : index
    %c0_32 = arith.constant 0 : index
    %100 = vector.load %arg6[%c0_31, %c0_32] : memref<1x64xf32, #tpu.memory_space<vmem>>, vector<1x64xf32>
    %101 = vector.broadcast %100 : vector<1x64xf32> to vector<120x64xf32>
    %102 = arith.addf %99, %101 : vector<120x64xf32>
    %cst_33 = arith.constant 0.000000e+00 : f32
    %103 = vector.broadcast %cst_33 : f32 to vector<120x64xf32>
    %104 = arith.cmpf ogt, %102, %103 : vector<120x64xf32>
    %cst_34 = arith.constant 0.000000e+00 : f32
    %105 = vector.broadcast %cst_34 : f32 to vector<120x64xf32>
    %106 = arith.minimumf %102, %105 : vector<120x64xf32>
    %107 = math.exp %106 : vector<120x64xf32>
    %cst_35 = arith.constant 1.000000e+00 : f32
    %108 = vector.broadcast %cst_35 : f32 to vector<120x64xf32>
    %109 = arith.subf %107, %108 : vector<120x64xf32>
    %110 = arith.select %104, %102, %109 : vector<120x64xi1>, vector<120x64xf32>
    %c0_36 = arith.constant 0 : index
    %c0_37 = arith.constant 0 : index
    %111 = vector.load %arg7[%c0_36, %c0_37] : memref<64x64xf32, #tpu.memory_space<vmem>>, vector<64x64xf32>
    %cst_38 = arith.constant dense<0.000000e+00> : vector<120x64xf32>
    %112 = tpu.matmul %110, %111, %cst_38 {dimension_numbers = #tpu.dot_dimension_numbers<[1], [0], [0], [1], [0, 0, 1, 1], [], []>} : vector<120x64xf32>, vector<64x64xf32>, vector<120x64xf32> -> vector<120x64xf32>
    %c0_39 = arith.constant 0 : index
    %c0_40 = arith.constant 0 : index
    %113 = vector.load %arg8[%c0_39, %c0_40] : memref<8x64xf32, #tpu.memory_space<vmem>>, vector<8x64xf32>
    %cst_41 = arith.constant dense<0.000000e+00> : vector<8x120xf32>
    %114 = tpu.matmul %113, %112, %cst_41 {dimension_numbers = #tpu.dot_dimension_numbers<[1], [1], [0], [0], [0, 0, 1, 0], [], []>} : vector<8x64xf32>, vector<120x64xf32>, vector<8x120xf32> -> vector<8x120xf32>
    %115 = vector.extract_strided_slice %114 {offsets = [0, 0], sizes = [4, 120], strides = [1, 1]} : vector<8x120xf32> to vector<4x120xf32>
    %116 = vector.extract_strided_slice %114 {offsets = [4, 0], sizes = [4, 120], strides = [1, 1]} : vector<8x120xf32> to vector<4x120xf32>
    %117 = vector.shape_cast %116 : vector<4x120xf32> to vector<4x120x1xf32>
    %118 = vector.shape_cast %115 : vector<4x120xf32> to vector<4x1x120xf32>
    %119 = vector.broadcast %117 : vector<4x120x1xf32> to vector<4x120x120xf32>
    %120 = vector.broadcast %118 : vector<4x1x120xf32> to vector<4x120x120xf32>
    %121 = arith.addf %119, %120 : vector<4x120x120xf32>
    %cst_42 = arith.constant 0.000000e+00 : f32
    %122 = vector.broadcast %cst_42 : f32 to vector<4x120x120xf32>
    %123 = arith.cmpf ogt, %121, %122 : vector<4x120x120xf32>
    %cst_43 = arith.constant 2.000000e-01 : f32
    %124 = vector.broadcast %cst_43 : f32 to vector<4x120x120xf32>
    %125 = arith.mulf %124, %121 : vector<4x120x120xf32>
    %126 = arith.select %123, %121, %125 : vector<4x120x120xi1>, vector<4x120x120xf32>
    %cst_44 = arith.constant -1.000000e+30 : f32
    %127 = vector.shape_cast %36 : vector<1x120x120xi1> to vector<1x120x120xi1>
    %128 = vector.broadcast %127 : vector<1x120x120xi1> to vector<4x120x120xi1>
    %129 = vector.broadcast %cst_44 : f32 to vector<4x120x120xf32>
    %130 = arith.select %128, %126, %129 : vector<4x120x120xi1>, vector<4x120x120xf32>
    %cst_45 = arith.constant dense<0xFF800000> : vector<4x120xf32>
    %131 = vector.multi_reduction <maximumf>, %130, %cst_45 [2] : vector<4x120x120xf32> to vector<4x120xf32>
    %132 = vector.shape_cast %131 : vector<4x120xf32> to vector<4x120x1xf32>
    %133 = vector.broadcast %132 : vector<4x120x1xf32> to vector<4x120x120xf32>
    %134 = arith.subf %130, %133 : vector<4x120x120xf32>
    %135 = math.exp %134 : vector<4x120x120xf32>
    %cst_46 = arith.constant dense<0.000000e+00> : vector<4x120xf32>
    %136 = vector.multi_reduction <add>, %135, %cst_46 [2] : vector<4x120x120xf32> to vector<4x120xf32>
    %137 = vector.shape_cast %136 : vector<4x120xf32> to vector<4x120x1xf32>
    %cst_47 = arith.constant 1.000000e-30 : f32
    %138 = vector.broadcast %cst_47 : f32 to vector<4x120x1xf32>
    %139 = arith.maximumf %137, %138 : vector<4x120x1xf32>
    %140 = vector.broadcast %139 : vector<4x120x1xf32> to vector<4x120x120xf32>
    %141 = arith.divf %135, %140 : vector<4x120x120xf32>
    %142 = vector.extract_strided_slice %141 {offsets = [0, 0, 0], sizes = [1, 120, 120], strides = [1, 1, 1]} : vector<4x120x120xf32> to vector<1x120x120xf32>
    %143 = vector.shape_cast %142 : vector<1x120x120xf32> to vector<120x120xf32>
    %144 = vector.extract_strided_slice %112 {offsets = [0, 0], sizes = [120, 16], strides = [1, 1]} : vector<120x64xf32> to vector<120x16xf32>
    %cst_48 = arith.constant dense<0.000000e+00> : vector<120x16xf32>
    %145 = tpu.matmul %143, %144, %cst_48 {dimension_numbers = #tpu.dot_dimension_numbers<[1], [0], [0], [1], [0, 0, 1, 1], [], []>} : vector<120x120xf32>, vector<120x16xf32>, vector<120x16xf32> -> vector<120x16xf32>
    %146 = vector.extract_strided_slice %141 {offsets = [1, 0, 0], sizes = [1, 120, 120], strides = [1, 1, 1]} : vector<4x120x120xf32> to vector<1x120x120xf32>
    %147 = vector.shape_cast %146 : vector<1x120x120xf32> to vector<120x120xf32>
    %148 = vector.extract_strided_slice %112 {offsets = [0, 16], sizes = [120, 16], strides = [1, 1]} : vector<120x64xf32> to vector<120x16xf32>
    %cst_49 = arith.constant dense<0.000000e+00> : vector<120x16xf32>
    %149 = tpu.matmul %147, %148, %cst_49 {dimension_numbers = #tpu.dot_dimension_numbers<[1], [0], [0], [1], [0, 0, 1, 1], [], []>} : vector<120x120xf32>, vector<120x16xf32>, vector<120x16xf32> -> vector<120x16xf32>
    %150 = vector.extract_strided_slice %141 {offsets = [2, 0, 0], sizes = [1, 120, 120], strides = [1, 1, 1]} : vector<4x120x120xf32> to vector<1x120x120xf32>
    %151 = vector.shape_cast %150 : vector<1x120x120xf32> to vector<120x120xf32>
    %152 = vector.extract_strided_slice %112 {offsets = [0, 32], sizes = [120, 16], strides = [1, 1]} : vector<120x64xf32> to vector<120x16xf32>
    %cst_50 = arith.constant dense<0.000000e+00> : vector<120x16xf32>
    %153 = tpu.matmul %151, %152, %cst_50 {dimension_numbers = #tpu.dot_dimension_numbers<[1], [0], [0], [1], [0, 0, 1, 1], [], []>} : vector<120x120xf32>, vector<120x16xf32>, vector<120x16xf32> -> vector<120x16xf32>
    %154 = vector.extract_strided_slice %141 {offsets = [3, 0, 0], sizes = [1, 120, 120], strides = [1, 1, 1]} : vector<4x120x120xf32> to vector<1x120x120xf32>
    %155 = vector.shape_cast %154 : vector<1x120x120xf32> to vector<120x120xf32>
    %156 = vector.extract_strided_slice %112 {offsets = [0, 48], sizes = [120, 16], strides = [1, 1]} : vector<120x64xf32> to vector<120x16xf32>
    %cst_51 = arith.constant dense<0.000000e+00> : vector<120x16xf32>
    %157 = tpu.matmul %155, %156, %cst_51 {dimension_numbers = #tpu.dot_dimension_numbers<[1], [0], [0], [1], [0, 0, 1, 1], [], []>} : vector<120x120xf32>, vector<120x16xf32>, vector<120x16xf32> -> vector<120x16xf32>
    %158 = tpu.concatenate %145, %149, %153, %157 in 1 : vector<120x16xf32>, vector<120x16xf32>, vector<120x16xf32>, vector<120x16xf32> -> vector<120x64xf32>
    %c0_52 = arith.constant 0 : index
    %c0_53 = arith.constant 0 : index
    %159 = vector.load %arg9[%c0_52, %c0_53] : memref<1x64xf32, #tpu.memory_space<vmem>>, vector<1x64xf32>
    %160 = vector.broadcast %159 : vector<1x64xf32> to vector<120x64xf32>
    %161 = arith.addf %158, %160 : vector<120x64xf32>
    %cst_54 = arith.constant 0.000000e+00 : f32
    %162 = vector.broadcast %cst_54 : f32 to vector<120x64xf32>
    %163 = arith.cmpf ogt, %161, %162 : vector<120x64xf32>
    %cst_55 = arith.constant 0.000000e+00 : f32
    %164 = vector.broadcast %cst_55 : f32 to vector<120x64xf32>
    %165 = arith.minimumf %161, %164 : vector<120x64xf32>
    %166 = math.exp %165 : vector<120x64xf32>
    %cst_56 = arith.constant 1.000000e+00 : f32
    %167 = vector.broadcast %cst_56 : f32 to vector<120x64xf32>
    %168 = arith.subf %166, %167 : vector<120x64xf32>
    %169 = arith.select %163, %161, %168 : vector<120x64xi1>, vector<120x64xf32>
    %cst_57 = arith.constant dense<0.000000e+00> : vector<40x64xf32>
    %170 = tpu.matmul %50, %169, %cst_57 {dimension_numbers = #tpu.dot_dimension_numbers<[1], [0], [0], [1], [0, 0, 1, 1], [], []>} : vector<40x120xf32>, vector<120x64xf32>, vector<40x64xf32> -> vector<40x64xf32>
    %c0_58 = arith.constant 0 : index
    %c0_59 = arith.constant 0 : index
    %171 = vector.load %arg10[%c0_58, %c0_59] : memref<64x16xf32, #tpu.memory_space<vmem>>, vector<64x16xf32>
    %cst_60 = arith.constant dense<0.000000e+00> : vector<40x16xf32>
    %172 = tpu.matmul %170, %171, %cst_60 {dimension_numbers = #tpu.dot_dimension_numbers<[1], [0], [0], [1], [0, 0, 1, 1], [], []>} : vector<40x64xf32>, vector<64x16xf32>, vector<40x16xf32> -> vector<40x16xf32>
    %c0_61 = arith.constant 0 : index
    %c0_62 = arith.constant 0 : index
    %173 = vector.load %arg11[%c0_61, %c0_62] : memref<1x16xf32, #tpu.memory_space<vmem>>, vector<1x16xf32>
    %174 = vector.broadcast %173 : vector<1x16xf32> to vector<40x16xf32>
    %175 = arith.addf %172, %174 : vector<40x16xf32>
    %c0_63 = arith.constant 0 : index
    %c0_64 = arith.constant 0 : index
    %176 = vector.load %arg2[%c0_63, %c0_64] : memref<40x1xf32, #tpu.memory_space<vmem>>, vector<40x1xf32>
    %c0_65 = arith.constant 0 : index
    %c0_66 = arith.constant 0 : index
    %177 = vector.load %arg12[%c0_65, %c0_66] : memref<1x16xf32, #tpu.memory_space<vmem>>, vector<1x16xf32>
    %178 = vector.broadcast %176 : vector<40x1xf32> to vector<40x16xf32>
    %179 = vector.broadcast %177 : vector<1x16xf32> to vector<40x16xf32>
    %180 = arith.mulf %178, %179 : vector<40x16xf32>
    %c0_67 = arith.constant 0 : index
    %c0_68 = arith.constant 0 : index
    %181 = vector.load %arg13[%c0_67, %c0_68] : memref<1x16xf32, #tpu.memory_space<vmem>>, vector<1x16xf32>
    %182 = vector.broadcast %181 : vector<1x16xf32> to vector<40x16xf32>
    %183 = arith.addf %180, %182 : vector<40x16xf32>
    %cst_69 = arith.constant 0.000000e+00 : f32
    %184 = vector.broadcast %cst_69 : f32 to vector<40x16xf32>
    %185 = arith.maximumf %183, %184 : vector<40x16xf32>
    %186 = arith.addf %175, %185 : vector<40x16xf32>
    %c0_70 = arith.constant 0 : index
    %c0_71 = arith.constant 0 : index
    %187 = vector.load %arg14[%c0_70, %c0_71] : memref<16x128xf32, #tpu.memory_space<vmem>>, vector<16x128xf32>
    %cst_72 = arith.constant dense<0.000000e+00> : vector<40x128xf32>
    %188 = tpu.matmul %186, %187, %cst_72 {dimension_numbers = #tpu.dot_dimension_numbers<[1], [0], [0], [1], [0, 0, 1, 1], [], []>} : vector<40x16xf32>, vector<16x128xf32>, vector<40x128xf32> -> vector<40x128xf32>
    %c0_73 = arith.constant 0 : index
    %c0_74 = arith.constant 0 : index
    %189 = vector.load %arg15[%c0_73, %c0_74] : memref<1x128xf32, #tpu.memory_space<vmem>>, vector<1x128xf32>
    %190 = vector.broadcast %189 : vector<1x128xf32> to vector<40x128xf32>
    %191 = arith.addf %188, %190 : vector<40x128xf32>
    %c0_75 = arith.constant 0 : index
    %c0_76 = arith.constant 0 : index
    %192 = vector.load %arg16[%c0_75, %c0_76] : memref<40x128xf32, #tpu.memory_space<vmem>>, vector<40x128xf32>
    tpu.vector_store %arg16[%c0_75, %c0_76], %191 {strides = array<i32>} : memref<40x128xf32, #tpu.memory_space<vmem>>, vector<40x128xf32>,
    return
  }
  func.func @transform_0(%arg0: i32) -> (i32, i32) {
    %c0_i32 = arith.constant 0 : i32
    %c0_i32_0 = arith.constant 0 : i32
    return %arg0, %c0_i32 : i32, i32
  }
  func.func @transform_1(%arg0: i32) -> (i32, i32) {
    %c0_i32 = arith.constant 0 : i32
    %c0_i32_0 = arith.constant 0 : i32
    return %arg0, %c0_i32 : i32, i32
  }
  func.func @transform_2(%arg0: i32) -> (i32, i32) {
    %c0_i32 = arith.constant 0 : i32
    %c0_i32_0 = arith.constant 0 : i32
    %c0_i32_1 = arith.constant 0 : i32
    return %c0_i32, %c0_i32_0 : i32, i32
  }
  func.func @transform_3(%arg0: i32) -> (i32, i32) {
    %c0_i32 = arith.constant 0 : i32
    %c0_i32_0 = arith.constant 0 : i32
    %c0_i32_1 = arith.constant 0 : i32
    return %c0_i32, %c0_i32_0 : i32, i32
  }
  func.func @transform_4(%arg0: i32) -> (i32, i32) {
    %c0_i32 = arith.constant 0 : i32
    %c0_i32_0 = arith.constant 0 : i32
    %c0_i32_1 = arith.constant 0 : i32
    return %c0_i32, %c0_i32_0 : i32, i32
  }
  func.func @transform_5(%arg0: i32) -> (i32, i32) {
    %c0_i32 = arith.constant 0 : i32
    %c0_i32_0 = arith.constant 0 : i32
    %c0_i32_1 = arith.constant 0 : i32
    return %c0_i32, %c0_i32_0 : i32, i32
  }
  func.func @transform_6(%arg0: i32) -> (i32, i32) {
    %c0_i32 = arith.constant 0 : i32
    %c0_i32_0 = arith.constant 0 : i32
    %c0_i32_1 = arith.constant 0 : i32
    return %c0_i32, %c0_i32_0 : i32, i32
  }
  func.func @transform_7(%arg0: i32) -> (i32, i32) {
    %c0_i32 = arith.constant 0 : i32
    %c0_i32_0 = arith.constant 0 : i32
    %c0_i32_1 = arith.constant 0 : i32
    return %c0_i32, %c0_i32_0 : i32, i32
  }
  func.func @transform_8(%arg0: i32) -> (i32, i32) {
    %c0_i32 = arith.constant 0 : i32
    %c0_i32_0 = arith.constant 0 : i32
    %c0_i32_1 = arith.constant 0 : i32
    return %c0_i32, %c0_i32_0 : i32, i32
  }
  func.func @transform_9(%arg0: i32) -> (i32, i32) {
    %c0_i32 = arith.constant 0 : i32
    %c0_i32_0 = arith.constant 0 : i32
    %c0_i32_1 = arith.constant 0 : i32
    return %c0_i32, %c0_i32_0 : i32, i32
  }
  func.func @transform_10(%arg0: i32) -> (i32, i32) {
    %c0_i32 = arith.constant 0 : i32
    %c0_i32_0 = arith.constant 0 : i32
    %c0_i32_1 = arith.constant 0 : i32
    return %c0_i32, %c0_i32_0 : i32, i32
  }
  func.func @transform_11(%arg0: i32) -> (i32, i32) {
    %c0_i32 = arith.constant 0 : i32
    %c0_i32_0 = arith.constant 0 : i32
    %c0_i32_1 = arith.constant 0 : i32
    return %c0_i32, %c0_i32_0 : i32, i32
  }
  func.func @transform_12(%arg0: i32) -> (i32, i32) {
    %c0_i32 = arith.constant 0 : i32
    %c0_i32_0 = arith.constant 0 : i32
    %c0_i32_1 = arith.constant 0 : i32
    return %c0_i32, %c0_i32_0 : i32, i32
  }
  func.func @transform_13(%arg0: i32) -> (i32, i32) {
    %c0_i32 = arith.constant 0 : i32
    %c0_i32_0 = arith.constant 0 : i32
    %c0_i32_1 = arith.constant 0 : i32
    return %c0_i32, %c0_i32_0 : i32, i32
  }
  func.func @transform_14(%arg0: i32) -> (i32, i32) {
    %c0_i32 = arith.constant 0 : i32
    %c0_i32_0 = arith.constant 0 : i32
    %c0_i32_1 = arith.constant 0 : i32
    return %c0_i32, %c0_i32_0 : i32, i32
  }
  func.func @transform_15(%arg0: i32) -> (i32, i32) {
    %c0_i32 = arith.constant 0 : i32
    %c0_i32_0 = arith.constant 0 : i32
    return %arg0, %c0_i32 : i32, i32
  }
}

</mosaic_0001>

<bundles_post_ra>
// kernel: gnn_forward.1
= control target key start
LH: loop header
LB: loop body
LE: loop exit
PB: predicated region body
PF: predicated region fallthrough
CT: control target
= control target key end

     0   :  { %s10888_s18 = smov 0   ;;  %s15152_s0 = inlined_call_operand.vmem [shape: f32[240,8], index: 0, kind: input, shape index: {}]   ;;  %s15153_s1 = inlined_call_operand.vmem [shape: f32[80,1], index: 1, kind: input, shape index: {}]   ;;  %s15154_s2 = inlined_call_operand.vmem [shape: f32[8,8], index: 2, kind: input, shape index: {}]   ;;  %s15155_s3 = inlined_call_operand.vmem [shape: f32[8,64], index: 3, kind: input, shape index: {}]   ;;  %s15156_s4 = inlined_call_operand.vmem [shape: f32[8,64], index: 4, kind: input, shape index: {}]   ;;  %s15157_s5 = inlined_call_operand.vmem [shape: f32[1,64], index: 5, kind: input, shape index: {}]   ;;  %s15158_s6 = inlined_call_operand.vmem [shape: f32[64,64], index: 6, kind: input, shape index: {}]   ;;  %s15159_s7 = inlined_call_operand.vmem [shape: f32[8,64], index: 7, kind: input, shape index: {}]   ;;  %s15160_s8 = inlined_call_operand.vmem [shape: f32[1,64], index: 8, kind: input, shape index: {}]   ;;  %s15161_s9 = inlined_call_operand.vmem [shape: f32[64,16], index: 9, kind: input, shape index: {}]   ;;  %s15162_s10 = inlined_call_operand.vmem [shape: f32[1,16], index: 10, kind: input, shape index: {}]   ;;  %s15163_s11 = inlined_call_operand.vmem [shape: f32[1,16], index: 11, kind: input, shape index: {}]   ;;  %s15164_s12 = inlined_call_operand.vmem [shape: f32[1,16], index: 12, kind: input, shape index: {}]   ;;  %s15165_s13 = inlined_call_operand.vmem [shape: f32[16,128], index: 13, kind: input, shape index: {}]   ;;  %s15166_s14 = inlined_call_operand.vmem [shape: f32[1,128], index: 14, kind: input, shape index: {}]   ;;  %s15167_s15 = inlined_call_operand.vmem [shape: f32[80,128], index: 15, kind: output, shape index: {}]  }
   0x1 LB: > { %s15307_s19 = sadd.s32 4294967295, %s10795_s18   ;;  %p7755_p0 = scmp.ge.s32.totalorder %s10795_s18, 1  ;;  %s10795_s18 = sphi %s10888_s18, %s25_s18  }
   0x2   : > { %p449_p1 = scmp.lt.s32.totalorder %s10795_s18, 3 }
   0x4   : > { %p450_p2 = pnand %p7755_p0, %p449_p1 }
   0x6   : > { %453 = sbr.rel (%p450_p2) target bundleno = 4846 (0x12ee), region = 80 }
   0xd   : > { %v520_v0 = vlaneseq  ;;  %v15187_v1 = vmov 0.0|0.0   ;;  %vm15169_vm0 = vmmov 0   ;;  %v15189_v2 = vmov 0.0   ;;  %v1118_v52 = vld [vmem:[%s15154_s2] sm:$0xff]  ;;  %s502_s24 = smul.u32 15, %s15307_s19  ;;  %s10801_s29 = smov 96  }
   0xe   : > { %9710 = vmatprep.subr.bf16.mxu1 %v15187_v1  ;;  %8646 = vmatprep.mubr.msk.f32.mxu1 %vm15169_vm0, %v15189_v2  ;;  %vm616_vm6 = vcmask 326656   ;;  %v10800_v49 = vmov 0   ;;  %s10802_s30 = smov 112   ;;  %s10803_s16 = smov 80  }
   0xf   : > { %v10899_v3 = vshrl.u32 %v520_v0, 7  ;;  %v10901_v4 = vand.u32 127, %v520_v0  ;;  %9682 = vmatprep.subr.bf16.mxu0 %v15187_v1  ;;  %8591 = vmatprep.mubr.msk.f32.mxu0 %vm15169_vm0, %v15189_v2  ;;  %p503_p3 = scmp.lt.s32.totalorder %s502_s24, 29  ;;  %s10805_s21 = smov 16  }
  0x10   : > { %10037 = vset.pattern.permute.xlu0 %v10800_v49  ;;  %10038 = vset.pattern.permute.xlu1 %v10800_v49  ;;  %s10806_s22 = smov 32   ;;  %s10807_s19 = smov 48  }
  0x11   : > { %15378 = vst [vmem:[#allocation2_spill] sm:$0xff] %v10899_v3  ;;  %15379 = vst [vmem:[#allocation3_spill] sm:$0xff] %v10901_v4  ;;  %v10907_v5 = vadd.s32 8, %v10899_v3  ;;  %v15182_v6 = vmul.u32 3, %v10899_v3  ;;  %v10911_v7 = vadd.s32 16, %v10899_v3  ;;  %v10914_v8 = vadd.s32 24, %v10899_v3 }
  0x12   : > { %v554_v9 = vadd.s32 1, %v10901_v4  ;;  %v10925_v15 = vadd.s32 32, %v10899_v3  ;;  %v10928_v16 = vmul.u32 3, %v10901_v4  ;;  %v10980_v27 = vadd.s32 40, %v10899_v3  ;;  %s16074_s24 = smov (!%p503_p3, %s502_s24), 29 }
  0x13   : > { %15380 = vst [vmem:[#allocation4_spill] sm:$0xff] %v10907_v5  ;;  %15381 = vst [vmem:[#allocation5_spill] sm:$0xff] %v10911_v7  ;;  %v15181_v10 = vmul.u32 3, %v10907_v5  ;;  %v822_v11 = vcvt.s32.f32 %v15182_v6  ;;  %v15180_v12 = vmul.u32 3, %v10911_v7  ;;  %v10994_v29 = vadd.s32 48, %v10899_v3  ;;  %s7756_s25 = sshll.u32 %s16074_s24, 3 }
  0x14   : > { %15382 = vst [vmem:[#allocation6_spill] sm:$0xff] %v10914_v8  ;;  %v15179_v13 = vmul.u32 3, %v10914_v8  ;;  %15383 = vst [vmem:[#allocation7_spill] sm:$0xff] %v10925_v15  ;;  %v10930_v17 = vmul.u32 3, %v554_v9  ;;  %vm539_vm1 = vcmp.ge.s32.totalorder %v10899_v3, %v10928_v16  ;;  %vm540_vm4 = vcmp.ge.s32.totalorder %v10907_v5, %v10928_v16  ;;  %s11369_s28 = scalar_lea.vmem %s15152_s0, %s7756_s25 }
  0x15   : > { %v823_v14 = vcvt.s32.f32 %v15181_v10  ;;  %v824_v18 = vcvt.s32.f32 %v15180_v12  ;;  %v15178_v22 = vmul.u32 3, %v10925_v15  ;;  %vm541_vm8 = vcmp.ge.s32.totalorder %v10911_v7, %v10928_v16 }
  0x16   : > { %v825_v19 = vcvt.s32.f32 %v15179_v13  ;;  %vm556_vm2 = vcmp.lt.s32.totalorder %v10899_v3, %v10930_v17  ;;  %vm557_vm5 = vcmp.lt.s32.totalorder %v10907_v5, %v10930_v17  ;;  %vm558_vm9 = vcmp.lt.s32.totalorder %v10911_v7, %v10930_v17 }
  0x17   : > { %v9711_v20 = vpack.c.bf16 %v823_v14, %v822_v11  ;;  %vm571_vm3 = vmand %vm539_vm1, %vm556_vm2  ;;  %v826_v23 = vcvt.s32.f32 %v15178_v22  ;;  %vm542_vm11 = vcmp.ge.s32.totalorder %v10914_v8, %v10928_v16  ;;  %vm559_vm12 = vcmp.lt.s32.totalorder %v10914_v8, %v10930_v17 }
  0x18   : > { %v9714_v21 = vpack.c.bf16 %v825_v19, %v824_v18  ;;  %v10950_v24 = vsel %vm571_vm3, 1.0, %v15189_v2  ;;  %vm572_vm7 = vmand %vm540_vm4, %vm557_vm5  ;;  %vm543_vm14 = vcmp.ge.s32.totalorder %v10925_v15, %v10928_v16  ;;  %vm560_vm15 = vcmp.lt.s32.totalorder %v10925_v15, %v10930_v17 }
  0x19   : > { %9712 = vmatpush3.bf16.msra.mxu1 %v9711_v20  ;;  %v10962_v25 = vsel %vm572_vm7, 1.0, %v15189_v2  ;;  %vm573_vm10 = vmand %vm541_vm8, %vm558_vm9  ;;  %vm544_vm2 = vcmp.ge.s32.totalorder %v10980_v27, %v10928_v16  ;;  %vm561_vm3 = vcmp.lt.s32.totalorder %v10980_v27, %v10930_v17  ;;  %vm545_vm5 = vcmp.ge.s32.totalorder %v10994_v29, %v10928_v16 }
  0x1a   : > { %9713 = vmatprep.subr.bf16.mxu1 %v15187_v1  ;;  %v10973_v26 = vsel %vm573_vm10, 1.0, %v15189_v2  ;;  %vm574_vm13 = vmand %vm542_vm11, %vm559_vm12  ;;  %vm562_vm7 = vcmp.lt.s32.totalorder %v10994_v29, %v10930_v17  ;;  %v11008_v31 = vadd.s32 56, %v10899_v3  ;;  %v11022_v33 = vadd.s32 64, %v10899_v3 }
  0x1b   : > { %v10987_v28 = vsel %vm574_vm13, 1.0, %v15189_v2  ;;  %vm575_vm1 = vmand %vm543_vm14, %vm560_vm15  ;;  %v11036_v35 = vadd.s32 72, %v10899_v3  ;;  %v11050_v37 = vadd.s32 80, %v10899_v3  ;;  %v11064_v39 = vadd.s32 88, %v10899_v3 }
  0x1c   : > { %v11001_v30 = vsel %vm575_vm1, 1.0, %v15189_v2  ;;  %vm576_vm4 = vmand %vm544_vm2, %vm561_vm3  ;;  %vm546_vm9 = vcmp.ge.s32.totalorder %v11008_v31, %v10928_v16  ;;  %vm563_vm10 = vcmp.lt.s32.totalorder %v11008_v31, %v10930_v17  ;;  %vm547_vm12 = vcmp.ge.s32.totalorder %v11022_v33, %v10928_v16 }
  0x1d   : > { %9715 = vmatpush3.bf16.msra.mxu1 %v9714_v21  ;;  %v11015_v32 = vsel %vm576_vm4, 1.0, %v15189_v2  ;;  %vm577_vm8 = vmand %vm545_vm5, %vm562_vm7  ;;  %vm564_vm13 = vcmp.lt.s32.totalorder %v11022_v33, %v10930_v17  ;;  %vm548_vm15 = vcmp.ge.s32.totalorder %v11036_v35, %v10928_v16  ;;  %vm565_vm1 = vcmp.lt.s32.totalorder %v11036_v35, %v10930_v17 }
  0x1e   : > { %8644 = vmatprep.subr.mxu1 %v15189_v2  ;;  %v11029_v34 = vsel %vm577_vm8, 1.0, %v15189_v2  ;;  %vm578_vm11 = vmand %vm546_vm9, %vm563_vm10  ;;  %vm549_vm3 = vcmp.ge.s32.totalorder %v11050_v37, %v10928_v16  ;;  %vm566_vm4 = vcmp.lt.s32.totalorder %v11050_v37, %v10930_v17  ;;  %vm550_vm7 = vcmp.ge.s32.totalorder %v11064_v39, %v10928_v16 }
  0x1f   : > { %v11043_v36 = vsel %vm578_vm11, 1.0, %v15189_v2  ;;  %vm579_vm14 = vmand %vm547_vm12, %vm564_vm13  ;;  %vm567_vm8 = vcmp.lt.s32.totalorder %v11064_v39, %v10930_v17  ;;  %v11078_v41 = vadd.s32 96, %v10899_v3  ;;  %v11092_v43 = vadd.s32 104, %v10899_v3 }
  0x20   : > { %v11057_v38 = vsel %vm579_vm14, 1.0, %v15189_v2  ;;  %vm580_vm2 = vmand %vm548_vm15, %vm565_vm1  ;;  %v11106_v45 = vadd.s32 112, %v10899_v3  ;;  %v9683_v50 = vpack.c.bf16 %v10962_v25, %v10950_v24  ;;  %v9687_v53 = vpack.c.bf16 %v10987_v28, %v10973_v26 }
  0x21   : > { %8645 = vmatpush3.msra.mxu1 %v826_v23  ;;  %v11071_v40 = vsel %vm580_vm2, 1.0, %v15189_v2  ;;  %vm581_vm5 = vmand %vm549_vm3, %vm566_vm4  ;;  %vm551_vm10 = vcmp.ge.s32.totalorder %v11078_v41, %v10928_v16  ;;  %vm568_vm11 = vcmp.lt.s32.totalorder %v11078_v41, %v10930_v17  ;;  %vm552_vm13 = vcmp.ge.s32.totalorder %v11092_v43, %v10928_v16 }
  0x22   : > { %8647 = vmatmul.mubr.msk.f32.vlgmr.msra.gmra.mrb[0].mxu1 %vm616_vm6, %v10950_v24  ;;  %8691 = vmatprep.subr.mxu1 %v15189_v2  ;;  %v11085_v42 = vsel %vm581_vm5, 1.0, %v15189_v2  ;;  %vm582_vm9 = vmand %vm550_vm7, %vm567_vm8  ;;  %vm569_vm14 = vcmp.lt.s32.totalorder %v11092_v43, %v10930_v17  ;;  %vm553_vm1 = vcmp.ge.s32.totalorder %v11106_v45, %v10928_v16  ;;  %vm570_vm2 = vcmp.lt.s32.totalorder %v11106_v45, %v10930_v17 }
  0x23   : > { %8649 = vmatprep.mubr.msk.f32.mxu1 %vm15169_vm0, %v15189_v2  ;;  %v11099_v44 = vsel %vm582_vm9, 1.0, %v15189_v2  ;;  %vm583_vm12 = vmand %vm551_vm10, %vm568_vm11  ;;  %8692 = vmatpush3.msra.mxu1 %v1118_v52  ;;  %v9691_v54 = vpack.c.bf16 %v11015_v32, %v11001_v30  ;;  %v9695_v55 = vpack.c.bf16 %v11043_v36, %v11029_v34  ;;  %v9699_v56 = vpack.c.bf16 %v11071_v40, %v11057_v38 }
  0x24   : > { %v11113_v46 = vsel %vm583_vm12, 1.0, %v15189_v2  ;;  %vm584_vm15 = vmand %vm552_vm13, %vm569_vm14  ;;  %8813 = vmatprep.subr.mxu1 %v15189_v2  ;;  %v9703_v57 = vpack.c.bf16 %v11099_v44, %v11085_v42  ;;  %v967_v59 = vcvt.s32.f32 %v10899_v3  ;;  %v968_v63 = vcvt.s32.f32 %v10907_v5 }
  0x25   : > { %v11124_v47 = vsel %vm584_vm15, 1.0, %v15189_v2  ;;  %vm585_vm3 = vmand %vm553_vm1, %vm570_vm2  ;;  %v969_v14 = vcvt.s32.f32 %v10911_v7  ;;  %v970_v19 = vcvt.s32.f32 %v10914_v8  ;;  %v973_v51 = vcvt.s32.f32 %v10994_v29 }
  0x26   : > { %8650 = vmatmul.mubr.msk.f32.gmra.mrb[2].mxu1 %vm616_vm6, %v10962_v25  ;;  %v11131_v48 = vsel %vm585_vm3, 1.0, %v15189_v2  ;;  %vm11141_vm4 = vmpackc.low %vm616_vm6, %vm616_vm6  ;;  %v9707_v58 = vpack.c.bf16 %v11124_v47, %v11113_v46 }
  0x27   : > { %8652 = vmatprep.mubr.msk.f32.mxu1 %vm15169_vm0, %v15189_v2  ;;  %9685 = vmatpush3.bf16.xpose.msk.msra.mxu0 %vm11141_vm4, %v9683_v50 }
  0x28   : > { %9686 = vmatprep.subr.bf16.mxu0 %v15187_v1 }
  0x2a   : > { %8653 = vmatmul.mubr.msk.f32.gmra.mrb[4].mxu1 %vm616_vm6, %v10973_v26 }
  0x2b   : > { %8655 = vmatprep.mubr.msk.f32.mxu1 %vm15169_vm0, %v15189_v2 }
  0x2e   : > { %8656 = vmatmul.mubr.msk.f32.gmra.mrb[6].mxu1 %vm616_vm6, %v10987_v28 }
  0x2f   : > { %8658 = vmatprep.mubr.msk.f32.mxu1 %vm15169_vm0, %v15189_v2  ;;  %9689 = vmatpush3.bf16.xpose.msk.msra.mxu0 %vm11141_vm4, %v9687_v53  ;;  %v974_v53 = vcvt.s32.f32 %v11008_v31 }
  0x30   : > { %9690 = vmatprep.subr.bf16.mxu0 %v15187_v1 }
  0x32   : > { %8659 = vmatmul.mubr.msk.f32.gmra.mrb[8].mxu1 %vm616_vm6, %v11001_v30 }
  0x33   : > { %8661 = vmatprep.mubr.msk.f32.mxu1 %vm15169_vm0, %v15189_v2 }
  0x36   : > { %8662 = vmatmul.mubr.msk.f32.gmra.mrb[10].mxu1 %vm616_vm6, %v11015_v32 }
  0x37   : > { %8664 = vmatprep.mubr.msk.f32.mxu1 %vm15169_vm0, %v15189_v2  ;;  %9693 = vmatpush3.bf16.xpose.msk.msra.mxu0 %vm11141_vm4, %v9691_v54 }
  0x38   : > { %9694 = vmatprep.subr.bf16.mxu0 %v15187_v1 }
  0x3a   : > { %8665 = vmatmul.mubr.msk.f32.gmra.mrb[12].mxu1 %vm616_vm6, %v11029_v34 }
  0x3b   : > { %8667 = vmatprep.mubr.msk.f32.mxu1 %vm15169_vm0, %v15189_v2 }
  0x3e   : > { %8668 = vmatmul.mubr.msk.f32.gmra.mrb[14].mxu1 %vm616_vm6, %v11043_v36 }
  0x3f   : > { %8670 = vmatprep.mubr.msk.f32.mxu1 %vm15169_vm0, %v15189_v2  ;;  %9697 = vmatpush3.bf16.xpose.msk.msra.mxu0 %vm11141_vm4, %v9695_v55  ;;  %v975_v55 = vcvt.s32.f32 %v11022_v33 }
  0x40   : > { %9698 = vmatprep.subr.bf16.mxu0 %v15187_v1 }
  0x42   : > { %8671 = vmatmul.mubr.msk.f32.gmra.mrb[16].mxu1 %vm616_vm6, %v11057_v38 }
  0x43   : > { %8673 = vmatprep.mubr.msk.f32.mxu1 %vm15169_vm0, %v15189_v2 }
  0x46   : > { %8674 = vmatmul.mubr.msk.f32.gmra.mrb[18].mxu1 %vm616_vm6, %v11071_v40 }
  0x47   : > { %8676 = vmatprep.mubr.msk.f32.mxu1 %vm15169_vm0, %v15189_v2  ;;  %9701 = vmatpush3.bf16.xpose.msk.msra.mxu0 %vm11141_vm4, %v9699_v56 }
  0x48   : > { %9702 = vmatprep.subr.bf16.mxu0 %v15187_v1 }
  0x4a   : > { %8677 = vmatmul.mubr.msk.f32.gmra.mrb[20].mxu1 %vm616_vm6, %v11085_v42 }
  0x4b   : > { %8679 = vmatprep.mubr.msk.f32.mxu1 %vm15169_vm0, %v15189_v2 }
  0x4e   : > { %8680 = vmatmul.mubr.msk.f32.gmra.mrb[22].mxu1 %vm616_vm6, %v11099_v44 }
  0x4f   : > { %8682 = vmatprep.mubr.msk.f32.mxu1 %vm15169_vm0, %v15189_v2  ;;  %9705 = vmatpush3.bf16.xpose.msk.msra.mxu0 %vm11141_vm4, %v9703_v57  ;;  %v976_v57 = vcvt.s32.f32 %v11036_v35 }
  0x50   : > { %9706 = vmatprep.subr.bf16.mxu0 %v15187_v1 }
  0x52   : > { %8683 = vmatmul.mubr.msk.f32.gmra.mrb[24].mxu1 %vm616_vm6, %v11113_v46 }
  0x53   : > { %8685 = vmatprep.mubr.msk.f32.mxu1 %vm15169_vm0, %v15189_v2 }
  0x56   : > { %8686 = vmatmul.mubr.msk.f32.gmra.mrb[26].mxu1 %vm616_vm6, %v11124_v47 }
  0x57   : > { %8688 = vmatprep.mubr.msk.f32.mxu1 %vm15169_vm0, %v15189_v2  ;;  %9709 = vmatpush3.bf16.xpose.msk.msra.mxu0 %vm11141_vm4, %v9707_v58 }
  0x58   : > { %8589 = vmatprep.subr.mxu0 %v15189_v2 }
  0x5a   : > { %8689 = vmatmul.mubr.msk.f32.gmra.mrb[28].mxu1 %vm616_vm6, %v11131_v48 }
  0x5b   : > { %8693 = vmatprep.mubr.msk.f32.mxu1 %vm15169_vm0, %v15189_v2 }
  0x5f   : > { %8590 = vmatpush3.xpose.msk.msra.mxu0 %vm616_vm6, %v11131_v48 }
  0x60   : > { %9716 = vmatprep.subr.bf16.mxu0 %v15187_v1 }
  0x62   : > { %8592 = vmatmul.mubr.msk.f32.vlgmr.msra.gmra.mrb[0].mxu0 %vm616_vm6, %v10950_v24  ;;  %v971_v24 = vcvt.s32.f32 %v10925_v15 }
  0x63   : > { %8594 = vmatprep.mubr.msk.f32.mxu0 %vm15169_vm0, %v15189_v2 }
  0x66   : > { %8595 = vmatmul.mubr.msk.f32.gmra.mrb[2].mxu0 %vm616_vm6, %v10962_v25 }
  0x67   : > { %8597 = vmatprep.mubr.msk.f32.mxu0 %vm15169_vm0, %v15189_v2 }
  0x6a   : > { %8598 = vmatmul.mubr.msk.f32.gmra.mrb[4].mxu0 %vm616_vm6, %v10973_v26 }
  0x6b   : > { %8600 = vmatprep.mubr.msk.f32.mxu0 %vm15169_vm0, %v15189_v2 }
  0x6e   : > { %8601 = vmatmul.mubr.msk.f32.gmra.mrb[6].mxu0 %vm616_vm6, %v10987_v28 }
  0x6f   : > { %8603 = vmatprep.mubr.msk.f32.mxu0 %vm15169_vm0, %v15189_v2 }
  0x72   : > { %8604 = vmatmul.mubr.msk.f32.gmra.mrb[8].mxu0 %vm616_vm6, %v11001_v30  ;;  %v972_v30 = vcvt.s32.f32 %v10980_v27 }
  0x73   : > { %8606 = vmatprep.mubr.msk.f32.mxu0 %vm15169_vm0, %v15189_v2 }
  0x76   : > { %8607 = vmatmul.mubr.msk.f32.gmra.mrb[10].mxu0 %vm616_vm6, %v11015_v32 }
  0x77   : > { %8609 = vmatprep.mubr.msk.f32.mxu0 %vm15169_vm0, %v15189_v2 }
  0x7a   : > { %8610 = vmatmul.mubr.msk.f32.gmra.mrb[12].mxu0 %vm616_vm6, %v11029_v34 }
  0x7b   : > { %8612 = vmatprep.mubr.msk.f32.mxu0 %vm15169_vm0, %v15189_v2 }
  0x7e   : > { %8613 = vmatmul.mubr.msk.f32.gmra.mrb[14].mxu0 %vm616_vm6, %v11043_v36 }
  0x7f   : > { %8615 = vmatprep.mubr.msk.f32.mxu0 %vm15169_vm0, %v15189_v2 }
  0x82   : > { %8616 = vmatmul.mubr.msk.f32.gmra.mrb[16].mxu0 %vm616_vm6, %v11057_v38 }
  0x83   : > { %8618 = vmatprep.mubr.msk.f32.mxu0 %vm15169_vm0, %v15189_v2 }
  0x86   : > { %8619 = vmatmul.mubr.msk.f32.gmra.mrb[18].mxu0 %vm616_vm6, %v11071_v40 }
  0x87   : > { %8621 = vmatprep.mubr.msk.f32.mxu0 %vm15169_vm0, %v15189_v2 }
  0x8a   : > { %8622 = vmatmul.mubr.msk.f32.gmra.mrb[20].mxu0 %vm616_vm6, %v11085_v42 }
  0x8b   : > { %8624 = vmatprep.mubr.msk.f32.mxu0 %vm15169_vm0, %v15189_v2 }
  0x8e   : > { %8625 = vmatmul.mubr.msk.f32.gmra.mrb[22].mxu0 %vm616_vm6, %v11099_v44 }
  0x8f   : > { %8627 = vmatprep.mubr.msk.f32.mxu0 %vm15169_vm0, %v15189_v2 }
  0x92   : > { %8628 = vmatmul.mubr.msk.f32.gmra.mrb[24].mxu0 %vm616_vm6, %v11113_v46 }
  0x93   : > { %8630 = vmatprep.mubr.msk.f32.mxu0 %vm15169_vm0, %v15189_v2 }
  0x96   : > { %8631 = vmatmul.mubr.msk.f32.gmra.mrb[26].mxu0 %vm616_vm6, %v11124_v47 }
  0x97   : > { %8633 = vmatprep.mubr.msk.f32.mxu0 %vm15169_vm0, %v15189_v2 }
  0x9a   : > { %8634 = vmatmul.mubr.msk.f32.gmra.mrb[28].mxu0 %vm616_vm6, %v11131_v48  ;;  %v11261_v48 = vcvt.s32.f32 %v10901_v4  ;;  %vm1119_vm6 = vcmask 64512  }
  0x9b   : > { %8768 = vmatprep.mubr.msk.f32.mxu0 %vm15169_vm0, %v15189_v2  ;;  %vm11276_vm8 = vmpackc.low %vm1119_vm6, %vm1119_vm6 }
  0xf5   : > { %v893_v60 = vpop.f32.mrb[0].mxu1 }
  0xf6   : > { %v982_v61 = vsub.f32 %v967_v59, %v893_v60  ;;  %v8648_v62 = vpop.f32.mrb[1].mxu1  ;;  %v977_v59 = vcvt.s32.f32 %v11050_v37 }
  0xf8   : > { %1000 = vperm.xlu0 %10037, %v982_v61   ;;  %v978_v61 = vcvt.s32.f32 %v11064_v39 }
  0xf9   : > { %v898_v0 = vpop.f32.mrb[2].mxu1 }
  0xfa   : > { %v983_v9 = vsub.f32 %v968_v63, %v898_v0  ;;  %v8651_v11 = vpop.f32.mrb[3].mxu1  ;;  %v979_v63 = vcvt.s32.f32 %v11078_v41  ;;  %v981_v41 = vcvt.s32.f32 %v11106_v45 }
  0xfc   : > { %1005 = vperm.xlu0 %10037, %v983_v9   ;;  %v980_v9 = vcvt.s32.f32 %v11092_v43  ;;  %v1565_v43 = vld [vmem:[%s15155_s3] sm:$0xff] }
  0xfd   : > { %v903_v16 = vpop.f32.mrb[4].mxu1 }
  0xfe   : > { %v984_v17 = vsub.f32 %v969_v14, %v903_v16  ;;  %v8654_v18 = vpop.f32.mrb[5].mxu1 }
 0x100   : > { %1010 = vperm.xlu1 %10038, %v984_v17  }
 0x101   : > { %v908_v20 = vpop.f32.mrb[6].mxu1 }
 0x102   : > { %v985_v21 = vsub.f32 %v970_v19, %v908_v20  ;;  %v8657_v23 = vpop.f32.mrb[7].mxu1 }
 0x104   : > { %1015 = vperm.xlu1 %10038, %v985_v21  }
 0x105   : > { %v913_v25 = vpop.f32.mrb[8].mxu1 }
 0x106   : > { %v986_v26 = vsub.f32 %v971_v24, %v913_v25  ;;  %v8660_v28 = vpop.f32.mrb[9].mxu1 }
 0x108   : > { %1020 = vperm.xlu0 %10037, %v986_v26  }
 0x109   : > { %v918_v32 = vpop.f32.mrb[10].mxu1 }
 0x10a   : > { %v987_v49 = vsub.f32 %v972_v30, %v918_v32  ;;  %v8663_v50 = vpop.f32.mrb[11].mxu1 }
 0x10c   : > { %1025 = vperm.xlu1 %10038, %v987_v49  }
 0x10d   : > { %v923_v34 = vpop.f32.mrb[12].mxu1 }
 0x10e   : > { %v988_v27 = vsub.f32 %v973_v51, %v923_v34  ;;  %v8666_v52 = vpop.f32.mrb[13].mxu1 }
 0x110   : > { %1030 = vperm.xlu0 %10037, %v988_v27  }
 0x111   : > { %v928_v36 = vpop.f32.mrb[14].mxu1 }
 0x112   : > { %v989_v29 = vsub.f32 %v974_v53, %v928_v36  ;;  %v8669_v54 = vpop.f32.mrb[15].mxu1 }
 0x114   : > { %1035 = vperm.xlu1 %10038, %v989_v29  }
 0x115   : > { %v933_v38 = vpop.f32.mrb[16].mxu1 }
 0x116   : > { %v990_v31 = vsub.f32 %v975_v55, %v933_v38  ;;  %v8672_v56 = vpop.f32.mrb[17].mxu1 }
 0x118   : > { %1040 = vperm.xlu0 %10037, %v990_v31  }
 0x119   : > { %v938_v40 = vpop.f32.mrb[18].mxu1 }
 0x11a   : > { %v991_v33 = vsub.f32 %v976_v57, %v938_v40  ;;  %v8675_v58 = vpop.f32.mrb[19].mxu1 }
 0x11c   : > { %1045 = vperm.xlu1 %10038, %v991_v33  }
 0x11d   : > { %v943_v42 = vpop.f32.mrb[20].mxu1 }
 0x11e   : > { %v992_v35 = vsub.f32 %v977_v59, %v943_v42  ;;  %v8678_v60 = vpop.f32.mrb[21].mxu1 }
 0x120   : > { %1050 = vperm.xlu0 %10037, %v992_v35  }
 0x121   : > { %v948_v44 = vpop.f32.mrb[22].mxu1 }
 0x122   : > { %v993_v37 = vsub.f32 %v978_v61, %v948_v44  ;;  %v8681_v62 = vpop.f32.mrb[23].mxu1 }
 0x124   : > { %1055 = vperm.xlu1 %10038, %v993_v37  }
 0x125   : > { %v953_v46 = vpop.f32.mrb[24].mxu1 }
 0x126   : > { %v994_v39 = vsub.f32 %v979_v63, %v953_v46  ;;  %v8684_v0 = vpop.f32.mrb[25].mxu1  ;;  %v1550_v46 = vld [vmem:[%s11369_s28] sm:$0xff] }
 0x127   : > { %v1552_v0 = vld [vmem:[%s11369_s28 + $0x10] sm:$0xff] }
 0x128   : > { %1060 = vperm.xlu0 %10037, %v994_v39   ;;  %v1551_v39 = vld [vmem:[%s11369_s28 + $0x8] sm:$0xff] }
 0x129   : > { %v958_v47 = vpop.f32.mrb[26].mxu1 }
 0x12a   : > { %v995_v11 = vsub.f32 %v980_v9, %v958_v47  ;;  %v8687_v14 = vpop.f32.mrb[27].mxu1  ;;  %v1553_v9 = vld [vmem:[%s11369_s28 + $0x18] sm:$0xff]  ;;  %v1554_v47 = vld [vmem:[%s11369_s28 + $0x20] sm:$0xff] }
 0x12b   : > { %v1556_v14 = vld [vmem:[%s11369_s28 + $0x30] sm:$0xff] }
 0x12c   : > { %1065 = vperm.xlu1 %10038, %v995_v11   ;;  %v1555_v11 = vld [vmem:[%s11369_s28 + $0x28] sm:$0xff] }
 0x12d   : > { %v963_v16 = vpop.f32.mrb[28].mxu1 }
 0x12e   : > { %v996_v17 = vsub.f32 %v981_v41, %v963_v16  ;;  %v8690_v18 = vpop.f32.mrb[29].mxu1  ;;  %v1557_v41 = vld [vmem:[%s11369_s28 + $0x38] sm:$0xff]  ;;  %v1558_v16 = vld [vmem:[%s11369_s28 + $0x40] sm:$0xff] }
 0x12f   : > { %v1560_v18 = vld [vmem:[%s11369_s28 + $0x50] sm:$0xff] }
 0x130   : > { %1070 = vperm.xlu0 %10037, %v996_v17   ;;  %v1559_v17 = vld [vmem:[%s11369_s28 + $0x48] sm:$0xff] }
 0x177   : > { %v1001_v19 = vpop.permute.xlu0 %1000 }
 0x178   : > { %vm1073_vm5 = vcmp.eq.f32.partialorder %v1001_v19, %v11261_v48  ;;  %v1562_v19 = vld [vmem:[%s11369_s28 + $0x60] sm:$0xff] }
 0x179   : > { %v7819_v20 = vsel %vm1073_vm5, 1.0, %v15189_v2 }
 0x17a   : > { %8694 = vmatmul.mubr.msk.f32.vlgmr.msra.gmra.mrb[30].mxu1 %vm1119_vm6, %v7819_v20 }
 0x17b   : > { %v1006_v45 = vpop.permute.xlu0 %1005  ;;  %8696 = vmatprep.mubr.msk.f32.mxu1 %vm15169_vm0, %v15189_v2  ;;  %8814 = vmatpush3.msra.mxu1 %v1565_v43  ;;  %v1563_v43 = vld [vmem:[%s11369_s28 + $0x68] sm:$0xff] }
 0x17c   : > { %vm1074_vm7 = vcmp.eq.f32.partialorder %v1006_v45, %v11261_v48  ;;  %9772 = vmatprep.subr.bf16.mxu1 %v15187_v1 }
 0x17d   : > { %v7820_v21 = vsel %vm1074_vm7, 1.0, %v15189_v2 }
 0x17e   : > { %v9717_v24 = vpack.c.bf16 %v7820_v21, %v7819_v20  ;;  %8697 = vmatmul.mubr.msk.f32.gmra.mrb[32].mxu1 %vm1119_vm6, %v7820_v21  ;;  %v1564_v20 = vld [vmem:[%s11369_s28 + $0x70] sm:$0xff] }
 0x17f   : > { %v1011_v25 = vpop.permute.xlu1 %1010  ;;  %8699 = vmatprep.mubr.msk.f32.mxu1 %vm15169_vm0, %v15189_v2 }
 0x180   : > { %vm1075_vm9 = vcmp.eq.f32.partialorder %v1011_v25, %v11261_v48  ;;  %9719 = vmatpush3.bf16.xpose.msk.msra.mxu0 %vm11276_vm8, %v9717_v24 }
 0x181   : > { %v7821_v26 = vsel %vm1075_vm9, 1.0, %v15189_v2  ;;  %9720 = vmatprep.subr.bf16.mxu0 %v15187_v1 }
 0x182   : > { %8700 = vmatmul.mubr.msk.f32.gmra.mrb[34].mxu1 %vm1119_vm6, %v7821_v26 }
 0x183   : > { %v1016_v28 = vpop.permute.xlu1 %1015  ;;  %8702 = vmatprep.mubr.msk.f32.mxu1 %vm15169_vm0, %v15189_v2 }
 0x184   : > { %vm1076_vm10 = vcmp.eq.f32.partialorder %v1016_v28, %v11261_v48 }
 0x185   : > { %v7822_v30 = vsel %vm1076_vm10, 1.0, %v15189_v2 }
 0x186   : > { %v9721_v32 = vpack.c.bf16 %v7822_v30, %v7821_v26  ;;  %8703 = vmatmul.mubr.msk.f32.gmra.mrb[36].mxu1 %vm1119_vm6, %v7822_v30 }
 0x187   : > { %v1021_v49 = vpop.permute.xlu0 %1020  ;;  %8705 = vmatprep.mubr.msk.f32.mxu1 %vm15169_vm0, %v15189_v2 }
 0x188   : > { %vm1077_vm11 = vcmp.eq.f32.partialorder %v1021_v49, %v11261_v48  ;;  %9723 = vmatpush3.bf16.xpose.msk.msra.mxu0 %vm11276_vm8, %v9721_v32 }
 0x189   : > { %v7823_v50 = vsel %vm1077_vm11, 1.0, %v15189_v2  ;;  %9724 = vmatprep.subr.bf16.mxu0 %v15187_v1 }
 0x18a   : > { %8706 = vmatmul.mubr.msk.f32.gmra.mrb[38].mxu1 %vm1119_vm6, %v7823_v50 }
 0x18b   : > { %v1026_v51 = vpop.permute.xlu1 %1025  ;;  %8708 = vmatprep.mubr.msk.f32.mxu1 %vm15169_vm0, %v15189_v2 }
 0x18c   : > { %vm1078_vm12 = vcmp.eq.f32.partialorder %v1026_v51, %v11261_v48 }
 0x18d   : > { %v7824_v34 = vsel %vm1078_vm12, 1.0, %v15189_v2 }
 0x18e   : > { %v9725_v27 = vpack.c.bf16 %v7824_v34, %v7823_v50  ;;  %8709 = vmatmul.mubr.msk.f32.gmra.mrb[40].mxu1 %vm1119_vm6, %v7824_v34 }
 0x18f   : > { %v1031_v52 = vpop.permute.xlu0 %1030  ;;  %8711 = vmatprep.mubr.msk.f32.mxu1 %vm15169_vm0, %v15189_v2 }
 0x190   : > { %vm1079_vm13 = vcmp.eq.f32.partialorder %v1031_v52, %v11261_v48  ;;  %9727 = vmatpush3.bf16.xpose.msk.msra.mxu0 %vm11276_vm8, %v9725_v27 }
 0x191   : > { %v7825_v53 = vsel %vm1079_vm13, 1.0, %v15189_v2  ;;  %9728 = vmatprep.subr.bf16.mxu0 %v15187_v1 }
 0x192   : > { %8712 = vmatmul.mubr.msk.f32.gmra.mrb[42].mxu1 %vm1119_vm6, %v7825_v53 }
 0x193   : > { %v1036_v36 = vpop.permute.xlu1 %1035  ;;  %8714 = vmatprep.mubr.msk.f32.mxu1 %vm15169_vm0, %v15189_v2 }
 0x194   : > { %vm1080_vm14 = vcmp.eq.f32.partialorder %v1036_v36, %v11261_v48 }
 0x195   : > { %v7826_v29 = vsel %vm1080_vm14, 1.0, %v15189_v2 }
 0x196   : > { %v9729_v54 = vpack.c.bf16 %v7826_v29, %v7825_v53  ;;  %8715 = vmatmul.mubr.msk.f32.gmra.mrb[44].mxu1 %vm1119_vm6, %v7826_v29 }
 0x197   : > { %v1041_v55 = vpop.permute.xlu0 %1040  ;;  %8717 = vmatprep.mubr.msk.f32.mxu1 %vm15169_vm0, %v15189_v2 }
 0x198   : > { %vm1081_vm15 = vcmp.eq.f32.partialorder %v1041_v55, %v11261_v48  ;;  %9731 = vmatpush3.bf16.xpose.msk.msra.mxu0 %vm11276_vm8, %v9729_v54 }
 0x199   : > { %v7827_v38 = vsel %vm1081_vm15, 1.0, %v15189_v2  ;;  %9732 = vmatprep.subr.bf16.mxu0 %v15187_v1 }
 0x19a   : > { %8718 = vmatmul.mubr.msk.f32.gmra.mrb[46].mxu1 %vm1119_vm6, %v7827_v38 }
 0x19b   : > { %v1046_v31 = vpop.permute.xlu1 %1045  ;;  %8720 = vmatprep.mubr.msk.f32.mxu1 %vm15169_vm0, %v15189_v2 }
 0x19c   : > { %vm1082_vm1 = vcmp.eq.f32.partialorder %v1046_v31, %v11261_v48 }
 0x19d   : > { %v7828_v56 = vsel %vm1082_vm1, 1.0, %v15189_v2 }
 0x19e   : > { %v9733_v57 = vpack.c.bf16 %v7828_v56, %v7827_v38  ;;  %8721 = vmatmul.mubr.msk.f32.gmra.mrb[48].mxu1 %vm1119_vm6, %v7828_v56 }
 0x19f   : > { %v1051_v40 = vpop.permute.xlu0 %1050  ;;  %8723 = vmatprep.mubr.msk.f32.mxu1 %vm15169_vm0, %v15189_v2 }
 0x1a0   : > { %vm1083_vm2 = vcmp.eq.f32.partialorder %v1051_v40, %v11261_v48  ;;  %9735 = vmatpush3.bf16.xpose.msk.msra.mxu0 %vm11276_vm8, %v9733_v57 }
 0x1a1   : > { %v7829_v33 = vsel %vm1083_vm2, 1.0, %v15189_v2  ;;  %9736 = vmatprep.subr.bf16.mxu0 %v15187_v1 }
 0x1a2   : > { %8724 = vmatmul.mubr.msk.f32.gmra.mrb[50].mxu1 %vm1119_vm6, %v7829_v33 }
 0x1a3   : > { %v1056_v58 = vpop.permute.xlu1 %1055  ;;  %8726 = vmatprep.mubr.msk.f32.mxu1 %vm15169_vm0, %v15189_v2 }
 0x1a4   : > { %vm1084_vm3 = vcmp.eq.f32.partialorder %v1056_v58, %v11261_v48 }
 0x1a5   : > { %v7830_v59 = vsel %vm1084_vm3, 1.0, %v15189_v2 }
 0x1a6   : > { %v9737_v42 = vpack.c.bf16 %v7830_v59, %v7829_v33  ;;  %8727 = vmatmul.mubr.msk.f32.gmra.mrb[52].mxu1 %vm1119_vm6, %v7830_v59 }
 0x1a7   : > { %v1061_v35 = vpop.permute.xlu0 %1060  ;;  %8729 = vmatprep.mubr.msk.f32.mxu1 %vm15169_vm0, %v15189_v2 }
 0x1a8   : > { %vm1085_vm4 = vcmp.eq.f32.partialorder %v1061_v35, %v11261_v48  ;;  %9739 = vmatpush3.bf16.xpose.msk.msra.mxu0 %vm11276_vm8, %v9737_v42  ;;  %v11480_v42 = vpop.f32.mrb[0].mxu0 }
 0x1a9   : > { %v7831_v60 = vsel %vm1085_vm4, 1.0, %v15189_v2  ;;  %9740 = vmatprep.subr.bf16.mxu0 %v15187_v1  ;;  %vm802_vm9 = vcmp.gt.f32.partialorder %v11480_v42, 0.5  ;;  %v15402_v42 = vmov 0 }
 0x1aa   : > { %8730 = vmatmul.mubr.msk.f32.gmra.mrb[54].mxu1 %vm1119_vm6, %v7831_v60 }
 0x1ab   : > { %v1066_v61 = vpop.permute.xlu1 %1065  ;;  %8732 = vmatprep.mubr.msk.f32.mxu1 %vm15169_vm0, %v15189_v2 }
 0x1ac   : > { %vm1086_vm5 = vcmp.eq.f32.partialorder %v1066_v61, %v11261_v48 }
 0x1ad   : > { %v7832_v44 = vsel %vm1086_vm5, 1.0, %v15189_v2 }
 0x1ae   : > { %v9741_v37 = vpack.c.bf16 %v7832_v44, %v7831_v60  ;;  %8733 = vmatmul.mubr.msk.f32.gmra.mrb[56].mxu1 %vm1119_vm6, %v7832_v44  ;;  %v8593_v60 = vpop.f32.mrb[1].mxu0 }
 0x1af   : > { %v1071_v62 = vpop.permute.xlu0 %1070  ;;  %8735 = vmatprep.mubr.msk.f32.mxu1 %vm15169_vm0, %v15189_v2  ;;  %v11483_v44 = vpop.f32.mrb[2].mxu0 }
 0x1b0   : > { %vm1087_vm7 = vcmp.eq.f32.partialorder %v1071_v62, %v11261_v48  ;;  %9743 = vmatpush3.bf16.xpose.msk.msra.mxu0 %vm11276_vm8, %v9741_v37  ;;  %v1561_v48 = vld [vmem:[%s11369_s28 + $0x58] sm:$0xff]  ;;  %v8596_v37 = vpop.f32.mrb[3].mxu0  ;;  %vm15168_vm8 = vcmask 523264   ;;  %vm803_vm12 = vcmp.gt.f32.partialorder %v11483_v44, 0.5 }
 0x1b1   : > { %v7833_v63 = vsel %vm1087_vm7, 1.0, %v15189_v2  ;;  %8766 = vmatprep.subr.mxu0 %v15189_v2  ;;  %v11487_v62 = vpop.f32.mrb[4].mxu0 }
 0x1b2   : > { %8736 = vmatmul.mubr.msk.f32.gmra.mrb[58].mxu1 %vm1119_vm6, %v7833_v63  ;;  %vm804_vm15 = vcmp.gt.f32.partialorder %v11487_v62, 0.5  ;;  %v15408_v62 = vmov 0 }
 0x1b3   : > { %8815 = vmatprep.mubr.msk.f32.mxu1 %vm15169_vm0, %v15189_v2 }
 0x1b6   : > { %8816 = vmatmul.mubr.msk.f32.vlgmr.msra.gmra.mrb[60].mxu1 %vm1119_vm6, %v1550_v46  ;;  %v8599_v46 = vpop.f32.mrb[5].mxu0 }
 0x1b7   : > { %8818 = vmatprep.mubr.msk.f32.mxu1 %vm15169_vm0, %v15189_v2 }
 0x1b8   : > { %8767 = vmatpush3.xpose.msk.msra.mxu0 %vm1119_vm6, %v7833_v63 }
 0x1b9   : > { %9744 = vmatprep.subr.bf16.mxu0 %v15187_v1 }
 0x1ba   : > { %8819 = vmatmul.mubr.msk.f32.gmra.mrb[62].mxu1 %vm1119_vm6, %v1551_v39 }
 0x1bb   : > { %8821 = vmatprep.mubr.msk.f32.mxu1 %vm15169_vm0, %v15189_v2 }
 0x1be   : > { %8822 = vmatmul.mubr.msk.f32.gmra.mrb[64].mxu1 %vm1119_vm6, %v1552_v0  ;;  %v11489_v0 = vpop.f32.mrb[6].mxu0 }
 0x1bf   : > { %8824 = vmatprep.mubr.msk.f32.mxu1 %vm15169_vm0, %v15189_v2  ;;  %vm805_vm3 = vcmp.gt.f32.partialorder %v11489_v0, 0.5 }
 0x1c2   : > { %8825 = vmatmul.mubr.msk.f32.gmra.mrb[66].mxu1 %vm1119_vm6, %v1553_v9  ;;  %v8602_v9 = vpop.f32.mrb[7].mxu0 }
 0x1c3   : > { %8827 = vmatprep.mubr.msk.f32.mxu1 %vm15169_vm0, %v15189_v2 }
 0x1c6   : > { %8828 = vmatmul.mubr.msk.f32.gmra.mrb[68].mxu1 %vm1119_vm6, %v1554_v47  ;;  %v11491_v47 = vpop.f32.mrb[8].mxu0 }
 0x1c7   : > { %8830 = vmatprep.mubr.msk.f32.mxu1 %vm15169_vm0, %v15189_v2  ;;  %vm806_vm7 = vcmp.gt.f32.partialorder %v11491_v47, 0.5  ;;  %v15414_v47 = vmov 0 }
 0x1ca   : > { %8831 = vmatmul.mubr.msk.f32.gmra.mrb[70].mxu1 %vm1119_vm6, %v1555_v11 }
 0x1cb   : > { %8833 = vmatprep.mubr.msk.f32.mxu1 %vm15169_vm0, %v15189_v2 }
 0x1ce   : > { %8834 = vmatmul.mubr.msk.f32.gmra.mrb[72].mxu1 %vm1119_vm6, %v1556_v14  ;;  %v8605_v14 = vpop.f32.mrb[9].mxu0 }
 0x1cf   : > { %8836 = vmatprep.mubr.msk.f32.mxu1 %vm15169_vm0, %v15189_v2 }
 0x1d2   : > { %8837 = vmatmul.mubr.msk.f32.gmra.mrb[74].mxu1 %vm1119_vm6, %v1557_v41 }
 0x1d3   : > { %8839 = vmatprep.mubr.msk.f32.mxu1 %vm15169_vm0, %v15189_v2 }
 0x1d6   : > { %8840 = vmatmul.mubr.msk.f32.gmra.mrb[76].mxu1 %vm1119_vm6, %v1558_v16 }
 0x1d7   : > { %8842 = vmatprep.mubr.msk.f32.mxu1 %vm15169_vm0, %v15189_v2 }
 0x1da   : > { %8843 = vmatmul.mubr.msk.f32.gmra.mrb[78].mxu1 %vm1119_vm6, %v1559_v17 }
 0x1db   : > { %8845 = vmatprep.mubr.msk.f32.mxu1 %vm15169_vm0, %v15189_v2 }
 0x1de   : > { %8846 = vmatmul.mubr.msk.f32.gmra.mrb[80].mxu1 %vm1119_vm6, %v1560_v18  ;;  %v15388_v18 = vmov 0 }
 0x1df   : > { %8848 = vmatprep.mubr.msk.f32.mxu1 %vm15169_vm0, %v15189_v2 }
 0x1e2   : > { %8849 = vmatmul.mubr.msk.f32.gmra.mrb[82].mxu1 %vm1119_vm6, %v1561_v48  ;;  %v11499_v48 = vpop.f32.mrb[10].mxu0 }
 0x1e3   : > { %8851 = vmatprep.mubr.msk.f32.mxu1 %vm15169_vm0, %v15189_v2 }
 0x1e6   : > { %8852 = vmatmul.mubr.msk.f32.gmra.mrb[84].mxu1 %vm1119_vm6, %v1562_v19  ;;  %v8608_v19 = vpop.f32.mrb[11].mxu0 }
 0x1e7   : > { %8854 = vmatprep.mubr.msk.f32.mxu1 %vm15169_vm0, %v15189_v2 }
 0x1ea   : > { %8855 = vmatmul.mubr.msk.f32.gmra.mrb[86].mxu1 %vm1119_vm6, %v1563_v43  ;;  %v11503_v43 = vpop.f32.mrb[12].mxu0 }
 0x1eb   : > { %8857 = vmatprep.mubr.msk.f32.mxu1 %vm15169_vm0, %v15189_v2 }
 0x1ee   : > { %8858 = vmatmul.mubr.msk.f32.gmra.mrb[88].mxu1 %vm1119_vm6, %v1564_v20 }
 0x1ef   : > { %8923 = vmatprep.mubr.msk.f32.mxu1 %vm15169_vm0, %v15189_v2 }
 0x24d   : > { %v1231_v45 = vpop.f32.mrb[30].mxu1 }
 0x24e   : > { %v8695_v21 = vpop.f32.mrb[31].mxu1  ;;  %8769 = vmatmul.mubr.msk.f32.vlgmr.msra.gmra.mrb[30].mxu0 %vm1119_vm6, %v1231_v45  ;;  %v8611_v45 = vpop.f32.mrb[13].mxu0 }
 0x24f   : > { %8771 = vmatprep.mubr.msk.f32.mxu0 %vm15169_vm0, %v15189_v2 }
 0x251   : > { %v1236_v23 = vpop.f32.mrb[32].mxu1 }
 0x252   : > { %v8698_v24 = vpop.f32.mrb[33].mxu1  ;;  %8772 = vmatmul.mubr.msk.f32.gmra.mrb[32].mxu0 %vm1119_vm6, %v1236_v23  ;;  %v11509_v23 = vpop.f32.mrb[14].mxu0 }
 0x253   : > { %8774 = vmatprep.mubr.msk.f32.mxu0 %vm15169_vm0, %v15189_v2  ;;  %v8614_v24 = vpop.f32.mrb[15].mxu0 }
 0x255   : > { %v1241_v25 = vpop.f32.mrb[34].mxu1 }
 0x256   : > { %v8701_v26 = vpop.f32.mrb[35].mxu1  ;;  %8775 = vmatmul.mubr.msk.f32.gmra.mrb[34].mxu0 %vm1119_vm6, %v1241_v25  ;;  %v11512_v25 = vpop.f32.mrb[16].mxu0 }
 0x257   : > { %8777 = vmatprep.mubr.msk.f32.mxu0 %vm15169_vm0, %v15189_v2 }
 0x259   : > { %v1246_v28 = vpop.f32.mrb[36].mxu1 }
 0x25a   : > { %v8704_v30 = vpop.f32.mrb[37].mxu1  ;;  %8778 = vmatmul.mubr.msk.f32.gmra.mrb[36].mxu0 %vm1119_vm6, %v1246_v28  ;;  %v8617_v28 = vpop.f32.mrb[17].mxu0 }
 0x25b   : > { %8780 = vmatprep.mubr.msk.f32.mxu0 %vm15169_vm0, %v15189_v2 }
 0x25d   : > { %v1251_v32 = vpop.f32.mrb[38].mxu1 }
 0x25e   : > { %v8707_v49 = vpop.f32.mrb[39].mxu1  ;;  %8781 = vmatmul.mubr.msk.f32.gmra.mrb[38].mxu0 %vm1119_vm6, %v1251_v32 }
 0x25f   : > { %8783 = vmatprep.mubr.msk.f32.mxu0 %vm15169_vm0, %v15189_v2 }
 0x261   : > { %v1256_v50 = vpop.f32.mrb[40].mxu1 }
 0x262   : > { %v8710_v51 = vpop.f32.mrb[41].mxu1  ;;  %8784 = vmatmul.mubr.msk.f32.gmra.mrb[40].mxu0 %vm1119_vm6, %v1256_v50  ;;  %v11516_v50 = vpop.f32.mrb[18].mxu0 }
 0x263   : > { %8786 = vmatprep.mubr.msk.f32.mxu0 %vm15169_vm0, %v15189_v2  ;;  %v8620_v51 = vpop.f32.mrb[19].mxu0 }
 0x265   : > { %v1261_v34 = vpop.f32.mrb[42].mxu1 }
 0x266   : > { %v8713_v27 = vpop.f32.mrb[43].mxu1  ;;  %8787 = vmatmul.mubr.msk.f32.gmra.mrb[42].mxu0 %vm1119_vm6, %v1261_v34  ;;  %v11520_v34 = vpop.f32.mrb[20].mxu0 }
 0x267   : > { %8789 = vmatprep.mubr.msk.f32.mxu0 %vm15169_vm0, %v15189_v2 }
 0x269   : > { %v1266_v52 = vpop.f32.mrb[44].mxu1 }
 0x26a   : > { %v8716_v53 = vpop.f32.mrb[45].mxu1  ;;  %8790 = vmatmul.mubr.msk.f32.gmra.mrb[44].mxu0 %vm1119_vm6, %v1266_v52  ;;  %v8623_v52 = vpop.f32.mrb[21].mxu0 }
 0x26b   : > { %8792 = vmatprep.mubr.msk.f32.mxu0 %vm15169_vm0, %v15189_v2 }
 0x26d   : > { %v1271_v36 = vpop.f32.mrb[46].mxu1 }
 0x26e   : > { %v8719_v29 = vpop.f32.mrb[47].mxu1  ;;  %8793 = vmatmul.mubr.msk.f32.gmra.mrb[46].mxu0 %vm1119_vm6, %v1271_v36  ;;  %v11526_v36 = vpop.f32.mrb[22].mxu0 }
 0x26f   : > { %8795 = vmatprep.mubr.msk.f32.mxu0 %vm15169_vm0, %v15189_v2  ;;  %v8626_v29 = vpop.f32.mrb[23].mxu0 }
 0x270   : > { %v1751_v29 = vld [vmem:[%s15156_s4] sm:$0xff] }
 0x271   : > { %v1276_v54 = vpop.f32.mrb[48].mxu1 }
 0x272   : > { %v8722_v55 = vpop.f32.mrb[49].mxu1  ;;  %8796 = vmatmul.mubr.msk.f32.gmra.mrb[48].mxu0 %vm1119_vm6, %v1276_v54  ;;  %v11528_v54 = vpop.f32.mrb[24].mxu0 }
 0x273   : > { %8798 = vmatprep.mubr.msk.f32.mxu0 %vm15169_vm0, %v15189_v2 }
 0x275   : > { %v1281_v38 = vpop.f32.mrb[50].mxu1 }
 0x276   : > { %v8725_v31 = vpop.f32.mrb[51].mxu1  ;;  %8799 = vmatmul.mubr.msk.f32.gmra.mrb[50].mxu0 %vm1119_vm6, %v1281_v38  ;;  %v8629_v38 = vpop.f32.mrb[25].mxu0 }
 0x277   : > { %8801 = vmatprep.mubr.msk.f32.mxu0 %vm15169_vm0, %v15189_v2 }
 0x279   : > { %v1286_v56 = vpop.f32.mrb[52].mxu1 }
 0x27a   : > { %v8728_v57 = vpop.f32.mrb[53].mxu1  ;;  %8802 = vmatmul.mubr.msk.f32.gmra.mrb[52].mxu0 %vm1119_vm6, %v1286_v56 }
 0x27b   : > { %8804 = vmatprep.mubr.msk.f32.mxu0 %vm15169_vm0, %v15189_v2 }
 0x27d   : > { %v1291_v40 = vpop.f32.mrb[54].mxu1 }
 0x27e   : > { %v8731_v33 = vpop.f32.mrb[55].mxu1  ;;  %8805 = vmatmul.mubr.msk.f32.gmra.mrb[54].mxu0 %vm1119_vm6, %v1291_v40  ;;  %v11532_v40 = vpop.f32.mrb[26].mxu0 }
 0x27f   : > { %8807 = vmatprep.mubr.msk.f32.mxu0 %vm15169_vm0, %v15189_v2  ;;  %v8632_v33 = vpop.f32.mrb[27].mxu0 }
 0x281   : > { %v1296_v58 = vpop.f32.mrb[56].mxu1 }
 0x282   : > { %v8734_v59 = vpop.f32.mrb[57].mxu1  ;;  %8808 = vmatmul.mubr.msk.f32.gmra.mrb[56].mxu0 %vm1119_vm6, %v1296_v58  ;;  %v11536_v58 = vpop.f32.mrb[28].mxu0 }
 0x283   : > { %8810 = vmatprep.mubr.msk.f32.mxu0 %vm15169_vm0, %v15189_v2 }
 0x285   : > { %v1301_v35 = vpop.f32.mrb[58].mxu1 }
 0x286   : > { %v8737_v61 = vpop.f32.mrb[59].mxu1  ;;  %8811 = vmatmul.mubr.msk.f32.gmra.mrb[58].mxu0 %vm1119_vm6, %v1301_v35  ;;  %vm11495_vm6 = vmpackc.low %vm15168_vm8, %vm15168_vm8  ;;  %v8635_v35 = vpop.f32.mrb[29].mxu0 }
 0x287   : > { %8890 = vmatprep.mubr.msk.f32.mxu0 %vm15169_vm0, %v15189_v2  ;;  %v15389_v18 = vsel %vm11495_vm6, 4294967295, %v15388_v18 }
 0x288   : > { %15390 = vst [vmem:[#allocation8_spill] sm:$0xff] %v15389_v18 }
 0x289   : > { %v1677_v63 = vpop.f32.mrb[60].mxu1 }
 0x28a   : > { %v8817_v39 = vpop.f32.mrb[61].mxu1 }
 0x28d   : > { %v1682_v11 = vpop.f32.mrb[62].mxu1 }
 0x28e   : > { %v9745_v41 = vpack.c.bf16 %v1682_v11, %v1677_v63  ;;  %v8820_v16 = vpop.f32.mrb[63].mxu1  ;;  %v10044_v17 = vpack.i.bf16 %v1682_v11, %v1677_v63 }
 0x290   : > { %10045 = vrot.lane.b32.xlu1 %v10044_v17, %s10801_s29  ;;  %10040 = vrot.lane.b32.xlu0 %v10044_v17, %s10802_s30 }
 0x291   : > { %9747 = vmatpush3.bf16.xpose.msk.msra.mxu0 %vm11495_vm6, %v9745_v41  ;;  %9774 = vmatpush3.bf16.msra.mxu1 %v9745_v41  ;;  %v1687_v20 = vpop.f32.mrb[64].mxu1 }
 0x292   : > { %v8823_v21 = vpop.f32.mrb[65].mxu1  ;;  %9748 = vmatprep.subr.bf16.mxu0 %v15187_v1  ;;  %9775 = vmatprep.subr.bf16.mxu1 %v15187_v1 }
 0x294   : > { %10050 = vrot.lane.b32.xlu0 %v10044_v17, %s10803_s16 }
 0x295   : > { %v1692_v26 = vpop.f32.mrb[66].mxu1 }
 0x296   : > { %v11514_v30 = vpack.i.bf16 %v1692_v26, %v1687_v20  ;;  %v9749_v32 = vpack.c.bf16 %v1692_v26, %v1687_v20  ;;  %v8826_v49 = vpop.f32.mrb[67].mxu1 }
 0x298   : > { %10055 = vrot.lane.b32.xlu1 %v11514_v30, %s10802_s30  ;;  %9777 = vmatpush3.bf16.msra.mxu1 %v9749_v32 }
 0x299   : > { %9751 = vmatpush3.bf16.xpose.msk.msra.mxu0 %vm11495_vm6, %v9749_v32  ;;  %v1697_v27 = vpop.f32.mrb[68].mxu1  ;;  %9778 = vmatprep.subr.bf16.mxu1 %v15187_v1 }
 0x29a   : > { %v8829_v53 = vpop.f32.mrb[69].mxu1  ;;  %9752 = vmatprep.subr.bf16.mxu0 %v15187_v1 }
 0x29d   : > { %v1702_v55 = vpop.f32.mrb[70].mxu1 }
 0x29e   : > { %v11530_v31 = vpack.i.bf16 %v1702_v55, %v1697_v27  ;;  %v9753_v56 = vpack.c.bf16 %v1702_v55, %v1697_v27  ;;  %v8832_v57 = vpop.f32.mrb[71].mxu1 }
 0x2a0   : > { %15391 = vst [vmem:[#allocation9_spill] sm:$0xff] %v11530_v31  ;;  %10060 = vrot.lane.b32.xlu0 %v11530_v31, %s10802_s30  ;;  %9780 = vmatpush3.bf16.msra.mxu1 %v9753_v56 }
 0x2a1   : > { %9755 = vmatpush3.bf16.xpose.msk.msra.mxu0 %vm11495_vm6, %v9753_v56  ;;  %v1707_v59 = vpop.f32.mrb[72].mxu1  ;;  %9781 = vmatprep.subr.bf16.mxu1 %v15187_v1 }
 0x2a2   : > { %v8835_v60 = vpop.f32.mrb[73].mxu1  ;;  %9756 = vmatprep.subr.bf16.mxu0 %v15187_v1 }
 0x2a5   : > { %v1712_v61 = vpop.f32.mrb[74].mxu1 }
 0x2a6   : > { %v11542_v37 = vpack.i.bf16 %v1712_v61, %v1707_v59  ;;  %v9757_v63 = vpack.c.bf16 %v1712_v61, %v1707_v59  ;;  %v8838_v46 = vpop.f32.mrb[75].mxu1 }
 0x2a8   : > { %15392 = vst [vmem:[#allocation10_spill] sm:$0xff] %v11542_v37  ;;  %10065 = vrot.lane.b32.xlu0 %v11542_v37, %s10802_s30  ;;  %9783 = vmatpush3.bf16.msra.mxu1 %v9757_v63 }
 0x2a9   : > { %9759 = vmatpush3.bf16.xpose.msk.msra.mxu0 %vm11495_vm6, %v9757_v63  ;;  %v1717_v39 = vpop.f32.mrb[76].mxu1  ;;  %9784 = vmatprep.subr.bf16.mxu1 %v15187_v1 }
 0x2aa   : > { %v8841_v9 = vpop.f32.mrb[77].mxu1  ;;  %9760 = vmatprep.subr.bf16.mxu0 %v15187_v1 }
 0x2ad   : > { %v1722_v11 = vpop.f32.mrb[78].mxu1 }
 0x2ae   : > { %v11550_v14 = vpack.i.bf16 %v1722_v11, %v1717_v39  ;;  %v9761_v41 = vpack.c.bf16 %v1722_v11, %v1717_v39  ;;  %v8844_v16 = vpop.f32.mrb[79].mxu1 }
 0x2b0   : > { %15393 = vst [vmem:[#allocation11_spill] sm:$0xff] %v11550_v14  ;;  %10070 = vrot.lane.b32.xlu1 %v11550_v14, %s10802_s30  ;;  %9786 = vmatpush3.bf16.msra.mxu1 %v9761_v41 }
 0x2b1   : > { %9763 = vmatpush3.bf16.xpose.msk.msra.mxu0 %vm11495_vm6, %v9761_v41  ;;  %v1727_v17 = vpop.f32.mrb[80].mxu1  ;;  %9787 = vmatprep.subr.bf16.mxu1 %v15187_v1 }
 0x2b2   : > { %v8847_v19 = vpop.f32.mrb[81].mxu1  ;;  %9764 = vmatprep.subr.bf16.mxu0 %v15187_v1 }
 0x2b5   : > { %v1732_v20 = vpop.f32.mrb[82].mxu1 }
 0x2b6   : > { %v11558_v45 = vpack.i.bf16 %v1732_v20, %v1727_v17  ;;  %v9765_v21 = vpack.c.bf16 %v1732_v20, %v1727_v17  ;;  %v8850_v24 = vpop.f32.mrb[83].mxu1 }
 0x2b8   : > { %15394 = vst [vmem:[#allocation12_spill] sm:$0xff] %v11558_v45  ;;  %10075 = vrot.lane.b32.xlu0 %v11558_v45, %s10802_s30  ;;  %9789 = vmatpush3.bf16.msra.mxu1 %v9765_v21 }
 0x2b9   : > { %9767 = vmatpush3.bf16.xpose.msk.msra.mxu0 %vm11495_vm6, %v9765_v21  ;;  %v1737_v26 = vpop.f32.mrb[84].mxu1  ;;  %9790 = vmatprep.subr.bf16.mxu1 %v15187_v1 }
 0x2ba   : > { %v8853_v28 = vpop.f32.mrb[85].mxu1  ;;  %9768 = vmatprep.subr.bf16.mxu0 %v15187_v1 }
 0x2bd   : > { %v1742_v32 = vpop.f32.mrb[86].mxu1 }
 0x2be   : > { %v11566_v49 = vpack.i.bf16 %v1742_v32, %v1737_v26  ;;  %v9769_v51 = vpack.c.bf16 %v1742_v32, %v1737_v26  ;;  %v8856_v27 = vpop.f32.mrb[87].mxu1  ;;  %v15399_v26 = vmov 0 }
 0x2c0   : > { %15395 = vst [vmem:[#allocation13_spill] sm:$0xff] %v11566_v49  ;;  %10080 = vrot.lane.b32.xlu1 %v11566_v49, %s10802_s30  ;;  %9792 = vmatpush3.bf16.msra.mxu1 %v9769_v51 }
 0x2c1   : > { %9771 = vmatpush3.bf16.xpose.msk.msra.mxu0 %vm11495_vm6, %v9769_v51  ;;  %v11572_v52 = vpop.f32.mrb[88].mxu1  ;;  %8921 = vmatprep.subr.mxu1 %v15189_v2 }
 0x2c2   : > { %15396 = vst [vmem:[#allocation14_spill] sm:$0xff] %v11572_v52  ;;  %v8859_v53 = vpop.f32.mrb[89].mxu1  ;;  %8888 = vmatprep.subr.mxu0 %v15189_v2  ;;  %3432 = vrot.lane.b32.xlu0 %v11572_v52, %s10802_s30 }
 0x2c4   : > { %8922 = vmatpush3.msra.mxu1 %v11572_v52 }
 0x2c5   : > { %9814 = vmatprep.subr.bf16.mxu1 %v15187_v1 }
 0x2c9   : > { %8889 = vmatpush3.xpose.msk.msra.mxu0 %vm15168_vm8, %v11572_v52 }
 0x2ca   : > { %9793 = vmatprep.subr.bf16.mxu0 %v15187_v1 }
 0x2cc   : > { %8891 = vmatmul.mubr.msk.f32.vlgmr.msra.gmra.mrb[60].mxu0 %vm15168_vm8, %v1751_v29 }
 0x2cd   : > { %8998 = vmatprep.mubr.msk.f32.mxu0 %vm15169_vm0, %v15189_v2 }
 0x302   : > { %v10041_v55 = vpop.permute.xlu0 %10040  ;;  %v11589_v33 = vpop.permute.xlu1 %10045 }
 0x303   : > { %v10043_v38 = vunpack.i.h.bf16 %v10041_v55  ;;  %v10042_v56 = vunpack.i.l.bf16 %v10041_v55  ;;  %15397 = vst [vmem:[#allocation15_spill] sm:$0xff] %v11589_v33 }
 0x305   : > { %v9794_v57 = vpack.c.bf16 %v10043_v38, %v10042_v56  ;;  %v15405_v56 = vmov 0 }
 0x306   : > { %v11592_v63 = vpop.permute.xlu0 %10050 }
 0x307   : > { %9795 = vmatpush3.bf16.msra.mxu0 %v9794_v57  ;;  %15398 = vst [vmem:[#allocation16_spill] sm:$0xff] %v11592_v63 }
 0x308   : > { %9796 = vmatprep.subr.bf16.mxu0 %v15187_v1 }
 0x30a   : > { %v10056_v59 = vpop.permute.xlu1 %10055 }
 0x30b   : > { %v10058_v35 = vunpack.i.h.bf16 %v10056_v59  ;;  %v10057_v60 = vunpack.i.l.bf16 %v10056_v59 }
 0x30d   : > { %v9797_v61 = vpack.c.bf16 %v10058_v35, %v10057_v60 }
 0x30f   : > { %9798 = vmatpush3.bf16.msra.mxu0 %v9797_v61 }
 0x310   : > { %9799 = vmatprep.subr.bf16.mxu0 %v15187_v1 }
 0x312   : > { %v10061_v46 = vpop.permute.xlu0 %10060 }
 0x313   : > { %v10063_v39 = vunpack.i.h.bf16 %v10061_v46  ;;  %v10062_v9 = vunpack.i.l.bf16 %v10061_v46 }
 0x315   : > { %v9800_v11 = vpack.c.bf16 %v10063_v39, %v10062_v9  ;;  %v15411_v9 = vmov 0 }
 0x317   : > { %9801 = vmatpush3.bf16.msra.mxu0 %v9800_v11 }
 0x318   : > { %9802 = vmatprep.subr.bf16.mxu0 %v15187_v1 }
 0x31a   : > { %v10066_v41 = vpop.permute.xlu0 %10065 }
 0x31b   : > { %v10068_v16 = vunpack.i.h.bf16 %v10066_v41  ;;  %v10067_v17 = vunpack.i.l.bf16 %v10066_v41 }
 0x31d   : > { %v9803_v19 = vpack.c.bf16 %v10068_v16, %v10067_v17 }
 0x31f   : > { %9804 = vmatpush3.bf16.msra.mxu0 %v9803_v19 }
 0x320   : > { %9805 = vmatprep.subr.bf16.mxu0 %v15187_v1 }
 0x321   : > { %v1416_v20 = vpop.f32.mrb[30].mxu0 }
 0x322   : > { %vm1490_vm10 = vcmp.gt.f32.partialorder %v1416_v20, 0.5  ;;  %v8770_v21 = vpop.f32.mrb[31].mxu0  ;;  %v10071_v24 = vpop.permute.xlu1 %10070 }
 0x323   : > { %vm11598_vm11 = vmand %vm802_vm9, %vm1490_vm10  ;;  %v10073_v28 = vunpack.i.h.bf16 %v10071_v24  ;;  %v10072_v32 = vunpack.i.l.bf16 %v10071_v24  ;;  %v15417_v24 = vmov 0 }
 0x324   : > { %v15400_v26 = vsel %vm11598_vm11, 4294967295, %v15399_v26 }
 0x325   : > { %15401 = vst [vmem:[#allocation17_spill] sm:$0xff] %v15400_v26  ;;  %v9806_v51 = vpack.c.bf16 %v10073_v28, %v10072_v32  ;;  %v1421_v27 = vpop.f32.mrb[32].mxu0 }
 0x326   : > { %vm1491_vm13 = vcmp.gt.f32.partialorder %v1421_v27, 0.5  ;;  %v8773_v53 = vpop.f32.mrb[33].mxu0  ;;  %v15423_v27 = vmov 0 }
 0x327   : > { %vm11603_vm14 = vmand %vm803_vm12, %vm1491_vm13  ;;  %9807 = vmatpush3.bf16.msra.mxu0 %v9806_v51  ;;  %vm807_vm12 = vcmp.gt.f32.partialorder %v11499_v48, 0.5 }
 0x328   : > { %v15403_v42 = vsel %vm11603_vm14, 4294967295, %v15402_v42  ;;  %9808 = vmatprep.subr.bf16.mxu0 %v15187_v1 }
 0x329   : > { %15404 = vst [vmem:[#allocation18_spill] sm:$0xff] %v15403_v42  ;;  %v1426_v29 = vpop.f32.mrb[34].mxu0 }
 0x32a   : > { %vm1492_vm1 = vcmp.gt.f32.partialorder %v1426_v29, 0.5  ;;  %v8776_v55 = vpop.f32.mrb[35].mxu0  ;;  %v10076_v38 = vpop.permute.xlu0 %10075  ;;  %v15426_v29 = vmov 0 }
 0x32b   : > { %vm11609_vm2 = vmand %vm804_vm15, %vm1492_vm1  ;;  %v10078_v44 = vunpack.i.h.bf16 %v10076_v38  ;;  %v10077_v57 = vunpack.i.l.bf16 %v10076_v38  ;;  %vm808_vm1 = vcmp.gt.f32.partialorder %v11503_v43, 0.5  ;;  %v15420_v43 = vmov 0 }
 0x32c   : > { %v15406_v56 = vsel %vm11609_vm2, 4294967295, %v15405_v56  ;;  %v15429_v38 = vmov 0 }
 0x32d   : > { %15407 = vst [vmem:[#allocation19_spill] sm:$0xff] %v15406_v56  ;;  %v9809_v59 = vpack.c.bf16 %v10078_v44, %v10077_v57  ;;  %v1431_v35 = vpop.f32.mrb[36].mxu0  ;;  %v15432_v57 = vmov 0 }
 0x32e   : > { %vm1493_vm4 = vcmp.gt.f32.partialorder %v1431_v35, 0.5  ;;  %v8779_v60 = vpop.f32.mrb[37].mxu0  ;;  %v15435_v35 = vmov 0 }
 0x32f   : > { %vm11614_vm5 = vmand %vm805_vm3, %vm1493_vm4  ;;  %9810 = vmatpush3.bf16.msra.mxu0 %v9809_v59 }
 0x330   : > { %v15409_v62 = vsel %vm11614_vm5, 4294967295, %v15408_v62  ;;  %9811 = vmatprep.subr.bf16.mxu0 %v15187_v1 }
 0x331   : > { %15410 = vst [vmem:[#allocation20_spill] sm:$0xff] %v15409_v62  ;;  %v1436_v61 = vpop.f32.mrb[38].mxu0 }
 0x332   : > { %vm1494_vm9 = vcmp.gt.f32.partialorder %v1436_v61, 0.5  ;;  %v8782_v46 = vpop.f32.mrb[39].mxu0  ;;  %v10081_v39 = vpop.permute.xlu1 %10080  ;;  %v15438_v61 = vmov 0 }
 0x333   : > { %vm11620_vm10 = vmand %vm806_vm7, %vm1494_vm9  ;;  %v10083_v0 = vunpack.i.h.bf16 %v10081_v39  ;;  %v10082_v11 = vunpack.i.l.bf16 %v10081_v39  ;;  %vm809_vm7 = vcmp.gt.f32.partialorder %v11509_v23, 0.5  ;;  %v15441_v39 = vmov 0 }
 0x334   : > { %v15412_v9 = vsel %vm11620_vm10, 4294967295, %v15411_v9  ;;  %v3433_v19 = vpop.permute.xlu0 %3432 }
 0x335   : > { %15413 = vst [vmem:[#allocation21_spill] sm:$0xff] %v15412_v9  ;;  %v9812_v41 = vpack.c.bf16 %v10083_v0, %v10082_v11  ;;  %v1441_v16 = vpop.f32.mrb[40].mxu0  ;;  %v15186_v0 = vsub.s32 4, %v10899_v3 }
 0x336   : > { %vm1495_vm13 = vcmp.gt.f32.partialorder %v1441_v16, 0.5  ;;  %v8785_v17 = vpop.f32.mrb[41].mxu0 }
 0x337   : > { %vm11625_vm15 = vmand %vm807_vm12, %vm1495_vm13  ;;  %9813 = vmatpush3.bf16.msra.mxu0 %v9812_v41  ;;  %vm810_vm13 = vcmp.gt.f32.partialorder %v11512_v25, 0.5  ;;  %v15184_v17 = vsub.s32 6, %v10899_v3 }
 0x338   : > { %v15415_v47 = vsel %vm11625_vm15, 4294967295, %v15414_v47  ;;  %8996 = vmatprep.subr.mxu0 %v15189_v2 }
 0x339   : > { %15416 = vst [vmem:[#allocation22_spill] sm:$0xff] %v15415_v47  ;;  %v1446_v20 = vpop.f32.mrb[42].mxu0 }
 0x33a   : > { %vm1496_vm3 = vcmp.gt.f32.partialorder %v1446_v20, 0.5  ;;  %v8788_v21 = vpop.f32.mrb[43].mxu0 }
 0x33b   : > { %vm11631_vm4 = vmand %vm808_vm1, %vm1496_vm3  ;;  %8997 = vmatpush3.msra.mxu0 %v3433_v19  ;;  %vm811_vm3 = vcmp.gt.f32.partialorder %v11516_v50, 0.5  ;;  %v15183_v19 = vsub.s32 7, %v10899_v3 }
 0x33c   : > { %v15418_v24 = vsel %vm11631_vm4, 4294967295, %v15417_v24  ;;  %9835 = vmatprep.subr.bf16.mxu0 %v15187_v1 }
 0x33d   : > { %15419 = vst [vmem:[#allocation23_spill] sm:$0xff] %v15418_v24  ;;  %v1451_v48 = vpop.f32.mrb[44].mxu0 }
 0x33e   : > { %vm1497_vm9 = vcmp.gt.f32.partialorder %v1451_v48, 0.5  ;;  %v8791_v28 = vpop.f32.mrb[45].mxu0  ;;  %v10804_v48 = vmov 1966171168  }
 0x33f   : > { %vm11637_vm12 = vmand %vm809_vm7, %vm1497_vm9  ;;  %vm812_vm7 = vcmp.gt.f32.partialorder %v11520_v34, 0.5  ;;  %v2125_v28 = vunpack.c.l.s4 %v10804_v48 }
 0x340   : > { %v15421_v43 = vsel %vm11637_vm12, 4294967295, %v15420_v43 }
 0x341   : > { %15422 = vst [vmem:[#allocation24_spill] sm:$0xff] %v15421_v43  ;;  %v1456_v32 = vpop.f32.mrb[46].mxu0 }
 0x342   : > { %vm1498_vm8 = vcmp.gt.f32.partialorder %v1456_v32, 0.5  ;;  %v8794_v51 = vpop.f32.mrb[47].mxu0  ;;  %v2126_v32 = vunpack.c.0.s8 %v2125_v28 }
 0x343   : > { %vm11642_vm1 = vmand %vm810_vm13, %vm1498_vm8  ;;  %vm813_vm8 = vcmp.gt.f32.partialorder %v11526_v36, 0.5 }
 0x344   : > { %v15424_v27 = vsel %vm11642_vm1, 4294967295, %v15423_v27  ;;  %v11695_v51 = vsub.s32 %v2126_v32, %v10899_v3 }
 0x345   : > { %15425 = vst [vmem:[#allocation25_spill] sm:$0xff] %v15424_v27  ;;  %v1461_v23 = vpop.f32.mrb[48].mxu0 }
 0x346   : > { %vm1499_vm0 = vcmp.gt.f32.partialorder %v1461_v23, 0.5  ;;  %v8797_v53 = vpop.f32.mrb[49].mxu0  ;;  %15444 = vst [vmem:[#allocation32_spill] sm:$0xff] %v11695_v51 }
 0x347   : > { %vm11647_vm6 = vmand %vm811_vm3, %vm1499_vm0  ;;  %vm814_vm0 = vcmp.gt.f32.partialorder %v11528_v54, 0.5 }
 0x348   : > { %v15427_v29 = vsel %vm11647_vm6, 4294967295, %v15426_v29 }
 0x349   : > { %15428 = vst [vmem:[#allocation26_spill] sm:$0xff] %v15427_v29  ;;  %v1466_v55 = vpop.f32.mrb[50].mxu0 }
 0x34a   : > { %vm1500_vm9 = vcmp.gt.f32.partialorder %v1466_v55, 0.5  ;;  %v8800_v25 = vpop.f32.mrb[51].mxu0 }
 0x34b   : > { %vm11652_vm12 = vmand %vm812_vm7, %vm1500_vm9  ;;  %vm815_vm7 = vcmp.gt.f32.partialorder %v11532_v40, 0.5  ;;  %v15185_v40 = vsub.s32 5, %v10899_v3 }
 0x34c   : > { %v15430_v38 = vsel %vm11652_vm12, 4294967295, %v15429_v38 }
 0x34d   : > { %15431 = vst [vmem:[#allocation27_spill] sm:$0xff] %v15430_v38  ;;  %v1471_v44 = vpop.f32.mrb[52].mxu0 }
 0x34e   : > { %vm1501_vm13 = vcmp.gt.f32.partialorder %v1471_v44, 0.5  ;;  %v8803_v50 = vpop.f32.mrb[53].mxu0 }
 0x34f   : > { %vm11657_vm1 = vmand %vm813_vm8, %vm1501_vm13  ;;  %vm816_vm8 = vcmp.gt.f32.partialorder %v11536_v58, 0.5 }
 0x350   : > { %v15433_v57 = vsel %vm11657_vm1, 4294967295, %v15432_v57 }
 0x351   : > { %15434 = vst [vmem:[#allocation28_spill] sm:$0xff] %v15433_v57  ;;  %v1476_v59 = vpop.f32.mrb[54].mxu0 }
 0x352   : > { %vm1502_vm3 = vcmp.gt.f32.partialorder %v1476_v59, 0.5  ;;  %v8806_v34 = vpop.f32.mrb[55].mxu0 }
 0x353   : > { %vm11662_vm6 = vmand %vm814_vm0, %vm1502_vm3 }
 0x354   : > { %v15436_v35 = vsel %vm11662_vm6, 4294967295, %v15435_v35 }
 0x355   : > { %15437 = vst [vmem:[#allocation29_spill] sm:$0xff] %v15436_v35  ;;  %v1481_v60 = vpop.f32.mrb[56].mxu0 }
 0x356   : > { %vm1503_vm9 = vcmp.gt.f32.partialorder %v1481_v60, 0.5  ;;  %v8809_v36 = vpop.f32.mrb[57].mxu0 }
 0x357   : > { %vm11667_vm12 = vmand %vm815_vm7, %vm1503_vm9  ;;  %vm15308_vm9 = vcmask 982016  }
 0x358   : > { %v15439_v61 = vsel %vm11667_vm12, 4294967295, %v15438_v61 }
 0x359   : > { %15440 = vst [vmem:[#allocation30_spill] sm:$0xff] %v15439_v61  ;;  %v1486_v46 = vpop.f32.mrb[58].mxu0 }
 0x35a   : > { %vm1504_vm13 = vcmp.gt.f32.partialorder %v1486_v46, 0.5  ;;  %v8812_v54 = vpop.f32.mrb[59].mxu0 }
 0x35b   : > { %vm11672_vm1 = vmand %vm816_vm8, %vm1504_vm13  ;;  %v11703_v54 = vsub.s32 0, %v10899_v3 }
 0x35c   : > { %v15442_v39 = vsel %vm11672_vm1, 4294967295, %v15441_v39 }
 0x35d   : > { %15443 = vst [vmem:[#allocation31_spill] sm:$0xff] %v15442_v39  ;;  %15445 = vst [vmem:[#allocation33_spill] sm:$0xff] %v11703_v54 }
 0x39f   : > { %v11678_v11 = vpop.f32.mrb[60].mxu0 }
 0x3a0   : > { %v1874_v41 = vrot.slane %v11678_v11, %v15186_v0  ;;  %v1937_v58 = vrot.slane %v11678_v11, %v15185_v40  ;;  %v8892_v16 = vpop.f32.mrb[61].mxu0  ;;  %v2000_v20 = vrot.slane %v11678_v11, %v15184_v17  ;;  %v2063_v21 = vrot.slane %v11678_v11, %v15183_v19 }
 0x3a1   : > { %v2130_v55 = vrot.slane %v11678_v11, %v11695_v51 }
 0x3a2   : > { %1939 = vbcast.lane.b32.xlu0 %v1937_v58, 256  ;;  %1876 = vbcast.lane.b32.xlu1 %v1874_v41, 256 }
 0x3a3   : > { %v2131_v50 = vcombine.high %v2130_v55, %v2130_v55  ;;  %v11710_v11 = vrot.slane %v2130_v55, %v11695_v51 }
 0x3a5   : > { %v11700_v60 = vrot.slane %v2131_v50, %v11695_v51  ;;  %v11717_v28 = vrot.slane %v11710_v11, %v11703_v54 }
 0x3a6   : > { %1943 = vbcast.lane.b32.xlu0 %v1937_v58, 264  ;;  %1880 = vbcast.lane.b32.xlu1 %v1874_v41, 264 }
 0x3aa   : > { %1947 = vbcast.lane.b32.xlu0 %v1937_v58, 272  ;;  %1884 = vbcast.lane.b32.xlu1 %v1874_v41, 272 }
 0x3ae   : > { %1951 = vbcast.lane.b32.xlu0 %v1937_v58, 280  ;;  %1888 = vbcast.lane.b32.xlu1 %v1874_v41, 280 }
 0x3b2   : > { %1955 = vbcast.lane.b32.xlu0 %v1937_v58, 288  ;;  %1892 = vbcast.lane.b32.xlu1 %v1874_v41, 288 }
 0x3b6   : > { %1959 = vbcast.lane.b32.xlu0 %v1937_v58, 296  ;;  %1896 = vbcast.lane.b32.xlu1 %v1874_v41, 296 }
 0x3ba   : > { %1963 = vbcast.lane.b32.xlu0 %v1937_v58, 304  ;;  %1900 = vbcast.lane.b32.xlu1 %v1874_v41, 304 }
 0x3be   : > { %1967 = vbcast.lane.b32.xlu0 %v1937_v58, 312  ;;  %1904 = vbcast.lane.b32.xlu1 %v1874_v41, 312 }
 0x3c2   : > { %1971 = vbcast.lane.b32.xlu0 %v1937_v58, 320  ;;  %1908 = vbcast.lane.b32.xlu1 %v1874_v41, 320 }
 0x3c6   : > { %1975 = vbcast.lane.b32.xlu0 %v1937_v58, 328  ;;  %1912 = vbcast.lane.b32.xlu1 %v1874_v41, 328 }
 0x3ca   : > { %1979 = vbcast.lane.b32.xlu0 %v1937_v58, 336  ;;  %1916 = vbcast.lane.b32.xlu1 %v1874_v41, 336 }
 0x3ce   : > { %1983 = vbcast.lane.b32.xlu0 %v1937_v58, 344  ;;  %1920 = vbcast.lane.b32.xlu1 %v1874_v41, 344 }
 0x3d2   : > { %1987 = vbcast.lane.b32.xlu0 %v1937_v58, 352  ;;  %1924 = vbcast.lane.b32.xlu1 %v1874_v41, 352 }
 0x3d6   : > { %1991 = vbcast.lane.b32.xlu0 %v1937_v58, 360  ;;  %1928 = vbcast.lane.b32.xlu1 %v1874_v41, 360 }
 0x3da   : > { %1995 = vbcast.lane.b32.xlu0 %v1937_v58, 368  ;;  %1932 = vbcast.lane.b32.xlu1 %v1874_v41, 368  ;;  %v11707_v41 = vrot.slane %v11700_v60, %v11703_v54 }
 0x3de   : > { %2065 = vbcast.lane.b32.xlu0 %v2063_v21, 256  ;;  %2002 = vbcast.lane.b32.xlu1 %v2000_v20, 256 }
 0x3e2   : > { %2069 = vbcast.lane.b32.xlu0 %v2063_v21, 264  ;;  %2006 = vbcast.lane.b32.xlu1 %v2000_v20, 264 }
 0x3e6   : > { %2010 = vbcast.lane.b32.xlu0 %v2000_v20, 272  ;;  %2073 = vbcast.lane.b32.xlu1 %v2063_v21, 272 }
 0x3ea   : > { %2014 = vbcast.lane.b32.xlu0 %v2000_v20, 280  ;;  %2077 = vbcast.lane.b32.xlu1 %v2063_v21, 280 }
 0x3ee   : > { %2018 = vbcast.lane.b32.xlu0 %v2000_v20, 288  ;;  %2081 = vbcast.lane.b32.xlu1 %v2063_v21, 288 }
 0x3f2   : > { %2022 = vbcast.lane.b32.xlu0 %v2000_v20, 296  ;;  %2085 = vbcast.lane.b32.xlu1 %v2063_v21, 296 }
 0x3f6   : > { %2026 = vbcast.lane.b32.xlu0 %v2000_v20, 304  ;;  %2089 = vbcast.lane.b32.xlu1 %v2063_v21, 304 }
 0x3fa   : > { %2030 = vbcast.lane.b32.xlu0 %v2000_v20, 312  ;;  %2093 = vbcast.lane.b32.xlu1 %v2063_v21, 312 }
 0x3fe   : > { %2034 = vbcast.lane.b32.xlu0 %v2000_v20, 320  ;;  %2097 = vbcast.lane.b32.xlu1 %v2063_v21, 320 }
 0x402   : > { %2038 = vbcast.lane.b32.xlu0 %v2000_v20, 328  ;;  %2101 = vbcast.lane.b32.xlu1 %v2063_v21, 328 }
 0x406   : > { %2042 = vbcast.lane.b32.xlu0 %v2000_v20, 336  ;;  %2105 = vbcast.lane.b32.xlu1 %v2063_v21, 336 }
 0x40a   : > { %2046 = vbcast.lane.b32.xlu0 %v2000_v20, 344  ;;  %2109 = vbcast.lane.b32.xlu1 %v2063_v21, 344 }
 0x40e   : > { %2050 = vbcast.lane.b32.xlu0 %v2000_v20, 352  ;;  %2113 = vbcast.lane.b32.xlu1 %v2063_v21, 352 }
 0x412   : > { %2054 = vbcast.lane.b32.xlu0 %v2000_v20, 360  ;;  %2117 = vbcast.lane.b32.xlu1 %v2063_v21, 360 }
 0x414   : > { %v1940_v23 = vpop.permute.xlu0 %1939  ;;  %v1877_v53 = vpop.permute.xlu1 %1876 }
 0x415   : > { %v2168_v22 = vadd.f32 %v11717_v28, %v1877_v53 }
 0x416   : > { %2121 = vbcast.lane.b32.xlu0 %v2063_v21, 368  ;;  %2058 = vbcast.lane.b32.xlu1 %v2000_v20, 368  ;;  %v2183_v20 = vadd.f32 %v11707_v41, %v1940_v23 }
 0x417   : > { %v2288_v6 = vmul.f32 0.2, %v2168_v22  ;;  %vm2228_vm7 = vcmp.gt.f32.partialorder %v2168_v22, 0.0 }
 0x418   : > { %v1944_v25 = vpop.permute.xlu0 %1943  ;;  %v1881_v44 = vpop.permute.xlu1 %1880  ;;  %v2303_v32 = vmul.f32 0.2, %v2183_v20  ;;  %vm2243_vm0 = vcmp.gt.f32.partialorder %v2183_v20, 0.0 }
 0x419   : > { %v2184_v50 = vadd.f32 %v11707_v41, %v1944_v25  ;;  %v2169_v19 = vadd.f32 %v11717_v28, %v1881_v44 }
 0x41a   : > { %v2363_v23 = vsel %vm2243_vm0, %v2183_v20, %v2303_v32  ;;  %v2348_v32 = vsel %vm2228_vm7, %v2168_v22, %v2288_v6 }
 0x41b   : > { %v2304_v55 = vmul.f32 0.2, %v2184_v50  ;;  %vm2244_vm3 = vcmp.gt.f32.partialorder %v2184_v50, 0.0  ;;  %v11731_v53 = vsel %vm11598_vm11, %v2363_v23, -1e+30  ;;  %vm2229_vm13 = vcmp.gt.f32.partialorder %v2169_v19, 0.0 }
 0x41c   : > { %v1948_v59 = vpop.permute.xlu0 %1947  ;;  %v1885_v34 = vpop.permute.xlu1 %1884  ;;  %v2544_v15 = vsel %vm15308_vm9, %v11731_v53, -inf  ;;  %v11748_v6 = vsel %vm11598_vm11, %v2348_v32, -1e+30 }
 0x41d   : > { %v2185_v10 = vadd.f32 %v11707_v41, %v1948_v59  ;;  %v2364_v1 = vsel %vm2244_vm3, %v2184_v50, %v2304_v55  ;;  %v2289_v59 = vmul.f32 0.2, %v2169_v19  ;;  %v2170_v20 = vadd.f32 %v11717_v28, %v1885_v34 }
 0x41e   : > { %v11743_v23 = vsel %vm11603_vm14, %v2364_v1, -1e+30 }
 0x41f   : > { %v2305_v25 = vmul.f32 0.2, %v2185_v10  ;;  %vm2245_vm8 = vcmp.gt.f32.partialorder %v2185_v10, 0.0  ;;  %v2290_v34 = vmul.f32 0.2, %v2170_v20  ;;  %v2349_v8 = vsel %vm2229_vm13, %v2169_v19, %v2289_v59 }
 0x420   : > { %v1952_v36 = vpop.permute.xlu0 %1951  ;;  %v1889_v46 = vpop.permute.xlu1 %1888  ;;  %v2547_v1 = vsel %vm15308_vm9, %v11743_v23, -inf  ;;  %vm2230_vm3 = vcmp.gt.f32.partialorder %v2170_v20, 0.0 }
 0x421   : > { %v2186_v0 = vadd.f32 %v11707_v41, %v1952_v36  ;;  %v2365_v22 = vsel %vm2245_vm8, %v2185_v10, %v2305_v25  ;;  %v2171_v55 = vadd.f32 %v11717_v28, %v1889_v46  ;;  %v11766_v46 = vsel %vm11603_vm14, %v2349_v8, -1e+30 }
 0x422   : > { %v11761_v10 = vsel %vm11609_vm2, %v2365_v22, -1e+30 }
 0x423   : > { %v2306_v36 = vmul.f32 0.2, %v2186_v0  ;;  %vm2246_vm0 = vcmp.gt.f32.partialorder %v2186_v0, 0.0  ;;  %v2291_v32 = vmul.f32 0.2, %v2171_v55  ;;  %v2550_v22 = vsel %vm15308_vm9, %v11761_v10, -inf }
 0x424   : > { %v1956_v58 = vpop.permute.xlu0 %1955  ;;  %v1893_v16 = vpop.permute.xlu1 %1892  ;;  %vm2231_vm8 = vcmp.gt.f32.partialorder %v2171_v55, 0.0 }
 0x425   : > { %v2187_v50 = vadd.f32 %v11707_v41, %v1956_v58  ;;  %v2499_v58 = vsel %vm15308_vm9, %v11748_v6, -inf  ;;  %v2366_v59 = vsel %vm2246_vm0, %v2186_v0, %v2306_v36  ;;  %v2172_v4 = vadd.f32 %v11717_v28, %v1893_v16 }
 0x426   : > { %v11779_v8 = vsel %vm11614_vm5, %v2366_v59, -1e+30 }
 0x427   : > { %v2307_v25 = vmul.f32 0.2, %v2187_v50  ;;  %vm2247_vm7 = vcmp.gt.f32.partialorder %v2187_v50, 0.0  ;;  %15446 = vst [vmem:[#allocation34_spill] sm:$0xff] %v11779_v8  ;;  %v2553_v59 = vsel %vm15308_vm9, %v11779_v8, -inf  ;;  %vm2232_vm0 = vcmp.gt.f32.partialorder %v2172_v4, 0.0 }
 0x428   : > { %v1960_v21 = vpop.permute.xlu0 %1959  ;;  %v11713_v48 = vpop.permute.xlu1 %1896 }
 0x429   : > { %v2188_v19 = vadd.f32 %v11707_v41, %v1960_v21  ;;  %v2502_v21 = vsel %vm15308_vm9, %v11766_v46, -inf  ;;  %v2367_v36 = vsel %vm2247_vm7, %v2187_v50, %v2307_v25 }
 0x42a   : > { %v11798_v50 = vsel %vm11620_vm10, %v2367_v36, -1e+30 }
 0x42b   : > { %v2308_v0 = vmul.f32 0.2, %v2188_v19  ;;  %vm2248_vm13 = vcmp.gt.f32.partialorder %v2188_v19, 0.0  ;;  %v2556_v49 = vsel %vm15308_vm9, %v11798_v50, -inf }
 0x42c   : > { %v1964_v13 = vpop.permute.xlu0 %1963  ;;  %v11721_v12 = vpop.permute.xlu1 %1900 }
 0x42d   : > { %v2189_v16 = vadd.f32 %v11707_v41, %v1964_v13 }
 0x42f   : > { %v2309_v25 = vmul.f32 0.2, %v2189_v16 }
 0x430   : > { %v11725_v17 = vpop.permute.xlu0 %1967  ;;  %v11727_v40 = vpop.permute.xlu1 %1904 }
 0x434   : > { %v11735_v44 = vpop.permute.xlu0 %1971  ;;  %v11737_v2 = vpop.permute.xlu1 %1908 }
 0x435   : > { %2545 = vmax.xlane.f32.xlu0 %v2544_v15 }
 0x438   : > { %v11751_v7 = vpop.permute.xlu0 %1975  ;;  %v11753_v15 = vpop.permute.xlu1 %1912 }
 0x439   : > { %2548 = vmax.xlane.f32.xlu0 %v2547_v1  ;;  %v2350_v1 = vsel %vm2230_vm3, %v2170_v20, %v2290_v34  ;;  %v2292_v34 = vmul.f32 0.2, %v2172_v4  ;;  %vm2249_vm3 = vcmp.gt.f32.partialorder %v2189_v16, 0.0 }
 0x43a   : > { %2500 = vmax.xlane.f32.xlu1 %v2499_v58  ;;  %v11784_v20 = vsel %vm11609_vm2, %v2350_v1, -1e+30  ;;  %v2173_v58 = vadd.f32 %v11717_v28, %v11713_v48  ;;  %v2190_v48 = vadd.f32 %v11707_v41, %v11725_v17 }
 0x43b   : > { %v2505_v13 = vsel %vm15308_vm9, %v11784_v20, -inf }
 0x43c   : > { %v11769_v5 = vpop.permute.xlu0 %1979  ;;  %v11771_v51 = vpop.permute.xlu1 %1916  ;;  %v2293_v1 = vmul.f32 0.2, %v2173_v58  ;;  %vm2233_vm7 = vcmp.gt.f32.partialorder %v2173_v58, 0.0 }
 0x43d   : > { %2551 = vmax.xlane.f32.xlu0 %v2550_v22  ;;  %v2351_v22 = vsel %vm2231_vm8, %v2171_v55, %v2291_v32  ;;  %v2368_v32 = vsel %vm2248_vm13, %v2188_v19, %v2308_v0  ;;  %v2310_v0 = vmul.f32 0.2, %v2190_v48  ;;  %vm2250_vm8 = vcmp.gt.f32.partialorder %v2190_v48, 0.0 }
 0x43e   : > { %2503 = vmax.xlane.f32.xlu1 %v2502_v21  ;;  %v11804_v55 = vsel %vm11614_vm5, %v2351_v22, -1e+30  ;;  %v2174_v21 = vadd.f32 %v11717_v28, %v11721_v12  ;;  %v11818_v19 = vsel %vm11625_vm15, %v2368_v32, -1e+30 }
 0x43f   : > { %v2508_v17 = vsel %vm15308_vm9, %v11804_v55, -inf  ;;  %15447 = vst [vmem:[#allocation35_spill] sm:$0xff] %v11818_v19  ;;  %v2559_v14 = vsel %vm15308_vm9, %v11818_v19, -inf }
 0x440   : > { %v11788_v3 = vpop.permute.xlu0 %1983  ;;  %v11790_v18 = vpop.permute.xlu1 %1920  ;;  %v2294_v22 = vmul.f32 0.2, %v2174_v21  ;;  %vm2234_vm13 = vcmp.gt.f32.partialorder %v2174_v21, 0.0 }
 0x441   : > { %2554 = vmax.xlane.f32.xlu0 %v2553_v59  ;;  %v2352_v59 = vsel %vm2232_vm0, %v2172_v4, %v2292_v34  ;;  %v2191_v4 = vadd.f32 %v11707_v41, %v11735_v44  ;;  %v2369_v34 = vsel %vm2249_vm3, %v2189_v16, %v2309_v25 }
 0x442   : > { %2506 = vmax.xlane.f32.xlu1 %v2505_v13  ;;  %v11824_v12 = vsel %vm11620_vm10, %v2352_v59, -1e+30  ;;  %v2353_v13 = vsel %vm2233_vm7, %v2173_v58, %v2293_v1  ;;  %v11838_v16 = vsel %vm11631_vm4, %v2369_v34, -1e+30  ;;  %v2370_v1 = vsel %vm2250_vm8, %v2190_v48, %v2310_v0 }
 0x443   : > { %v2511_v44 = vsel %vm15308_vm9, %v11824_v12, -inf  ;;  %v2311_v25 = vmul.f32 0.2, %v2191_v4  ;;  %v11844_v58 = vsel %vm11625_vm15, %v2353_v13, -1e+30  ;;  %vm2251_vm0 = vcmp.gt.f32.partialorder %v2191_v4, 0.0 }
 0x444   : > { %v11808_v52 = vpop.permute.xlu0 %1987  ;;  %v11810_v36 = vpop.permute.xlu1 %1924  ;;  %v2562_v33 = vsel %vm15308_vm9, %v11838_v16, -inf  ;;  %vm15448_vm7 = vnez %v15421_v43 }
 0x445   : > { %2557 = vmax.xlane.f32.xlu0 %v2556_v49  ;;  %v2175_v49 = vadd.f32 %v11717_v28, %v11727_v40  ;;  %v2192_v40 = vadd.f32 %v11707_v41, %v11751_v7  ;;  %v2514_v7 = vsel %vm15308_vm9, %v11844_v58, -inf  ;;  %v11858_v48 = vsel %vm15448_vm7, %v2370_v1, -1e+30 }
 0x446   : > { %2509 = vmax.xlane.f32.xlu1 %v2508_v17  ;;  %v2354_v17 = vsel %vm2234_vm13, %v2174_v21, %v2294_v22  ;;  %15449 = vst [vmem:[#allocation36_spill] sm:$0xff] %v11858_v48  ;;  %v2371_v22 = vsel %vm2251_vm0, %v2191_v4, %v2311_v25  ;;  %v2565_v31 = vsel %vm15308_vm9, %v11858_v48, -inf  ;;  %vm15450_vm0 = vnez %v15424_v27 }
 0x447   : > { %v2295_v59 = vmul.f32 0.2, %v2175_v49  ;;  %vm2235_vm3 = vcmp.gt.f32.partialorder %v2175_v49, 0.0  ;;  %v2312_v0 = vmul.f32 0.2, %v2192_v40  ;;  %vm2252_vm8 = vcmp.gt.f32.partialorder %v2192_v40, 0.0 }
 0x448   : > { %v11828_v45 = vpop.permute.xlu0 %1991  ;;  %v11830_v32 = vpop.permute.xlu1 %1928  ;;  %v11864_v21 = vsel %vm11631_vm4, %v2354_v17, -1e+30  ;;  %v11878_v4 = vsel %vm15450_vm0, %v2371_v22, -1e+30 }
 0x449   : > { %2560 = vmax.xlane.f32.xlu0 %v2559_v14  ;;  %v2176_v14 = vadd.f32 %v11717_v28, %v11737_v2  ;;  %v2193_v2 = vadd.f32 %v11707_v41, %v11769_v5  ;;  %v2517_v5 = vsel %vm15308_vm9, %v11864_v21, -inf  ;;  %15451 = vst [vmem:[#allocation37_spill] sm:$0xff] %v11878_v4  ;;  %v2568_v8 = vsel %vm15308_vm9, %v11878_v4, -inf }
 0x44a   : > { %2512 = vmax.xlane.f32.xlu1 %v2511_v44  ;;  %v2355_v44 = vsel %vm2235_vm3, %v2175_v49, %v2295_v59  ;;  %v2372_v59 = vsel %vm2252_vm8, %v2192_v40, %v2312_v0  ;;  %vm15452_vm8 = vnez %v15427_v29 }
 0x44b   : > { %v2296_v13 = vmul.f32 0.2, %v2176_v14  ;;  %vm2236_vm13 = vcmp.gt.f32.partialorder %v2176_v14, 0.0  ;;  %v2313_v25 = vmul.f32 0.2, %v2193_v2  ;;  %vm2253_vm3 = vcmp.gt.f32.partialorder %v2193_v2, 0.0 }
 0x44c   : > { %v11848_v63 = vpop.permute.xlu0 %1995  ;;  %v11850_v34 = vpop.permute.xlu1 %1932  ;;  %v11884_v49 = vsel %vm15448_vm7, %v2355_v44, -1e+30  ;;  %v11898_v40 = vsel %vm15452_vm8, %v2372_v59, -1e+30 }
 0x44d   : > { %2563 = vmax.xlane.f32.xlu0 %v2562_v33  ;;  %v2177_v33 = vadd.f32 %v11717_v28, %v11753_v15  ;;  %v2194_v15 = vadd.f32 %v11707_v41, %v11788_v3  ;;  %v2520_v3 = vsel %vm15308_vm9, %v11884_v49, -inf  ;;  %15453 = vst [vmem:[#allocation38_spill] sm:$0xff] %v11898_v40  ;;  %v2571_v48 = vsel %vm15308_vm9, %v11898_v40, -inf }
 0x44e   : > { %2515 = vmax.xlane.f32.xlu1 %v2514_v7  ;;  %v2356_v7 = vsel %vm2236_vm13, %v2176_v14, %v2296_v13  ;;  %v2373_v13 = vsel %vm2253_vm3, %v2193_v2, %v2313_v25  ;;  %vm15455_vm3 = vnez %v15430_v38 }
 0x44f   : > { %v2297_v17 = vmul.f32 0.2, %v2177_v33  ;;  %vm2237_vm4 = vcmp.gt.f32.partialorder %v2177_v33, 0.0  ;;  %v2314_v0 = vmul.f32 0.2, %v2194_v15  ;;  %vm2254_vm13 = vcmp.gt.f32.partialorder %v2194_v15, 0.0 }
 0x450   : > { %v11868_v37 = vpop.permute.xlu0 %2065  ;;  %v11870_v1 = vpop.permute.xlu1 %2002  ;;  %v11904_v14 = vsel %vm15450_vm0, %v2356_v7, -1e+30  ;;  %v11918_v2 = vsel %vm15455_vm3, %v2373_v13, -1e+30 }
 0x451   : > { %2566 = vmax.xlane.f32.xlu0 %v2565_v31  ;;  %v2178_v31 = vadd.f32 %v11717_v28, %v11771_v51  ;;  %v2195_v51 = vadd.f32 %v11707_v41, %v11808_v52  ;;  %15454 = vst [vmem:[#allocation39_spill] sm:$0xff] %v11904_v14  ;;  %v2523_v52 = vsel %vm15308_vm9, %v11904_v14, -inf  ;;  %15456 = vst [vmem:[#allocation40_spill] sm:$0xff] %v11918_v2  ;;  %v2574_v14 = vsel %vm15308_vm9, %v11918_v2, -inf }
 0x452   : > { %2518 = vmax.xlane.f32.xlu1 %v2517_v5  ;;  %v2357_v5 = vsel %vm2237_vm4, %v2177_v33, %v2297_v17  ;;  %v2374_v17 = vsel %vm2254_vm13, %v2194_v15, %v2314_v0  ;;  %vm15458_vm13 = vnez %v15433_v57  ;;  %v2182_v0 = vadd.f32 %v11717_v28, %v11850_v34 }
 0x453   : > { %v2298_v44 = vmul.f32 0.2, %v2178_v31  ;;  %vm2238_vm7 = vcmp.gt.f32.partialorder %v2178_v31, 0.0  ;;  %v2315_v25 = vmul.f32 0.2, %v2195_v51  ;;  %vm2255_vm4 = vcmp.gt.f32.partialorder %v2195_v51, 0.0 }
 0x454   : > { %v11888_v19 = vpop.permute.xlu0 %2069  ;;  %v11890_v22 = vpop.permute.xlu1 %2006  ;;  %v11924_v33 = vsel %vm15452_vm8, %v2357_v5, -1e+30 }
 0x455   : > { %2569 = vmax.xlane.f32.xlu0 %v2568_v8  ;;  %v2179_v8 = vadd.f32 %v11717_v28, %v11790_v18  ;;  %v2181_v18 = vadd.f32 %v11717_v28, %v11830_v32  ;;  %15457 = vst [vmem:[#allocation41_spill] sm:$0xff] %v11924_v33  ;;  %v2146_v32 = vcombine.high %v11710_v11, %v11710_v11  ;;  %v2526_v15 = vsel %vm15308_vm9, %v11924_v33, -inf }
 0x456   : > { %2521 = vmax.xlane.f32.xlu1 %v2520_v3  ;;  %v2358_v3 = vsel %vm2238_vm7, %v2178_v31, %v2298_v44  ;;  %v2375_v5 = vsel %vm2255_vm4, %v2195_v51, %v2315_v25  ;;  %v2196_v11 = vadd.f32 %v11707_v41, %v11828_v45 }
 0x457   : > { %v2299_v7 = vmul.f32 0.2, %v2179_v8  ;;  %vm2239_vm0 = vcmp.gt.f32.partialorder %v2179_v8, 0.0  ;;  %v2301_v31 = vmul.f32 0.2, %v2181_v18  ;;  %vm2241_vm7 = vcmp.gt.f32.partialorder %v2181_v18, 0.0 }
 0x458   : > { %v11908_v4 = vpop.permute.xlu0 %2010  ;;  %v11910_v59 = vpop.permute.xlu1 %2073  ;;  %v11946_v44 = vsel %vm15455_vm3, %v2358_v3, -1e+30  ;;  %v11959_v34 = vrot.slane %v2146_v32, %v11703_v54  ;;  %v11965_v51 = vsel %vm11662_vm6, %v2375_v5, -1e+30  ;;  %v2316_v3 = vmul.f32 0.2, %v2196_v11 }
 0x459   : > { %2572 = vmax.xlane.f32.xlu0 %v2571_v48  ;;  %v2180_v48 = vadd.f32 %v11717_v28, %v11810_v36  ;;  %v11940_v36 = vsel %vm15458_vm13, %v2374_v17, -1e+30  ;;  %15460 = vst [vmem:[#allocation43_spill] sm:$0xff] %v11946_v44  ;;  %v2147_v17 = vcombine.high %v11700_v60, %v11700_v60  ;;  %v2529_v45 = vsel %vm15308_vm9, %v11946_v44, -inf }
 0x45a   : > { %2524 = vmax.xlane.f32.xlu1 %v2523_v52  ;;  %15459 = vst [vmem:[#allocation42_spill] sm:$0xff] %v11940_v36  ;;  %v2577_v28 = vsel %vm15308_vm9, %v11940_v36, -inf  ;;  %v2197_v60 = vadd.f32 %v11707_v41, %v11848_v63  ;;  %v2198_v32 = vadd.f32 %v11959_v34, %v11870_v1  ;;  %v2580_v63 = vsel %vm15308_vm9, %v11965_v51, -inf }
 0x45b   : > { %v2300_v52 = vmul.f32 0.2, %v2180_v48  ;;  %vm2240_vm8 = vcmp.gt.f32.partialorder %v2180_v48, 0.0  ;;  %vm2256_vm4 = vcmp.gt.f32.partialorder %v2196_v11, 0.0 }
 0x45c   : > { %v11928_v40 = vpop.permute.xlu0 %2014  ;;  %v11930_v13 = vpop.permute.xlu1 %2077 }
 0x45d   : > { %2575 = vmax.xlane.f32.xlu0 %v2574_v14  ;;  %v2359_v14 = vsel %vm2239_vm0, %v2179_v8, %v2299_v7  ;;  %v2302_v8 = vmul.f32 0.2, %v2182_v0  ;;  %v2361_v7 = vsel %vm2241_vm7, %v2181_v18, %v2301_v31  ;;  %vm2242_vm0 = vcmp.gt.f32.partialorder %v2182_v0, 0.0 }
 0x45e   : > { %2527 = vmax.xlane.f32.xlu1 %v2526_v15  ;;  %v11971_v25 = vsel %vm15458_vm13, %v2359_v14, -1e+30  ;;  %v2360_v15 = vsel %vm2240_vm8, %v2180_v48, %v2300_v52  ;;  %v11988_v1 = vsel %vm11667_vm12, %v2361_v7, -1e+30  ;;  %v2317_v18 = vmul.f32 0.2, %v2197_v60 }
 0x45f   : > { %15461 = vst [vmem:[#allocation44_spill] sm:$0xff] %v11971_v25  ;;  %v2532_v41 = vsel %vm15308_vm9, %v11971_v25, -inf  ;;  %15462 = vst [vmem:[#allocation45_spill] sm:$0xff] %v11988_v1  ;;  %v11994_v31 = vsel %vm11662_vm6, %v2360_v15, -1e+30  ;;  %v2362_v52 = vsel %vm2242_vm0, %v2182_v0, %v2302_v8  ;;  %vm2257_vm8 = vcmp.gt.f32.partialorder %v2197_v60, 0.0 }
 0x460   : > { %v11952_v2 = vpop.permute.xlu0 %2018  ;;  %v11954_v33 = vpop.permute.xlu1 %2081  ;;  %15463 = vst [vmem:[#allocation46_spill] sm:$0xff] %v11994_v31  ;;  %v2318_v14 = vmul.f32 0.2, %v2198_v32  ;;  %vm2258_vm7 = vcmp.gt.f32.partialorder %v2198_v32, 0.0  ;;  %v12008_v0 = vsel %vm11672_vm1, %v2362_v52, -1e+30 }
 0x461   : > { %2578 = vmax.xlane.f32.xlu0 %v2577_v28  ;;  %v11976_v28 = vrot.slane %v2147_v17, %v11703_v54  ;;  %v2199_v17 = vadd.f32 %v11959_v34, %v11890_v22  ;;  %v2538_v54 = vsel %vm15308_vm9, %v11988_v1, -inf  ;;  %15464 = vst [vmem:[#allocation47_spill] sm:$0xff] %v12008_v0  ;;  %v2200_v22 = vadd.f32 %v11959_v34, %v11908_v4 }
 0x462   : > { %2530 = vmax.xlane.f32.xlu1 %v2529_v45  ;;  %v2376_v45 = vsel %vm2256_vm4, %v2196_v11, %v2316_v3  ;;  %v2377_v3 = vsel %vm2257_vm8, %v2197_v60, %v2317_v18 }
 0x463   : > { %v2213_v48 = vadd.f32 %v11976_v28, %v11868_v37  ;;  %v2535_v37 = vsel %vm15308_vm9, %v11994_v31, -inf  ;;  %v12014_v11 = vsel %vm11667_vm12, %v2376_v45, -1e+30  ;;  %v2319_v15 = vmul.f32 0.2, %v2199_v17 }
 0x464   : > { %v11978_v5 = vpop.permute.xlu0 %2022  ;;  %v11980_v36 = vpop.permute.xlu1 %2085  ;;  %v2541_v31 = vsel %vm15308_vm9, %v12008_v0, -inf  ;;  %vm2259_vm4 = vcmp.gt.f32.partialorder %v2199_v17, 0.0  ;;  %v2583_v4 = vsel %vm15308_vm9, %v12014_v11, -inf  ;;  %v12028_v60 = vsel %vm11672_vm1, %v2377_v3, -1e+30 }
 0x465   : > { %2581 = vmax.xlane.f32.xlu0 %v2580_v63  ;;  %v2333_v8 = vmul.f32 0.2, %v2213_v48  ;;  %vm2273_vm0 = vcmp.gt.f32.partialorder %v2213_v48, 0.0  ;;  %vm2260_vm8 = vcmp.gt.f32.partialorder %v2200_v22, 0.0  ;;  %v2586_v3 = vsel %vm15308_vm9, %v12028_v60, -inf }
 0x466   : > { %2533 = vmax.xlane.f32.xlu1 %v2532_v41  ;;  %v2378_v41 = vsel %vm2258_vm7, %v2198_v32, %v2318_v14  ;;  %v2201_v32 = vadd.f32 %v11959_v34, %v11928_v40 }
 0x467   : > { %v12034_v18 = vsel %vm11598_vm11, %v2378_v41, -1e+30  ;;  %v2393_v14 = vsel %vm2273_vm0, %v2213_v48, %v2333_v8 }
 0x468   : > { %v11998_v63 = vpop.permute.xlu0 %2026  ;;  %v12000_v7 = vpop.permute.xlu1 %2089  ;;  %15465 = vst [vmem:[#allocation48_spill] sm:$0xff] %v12034_v18  ;;  %v2589_v40 = vsel %vm15308_vm9, %v12034_v18, -inf  ;;  %v12046_v48 = vsel %vm11598_vm11, %v2393_v14, -1e+30  ;;  %v2321_v8 = vmul.f32 0.2, %v2201_v32 }
 0x469   : > { %2539 = vmax.xlane.f32.xlu0 %v2538_v54  ;;  %v2214_v54 = vadd.f32 %v11976_v28, %v11888_v19  ;;  %v2320_v19 = vmul.f32 0.2, %v2200_v22  ;;  %vm2261_vm0 = vcmp.gt.f32.partialorder %v2201_v32, 0.0  ;;  %v2634_v26 = vsel %vm15308_vm9, %v12046_v48, -inf }
 0x46a   : > { %2536 = vmax.xlane.f32.xlu1 %v2535_v37  ;;  %v2379_v37 = vsel %vm2259_vm4, %v2199_v17, %v2319_v15 }
 0x46b   : > { %v2334_v45 = vmul.f32 0.2, %v2214_v54  ;;  %vm2274_vm7 = vcmp.gt.f32.partialorder %v2214_v54, 0.0  ;;  %v12052_v17 = vsel %vm11603_vm14, %v2379_v37, -1e+30  ;;  %v2380_v15 = vsel %vm2260_vm8, %v2200_v22, %v2320_v19 }
 0x46c   : > { %v12018_v1 = vpop.permute.xlu0 %2030  ;;  %v12020_v52 = vpop.permute.xlu1 %2093  ;;  %15466 = vst [vmem:[#allocation49_spill] sm:$0xff] %v12052_v17  ;;  %v12066_v22 = vsel %vm11609_vm2, %v2380_v15, -1e+30 }
 0x46d   : > { %2542 = vmax.xlane.f32.xlu0 %v2541_v31  ;;  %v2215_v31 = vadd.f32 %v11976_v28, %v11910_v59  ;;  %v2202_v59 = vadd.f32 %v11959_v34, %v11952_v2  ;;  %v2592_v2 = vsel %vm15308_vm9, %v12052_v17, -inf  ;;  %15467 = vst [vmem:[#allocation50_spill] sm:$0xff] %v12066_v22  ;;  %v2595_v44 = vsel %vm15308_vm9, %v12066_v22, -inf }
 0x46e   : > { %2584 = vmax.xlane.f32.xlu1 %v2583_v4  ;;  %v2216_v4 = vadd.f32 %v11976_v28, %v11930_v13  ;;  %v2203_v13 = vadd.f32 %v11959_v34, %v11978_v5 }
 0x46f   : > { %v2335_v41 = vmul.f32 0.2, %v2215_v31  ;;  %vm2275_vm4 = vcmp.gt.f32.partialorder %v2215_v31, 0.0  ;;  %v2322_v19 = vmul.f32 0.2, %v2202_v59  ;;  %vm2262_vm8 = vcmp.gt.f32.partialorder %v2202_v59, 0.0 }
 0x470   : > { %v2035_v0 = vpop.permute.xlu0 %2034  ;;  %v12038_v25 = vpop.permute.xlu1 %2097  ;;  %v2336_v37 = vmul.f32 0.2, %v2216_v4 }
 0x471   : > { %2587 = vmax.xlane.f32.xlu0 %v2586_v3  ;;  %v2394_v3 = vsel %vm2274_vm7, %v2214_v54, %v2334_v45  ;;  %v2381_v45 = vsel %vm2261_vm0, %v2201_v32, %v2321_v8  ;;  %vm2276_vm7 = vcmp.gt.f32.partialorder %v2216_v4, 0.0  ;;  %v2323_v8 = vmul.f32 0.2, %v2203_v13 }
 0x472   : > { %2590 = vmax.xlane.f32.xlu1 %v2589_v40  ;;  %v12072_v54 = vsel %vm11603_vm14, %v2394_v3, -1e+30  ;;  %v2395_v40 = vsel %vm2275_vm4, %v2215_v31, %v2335_v41  ;;  %v12086_v32 = vsel %vm11614_vm5, %v2381_v45, -1e+30  ;;  %v2382_v41 = vsel %vm2262_vm8, %v2202_v59, %v2322_v19 }
 0x473   : > { %v2637_v5 = vsel %vm15308_vm9, %v12072_v54, -inf  ;;  %15468 = vst [vmem:[#allocation51_spill] sm:$0xff] %v12086_v32  ;;  %v12092_v31 = vsel %vm11609_vm2, %v2395_v40, -1e+30  ;;  %vm2263_vm0 = vcmp.gt.f32.partialorder %v2203_v13, 0.0  ;;  %v2598_v22 = vsel %vm15308_vm9, %v12086_v32, -inf }
 0x474   : > { %v12056_v18 = vpop.permute.xlu0 %2038  ;;  %v12058_v14 = vpop.permute.xlu1 %2101  ;;  %v12104_v59 = vsel %vm11620_vm10, %v2382_v41, -1e+30 }
 0x475   : > { %2635 = vmax.xlane.f32.xlu0 %v2634_v26  ;;  %v2217_v26 = vadd.f32 %v11976_v28, %v11954_v33  ;;  %v2204_v33 = vadd.f32 %v11959_v34, %v11998_v63  ;;  %v2640_v63 = vsel %vm15308_vm9, %v12092_v31, -inf  ;;  %v2601_v41 = vsel %vm15308_vm9, %v12104_v59, -inf }
 0x476   : > { %2593 = vmax.xlane.f32.xlu1 %v2592_v2  ;;  %v2396_v2 = vsel %vm2276_vm7, %v2216_v4, %v2336_v37  ;;  %v2383_v37 = vsel %vm2263_vm0, %v2203_v13, %v2323_v8 }
 0x477   : > { %v2337_v3 = vmul.f32 0.2, %v2217_v26  ;;  %vm2277_vm4 = vcmp.gt.f32.partialorder %v2217_v26, 0.0  ;;  %v2324_v19 = vmul.f32 0.2, %v2204_v33  ;;  %vm2264_vm8 = vcmp.gt.f32.partialorder %v2204_v33, 0.0 }
 0x478   : > { %v12076_v17 = vpop.permute.xlu0 %2042  ;;  %v12078_v15 = vpop.permute.xlu1 %2105  ;;  %v12109_v4 = vsel %vm11614_vm5, %v2396_v2, -1e+30  ;;  %v12123_v13 = vsel %vm11625_vm15, %v2383_v37, -1e+30  ;;  %vm15472_vm5 = vnez %v15424_v27 }
 0x479   : > { %2596 = vmax.xlane.f32.xlu0 %v2595_v44  ;;  %v2218_v44 = vadd.f32 %v11976_v28, %v11980_v36  ;;  %v2206_v36 = vadd.f32 %v11959_v34, %v2035_v0  ;;  %v2643_v0 = vsel %vm15308_vm9, %v12109_v4, -inf  ;;  %15469 = vst [vmem:[#allocation52_spill] sm:$0xff] %v12123_v13  ;;  %v2604_v37 = vsel %vm15308_vm9, %v12123_v13, -inf }
 0x47a   : > { %2638 = vmax.xlane.f32.xlu1 %v2637_v5  ;;  %v2397_v5 = vsel %vm2277_vm4, %v2217_v26, %v2337_v3  ;;  %v2384_v3 = vsel %vm2264_vm8, %v2204_v33, %v2324_v19 }
 0x47b   : > { %v2338_v40 = vmul.f32 0.2, %v2218_v44  ;;  %vm2278_vm7 = vcmp.gt.f32.partialorder %v2218_v44, 0.0  ;;  %v2326_v8 = vmul.f32 0.2, %v2206_v36  ;;  %vm2266_vm0 = vcmp.gt.f32.partialorder %v2206_v36, 0.0 }
 0x47c   : > { %v12096_v42 = vpop.permute.xlu0 %2046  ;;  %v2110_v45 = vpop.permute.xlu1 %2109  ;;  %v12129_v26 = vsel %vm11620_vm10, %v2397_v5, -1e+30  ;;  %vm15470_vm10 = vnez %v15418_v24 }
 0x47d   : > { %2599 = vmax.xlane.f32.xlu0 %v2598_v22  ;;  %v2219_v22 = vadd.f32 %v11976_v28, %v12000_v7  ;;  %v2221_v7 = vadd.f32 %v11976_v28, %v12038_v25  ;;  %v2646_v25 = vsel %vm15308_vm9, %v12129_v26, -inf  ;;  %v12141_v5 = vsel %vm15470_vm10, %v2384_v3, -1e+30 }
 0x47e   : > { %2641 = vmax.xlane.f32.xlu1 %v2640_v63  ;;  %v2205_v63 = vadd.f32 %v11959_v34, %v12018_v1  ;;  %15471 = vst [vmem:[#allocation53_spill] sm:$0xff] %v12141_v5  ;;  %v2224_v19 = vadd.f32 %v11976_v28, %v2110_v45  ;;  %v2607_v3 = vsel %vm15308_vm9, %v12141_v5, -inf }
 0x47f   : > { %v2339_v2 = vmul.f32 0.2, %v2219_v22  ;;  %vm2279_vm4 = vcmp.gt.f32.partialorder %v2219_v22, 0.0  ;;  %v2341_v33 = vmul.f32 0.2, %v2221_v7  ;;  %vm2281_vm8 = vcmp.gt.f32.partialorder %v2221_v7, 0.0 }
 0x480   : > { %v12113_v56 = vpop.permute.xlu0 %2050  ;;  %v12117_v32 = vpop.permute.xlu1 %2113 }
 0x481   : > { %2602 = vmax.xlane.f32.xlu0 %v2601_v41  ;;  %v2398_v41 = vsel %vm2278_vm7, %v2218_v44, %v2338_v40  ;;  %v2386_v44 = vsel %vm2266_vm0, %v2206_v36, %v2326_v8  ;;  %v2325_v40 = vmul.f32 0.2, %v2205_v63  ;;  %v2399_v9 = vsel %vm2279_vm4, %v2219_v22, %v2339_v2 }
 0x482   : > { %2644 = vmax.xlane.f32.xlu1 %v2643_v0  ;;  %v12146_v1 = vsel %vm11625_vm15, %v2398_v41, -1e+30  ;;  %v2220_v0 = vadd.f32 %v11976_v28, %v12020_v52  ;;  %vm2265_vm7 = vcmp.gt.f32.partialorder %v2205_v63, 0.0  ;;  %v12156_v41 = vsel %vm15472_vm5, %v2386_v44, -1e+30 }
 0x483   : > { %v2649_v45 = vsel %vm15308_vm9, %v12146_v1, -inf  ;;  %15473 = vst [vmem:[#allocation54_spill] sm:$0xff] %v12156_v41  ;;  %v2344_v36 = vmul.f32 0.2, %v2224_v19  ;;  %v12161_v52 = vsel %vm15470_vm10, %v2399_v9, -1e+30  ;;  %v2401_v22 = vsel %vm2281_vm8, %v2221_v7, %v2341_v33 }
 0x484   : > { %v12135_v62 = vpop.permute.xlu0 %2054  ;;  %15474 = vst [vmem:[#allocation55_spill] sm:$0xff] %v12161_v52  ;;  %v2340_v2 = vmul.f32 0.2, %v2220_v0  ;;  %v2385_v47 = vsel %vm2265_vm7, %v2205_v63, %v2325_v40  ;;  %vm2284_vm0 = vcmp.gt.f32.partialorder %v2224_v19, 0.0  ;;  %v2613_v44 = vsel %vm15308_vm9, %v12156_v41, -inf }
 0x485   : > { %2605 = vmax.xlane.f32.xlu0 %v2604_v37  ;;  %v2118_v37 = vpop.permute.xlu1 %2117  ;;  %vm2280_vm4 = vcmp.gt.f32.partialorder %v2220_v0, 0.0  ;;  %v12171_v9 = vsel %vm15472_vm5, %v2401_v22, -1e+30  ;;  %vm15476_vm8 = vnez %v15421_v43  ;;  %v2404_v63 = vsel %vm2284_vm0, %v2224_v19, %v2344_v36 }
 0x486   : > { %2647 = vmax.xlane.f32.xlu1 %v2646_v25  ;;  %v2226_v8 = vadd.f32 %v11976_v28, %v2118_v37  ;;  %v2207_v25 = vadd.f32 %v11959_v34, %v12056_v18  ;;  %v2652_v37 = vsel %vm15308_vm9, %v12161_v52, -inf  ;;  %15475 = vst [vmem:[#allocation56_spill] sm:$0xff] %v12171_v9  ;;  %v12176_v18 = vsel %vm15476_vm8, %v2385_v47, -1e+30 }
 0x487   : > { %15477 = vst [vmem:[#allocation57_spill] sm:$0xff] %v12176_v18  ;;  %v2658_v27 = vsel %vm15308_vm9, %v12171_v9, -inf  ;;  %v2610_v22 = vsel %vm15308_vm9, %v12176_v18, -inf  ;;  %v2208_v36 = vadd.f32 %v11959_v34, %v12076_v17 }
 0x488   : > { %v2346_v7 = vmul.f32 0.2, %v2226_v8  ;;  %v2327_v40 = vmul.f32 0.2, %v2207_v25  ;;  %vm2286_vm7 = vcmp.gt.f32.partialorder %v2226_v8, 0.0  ;;  %vm2267_vm5 = vcmp.gt.f32.partialorder %v2207_v25, 0.0 }
 0x489   : > { %2608 = vmax.xlane.f32.xlu0 %v2607_v3  ;;  %v2122_v3 = vpop.permute.xlu0 %2121 }
 0x48a   : > { %2650 = vmax.xlane.f32.xlu1 %v2649_v45  ;;  %v2227_v33 = vadd.f32 %v11976_v28, %v2122_v3  ;;  %v2222_v45 = vadd.f32 %v11976_v28, %v12058_v14  ;;  %v12186_v3 = vsel %vm15458_vm13, %v2404_v63, -1e+30  ;;  %v2406_v14 = vsel %vm2286_vm7, %v2226_v8, %v2346_v7 }
 0x48b   : > { %15478 = vst [vmem:[#allocation58_spill] sm:$0xff] %v12186_v3  ;;  %v12200_v63 = vsel %vm11667_vm12, %v2406_v14, -1e+30  ;;  %vm15481_vm7 = vnez %v15427_v29  ;;  %v2223_v7 = vadd.f32 %v11976_v28, %v12078_v15  ;;  %v2209_v15 = vadd.f32 %v11959_v34, %v12096_v42 }
 0x48c   : > { %v2347_v47 = vmul.f32 0.2, %v2227_v33  ;;  %vm2287_vm0 = vcmp.gt.f32.partialorder %v2227_v33, 0.0  ;;  %15480 = vst [vmem:[#allocation60_spill] sm:$0xff] %v12200_v63 }
 0x48d   : > { %2614 = vmax.xlane.f32.xlu0 %v2613_v44  ;;  %v2400_v44 = vsel %vm2280_vm4, %v2220_v0, %v2340_v2  ;;  %v2342_v0 = vmul.f32 0.2, %v2222_v45  ;;  %v2387_v2 = vsel %vm2267_vm5, %v2207_v25, %v2327_v40  ;;  %vm2282_vm4 = vcmp.gt.f32.partialorder %v2222_v45, 0.0 }
 0x48e   : > { %2653 = vmax.xlane.f32.xlu1 %v2652_v37  ;;  %v12190_v19 = vsel %vm15476_vm8, %v2400_v44, -1e+30  ;;  %v12204_v8 = vsel %vm15481_vm7, %v2387_v2, -1e+30  ;;  %v2407_v17 = vsel %vm2287_vm0, %v2227_v33, %v2347_v47  ;;  %v2328_v25 = vmul.f32 0.2, %v2208_v36 }
 0x48f   : > { %15479 = vst [vmem:[#allocation59_spill] sm:$0xff] %v12190_v19  ;;  %v2655_v37 = vsel %vm15308_vm9, %v12190_v19, -inf  ;;  %15482 = vst [vmem:[#allocation61_spill] sm:$0xff] %v12204_v8  ;;  %v2402_v40 = vsel %vm2282_vm4, %v2222_v45, %v2342_v0  ;;  %v2673_v44 = vsel %vm15308_vm9, %v12200_v63, -inf  ;;  %vm2268_vm5 = vcmp.gt.f32.partialorder %v2208_v36, 0.0 }
 0x490   : > { %v12214_v14 = vsel %vm11672_vm1, %v2407_v17, -1e+30  ;;  %v12218_v33 = vsel %vm15481_vm7, %v2402_v40, -1e+30  ;;  %v2343_v47 = vmul.f32 0.2, %v2223_v7  ;;  %v2388_v45 = vsel %vm2268_vm5, %v2208_v36, %v2328_v25 }
 0x491   : > { %2659 = vmax.xlane.f32.xlu0 %v2658_v27  ;;  %v2667_v27 = vsel %vm15308_vm9, %v12186_v3, -inf  ;;  %15483 = vst [vmem:[#allocation62_spill] sm:$0xff] %v12214_v14  ;;  %15484 = vst [vmem:[#allocation63_spill] sm:$0xff] %v12218_v33  ;;  %v2676_v0 = vsel %vm15308_vm9, %v12214_v14, -inf  ;;  %vm2283_vm0 = vcmp.gt.f32.partialorder %v2223_v7, 0.0  ;;  %v2661_v2 = vsel %vm15308_vm9, %v12218_v33, -inf }
 0x492   : > { %2611 = vmax.xlane.f32.xlu1 %v2610_v22  ;;  %v2616_v22 = vsel %vm15308_vm9, %v12204_v8, -inf  ;;  %v2210_v17 = vadd.f32 %v11959_v34, %v12113_v56  ;;  %v2403_v40 = vsel %vm2283_vm0, %v2223_v7, %v2343_v47  ;;  %vm2269_vm4 = vcmp.gt.f32.partialorder %v2209_v15, 0.0 }
 0x493   : > { %v12236_v36 = vsel %vm15455_vm3, %v2403_v40, -1e+30  ;;  %v2211_v47 = vadd.f32 %v11959_v34, %v12135_v62 }
 0x494   : > { %15486 = vst [vmem:[#allocation65_spill] sm:$0xff] %v12236_v36  ;;  %v2330_v25 = vmul.f32 0.2, %v2210_v17  ;;  %vm2270_vm5 = vcmp.gt.f32.partialorder %v2210_v17, 0.0 }
 0x495   : > { %2668 = vmax.xlane.f32.xlu0 %v2667_v27  ;;  %v12228_v27 = vsel %vm15455_vm3, %v2388_v45, -1e+30  ;;  %v2664_v45 = vsel %vm15308_vm9, %v12236_v36, -inf  ;;  %v15526_v36 = vld [vmem:[#allocation50_spill] sm:$0xff] }
 0x496   : > { %2656 = vmax.xlane.f32.xlu1 %v2655_v37  ;;  %15485 = vst [vmem:[#allocation64_spill] sm:$0xff] %v12228_v27  ;;  %v2329_v37 = vmul.f32 0.2, %v2209_v15  ;;  %v2619_v42 = vsel %vm15308_vm9, %v12228_v27, -inf }
 0x499   : > { %2674 = vmax.xlane.f32.xlu0 %v2673_v44  ;;  %v2225_v44 = vadd.f32 %v11976_v28, %v12117_v32 }
 0x49a   : > { %2617 = vmax.xlane.f32.xlu1 %v2616_v22  ;;  %v2389_v22 = vsel %vm2269_vm4, %v2209_v15, %v2329_v37  ;;  %v2331_v15 = vmul.f32 0.2, %v2211_v47  ;;  %vm2271_vm4 = vcmp.gt.f32.partialorder %v2211_v47, 0.0 }
 0x49b   : > { %v12244_v56 = vsel %vm15458_vm13, %v2389_v22, -1e+30  ;;  %v2345_v7 = vmul.f32 0.2, %v2225_v44  ;;  %vm2285_vm0 = vcmp.gt.f32.partialorder %v2225_v44, 0.0 }
 0x49c   : > { %15487 = vst [vmem:[#allocation66_spill] sm:$0xff] %v12244_v56  ;;  %v2622_v28 = vsel %vm15308_vm9, %v12244_v56, -inf }
 0x49d   : > { %2677 = vmax.xlane.f32.xlu0 %v2676_v0  ;;  %v2390_v0 = vsel %vm2270_vm5, %v2210_v17, %v2330_v25  ;;  %v2405_v40 = vsel %vm2285_vm0, %v2225_v44, %v2345_v7  ;;  %v2391_v25 = vsel %vm2271_vm4, %v2211_v47, %v2331_v15  ;;  %vm15540_vm0 = vmmov 0  }
 0x49e   : > { %2662 = vmax.xlane.f32.xlu1 %v2661_v2  ;;  %v2059_v2 = vpop.permute.xlu1 %2058  ;;  %v12252_v32 = vsel %vm11662_vm6, %v2390_v0, -1e+30  ;;  %v12259_v62 = vsel %vm11662_vm6, %v2405_v40, -1e+30  ;;  %vm15314_vm4 = vcmask 261120  }
 0x49f   : > { %15488 = vst [vmem:[#allocation67_spill] sm:$0xff] %v12252_v32  ;;  %v2212_v37 = vadd.f32 %v11959_v34, %v2059_v2  ;;  %15489 = vst [vmem:[#allocation68_spill] sm:$0xff] %v12259_v62  ;;  %v2670_v22 = vsel %vm15308_vm9, %v12259_v62, -inf  ;;  %v12265_v34 = vsel %vm11667_vm12, %v2391_v25, -1e+30  ;;  %vm15603_vm12 = vcmask 523264  }
 0x4a0   : > { %15490 = vst [vmem:[#allocation69_spill] sm:$0xff] %v12265_v34 }
 0x4a1   : > { %v2332_v17 = vmul.f32 0.2, %v2212_v37  ;;  %vm2272_vm5 = vcmp.gt.f32.partialorder %v2212_v37, 0.0 }
 0x4a2   : > { %2620 = vmax.xlane.f32.xlu1 %v2619_v42  ;;  %v2625_v42 = vsel %vm15308_vm9, %v12252_v32, -inf }
 0x4a3   : > { %v2392_v44 = vsel %vm2272_vm5, %v2212_v37, %v2332_v17  ;;  %vm15313_vm5 = vcmask 130048  }
 0x4a4   : > { %v12273_v7 = vsel %vm11672_vm1, %v2392_v44, -1e+30 }
 0x4a5   : > { %15491 = vst [vmem:[#allocation70_spill] sm:$0xff] %v12273_v7  ;;  %v2631_v47 = vsel %vm15308_vm9, %v12273_v7, -inf }
 0x4a6   : > { %2665 = vmax.xlane.f32.xlu1 %v2664_v45  ;;  %v2628_v45 = vsel %vm15308_vm9, %v12265_v34, -inf }
 0x4aa   : > { %2623 = vmax.xlane.f32.xlu1 %v2622_v28 }
 0x4ae   : > { %2626 = vmax.xlane.f32.xlu1 %v2625_v42 }
 0x4b2   : > { %2671 = vmax.xlane.f32.xlu1 %v2670_v22 }
 0x4b3   : > { %10090 = vrot.lane.b32.xlu0 %v11514_v30, %s10803_s16 }
 0x4b6   : > { %2629 = vmax.xlane.f32.xlu1 %v2628_v45 }
 0x4ba   : > { %2632 = vmax.xlane.f32.xlu1 %v2631_v47 }
 0x4c2   : > { %v2546_v0 = vpop.xlane.xlu0 %2545 }
 0x4c6   : > { %v2549_v2 = vpop.xlane.xlu0 %2548 }
 0x4c7   : > { %v2695_v28 = vsub.f32 %v11743_v23, %v2549_v2  ;;  %v2501_v15 = vpop.xlane.xlu1 %2500 }
 0x4c8   : > { %v2679_v61 = vsub.f32 %v11748_v6, %v2501_v15 }
 0x4c9   : > { %v2771_v40 = vmul.f32 1.442695, %v2695_v28 }
 0x4ca   : > { %v12278_v42 = vpop.xlane.xlu0 %2551 }
 0x4cb   : > { %10249 = vpow2.f32 %v2771_v40  ;;  %10085 = vrot.lane.b32.xlu1 %v11514_v30, %s10801_s29  ;;  %v2504_v37 = vpop.xlane.xlu1 %2503 }
 0x4cc   : > { %v2680_v6 = vsub.f32 %v11766_v46, %v2504_v37 }
 0x4ce   : > { %v12282_v17 = vpop.xlane.xlu0 %2554 }
 0x4cf   : > { %v2507_v25 = vpop.xlane.xlu1 %2506 }
 0x4d2   : > { %v2558_v22 = vpop.xlane.xlu0 %2557 }
 0x4d3   : > { %v2510_v44 = vpop.xlane.xlu1 %2509  ;;  %v2698_v23 = vsub.f32 %v11798_v50, %v2558_v22  ;;  %v2694_v22 = vsub.f32 %v11731_v53, %v2546_v0 }
 0x4d4   : > { %v2682_v45 = vsub.f32 %v11804_v55, %v2510_v44 }
 0x4d5   : > { %v12285_v47 = vpop.eup %10249  ;;  %v2777_v35 = vmul.f32 1.442695, %v2698_v23  ;;  %v2769_v43 = vmul.f32 1.442695, %v2694_v22 }
 0x4d6   : > { %v2745_v2 = vmul.f32 1.442695, %v2682_v45  ;;  %v12288_v28 = vpop.xlane.xlu0 %2560  ;;  %v2907_v40 = vsel %vm15308_vm9, %v12285_v47, 0.0  ;;  %v2739_v45 = vmul.f32 1.442695, %v2679_v61 }
 0x4d7   : > { %2908 = vadd.xlane.f32.xlu0 %v2907_v40  ;;  %v2513_v30 = vpop.xlane.xlu1 %2512  ;;  %v2741_v61 = vmul.f32 1.442695, %v2680_v6 }
 0x4d8   : > { %10251 = vpow2.f32 %v2745_v2  ;;  %v2683_v39 = vsub.f32 %v11824_v12, %v2513_v30 }
 0x4da   : > { %v2747_v57 = vmul.f32 1.442695, %v2683_v39  ;;  %v2564_v55 = vpop.xlane.xlu0 %2563 }
 0x4db   : > { %v2516_v44 = vpop.xlane.xlu1 %2515  ;;  %v2700_v39 = vsub.f32 %v11838_v16, %v2564_v55 }
 0x4dc   : > { %10253 = vpow2.f32 %v2747_v57  ;;  %v2684_v50 = vsub.f32 %v11844_v58, %v2516_v44 }
 0x4dd   : > { %10255 = vpow2.f32 %v2777_v35  ;;  %v2781_v46 = vmul.f32 1.442695, %v2700_v39 }
 0x4de   : > { %v2749_v38 = vmul.f32 1.442695, %v2684_v50  ;;  %v2567_v29 = vpop.xlane.xlu0 %2566  ;;  %10257 = vpow2.f32 %v2739_v45 }
 0x4df   : > { %v2519_v40 = vpop.xlane.xlu1 %2518 }
 0x4e0   : > { %v2685_v2 = vsub.f32 %v11864_v21, %v2519_v40  ;;  %10259 = vpow2.f32 %v2749_v38  ;;  %v2681_v21 = vsub.f32 %v11784_v20, %v2507_v25  ;;  %v15492_v25 = vld [vmem:[#allocation36_spill] sm:$0xff] }
 0x4e1   : > { %10261 = vpow2.f32 %v2769_v43  ;;  %v2696_v43 = vsub.f32 %v11761_v10, %v12278_v42  ;;  %v2701_v30 = vsub.f32 %v15492_v25, %v2567_v29  ;;  %v15493_v10 = vld [vmem:[#allocation34_spill] sm:$0xff] }
 0x4e2   : > { %v12298_v12 = vpop.eup %10251  ;;  %v2751_v57 = vmul.f32 1.442695, %v2685_v2  ;;  %v12301_v58 = vpop.xlane.xlu0 %2569  ;;  %v2743_v20 = vmul.f32 1.442695, %v2681_v21  ;;  %v2697_v42 = vsub.f32 %v15493_v10, %v12282_v17 }
 0x4e3   : > { %v2522_v53 = vpop.xlane.xlu1 %2521  ;;  %v2868_v35 = vsel %vm15308_vm9, %v12298_v12, 0.0  ;;  %v2773_v40 = vmul.f32 1.442695, %v2696_v43  ;;  %v2783_v2 = vmul.f32 1.442695, %v2701_v30 }
 0x4e4   : > { %2869 = vadd.xlane.f32.xlu0 %v2868_v35  ;;  %10263 = vpow2.f32 %v2751_v57  ;;  %v2686_v15 = vsub.f32 %v11884_v49, %v2522_v53  ;;  %v2775_v17 = vmul.f32 1.442695, %v2697_v42 }
 0x4e5   : > { %10265 = vpow2.f32 %v2741_v61  ;;  %v15494_v61 = vld [vmem:[#allocation35_spill] sm:$0xff] }
 0x4e6   : > { %v12306_v0 = vpop.eup %10253  ;;  %v12309_v16 = vpop.xlane.xlu0 %2572  ;;  %10267 = vpow2.f32 %v2781_v46  ;;  %v2753_v55 = vmul.f32 1.442695, %v2686_v15  ;;  %v2699_v21 = vsub.f32 %v15494_v61, %v12288_v28 }
 0x4e7   : > { %v2525_v38 = vpop.xlane.xlu1 %2524  ;;  %v2871_v37 = vsel %vm15308_vm9, %v12306_v0, 0.0  ;;  %v12313_v23 = vpop.eup %10255  ;;  %10269 = vpow2.f32 %v2743_v20 }
 0x4e8   : > { %2872 = vadd.xlane.f32.xlu0 %v2871_v37  ;;  %v12320_v49 = vpop.eup %10257  ;;  %v2916_v22 = vsel %vm15308_vm9, %v12313_v23, 0.0  ;;  %10271 = vpow2.f32 %v2753_v55  ;;  %v2779_v28 = vmul.f32 1.442695, %v2699_v21  ;;  %v15495_v55 = vld [vmem:[#allocation39_spill] sm:$0xff] }
 0x4e9   : > { %v2859_v6 = vsel %vm15308_vm9, %v12320_v49, 0.0  ;;  %10273 = vpow2.f32 %v2773_v40 }
 0x4ea   : > { %v12318_v44 = vpop.xlane.xlu0 %2575  ;;  %v12326_v45 = vpop.eup %10259  ;;  %10275 = vpow2.f32 %v2783_v2 }
 0x4eb   : > { %v12322_v50 = vpop.xlane.xlu1 %2527  ;;  %v12334_v39 = vpop.eup %10261  ;;  %v2874_v53 = vsel %vm15308_vm9, %v12326_v45, 0.0  ;;  %10277 = vpow2.f32 %v2775_v17 }
 0x4ec   : > { %2917 = vadd.xlane.f32.xlu0 %v2916_v22  ;;  %v2904_v15 = vsel %vm15308_vm9, %v12334_v39, 0.0  ;;  %v2687_v22 = vsub.f32 %v15495_v55, %v2525_v38  ;;  %v15496_v38 = vld [vmem:[#allocation37_spill] sm:$0xff] }
 0x4ed   : > { %v2702_v17 = vsub.f32 %v15496_v38, %v12301_v58  ;;  %v15497_v58 = vld [vmem:[#allocation41_spill] sm:$0xff] }
 0x4ee   : > { %v12330_v29 = vpop.xlane.xlu0 %2578  ;;  %v12340_v35 = vpop.eup %10263  ;;  %v2755_v61 = vmul.f32 1.442695, %v2687_v22  ;;  %v2688_v22 = vsub.f32 %v15497_v58, %v12322_v50  ;;  %v15498_v50 = vld [vmem:[#allocation38_spill] sm:$0xff] }
 0x4ef   : > { %2860 = vadd.xlane.f32.xlu1 %v2859_v6  ;;  %v12336_v57 = vpop.xlane.xlu1 %2530  ;;  %v12346_v37 = vpop.eup %10265  ;;  %v2877_v25 = vsel %vm15308_vm9, %v12340_v35, 0.0 }
 0x4f0   : > { %2875 = vadd.xlane.f32.xlu0 %v2874_v53  ;;  %v12353_v30 = vpop.eup %10267  ;;  %v2862_v42 = vsel %vm15308_vm9, %v12346_v37, 0.0 }
 0x4f1   : > { %v2922_v6 = vsel %vm15308_vm9, %v12353_v30, 0.0 }
 0x4f2   : > { %v2582_v46 = vpop.xlane.xlu0 %2581 }
 0x4f3   : > { %v2706_v43 = vsub.f32 %v11965_v51, %v2582_v46  ;;  %2905 = vadd.xlane.f32.xlu1 %v2904_v15  ;;  %v12349_v20 = vpop.xlane.xlu1 %2533  ;;  %v12360_v51 = vpop.eup %10269 }
 0x4f4   : > { %2878 = vadd.xlane.f32.xlu0 %v2877_v25  ;;  %v12366_v53 = vpop.eup %10271  ;;  %v2865_v46 = vsel %vm15308_vm9, %v12360_v51, 0.0 }
 0x4f5   : > { %v2793_v40 = vmul.f32 1.442695, %v2706_v43  ;;  %v12374_v15 = vpop.eup %10273  ;;  %v2880_v25 = vsel %vm15308_vm9, %v12366_v53, 0.0 }
 0x4f6   : > { %v12356_v10 = vpop.xlane.xlu0 %2539  ;;  %v12378_v55 = vpop.eup %10275  ;;  %v2910_v38 = vsel %vm15308_vm9, %v12374_v15, 0.0 }
 0x4f7   : > { %10279 = vpow2.f32 %v2793_v40  ;;  %2863 = vadd.xlane.f32.xlu1 %v2862_v42  ;;  %v12362_v2 = vpop.xlane.xlu1 %2536  ;;  %v2785_v40 = vmul.f32 1.442695, %v2702_v17 }
 0x4f8   : > { %2923 = vadd.xlane.f32.xlu0 %v2922_v6  ;;  %10281 = vpow2.f32 %v2779_v28 }
 0x4f9   : > { %10283 = vpow2.f32 %v2755_v61  ;;  %v2703_v61 = vsub.f32 %v15498_v50, %v12309_v16 }
 0x4fa   : > { %v12370_v21 = vpop.xlane.xlu0 %2542 }
 0x4fb   : > { %2866 = vadd.xlane.f32.xlu1 %v2865_v46  ;;  %v2585_v43 = vpop.xlane.xlu1 %2584  ;;  %v12385_v46 = vpop.eup %10277 }
 0x4fc   : > { %v2707_v28 = vsub.f32 %v12014_v11, %v2585_v43  ;;  %2881 = vadd.xlane.f32.xlu0 %v2880_v25  ;;  %v2925_v11 = vsel %vm15308_vm9, %v12378_v55, 0.0  ;;  %v2757_v43 = vmul.f32 1.442695, %v2688_v22 }
 0x4fe   : > { %v2795_v42 = vmul.f32 1.442695, %v2707_v28  ;;  %v2588_v6 = vpop.xlane.xlu0 %2587 }
 0x4ff   : > { %v2708_v24 = vsub.f32 %v12028_v60, %v2588_v6  ;;  %2911 = vadd.xlane.f32.xlu1 %v2910_v38  ;;  %v12388_v7 = vpop.xlane.xlu1 %2590  ;;  %v2913_v60 = vsel %vm15308_vm9, %v12385_v46, 0.0 }
 0x500   : > { %10285 = vpow2.f32 %v2795_v42  ;;  %2926 = vadd.xlane.f32.xlu0 %v2925_v11 }
 0x501   : > { %v12392_v17 = vpop.eup %10279  ;;  %10287 = vpow2.f32 %v2785_v40  ;;  %v2797_v25 = vmul.f32 1.442695, %v2708_v24  ;;  %v2787_v40 = vmul.f32 1.442695, %v2703_v61  ;;  %v15499_v24 = vld [vmem:[#allocation43_spill] sm:$0xff] }
 0x502   : > { %v2636_v28 = vpop.xlane.xlu0 %2635  ;;  %v2940_v58 = vsel %vm15308_vm9, %v12392_v17, 0.0  ;;  %v12400_v6 = vpop.eup %10281  ;;  %v2689_v16 = vsub.f32 %v15499_v24, %v12336_v57 }
 0x503   : > { %10289 = vpow2.f32 %v2797_v25  ;;  %v2724_v42 = vsub.f32 %v12046_v48, %v2636_v28  ;;  %2914 = vadd.xlane.f32.xlu1 %v2913_v60  ;;  %v12403_v38 = vpop.xlane.xlu1 %2593  ;;  %v2919_v11 = vsel %vm15308_vm9, %v12400_v6, 0.0  ;;  %v12409_v50 = vpop.eup %10283  ;;  %v15500_v28 = vld [vmem:[#allocation40_spill] sm:$0xff] }
 0x504   : > { %2941 = vadd.xlane.f32.xlu0 %v2940_v58  ;;  %10291 = vpow2.f32 %v2757_v43  ;;  %v2704_v60 = vsub.f32 %v15500_v28, %v12318_v44  ;;  %v2759_v61 = vmul.f32 1.442695, %v2689_v16  ;;  %v2883_v57 = vsel %vm15308_vm9, %v12409_v50, 0.0  ;;  %v15501_v44 = vld [vmem:[#allocation44_spill] sm:$0xff]  ;;  %v15503_v28 = vld [vmem:[#allocation42_spill] sm:$0xff] }
 0x505   : > { %v2829_v22 = vmul.f32 1.442695, %v2724_v42  ;;  %v2690_v16 = vsub.f32 %v15501_v44, %v12349_v20  ;;  %v15504_v44 = vld [vmem:[#allocation46_spill] sm:$0xff] }
 0x507   : > { %10293 = vpow2.f32 %v2829_v22  ;;  %2920 = vadd.xlane.f32.xlu1 %v2919_v11  ;;  %v2639_v25 = vpop.xlane.xlu1 %2638 }
 0x508   : > { %v2725_v48 = vsub.f32 %v12072_v54, %v2639_v25  ;;  %10295 = vpow2.f32 %v2787_v40  ;;  %v2789_v40 = vmul.f32 1.442695, %v2704_v60  ;;  %v2705_v60 = vsub.f32 %v15503_v28, %v12330_v29 }
 0x50a   : > { %v12414_v43 = vpop.eup %10285  ;;  %v2831_v58 = vmul.f32 1.442695, %v2725_v48 }
 0x50b   : > { %v12418_v42 = vpop.eup %10287  ;;  %2884 = vadd.xlane.f32.xlu1 %v2883_v57  ;;  %v2943_v24 = vsel %vm15308_vm9, %v12414_v43, 0.0  ;;  %v2642_v28 = vpop.xlane.xlu1 %2641 }
 0x50c   : > { %10297 = vpow2.f32 %v2831_v58  ;;  %2944 = vadd.xlane.f32.xlu0 %v2943_v24  ;;  %v2928_v22 = vsel %vm15308_vm9, %v12418_v42, 0.0  ;;  %v2791_v24 = vmul.f32 1.442695, %v2705_v60  ;;  %v15506_v60 = vld [vmem:[#allocation45_spill] sm:$0xff]  ;;  %v2726_v27 = vsub.f32 %v12092_v31, %v2642_v28 }
 0x50d   : > { %v12422_v54 = vpop.eup %10289  ;;  %10299 = vpow2.f32 %v2759_v61  ;;  %v2761_v61 = vmul.f32 1.442695, %v2690_v16 }
 0x50e   : > { %v2946_v11 = vsel %vm15308_vm9, %v12422_v54, 0.0  ;;  %v12430_v25 = vpop.eup %10291  ;;  %10301 = vpow2.f32 %v2789_v40  ;;  %v2833_v14 = vmul.f32 1.442695, %v2726_v27 }
 0x50f   : > { %2929 = vadd.xlane.f32.xlu1 %v2928_v22  ;;  %v2886_v20 = vsel %vm15308_vm9, %v12430_v25, 0.0  ;;  %10303 = vpow2.f32 %v2761_v61  ;;  %v2691_v22 = vsub.f32 %v15504_v44, %v12362_v2  ;;  %v2692_v61 = vsub.f32 %v15506_v60, %v12356_v10  ;;  %v12460_v34 = vpop.xlane.xlu1 %2644 }
 0x510   : > { %2947 = vadd.xlane.f32.xlu0 %v2946_v11  ;;  %10305 = vpow2.f32 %v2791_v24 }
 0x511   : > { %v12432_v48 = vpop.eup %10293  ;;  %v2765_v44 = vmul.f32 1.442695, %v2692_v61 }
 0x512   : > { %15502 = vst [vmem:[#allocation36_spill] sm:$0xff] %v12432_v48  ;;  %v2994_v58 = vsel %vm15308_vm9, %v12432_v48, 0.0  ;;  %v12440_v57 = vpop.eup %10295 }
 0x513   : > { %2887 = vadd.xlane.f32.xlu1 %v2886_v20  ;;  %v2931_v29 = vsel %vm15308_vm9, %v12440_v57, 0.0  ;;  %v2763_v20 = vmul.f32 1.442695, %v2691_v22  ;;  %v15508_v22 = vld [vmem:[#allocation48_spill] sm:$0xff] }
 0x514   : > { %2995 = vadd.xlane.f32.xlu0 %v2994_v58  ;;  %v2709_v60 = vsub.f32 %v15508_v22, %v12388_v7 }
 0x515   : > { %10307 = vpow2.f32 %v2763_v20 }
 0x516   : > { %v12444_v40 = vpop.eup %10297  ;;  %10309 = vpow2.f32 %v2765_v44 }
 0x517   : > { %15505 = vst [vmem:[#allocation34_spill] sm:$0xff] %v12444_v40  ;;  %v12448_v16 = vpop.eup %10299  ;;  %2932 = vadd.xlane.f32.xlu1 %v2931_v29  ;;  %v2997_v11 = vsel %vm15308_vm9, %v12444_v40, 0.0  ;;  %v15507_v29 = vld [vmem:[#allocation47_spill] sm:$0xff] }
 0x518   : > { %2998 = vadd.xlane.f32.xlu0 %v2997_v11  ;;  %v2889_v2 = vsel %vm15308_vm9, %v12448_v16, 0.0  ;;  %v12456_v58 = vpop.eup %10301  ;;  %v2693_v48 = vsub.f32 %v15507_v29, %v12370_v21  ;;  %v12472_v21 = vpop.xlane.xlu1 %2647  ;;  %v15509_v29 = vld [vmem:[#allocation49_spill] sm:$0xff] }
 0x519   : > { %v2934_v24 = vsel %vm15308_vm9, %v12456_v58, 0.0  ;;  %v12464_v11 = vpop.eup %10303  ;;  %v2710_v40 = vsub.f32 %v15509_v29, %v12403_v38  ;;  %v15510_v38 = vld [vmem:[#allocation9_spill] sm:$0xff] }
 0x51a   : > { %v2767_v10 = vmul.f32 1.442695, %v2693_v48  ;;  %v2892_v61 = vsel %vm15308_vm9, %v12464_v11, 0.0  ;;  %v12470_v20 = vpop.eup %10305 }
 0x51b   : > { %2890 = vadd.xlane.f32.xlu1 %v2889_v2  ;;  %v2799_v2 = vmul.f32 1.442695, %v2709_v60  ;;  %v2937_v44 = vsel %vm15308_vm9, %v12470_v20, 0.0  ;;  %v2801_v7 = vmul.f32 1.442695, %v2710_v40 }
 0x51c   : > { %10311 = vpow2.f32 %v2767_v10  ;;  %v2597_v10 = vpop.xlane.xlu0 %2596 }
 0x51d   : > { %10313 = vpow2.f32 %v2799_v2  ;;  %v2711_v33 = vsub.f32 %v15526_v36, %v2597_v10  ;;  %v2727_v36 = vsub.f32 %v12109_v4, %v12460_v34 }
 0x51e   : > { %10315 = vpow2.f32 %v2801_v7 }
 0x51f   : > { %2935 = vadd.xlane.f32.xlu1 %v2934_v24  ;;  %v12478_v48 = vpop.eup %10307  ;;  %v12480_v24 = vpop.xlane.xlu1 %2650  ;;  %10317 = vpow2.f32 %v2833_v14  ;;  %v2803_v8 = vmul.f32 1.442695, %v2711_v33 }
 0x520   : > { %v2895_v22 = vsel %vm15308_vm9, %v12478_v48, 0.0  ;;  %v12498_v32 = vpop.xlane.xlu0 %2599 }
 0x521   : > { %10319 = vpow2.f32 %v2803_v8 }
 0x523   : > { %2893 = vadd.xlane.f32.xlu1 %v2892_v61  ;;  %v12484_v61 = vpop.eup %10309  ;;  %v12492_v40 = vpop.xlane.xlu1 %2653 }
 0x524   : > { %v2898_v60 = vsel %vm15308_vm9, %v12484_v61, 0.0  ;;  %15511 = vst [vmem:[#allocation35_spill] sm:$0xff] %v12492_v40 }
 0x526   : > { %v12490_v29 = vpop.eup %10311 }
 0x527   : > { %2938 = vadd.xlane.f32.xlu1 %v2937_v44  ;;  %v2901_v2 = vsel %vm15308_vm9, %v12490_v29, 0.0  ;;  %v12496_v44 = vpop.eup %10313  ;;  %v12500_v7 = vpop.xlane.xlu1 %2611 }
 0x528   : > { %15512 = vst [vmem:[#allocation39_spill] sm:$0xff] %v12496_v44  ;;  %15513 = vst [vmem:[#allocation37_spill] sm:$0xff] %v12500_v7  ;;  %v12504_v56 = vpop.eup %10315 }
 0x529   : > { %15514 = vst [vmem:[#allocation41_spill] sm:$0xff] %v12504_v56  ;;  %v2952_v41 = vsel %vm15308_vm9, %v12504_v56, 0.0  ;;  %v12521_v31 = vpop.eup %10317 }
 0x52a   : > { %15520 = vst [vmem:[#allocation46_spill] sm:$0xff] %v12521_v31 }
 0x52b   : > { %2896 = vadd.xlane.f32.xlu1 %v2895_v22  ;;  %v2949_v22 = vsel %vm15308_vm9, %v12496_v44, 0.0  ;;  %v12511_v63 = vpop.xlane.xlu1 %2656 }
 0x52c   : > { %15515 = vst [vmem:[#allocation38_spill] sm:$0xff] %v12511_v63  ;;  %v15537_v63 = vld [vmem:[#allocation15_spill] sm:$0xff] }
 0x52e   : > { %10100 = vrot.lane.b32.xlu0 %v15510_v38, %s10803_s16 }
 0x52f   : > { %2899 = vadd.xlane.f32.xlu1 %v2898_v60  ;;  %v12507_v60 = vpop.xlane.xlu0 %2602  ;;  %v12515_v62 = vpop.xlane.xlu1 %2617 }
 0x530   : > { %15517 = vst [vmem:[#allocation40_spill] sm:$0xff] %v12515_v62 }
 0x533   : > { %2902 = vadd.xlane.f32.xlu1 %v2901_v2  ;;  %v12513_v2 = vpop.xlane.xlu0 %2605  ;;  %v12519_v3 = vpop.xlane.xlu1 %2662 }
 0x534   : > { %15516 = vst [vmem:[#allocation43_spill] sm:$0xff] %v12513_v2  ;;  %15519 = vst [vmem:[#allocation42_spill] sm:$0xff] %v12519_v3 }
 0x537   : > { %2950 = vadd.xlane.f32.xlu1 %v2949_v22  ;;  %v12517_v44 = vpop.xlane.xlu0 %2608  ;;  %v12529_v14 = vpop.xlane.xlu1 %2620 }
 0x538   : > { %15518 = vst [vmem:[#allocation44_spill] sm:$0xff] %v12517_v44  ;;  %15522 = vst [vmem:[#allocation47_spill] sm:$0xff] %v12529_v14  ;;  %v15538_v44 = vld [vmem:[#allocation16_spill] sm:$0xff] }
 0x53b   : > { %2953 = vadd.xlane.f32.xlu1 %v2952_v41  ;;  %v12523_v28 = vpop.xlane.xlu0 %2614  ;;  %v3000_v41 = vsel %vm15308_vm9, %v12521_v31, 0.0  ;;  %v12533_v22 = vpop.xlane.xlu1 %2665 }
 0x53c   : > { %15521 = vst [vmem:[#allocation45_spill] sm:$0xff] %v12523_v28  ;;  %15524 = vst [vmem:[#allocation49_spill] sm:$0xff] %v12533_v22 }
 0x53f   : > { %v12531_v27 = vpop.xlane.xlu0 %2659  ;;  %v12538_v3 = vpop.xlane.xlu1 %2623 }
 0x540   : > { %15523 = vst [vmem:[#allocation48_spill] sm:$0xff] %v12531_v27  ;;  %15527 = vst [vmem:[#allocation50_spill] sm:$0xff] %v12538_v3 }
 0x543   : > { %v12535_v56 = vpop.xlane.xlu0 %2668 }
 0x544   : > { %15525 = vst [vmem:[#allocation9_spill] sm:$0xff] %v12535_v56  ;;  %v12552_v56 = vpop.eup %10319 }
 0x545   : > { %15533 = vst [vmem:[#allocation74_spill] sm:$0xff] %v12552_v56  ;;  %v2955_v8 = vsel %vm15308_vm9, %v12552_v56, 0.0 }
 0x547   : > { %v12540_v28 = vpop.xlane.xlu0 %2674 }
 0x548   : > { %15528 = vst [vmem:[#allocation71_spill] sm:$0xff] %v12540_v28 }
 0x54b   : > { %v12544_v31 = vpop.xlane.xlu0 %2677 }
 0x54c   : > { %10095 = vrot.lane.b32.xlu1 %v15510_v38, %s10801_s29  ;;  %v12542_v38 = vpop.xlane.xlu1 %2626  ;;  %15530 = vst [vmem:[#allocation73_spill] sm:$0xff] %v12544_v31 }
 0x54d   : > { %3001 = vadd.xlane.f32.xlu0 %v3000_v41  ;;  %15529 = vst [vmem:[#allocation72_spill] sm:$0xff] %v12542_v38  ;;  %v15531_v41 = vld [vmem:[#allocation10_spill] sm:$0xff]  ;;  %v2835_v38 = vmul.f32 1.442695, %v2727_v36 }
 0x54f   : > { %v12550_v22 = vpop.permute.xlu0 %10090  ;;  %10321 = vpow2.f32 %v2835_v38 }
 0x550   : > { %v12548_v14 = vpop.xlane.xlu1 %2671 }
 0x551   : > { %15532 = vst [vmem:[#allocation10_spill] sm:$0xff] %v12548_v14 }
 0x554   : > { %v12556_v10 = vpop.xlane.xlu1 %2629 }
 0x555   : > { %15534 = vst [vmem:[#allocation75_spill] sm:$0xff] %v12556_v10 }
 0x558   : > { %v12560_v31 = vpop.xlane.xlu1 %2632 }
 0x559   : > { %15535 = vst [vmem:[#allocation76_spill] sm:$0xff] %v12560_v31  ;;  %v12566_v4 = vpop.eup %10321 }
 0x55a   : > { %15536 = vst [vmem:[#allocation77_spill] sm:$0xff] %v12566_v4  ;;  %v3003_v38 = vsel %vm15308_vm9, %v12566_v4, 0.0  ;;  %v10053_v4 = vunpack.i.h.bf16 %v15538_v44 }
 0x55c   : > { %v10086_v14 = vpop.permute.xlu1 %10085 }
 0x55d   : > { %v10087_v52 = vunpack.i.l.bf16 %v10086_v14 }
 0x563   : > { %10110 = vrot.lane.b32.xlu0 %v15531_v41, %s10803_s16 }
 0x564   : > { %v2909_v33 = vpop.xlane.xlu0 %2908 }
 0x565   : > { %v3055_v10 = vmax.f32 %v2909_v33, 1e-30  ;;  %v10047_v33 = vunpack.i.l.bf16 %v15537_v63 }
 0x570   : > { %2956 = vadd.xlane.f32.xlu1 %v2955_v8 }
 0x571   : > { %v2870_v3 = vpop.xlane.xlu0 %2869 }
 0x572   : > { %v3042_v7 = vmax.f32 %v2870_v3, 1e-30 }
 0x575   : > { %v2873_v28 = vpop.xlane.xlu0 %2872 }
 0x576   : > { %v3043_v40 = vmax.f32 %v2873_v28, 1e-30 }
 0x579   : > { %v12562_v62 = vpop.xlane.xlu0 %2917 }
 0x57c   : > { %v2861_v9 = vpop.xlane.xlu1 %2860 }
 0x57d   : > { %v3039_v27 = vmax.f32 %v2861_v9, 1e-30  ;;  %v12564_v19 = vpop.xlane.xlu0 %2875 }
 0x57f   : > { %10323 = vrcp.f32 %v3039_v27  ;;  %v10048_v27 = vunpack.i.h.bf16 %v15537_v63 }
 0x580   : > { %v2906_v34 = vpop.xlane.xlu1 %2905 }
 0x581   : > { %v3054_v56 = vmax.f32 %v2906_v34, 1e-30  ;;  %v12568_v36 = vpop.xlane.xlu0 %2878  ;;  %10105 = vrot.lane.b32.xlu1 %v15531_v41, %s10801_s29 }
 0x582   : > { %3004 = vadd.xlane.f32.xlu0 %v3003_v38  ;;  %v9815_v38 = vpack.c.bf16 %v10048_v27, %v10047_v33  ;;  %v10092_v27 = vunpack.i.l.bf16 %v12550_v22  ;;  %v3058_v33 = vmax.f32 %v12562_v62, 1e-30 }
 0x583   : > { %10325 = vrcp.f32 %v3054_v56  ;;  %v10052_v56 = vunpack.i.l.bf16 %v15538_v44  ;;  %v15541_v44 = vld [vmem:[#allocation51_spill] sm:$0xff] }
 0x584   : > { %v2864_v8 = vpop.xlane.xlu1 %2863  ;;  %10327 = vrcp.f32 %v3055_v10  ;;  %v2712_v2 = vsub.f32 %v15541_v44, %v12498_v32  ;;  %v3044_v32 = vmax.f32 %v12564_v19, 1e-30  ;;  %v3045_v19 = vmax.f32 %v12568_v36, 1e-30 }
 0x585   : > { %v3040_v9 = vmax.f32 %v2864_v8, 1e-30  ;;  %v12574_v31 = vpop.xlane.xlu0 %2923  ;;  %v10088_v8 = vunpack.i.h.bf16 %v10086_v14  ;;  %v9836_v13 = vpack.c.bf16 %v10053_v4, %v10052_v56  ;;  %v10093_v14 = vunpack.i.h.bf16 %v12550_v22 }
 0x586   : > { %v2805_v62 = vmul.f32 1.442695, %v2712_v2  ;;  %v3060_v36 = vmax.f32 %v12574_v31, 1e-30 }
 0x587   : > { %10329 = vrcp.f32 %v3040_v9 }
 0x588   : > { %v2867_v34 = vpop.xlane.xlu1 %2866 }
 0x589   : > { %v10324_v18 = vpop.eup %10323  ;;  %v3041_v5 = vmax.f32 %v2867_v34, 1e-30  ;;  %v12578_v41 = vpop.xlane.xlu0 %2881  ;;  %v15539_v34 = vmov 0.0  }
 0x58a   : > { %v3100_v10 = vmul.f32 %v10324_v18, %v12320_v49  ;;  %v15542_v18 = vmov 0.0|0.0  }
 0x58b   : > { %10331 = vrcp.f32 %v3041_v5 }
 0x58c   : > { %8924 = vmatmul.mubr.msk.f32.vlgmr.msra.gmra.mrb[90].mxu1 %vm15308_vm9, %v3100_v10  ;;  %v2912_v63 = vpop.xlane.xlu1 %2911  ;;  %10333 = vrcp.f32 %v3042_v7  ;;  %v9818_v7 = vpack.c.bf16 %v10088_v8, %v10087_v52  ;;  %v9839_v10 = vpack.c.bf16 %v10093_v14, %v10092_v27  ;;  %v15543_v8 = vld [vmem:[#allocation11_spill] sm:$0xff] }
 0x58d   : > { %v10326_v9 = vpop.eup %10325  ;;  %9816 = vmatpush3.bf16.msra.mxu1 %v9815_v38  ;;  %v3056_v3 = vmax.f32 %v2912_v63, 1e-30  ;;  %8926 = vmatprep.mubr.msk.f32.mxu1 %vm15540_vm0, %v15539_v34  ;;  %v12592_v28 = vpop.xlane.xlu0 %2926 }
 0x58e   : > { %9817 = vmatprep.subr.bf16.mxu1 %v15542_v18  ;;  %v3130_v49 = vmul.f32 %v10326_v9, %v12334_v39  ;;  %v10328_v5 = vpop.eup %10327 }
 0x58f   : > { %10335 = vrcp.f32 %v3056_v3  ;;  %v3132_v22 = vmul.f32 %v10328_v5, %v12285_v47  ;;  %v3046_v3 = vmax.f32 %v12578_v41, 1e-30  ;;  %v3061_v5 = vmax.f32 %v12592_v28, 1e-30 }
 0x590   : > { %8999 = vmatmul.mubr.msk.f32.vlgmr.msra.gmra.mrb[62].mxu0 %vm15308_vm9, %v3130_v49  ;;  %v2915_v4 = vpop.xlane.xlu1 %2914  ;;  %10337 = vrcp.f32 %v3043_v40 }
 0x591   : > { %v10330_v56 = vpop.eup %10329  ;;  %9837 = vmatpush3.bf16.msra.mxu0 %v9836_v13  ;;  %v3057_v39 = vmax.f32 %v2915_v4, 1e-30  ;;  %9819 = vmatpush3.bf16.msra.mxu1 %v9818_v7  ;;  %v12606_v38 = vpop.xlane.xlu0 %2941  ;;  %v2728_v4 = vsub.f32 %v12129_v26, %v12472_v21 }
 0x592   : > { %9001 = vmatprep.mubr.msk.f32.mxu0 %vm15540_vm0, %v15539_v34  ;;  %9838 = vmatprep.subr.bf16.mxu0 %v15542_v18  ;;  %v3102_v52 = vmul.f32 %v10330_v56, %v12346_v37 }
 0x593   : > { %10339 = vrcp.f32 %v3057_v39  ;;  %9820 = vmatprep.subr.bf16.mxu1 %v15542_v18 }
 0x594   : > { %10341 = vrcp.f32 %v3058_v33  ;;  %8927 = vmatmul.mubr.msk.f32.gmra.mrb[92].mxu1 %vm15308_vm9, %v3102_v52  ;;  %9002 = vmatmul.mubr.msk.f32.gmra.mrb[64].mxu0 %vm15308_vm9, %v3132_v22  ;;  %v2921_v13 = vpop.xlane.xlu1 %2920 }
 0x595   : > { %v10332_v40 = vpop.eup %10331  ;;  %10343 = vrcp.f32 %v3044_v32  ;;  %9840 = vmatpush3.bf16.msra.mxu0 %v9839_v10  ;;  %v3059_v37 = vmax.f32 %v2921_v13, 1e-30  ;;  %8929 = vmatprep.mubr.msk.f32.mxu1 %vm15540_vm0, %v15539_v34 }
 0x596   : > { %v3104_v47 = vmul.f32 %v10332_v40, %v12360_v51  ;;  %9004 = vmatprep.mubr.msk.f32.mxu0 %vm15540_vm0, %v15539_v34  ;;  %9841 = vmatprep.subr.bf16.mxu0 %v15542_v18  ;;  %v10334_v2 = vpop.eup %10333  ;;  %10345 = vpow2.f32 %v2805_v62  ;;  %v2837_v62 = vmul.f32 1.442695, %v2728_v4 }
 0x597   : > { %10347 = vrcp.f32 %v3045_v19  ;;  %v3106_v44 = vmul.f32 %v10334_v2, %v12298_v12 }
 0x598   : > { %10120 = vrot.lane.b32.xlu0 %v15543_v8, %s10803_s16  ;;  %8930 = vmatmul.mubr.msk.f32.gmra.mrb[94].mxu1 %vm15308_vm9, %v3104_v47  ;;  %v2885_v63 = vpop.xlane.xlu1 %2884  ;;  %10349 = vrcp.f32 %v3059_v37 }
 0x599   : > { %v10336_v9 = vpop.eup %10335  ;;  %v12619_v51 = vpop.xlane.xlu0 %2944  ;;  %8932 = vmatprep.mubr.msk.f32.mxu1 %vm15540_vm0, %v15539_v34  ;;  %10351 = vrcp.f32 %v3060_v36  ;;  %v3047_v27 = vmax.f32 %v2885_v63, 1e-30 }
 0x59a   : > { %v3134_v49 = vmul.f32 %v10336_v9, %v12374_v15  ;;  %v10338_v31 = vpop.eup %10337  ;;  %10353 = vrcp.f32 %v3046_v3 }
 0x59b   : > { %v3108_v15 = vmul.f32 %v10338_v31, %v12306_v0  ;;  %10355 = vrcp.f32 %v3061_v5 }
 0x59c   : > { %8933 = vmatmul.mubr.msk.f32.gmra.mrb[96].mxu1 %vm15308_vm9, %v3106_v44  ;;  %9005 = vmatmul.mubr.msk.f32.gmra.mrb[66].mxu0 %vm15308_vm9, %v3134_v49  ;;  %v2930_v14 = vpop.xlane.xlu1 %2929  ;;  %10357 = vrcp.f32 %v3047_v27 }
 0x59d   : > { %v10340_v41 = vpop.eup %10339  ;;  %v12628_v7 = vpop.xlane.xlu0 %2947  ;;  %8935 = vmatprep.mubr.msk.f32.mxu1 %vm15540_vm0, %v15539_v34  ;;  %9007 = vmatprep.mubr.msk.f32.mxu0 %vm15540_vm0, %v15539_v34  ;;  %v3062_v56 = vmax.f32 %v2930_v14, 1e-30 }
 0x59e   : > { %v10342_v12 = vpop.eup %10341  ;;  %v3136_v28 = vmul.f32 %v10340_v41, %v12385_v46 }
 0x59f   : > { %v10344_v33 = vpop.eup %10343  ;;  %v3138_v46 = vmul.f32 %v10342_v12, %v12313_v23  ;;  %10359 = vrcp.f32 %v3062_v56 }
 0x5a0   : > { %8936 = vmatmul.mubr.msk.f32.gmra.mrb[98].mxu1 %vm15308_vm9, %v3108_v15  ;;  %9008 = vmatmul.mubr.msk.f32.gmra.mrb[68].mxu0 %vm15308_vm9, %v3136_v28  ;;  %v2888_v32 = vpop.xlane.xlu1 %2887  ;;  %v12640_v39 = vpop.eup %10345  ;;  %v3110_v0 = vmul.f32 %v10344_v33, %v12326_v45 }
 0x5a1   : > { %v3048_v52 = vmax.f32 %v2888_v32, 1e-30  ;;  %v12642_v22 = vpop.xlane.xlu0 %2995  ;;  %8938 = vmatprep.mubr.msk.f32.mxu1 %vm15540_vm0, %v15539_v34  ;;  %9010 = vmatprep.mubr.msk.f32.mxu0 %vm15540_vm0, %v15539_v34  ;;  %v10348_v26 = vpop.eup %10347  ;;  %v2958_v19 = vsel %vm15308_vm9, %v12640_v39, 0.0  ;;  %v3066_v32 = vmax.f32 %v12606_v38, 1e-30 }
 0x5a2   : > { %v10350_v21 = vpop.eup %10349  ;;  %v3112_v45 = vmul.f32 %v10348_v26, %v12340_v35 }
 0x5a3   : > { %10361 = vrcp.f32 %v3048_v52  ;;  %v10352_v23 = vpop.eup %10351  ;;  %v3140_v37 = vmul.f32 %v10350_v21, %v12400_v6 }
 0x5a4   : > { %8939 = vmatmul.mubr.msk.f32.gmra.mrb[100].mxu1 %vm15308_vm9, %v3110_v0  ;;  %9011 = vmatmul.mubr.msk.f32.gmra.mrb[70].mxu0 %vm15308_vm9, %v3138_v46  ;;  %v2933_v10 = vpop.xlane.xlu1 %2932  ;;  %v10354_v47 = vpop.eup %10353  ;;  %10363 = vpow2.f32 %v2837_v62  ;;  %v3142_v44 = vmul.f32 %v10352_v23, %v12353_v30  ;;  %v3067_v46 = vmax.f32 %v12619_v51, 1e-30  ;;  %v3068_v62 = vmax.f32 %v12628_v7, 1e-30 }
 0x5a5   : > { %v3063_v13 = vmax.f32 %v2933_v10, 1e-30  ;;  %2959 = vadd.xlane.f32.xlu1 %v2958_v19  ;;  %v12654_v40 = vpop.xlane.xlu0 %2998  ;;  %8941 = vmatprep.mubr.msk.f32.mxu1 %vm15540_vm0, %v15539_v34  ;;  %v10356_v9 = vpop.eup %10355  ;;  %v3114_v6 = vmul.f32 %v10354_v47, %v12366_v53  ;;  %v2713_v7 = vsub.f32 %v12104_v59, %v12507_v60 }
 0x5a6   : > { %9013 = vmatprep.mubr.msk.f32.mxu0 %vm15540_vm0, %v15539_v34  ;;  %v10358_v49 = vpop.eup %10357  ;;  %v3144_v30 = vmul.f32 %v10356_v9, %v12378_v55 }
 0x5a7   : > { %10365 = vrcp.f32 %v3063_v13  ;;  %v3116_v53 = vmul.f32 %v10358_v49, %v12409_v50 }
 0x5a8   : > { %8942 = vmatmul.mubr.msk.f32.gmra.mrb[102].mxu1 %vm15308_vm9, %v3112_v45  ;;  %9014 = vmatmul.mubr.msk.f32.gmra.mrb[72].mxu0 %vm15308_vm9, %v3140_v37  ;;  %v2891_v2 = vpop.xlane.xlu1 %2890 }
 0x5a9   : > { %v3049_v36 = vmax.f32 %v2891_v2, 1e-30  ;;  %v10101_v63 = vpop.permute.xlu0 %10100  ;;  %8944 = vmatprep.mubr.msk.f32.mxu1 %vm15540_vm0, %v15539_v34  ;;  %9016 = vmatprep.mubr.msk.f32.mxu0 %vm15540_vm0, %v15539_v34  ;;  %v10360_v41 = vpop.eup %10359 }
 0x5aa   : > { %v10103_v35 = vunpack.i.h.bf16 %v10101_v63  ;;  %v10102_v3 = vunpack.i.l.bf16 %v10101_v63  ;;  %v3146_v50 = vmul.f32 %v10360_v41, %v12418_v42  ;;  %v2807_v63 = vmul.f32 1.442695, %v2713_v7  ;;  %v15552_v7 = vld [vmem:[#allocation37_spill] sm:$0xff] }
 0x5ab   : > { %10367 = vrcp.f32 %v3049_v36 }
 0x5ac   : > { %v9842_v31 = vpack.c.bf16 %v10103_v35, %v10102_v3  ;;  %8945 = vmatmul.mubr.msk.f32.gmra.mrb[104].mxu1 %vm15308_vm9, %v3114_v6  ;;  %9017 = vmatmul.mubr.msk.f32.gmra.mrb[74].mxu0 %vm15308_vm9, %v3142_v44  ;;  %v2936_v5 = vpop.xlane.xlu1 %2935  ;;  %v15544_v44 = vld [vmem:[#allocation12_spill] sm:$0xff] }
 0x5ad   : > { %v3064_v14 = vmax.f32 %v2936_v5, 1e-30  ;;  %8947 = vmatprep.mubr.msk.f32.mxu1 %vm15540_vm0, %v15539_v34  ;;  %9019 = vmatprep.mubr.msk.f32.mxu0 %vm15540_vm0, %v15539_v34  ;;  %v10362_v27 = vpop.eup %10361 }
 0x5ae   : > { %9843 = vmatpush3.bf16.msra.mxu0 %v9842_v31  ;;  %v12685_v28 = vpop.eup %10363  ;;  %v3118_v55 = vmul.f32 %v10362_v27, %v12430_v25 }
 0x5af   : > { %10369 = vrcp.f32 %v3064_v14  ;;  %9844 = vmatprep.subr.bf16.mxu0 %v15542_v18  ;;  %v3006_v42 = vsel %vm15308_vm9, %v12685_v28, 0.0 }
 0x5b0   : > { %8948 = vmatmul.mubr.msk.f32.gmra.mrb[106].mxu1 %vm15308_vm9, %v3116_v53  ;;  %9020 = vmatmul.mubr.msk.f32.gmra.mrb[76].mxu0 %vm15308_vm9, %v3144_v30  ;;  %v2894_v12 = vpop.xlane.xlu1 %2893 }
 0x5b1   : > { %v3050_v15 = vmax.f32 %v2894_v12, 1e-30  ;;  %8950 = vmatprep.mubr.msk.f32.mxu1 %vm15540_vm0, %v15539_v34  ;;  %9022 = vmatprep.mubr.msk.f32.mxu0 %vm15540_vm0, %v15539_v34  ;;  %v10366_v33 = vpop.eup %10365 }
 0x5b2   : > { %v3148_v26 = vmul.f32 %v10366_v33, %v12440_v57 }
 0x5b3   : > { %10371 = vrcp.f32 %v3050_v15  ;;  %v15546_v15 = vld [vmem:[#allocation52_spill] sm:$0xff] }
 0x5b4   : > { %8951 = vmatmul.mubr.msk.f32.gmra.mrb[108].mxu1 %vm15308_vm9, %v3118_v55  ;;  %9023 = vmatmul.mubr.msk.f32.gmra.mrb[78].mxu0 %vm15308_vm9, %v3146_v50  ;;  %v2939_v4 = vpop.xlane.xlu1 %2938 }
 0x5b5   : > { %v10368_v56 = vpop.eup %10367  ;;  %v3065_v52 = vmax.f32 %v2939_v4, 1e-30  ;;  %8953 = vmatprep.mubr.msk.f32.mxu1 %vm15540_vm0, %v15539_v34  ;;  %9025 = vmatprep.mubr.msk.f32.mxu0 %vm15540_vm0, %v15539_v34 }
 0x5b6   : > { %10115 = vrot.lane.b32.xlu1 %v15543_v8, %s10801_s29  ;;  %v3120_v25 = vmul.f32 %v10368_v56, %v12448_v16 }
 0x5b7   : > { %10373 = vrcp.f32 %v3065_v52  ;;  %3007 = vadd.xlane.f32.xlu0 %v3006_v42  ;;  %v15547_v52 = vld [vmem:[#allocation13_spill] sm:$0xff] }
 0x5b8   : > { %8954 = vmatmul.mubr.msk.f32.gmra.mrb[110].mxu1 %vm15308_vm9, %v3120_v25  ;;  %9026 = vmatmul.mubr.msk.f32.gmra.mrb[80].mxu0 %vm15308_vm9, %v3148_v26  ;;  %v2897_v38 = vpop.xlane.xlu1 %2896  ;;  %10375 = vrcp.f32 %v3066_v32  ;;  %v15548_v26 = vld [vmem:[#allocation35_spill] sm:$0xff] }
 0x5b9   : > { %v10370_v0 = vpop.eup %10369  ;;  %v3051_v21 = vmax.f32 %v2897_v38, 1e-30  ;;  %9028 = vmatprep.mubr.msk.f32.mxu0 %vm15540_vm0, %v15539_v34  ;;  %8956 = vmatprep.mubr.msk.f32.mxu1 %vm15540_vm0, %v15539_v34  ;;  %v15549_v38 = vld [vmem:[#allocation55_spill] sm:$0xff] }
 0x5ba   : > { %v3150_v57 = vmul.f32 %v10370_v0, %v12456_v58  ;;  %v2730_v0 = vsub.f32 %v15549_v38, %v15548_v26 }
 0x5bb   : > { %10377 = vrcp.f32 %v3051_v21 }
 0x5bc   : > { %9029 = vmatmul.mubr.msk.f32.gmra.mrb[82].mxu0 %vm15308_vm9, %v3150_v57  ;;  %v2900_v16 = vpop.xlane.xlu1 %2899  ;;  %10379 = vrcp.f32 %v3067_v46  ;;  %v2841_v21 = vmul.f32 1.442695, %v2730_v0  ;;  %v15563_v0 = vld [vmem:[#allocation49_spill] sm:$0xff] }
 0x5bd   : > { %v10372_v8 = vpop.eup %10371  ;;  %v3052_v10 = vmax.f32 %v2900_v16, 1e-30  ;;  %9031 = vmatprep.mubr.msk.f32.mxu0 %vm15540_vm0, %v15539_v34 }
 0x5be   : > { %v3122_v51 = vmul.f32 %v10372_v8, %v12464_v11 }
 0x5bf   : > { %10381 = vrcp.f32 %v3052_v10 }
 0x5c0   : > { %8957 = vmatmul.mubr.msk.f32.gmra.mrb[112].mxu1 %vm15308_vm9, %v3122_v51  ;;  %v2903_v19 = vpop.xlane.xlu1 %2902  ;;  %10383 = vrcp.f32 %v3068_v62 }
 0x5c1   : > { %v10374_v13 = vpop.eup %10373  ;;  %v3053_v58 = vmax.f32 %v2903_v19, 1e-30  ;;  %8959 = vmatprep.mubr.msk.f32.mxu1 %vm15540_vm0, %v15539_v34 }
 0x5c2   : > { %v3152_v23 = vmul.f32 %v10374_v13, %v12470_v20  ;;  %v10376_v45 = vpop.eup %10375  ;;  %v15550_v13 = vld [vmem:[#allocation44_spill] sm:$0xff] }
 0x5c3   : > { %10385 = vrcp.f32 %v3053_v58  ;;  %v3154_v2 = vmul.f32 %v10376_v45, %v12392_v17  ;;  %v15551_v58 = vld [vmem:[#allocation53_spill] sm:$0xff] }
 0x5c4   : > { %9032 = vmatmul.mubr.msk.f32.gmra.mrb[84].mxu0 %vm15308_vm9, %v3152_v23  ;;  %v12722_v11 = vpop.xlane.xlu1 %2950  ;;  %10387 = vpow2.f32 %v2807_v63  ;;  %v2715_v23 = vsub.f32 %v15551_v58, %v15550_v13  ;;  %v15554_v63 = vld [vmem:[#allocation38_spill] sm:$0xff] }
 0x5c5   : > { %v10378_v37 = vpop.eup %10377  ;;  %9034 = vmatprep.mubr.msk.f32.mxu0 %vm15540_vm0, %v15539_v34  ;;  %v15567_v58 = vld [vmem:[#allocation10_spill] sm:$0xff] }
 0x5c6   : > { %v3124_v47 = vmul.f32 %v10378_v37, %v12478_v48  ;;  %v10380_v36 = vpop.eup %10379  ;;  %v2811_v45 = vmul.f32 1.442695, %v2715_v23  ;;  %v15553_v37 = vld [vmem:[#allocation57_spill] sm:$0xff]  ;;  %v15568_v23 = vld [vmem:[#allocation68_spill] sm:$0xff] }
 0x5c7   : > { %v3156_v48 = vmul.f32 %v10380_v36, %v12414_v43 }
 0x5c8   : > { %8960 = vmatmul.mubr.msk.f32.gmra.mrb[114].mxu1 %vm15308_vm9, %v3124_v47  ;;  %9035 = vmatmul.mubr.msk.f32.gmra.mrb[86].mxu0 %vm15308_vm9, %v3154_v2  ;;  %v12730_v20 = vpop.xlane.xlu1 %2953  ;;  %v2716_v47 = vsub.f32 %v15553_v37, %v15552_v7 }
 0x5c9   : > { %v10382_v59 = vpop.eup %10381  ;;  %8962 = vmatprep.mubr.msk.f32.mxu1 %vm15540_vm0, %v15539_v34  ;;  %9037 = vmatprep.mubr.msk.f32.mxu0 %vm15540_vm0, %v15539_v34 }
 0x5ca   : > { %v3126_v60 = vmul.f32 %v10382_v59, %v12484_v61  ;;  %v10384_v17 = vpop.eup %10383  ;;  %v2813_v36 = vmul.f32 1.442695, %v2716_v47  ;;  %v15555_v59 = vld [vmem:[#allocation59_spill] sm:$0xff] }
 0x5cb   : > { %v3158_v61 = vmul.f32 %v10384_v17, %v12422_v54  ;;  %v15569_v47 = vld [vmem:[#allocation71_spill] sm:$0xff] }
 0x5cc   : > { %8963 = vmatmul.mubr.msk.f32.gmra.mrb[116].mxu1 %vm15308_vm9, %v3126_v60  ;;  %9038 = vmatmul.mubr.msk.f32.gmra.mrb[88].mxu0 %vm15308_vm9, %v3156_v48  ;;  %v10096_v9 = vpop.permute.xlu1 %10095  ;;  %v2731_v60 = vsub.f32 %v15555_v59, %v15554_v63 }
 0x5cd   : > { %v10386_v35 = vpop.eup %10385  ;;  %v10098_v3 = vunpack.i.h.bf16 %v10096_v9  ;;  %v10097_v6 = vunpack.i.l.bf16 %v10096_v9  ;;  %10130 = vrot.lane.b32.xlu0 %v15544_v44, %s10803_s16  ;;  %8965 = vmatprep.mubr.msk.f32.mxu1 %vm15540_vm0, %v15539_v34 }
 0x5ce   : > { %9040 = vmatprep.mubr.msk.f32.mxu0 %vm15540_vm0, %v15539_v34  ;;  %v3128_v43 = vmul.f32 %v10386_v35, %v12490_v29  ;;  %v12755_v31 = vpop.eup %10387  ;;  %v2729_v29 = vsub.f32 %v12146_v1, %v12480_v24  ;;  %v15545_v24 = vld [vmem:[#allocation43_spill] sm:$0xff]  ;;  %v15556_v35 = vld [vmem:[#allocation14_spill] sm:$0xff] }
 0x5cf   : > { %v9821_v49 = vpack.c.bf16 %v10098_v3, %v10097_v6  ;;  %v2961_v54 = vsel %vm15308_vm9, %v12755_v31, 0.0  ;;  %v2714_v55 = vsub.f32 %v15546_v15, %v15545_v24  ;;  %v2843_v6 = vmul.f32 1.442695, %v2731_v60 }
 0x5d0   : > { %8966 = vmatmul.mubr.msk.f32.gmra.mrb[118].mxu1 %vm15308_vm9, %v3128_v43  ;;  %9041 = vmatmul.mubr.msk.f32.gmra.mrb[90].mxu0 %vm15308_vm9, %v3158_v61  ;;  %v2839_v5 = vmul.f32 1.442695, %v2729_v29  ;;  %v15557_v43 = vld [vmem:[#allocation48_spill] sm:$0xff] }
 0x5d1   : > { %9822 = vmatpush3.bf16.msra.mxu1 %v9821_v49  ;;  %9073 = vmatprep.mubr.msk.f32.mxu1 %vm15540_vm0, %v15539_v34  ;;  %v2809_v50 = vmul.f32 1.442695, %v2714_v55  ;;  %v15558_v61 = vld [vmem:[#allocation56_spill] sm:$0xff]  ;;  %v15561_v55 = vld [vmem:[#allocation42_spill] sm:$0xff] }
 0x5d2   : > { %9823 = vmatprep.subr.bf16.mxu1 %v15542_v18  ;;  %9148 = vmatprep.mubr.msk.f32.mxu0 %vm15540_vm0, %v15539_v34  ;;  %10389 = vpow2.f32 %v2839_v5  ;;  %v2732_v49 = vsub.f32 %v15558_v61, %v15557_v43 }
 0x5d3   : > { %10391 = vpow2.f32 %v2809_v50  ;;  %v15562_v50 = vld [vmem:[#allocation63_spill] sm:$0xff] }
 0x5d4   : > { %10393 = vpow2.f32 %v2841_v21  ;;  %v2845_v5 = vmul.f32 1.442695, %v2732_v49 }
 0x5d5   : > { %10395 = vpow2.f32 %v2811_v45  ;;  %v2736_v45 = vsub.f32 %v15568_v23, %v15567_v58 }
 0x5d6   : > { %10397 = vpow2.f32 %v2813_v36  ;;  %v15570_v36 = vld [vmem:[#allocation60_spill] sm:$0xff] }
 0x5d7   : > { %10399 = vpow2.f32 %v2843_v6  ;;  %v2737_v63 = vsub.f32 %v15570_v36, %v15569_v47  ;;  %v2853_v59 = vmul.f32 1.442695, %v2736_v45  ;;  %v15575_v45 = vld [vmem:[#allocation47_spill] sm:$0xff] }
 0x5d8   : > { %10401 = vpow2.f32 %v2845_v5 }
 0x5da   : > { %2962 = vadd.xlane.f32.xlu1 %v2961_v54  ;;  %v12761_v14 = vpop.xlane.xlu0 %3001 }
 0x5dc   : > { %v12764_v12 = vpop.eup %10389 }
 0x5dd   : > { %v3009_v1 = vsel %vm15308_vm9, %v12764_v12, 0.0  ;;  %v12777_v25 = vpop.eup %10391 }
 0x5de   : > { %v10111_v41 = vpop.permute.xlu0 %10110  ;;  %v2964_v46 = vsel %vm15308_vm9, %v12777_v25, 0.0  ;;  %v12786_v51 = vpop.eup %10393 }
 0x5df   : > { %v10113_v53 = vunpack.i.h.bf16 %v10111_v41  ;;  %v10112_v30 = vunpack.i.l.bf16 %v10111_v41  ;;  %v3012_v19 = vsel %vm15308_vm9, %v12786_v51, 0.0  ;;  %v15559_v41 = vld [vmem:[#allocation40_spill] sm:$0xff] }
 0x5e1   : > { %v9845_v27 = vpack.c.bf16 %v10113_v53, %v10112_v30  ;;  %v15560_v53 = vld [vmem:[#allocation61_spill] sm:$0xff] }
 0x5e2   : > { %v2718_v30 = vsub.f32 %v15560_v53, %v15559_v41 }
 0x5e3   : > { %9846 = vmatpush3.bf16.msra.mxu0 %v9845_v27 }
 0x5e4   : > { %9847 = vmatprep.subr.bf16.mxu0 %v15542_v18  ;;  %v2817_v15 = vmul.f32 1.442695, %v2718_v30 }
 0x5e6   : > { %10403 = vpow2.f32 %v2817_v15 }
 0x5eb   : > { %10125 = vrot.lane.b32.xlu1 %v15544_v44, %s10801_s29  ;;  %v12803_v44 = vpop.eup %10395 }
 0x5ec   : > { %3010 = vadd.xlane.f32.xlu0 %v3009_v1  ;;  %v2967_v29 = vsel %vm15308_vm9, %v12803_v44, 0.0  ;;  %v12809_v54 = vpop.eup %10397 }
 0x5ed   : > { %v2970_v1 = vsel %vm15308_vm9, %v12809_v54, 0.0  ;;  %v12817_v24 = vpop.eup %10399 }
 0x5ee   : > { %v3015_v26 = vsel %vm15308_vm9, %v12817_v24, 0.0 }
 0x5fd   : > { %v12772_v33 = vpop.xlane.xlu1 %2956 }
 0x601   : > { %v10106_v4 = vpop.permute.xlu1 %10105 }
 0x602   : > { %v10108_v56 = vunpack.i.h.bf16 %v10106_v4  ;;  %v10107_v32 = vunpack.i.l.bf16 %v10106_v4  ;;  %10140 = vrot.lane.b32.xlu0 %v15547_v52, %s10803_s16  ;;  %v2733_v4 = vsub.f32 %v15562_v50, %v15561_v55 }
 0x604   : > { %v9824_v42 = vpack.c.bf16 %v10108_v56, %v10107_v32  ;;  %v2847_v38 = vmul.f32 1.442695, %v2733_v4 }
 0x606   : > { %9825 = vmatpush3.bf16.msra.mxu1 %v9824_v42  ;;  %10405 = vpow2.f32 %v2847_v38  ;;  %v15574_v38 = vld [vmem:[#allocation54_spill] sm:$0xff] }
 0x607   : > { %9826 = vmatprep.subr.bf16.mxu1 %v15542_v18 }
 0x60f   : > { %2965 = vadd.xlane.f32.xlu1 %v2964_v46  ;;  %v12783_v57 = vpop.xlane.xlu0 %3004  ;;  %v15564_v46 = vld [vmem:[#allocation65_spill] sm:$0xff] }
 0x610   : > { %v2734_v21 = vsub.f32 %v15564_v46, %v15563_v0 }
 0x613   : > { %v10121_v16 = vpop.permute.xlu0 %10120 }
 0x614   : > { %v10123_v8 = vunpack.i.h.bf16 %v10121_v16  ;;  %v10122_v62 = vunpack.i.l.bf16 %v10121_v16  ;;  %v15565_v16 = vld [vmem:[#allocation9_spill] sm:$0xff] }
 0x616   : > { %v9848_v10 = vpack.c.bf16 %v10123_v8, %v10122_v62  ;;  %v15566_v8 = vld [vmem:[#allocation58_spill] sm:$0xff] }
 0x617   : > { %v2735_v62 = vsub.f32 %v15566_v8, %v15565_v16 }
 0x618   : > { %9849 = vmatpush3.bf16.msra.mxu0 %v9848_v10  ;;  %v2849_v10 = vmul.f32 1.442695, %v2734_v21 }
 0x619   : > { %9850 = vmatprep.subr.bf16.mxu0 %v15542_v18  ;;  %v2851_v13 = vmul.f32 1.442695, %v2735_v62 }
 0x61a   : > { %10407 = vpow2.f32 %v2849_v10 }
 0x61b   : > { %10409 = vpow2.f32 %v2851_v13 }
 0x61c   : > { %10411 = vpow2.f32 %v2853_v59 }
 0x620   : > { %10135 = vrot.lane.b32.xlu1 %v15547_v52, %s10801_s29 }
 0x621   : > { %3013 = vadd.xlane.f32.xlu0 %v3012_v19  ;;  %v12828_v19 = vpop.eup %10401 }
 0x622   : > { %v3018_v7 = vsel %vm15308_vm9, %v12828_v19, 0.0  ;;  %v12834_v37 = vpop.eup %10403 }
 0x623   : > { %v2976_v60 = vsel %vm15308_vm9, %v12834_v37, 0.0 }
 0x632   : > { %v12796_v2 = vpop.xlane.xlu1 %2959 }
 0x636   : > { %v10116_v48 = vpop.permute.xlu1 %10115 }
 0x637   : > { %v10118_v17 = vunpack.i.h.bf16 %v10116_v48  ;;  %v10117_v9 = vunpack.i.l.bf16 %v10116_v48  ;;  %3662 = vrot.lane.b32.xlu0 %v15556_v35, %s10801_s29  ;;  %v12840_v48 = vpop.eup %10405 }
 0x638   : > { %v3021_v43 = vsel %vm15308_vm9, %v12840_v48, 0.0  ;;  %v12848_v61 = vpop.eup %10407 }
 0x639   : > { %v9827_v3 = vpack.c.bf16 %v10118_v17, %v10117_v9  ;;  %v2855_v17 = vmul.f32 1.442695, %v2737_v63  ;;  %v15571_v9 = vld [vmem:[#allocation73_spill] sm:$0xff]  ;;  %v3024_v41 = vsel %vm15308_vm9, %v12848_v61, 0.0  ;;  %v12854_v53 = vpop.eup %10409 }
 0x63a   : > { %v12860_v15 = vpop.eup %10411 }
 0x63b   : > { %9828 = vmatpush3.bf16.msra.mxu1 %v9827_v3  ;;  %v15572_v3 = vld [vmem:[#allocation62_spill] sm:$0xff]  ;;  %10413 = vpow2.f32 %v2855_v17 }
 0x63c   : > { %9829 = vmatprep.subr.bf16.mxu1 %v15542_v18  ;;  %v2738_v6 = vsub.f32 %v15572_v3, %v15571_v9  ;;  %v15577_v3 = vld [vmem:[#allocation50_spill] sm:$0xff] }
 0x644   : > { %2968 = vadd.xlane.f32.xlu1 %v2967_v29  ;;  %v12813_v27 = vpop.xlane.xlu0 %3007  ;;  %v2857_v29 = vmul.f32 1.442695, %v2738_v6  ;;  %v15578_v6 = vld [vmem:[#allocation66_spill] sm:$0xff] }
 0x646   : > { %10415 = vpow2.f32 %v2857_v29 }
 0x648   : > { %v10131_v56 = vpop.permute.xlu0 %10130  ;;  %2971 = vadd.xlane.f32.xlu1 %v2970_v1  ;;  %v3027_v1 = vsel %vm15308_vm9, %v12854_v53, 0.0 }
 0x649   : > { %v10133_v32 = vunpack.i.h.bf16 %v10131_v56  ;;  %v10132_v52 = vunpack.i.l.bf16 %v10131_v56 }
 0x64b   : > { %v9851_v42 = vpack.c.bf16 %v10133_v32, %v10132_v52  ;;  %v3030_v52 = vsel %vm15308_vm9, %v12860_v15, 0.0 }
 0x64c   : > { %3016 = vadd.xlane.f32.xlu1 %v3015_v26  ;;  %v15573_v26 = vld [vmem:[#allocation45_spill] sm:$0xff] }
 0x64d   : > { %9852 = vmatpush3.bf16.msra.mxu0 %v9851_v42  ;;  %v12870_v42 = vpop.eup %10413  ;;  %v2717_v0 = vsub.f32 %v15574_v38, %v15573_v26 }
 0x64e   : > { %9853 = vmatprep.subr.bf16.mxu0 %v15542_v18  ;;  %v3033_v10 = vsel %vm15308_vm9, %v12870_v42, 0.0 }
 0x64f   : > { %v2815_v23 = vmul.f32 1.442695, %v2717_v0 }
 0x650   : > { %v12878_v13 = vpop.eup %10415 }
 0x651   : > { %v3036_v17 = vsel %vm15308_vm9, %v12878_v13, 0.0  ;;  %10417 = vpow2.f32 %v2815_v23 }
 0x656   : > { %3019 = vadd.xlane.f32.xlu0 %v3018_v7  ;;  %v15576_v7 = vld [vmem:[#allocation64_spill] sm:$0xff] }
 0x657   : > { %v2719_v47 = vsub.f32 %v15576_v7, %v15575_v45 }
 0x659   : > { %v2819_v9 = vmul.f32 1.442695, %v2719_v47 }
 0x65a   : > { %2977 = vadd.xlane.f32.xlu0 %v2976_v60 }
 0x65b   : > { %10419 = vpow2.f32 %v2819_v9 }
 0x65d   : > { %3892 = vrot.lane.b32.xlu1 %v15556_v35, %s10803_s16 }
 0x65e   : > { %3022 = vadd.xlane.f32.xlu0 %v3021_v43  ;;  %v2720_v43 = vsub.f32 %v15578_v6, %v15577_v3  ;;  %v15586_v6 = vld [vmem:[#allocation76_spill] sm:$0xff] }
 0x65f   : > { %v12850_v49 = vpop.f32.mrb[90].mxu1 }
 0x660   : > { %v8925_v5 = vpop.f32.mrb[91].mxu1 }
 0x662   : > { %3025 = vadd.xlane.f32.xlu0 %v3024_v41 }
 0x663   : > { %v12856_v30 = vpop.f32.mrb[62].mxu0 }
 0x664   : > { %v9000_v35 = vpop.f32.mrb[63].mxu0 }
 0x666   : > { %3028 = vadd.xlane.f32.xlu0 %v3027_v1  ;;  %v2821_v1 = vmul.f32 1.442695, %v2720_v43  ;;  %v15587_v43 = vld [vmem:[#allocation70_spill] sm:$0xff] }
 0x667   : > { %v12862_v55 = vpop.xlane.xlu1 %2962  ;;  %v12864_v50 = vpop.f32.mrb[92].mxu1 }
 0x668   : > { %v12866_v4 = vpop.f32.mrb[64].mxu0  ;;  %v8928_v56 = vpop.f32.mrb[93].mxu1  ;;  %10421 = vpow2.f32 %v2821_v1 }
 0x669   : > { %v9003_v32 = vpop.f32.mrb[65].mxu0  ;;  %v15580_v56 = vld [vmem:[#allocation72_spill] sm:$0xff] }
 0x66a   : > { %3031 = vadd.xlane.f32.xlu0 %v3030_v52  ;;  %v15581_v32 = vld [vmem:[#allocation67_spill] sm:$0xff] }
 0x66b   : > { %v10126_v46 = vpop.permute.xlu1 %10125  ;;  %v12874_v21 = vpop.f32.mrb[94].mxu1  ;;  %v2721_v52 = vsub.f32 %v15581_v32, %v15580_v56 }
 0x66c   : > { %v10128_v16 = vunpack.i.h.bf16 %v10126_v46  ;;  %v10127_v8 = vunpack.i.l.bf16 %v10126_v46  ;;  %v8931_v62 = vpop.f32.mrb[95].mxu1 }
 0x66d   : > { %v15583_v62 = vld [vmem:[#allocation75_spill] sm:$0xff] }
 0x66e   : > { %v9830_v58 = vpack.c.bf16 %v10128_v16, %v10127_v8  ;;  %3034 = vadd.xlane.f32.xlu0 %v3033_v10  ;;  %v2823_v8 = vmul.f32 1.442695, %v2721_v52  ;;  %v15584_v10 = vld [vmem:[#allocation69_spill] sm:$0xff] }
 0x66f   : > { %v12882_v36 = vpop.f32.mrb[96].mxu1  ;;  %v12884_v63 = vpop.f32.mrb[66].mxu0 }
 0x670   : > { %v8934_v59 = vpop.f32.mrb[97].mxu1  ;;  %v9006_v60 = vpop.f32.mrb[67].mxu0  ;;  %9831 = vmatpush3.bf16.msra.mxu1 %v9830_v58  ;;  %v2722_v58 = vsub.f32 %v15584_v10, %v15583_v62  ;;  %10423 = vpow2.f32 %v2823_v8 }
 0x671   : > { %9832 = vmatprep.subr.bf16.mxu1 %v15542_v18  ;;  %v12905_v59 = vpop.eup %10417 }
 0x672   : > { %3037 = vadd.xlane.f32.xlu0 %v3036_v17  ;;  %v2825_v3 = vmul.f32 1.442695, %v2722_v58 }
 0x673   : > { %v12891_v29 = vpop.f32.mrb[98].mxu1  ;;  %v3575_v5 = vpop.f32.mrb[68].mxu0 }
 0x674   : > { %15579 = vst [vmem:[#allocation15_spill] sm:$0xff] %v12891_v29  ;;  %v8937_v41 = vpop.f32.mrb[99].mxu1  ;;  %v9009_v35 = vpop.f32.mrb[69].mxu0  ;;  %10425 = vpow2.f32 %v2825_v3 }
 0x675   : > { %v2723_v41 = vsub.f32 %v15587_v43, %v15586_v6 }
 0x677   : > { %v12895_v26 = vpop.f32.mrb[100].mxu1  ;;  %v12897_v38 = vpop.f32.mrb[70].mxu0  ;;  %v2827_v8 = vmul.f32 1.442695, %v2723_v41 }
 0x678   : > { %15582 = vst [vmem:[#allocation16_spill] sm:$0xff] %v12895_v26  ;;  %v8940_v0 = vpop.f32.mrb[101].mxu1  ;;  %v9012_v46 = vpop.f32.mrb[71].mxu0 }
 0x679   : > { %v12899_v16 = vpop.xlane.xlu0 %3010  ;;  %v2973_v0 = vsel %vm15308_vm9, %v12905_v59, 0.0  ;;  %v12915_v46 = vpop.eup %10419  ;;  %10427 = vpow2.f32 %v2827_v8 }
 0x67b   : > { %v12903_v23 = vpop.f32.mrb[102].mxu1  ;;  %v3585_v45 = vpop.f32.mrb[72].mxu0 }
 0x67c   : > { %15585 = vst [vmem:[#allocation51_spill] sm:$0xff] %v12903_v23  ;;  %v8943_v7 = vpop.f32.mrb[103].mxu1  ;;  %v9015_v47 = vpop.f32.mrb[73].mxu0 }
 0x67d   : > { %v10141_v60 = vpop.permute.xlu0 %10140  ;;  %v2979_v47 = vsel %vm15308_vm9, %v12915_v46, 0.0 }
 0x67e   : > { %v10143_v17 = vunpack.i.h.bf16 %v10141_v60  ;;  %v10142_v9 = vunpack.i.l.bf16 %v10141_v60  ;;  %v12922_v60 = vpop.eup %10421 }
 0x67f   : > { %v12909_v35 = vpop.f32.mrb[104].mxu1  ;;  %v12911_v1 = vpop.f32.mrb[74].mxu0  ;;  %v2982_v43 = vsel %vm15308_vm9, %v12922_v60, 0.0 }
 0x680   : > { %15588 = vst [vmem:[#allocation11_spill] sm:$0xff] %v12909_v35  ;;  %v9854_v56 = vpack.c.bf16 %v10143_v17, %v10142_v9  ;;  %v8946_v32 = vpop.f32.mrb[105].mxu1  ;;  %v9018_v52 = vpop.f32.mrb[75].mxu0 }
 0x681   : > { %2974 = vadd.xlane.f32.xlu1 %v2973_v0  ;;  %v12931_v41 = vpop.eup %10423 }
 0x682   : > { %9855 = vmatpush3.bf16.msra.mxu0 %v9854_v56  ;;  %v2985_v8 = vsel %vm15308_vm9, %v12931_v41, 0.0 }
 0x683   : > { %v12917_v62 = vpop.f32.mrb[106].mxu1  ;;  %v3595_v10 = vpop.f32.mrb[76].mxu0  ;;  %9146 = vmatprep.subr.mxu0 %v15539_v34 }
 0x684   : > { %15589 = vst [vmem:[#allocation12_spill] sm:$0xff] %v12917_v62  ;;  %v8949_v58 = vpop.f32.mrb[107].mxu1  ;;  %v9021_v7 = vpop.f32.mrb[77].mxu0 }
 0x685   : > { %2980 = vadd.xlane.f32.xlu1 %v2979_v47  ;;  %v12938_v58 = vpop.eup %10425 }
 0x686   : > { %v2988_v47 = vsel %vm15308_vm9, %v12938_v58, 0.0 }
 0x687   : > { %v12924_v17 = vpop.f32.mrb[108].mxu1  ;;  %v12926_v9 = vpop.f32.mrb[78].mxu0 }
 0x688   : > { %15590 = vst [vmem:[#allocation43_spill] sm:$0xff] %v12924_v17  ;;  %4115 = vrot.lane.b32.xlu0 %v3575_v5, %s10805_s21  ;;  %v8952_v3 = vpop.f32.mrb[109].mxu1  ;;  %v9024_v6 = vpop.f32.mrb[79].mxu0 }
 0x689   : > { %2983 = vadd.xlane.f32.xlu1 %v2982_v43  ;;  %v12945_v3 = vpop.eup %10427 }
 0x68a   : > { %v2991_v43 = vsel %vm15308_vm9, %v12945_v3, 0.0 }
 0x68b   : > { %v12933_v56 = vpop.f32.mrb[110].mxu1  ;;  %v3605_v32 = vpop.f32.mrb[80].mxu0 }
 0x68c   : > { %15591 = vst [vmem:[#allocation52_spill] sm:$0xff] %v12933_v56  ;;  %4119 = vrot.lane.b32.xlu0 %v3585_v45, %s10805_s21  ;;  %v8955_v52 = vpop.f32.mrb[111].mxu1  ;;  %v9027_v0 = vpop.f32.mrb[81].mxu0 }
 0x68d   : > { %2986 = vadd.xlane.f32.xlu1 %v2985_v8 }
 0x68f   : > { %v12940_v5 = vpop.f32.mrb[82].mxu0 }
 0x690   : > { %4123 = vrot.lane.b32.xlu0 %v3595_v10, %s10805_s21  ;;  %v9030_v7 = vpop.f32.mrb[83].mxu0 }
 0x691   : > { %2989 = vadd.xlane.f32.xlu1 %v2988_v47 }
 0x693   : > { %v12947_v45 = vpop.f32.mrb[112].mxu1 }
 0x694   : > { %15592 = vst [vmem:[#allocation13_spill] sm:$0xff] %v12947_v45  ;;  %4127 = vrot.lane.b32.xlu0 %v3605_v32, %s10805_s21  ;;  %v8958_v6 = vpop.f32.mrb[113].mxu1 }
 0x695   : > { %2992 = vadd.xlane.f32.xlu1 %v2991_v43  ;;  %v3069_v6 = vmax.f32 %v12722_v11, 1e-30  ;;  %v3071_v11 = vmax.f32 %v12772_v33, 1e-30 }
 0x697   : > { %v3615_v52 = vpop.f32.mrb[84].mxu0  ;;  %10429 = vrcp.f32 %v3069_v6 }
 0x698   : > { %4131 = vrot.lane.b32.xlu0 %v3615_v52, %s10805_s21  ;;  %v9033_v10 = vpop.f32.mrb[85].mxu0 }
 0x69b   : > { %v12953_v0 = vpop.f32.mrb[114].mxu1  ;;  %v3620_v8 = vpop.f32.mrb[86].mxu0 }
 0x69c   : > { %15593 = vst [vmem:[#allocation35_spill] sm:$0xff] %v12953_v0  ;;  %v2966_v7 = vpop.xlane.xlu1 %2965  ;;  %v8961_v56 = vpop.f32.mrb[115].mxu1 }
 0x69d   : > { %v9036_v17 = vpop.f32.mrb[87].mxu0 }
 0x69e   : > { %v3070_v17 = vmax.f32 %v12730_v20, 1e-30 }
 0x69f   : > { %v12955_v47 = vpop.f32.mrb[116].mxu1  ;;  %v3625_v45 = vpop.f32.mrb[88].mxu0 }
 0x6a0   : > { %v10136_v62 = vpop.permute.xlu1 %10135  ;;  %4135 = vrot.lane.b32.xlu0 %v3625_v45, %s10805_s21  ;;  %v8964_v32 = vpop.f32.mrb[117].mxu1  ;;  %10431 = vrcp.f32 %v3070_v17 }
 0x6a1   : > { %v10138_v43 = vunpack.i.h.bf16 %v10136_v62  ;;  %v10137_v35 = vunpack.i.l.bf16 %v10136_v62  ;;  %v9039_v23 = vpop.f32.mrb[89].mxu0  ;;  %10433 = vrcp.f32 %v3071_v11  ;;  %v10430_v20 = vpop.eup %10429 }
 0x6a2   : > { %v3072_v23 = vmax.f32 %v12796_v2, 1e-30  ;;  %v3074_v2 = vmax.f32 %v2966_v7, 1e-30 }
 0x6a3   : > { %v9833_v52 = vpack.c.bf16 %v10138_v43, %v10137_v35  ;;  %v12959_v10 = vpop.f32.mrb[118].mxu1  ;;  %v3630_v0 = vpop.f32.mrb[90].mxu0  ;;  %v3086_v43 = vmax.f32 %v12761_v14, 1e-30 }
 0x6a4   : > { %v8967_v26 = vpop.f32.mrb[119].mxu1  ;;  %v9042_v29 = vpop.f32.mrb[91].mxu0  ;;  %10435 = vrcp.f32 %v3072_v23 }
 0x6a5   : > { %9834 = vmatpush3.bf16.msra.mxu1 %v9833_v52  ;;  %v15594_v29 = vld [vmem:[#allocation39_spill] sm:$0xff] }
 0x6a6   : > { %4109 = vrot.lane.b32.xlu1 %v12856_v30, %s10805_s21  ;;  %9071 = vmatprep.subr.mxu1 %v15539_v34  ;;  %v3073_v30 = vmax.f32 %v12862_v55, 1e-30  ;;  %v3160_v35 = vmul.f32 %v10430_v20, %v15594_v29  ;;  %v15595_v55 = vld [vmem:[#allocation41_spill] sm:$0xff] }
 0x6a8   : > { %10437 = vrcp.f32 %v3073_v30 }
 0x6a9   : > { %10439 = vrcp.f32 %v3074_v2 }
 0x6aa   : > { %4111 = vrot.lane.b32.xlu1 %v12866_v4, %s10805_s21  ;;  %v10432_v33 = vpop.eup %10431 }
 0x6ab   : > { %v3162_v4 = vmul.f32 %v10432_v33, %v15595_v55  ;;  %v15599_v55 = vld [vmem:[#allocation46_spill] sm:$0xff] }
 0x6ae   : > { %v12969_v26 = vpop.xlane.xlu0 %3013  ;;  %4113 = vrot.lane.b32.xlu1 %v12884_v63, %s10805_s21  ;;  %v10434_v63 = vpop.eup %10433 }
 0x6af   : > { %v10436_v45 = vpop.eup %10435 }
 0x6b2   : > { %v3663_v62 = vpop.permute.xlu0 %3662  ;;  %4117 = vrot.lane.b32.xlu1 %v12897_v38, %s10805_s21  ;;  %v15596_v38 = vld [vmem:[#allocation74_spill] sm:$0xff]  ;;  %v10438_v7 = vpop.eup %10437 }
 0x6b3   : > { %9072 = vmatpush3.msra.mxu1 %v3663_v62  ;;  %v3164_v56 = vmul.f32 %v10434_v63, %v15596_v38  ;;  %v10440_v32 = vpop.eup %10439 }
 0x6b4   : > { %9074 = vmatmul.mubr.msk.f32.vlgmr.msra.gmra.mrb[120].mxu1 %vm15308_vm9, %v3160_v35  ;;  %9856 = vmatprep.subr.bf16.mxu1 %v15542_v18 }
 0x6b5   : > { %9076 = vmatprep.mubr.msk.f32.mxu1 %vm15540_vm0, %v15539_v34 }
 0x6b6   : > { %4121 = vrot.lane.b32.xlu1 %v12911_v1, %s10805_s21  ;;  %v3166_v1 = vmul.f32 %v10436_v45, %v12640_v39  ;;  %v3170_v39 = vmul.f32 %v10440_v32, %v12777_v25  ;;  %v3087_v25 = vmax.f32 %v12783_v57, 1e-30  ;;  %v3089_v57 = vmax.f32 %v12899_v16, 1e-30 }
 0x6b7   : > { %v3090_v16 = vmax.f32 %v12969_v26, 1e-30  ;;  %v15600_v26 = vld [vmem:[#allocation77_spill] sm:$0xff] }
 0x6b8   : > { %9077 = vmatmul.mubr.msk.f32.gmra.mrb[122].mxu1 %vm15308_vm9, %v3162_v4 }
 0x6b9   : > { %9079 = vmatprep.mubr.msk.f32.mxu1 %vm15540_vm0, %v15539_v34 }
 0x6ba   : > { %4125 = vrot.lane.b32.xlu1 %v12926_v9, %s10805_s21  ;;  %v3168_v9 = vmul.f32 %v10438_v7, %v12755_v31 }
 0x6bc   : > { %9080 = vmatmul.mubr.msk.f32.gmra.mrb[124].mxu1 %vm15308_vm9, %v3164_v56 }
 0x6bd   : > { %9082 = vmatprep.mubr.msk.f32.mxu1 %vm15540_vm0, %v15539_v34 }
 0x6be   : > { %4129 = vrot.lane.b32.xlu1 %v12940_v5, %s10805_s21  ;;  %v3084_v5 = vmax.f32 %v12642_v22, 1e-30  ;;  %v3088_v22 = vmax.f32 %v12813_v27, 1e-30  ;;  %v15598_v27 = vld [vmem:[#allocation34_spill] sm:$0xff] }
 0x6c0   : > { %9083 = vmatmul.mubr.msk.f32.gmra.mrb[126].mxu1 %vm15308_vm9, %v3166_v1  ;;  %10441 = vrcp.f32 %v3084_v5 }
 0x6c1   : > { %9085 = vmatprep.mubr.msk.f32.mxu1 %vm15540_vm0, %v15539_v34 }
 0x6c2   : > { %4133 = vrot.lane.b32.xlu1 %v3620_v8, %s10805_s21  ;;  %v3085_v8 = vmax.f32 %v12654_v40, 1e-30  ;;  %v15597_v40 = vld [vmem:[#allocation36_spill] sm:$0xff] }
 0x6c4   : > { %9086 = vmatmul.mubr.msk.f32.gmra.mrb[128].mxu1 %vm15308_vm9, %v3168_v9  ;;  %10443 = vrcp.f32 %v3085_v8 }
 0x6c5   : > { %9088 = vmatprep.mubr.msk.f32.mxu1 %vm15540_vm0, %v15539_v34 }
 0x6c6   : > { %4137 = vrot.lane.b32.xlu1 %v3630_v0, %s10805_s21 }
 0x6c8   : > { %9089 = vmatmul.mubr.msk.f32.gmra.mrb[130].mxu1 %vm15308_vm9, %v3170_v39 }
 0x6c9   : > { %9091 = vmatprep.mubr.msk.f32.mxu1 %vm15540_vm0, %v15539_v34 }
 0x6ca   : > { %v10442_v11 = vpop.eup %10441 }
 0x6cb   : > { %v3190_v20 = vmul.f32 %v10442_v11, %v15597_v40 }
 0x6ce   : > { %v10444_v23 = vpop.eup %10443 }
 0x6cf   : > { %v3192_v62 = vmul.f32 %v10444_v23, %v15598_v27 }
 0x6d1   : > { %v2969_v31 = vpop.xlane.xlu1 %2968 }
 0x6d2   : > { %v3075_v6 = vmax.f32 %v2969_v31, 1e-30 }
 0x6d4   : > { %10445 = vrcp.f32 %v3075_v6 }
 0x6d5   : > { %v2972_v52 = vpop.xlane.xlu1 %2971  ;;  %10447 = vrcp.f32 %v3086_v43 }
 0x6d6   : > { %v3076_v0 = vmax.f32 %v2972_v52, 1e-30 }
 0x6d8   : > { %10449 = vrcp.f32 %v3076_v0 }
 0x6d9   : > { %v3017_v17 = vpop.xlane.xlu1 %3016  ;;  %10451 = vrcp.f32 %v3087_v25 }
 0x6da   : > { %10453 = vrcp.f32 %v3088_v22 }
 0x6db   : > { %10455 = vrcp.f32 %v3089_v57 }
 0x6dc   : > { %10457 = vrcp.f32 %v3090_v16 }
 0x6dd   : > { %v3893_v30 = vpop.permute.xlu1 %3892 }
 0x6de   : > { %v10446_v29 = vpop.eup %10445  ;;  %9147 = vmatpush3.msra.mxu0 %v3893_v30 }
 0x6df   : > { %9149 = vmatmul.mubr.msk.f32.vlgmr.msra.gmra.mrb[92].mxu0 %vm15308_vm9, %v3190_v20  ;;  %v3172_v14 = vmul.f32 %v10446_v29, %v12803_v44  ;;  %9868 = vmatprep.subr.bf16.mxu0 %v15542_v18  ;;  %v10448_v35 = vpop.eup %10447 }
 0x6e0   : > { %9151 = vmatprep.mubr.msk.f32.mxu0 %vm15540_vm0, %v15539_v34  ;;  %v3194_v4 = vmul.f32 %v10448_v35, %v15599_v55 }
 0x6e1   : > { %9092 = vmatmul.mubr.msk.f32.gmra.mrb[132].mxu1 %vm15308_vm9, %v3172_v14 }
 0x6e2   : > { %v10450_v33 = vpop.eup %10449  ;;  %9094 = vmatprep.mubr.msk.f32.mxu1 %vm15540_vm0, %v15539_v34 }
 0x6e3   : > { %v3020_v2 = vpop.xlane.xlu0 %3019  ;;  %9152 = vmatmul.mubr.msk.f32.gmra.mrb[94].mxu0 %vm15308_vm9, %v3192_v62  ;;  %v3174_v44 = vmul.f32 %v10450_v33, %v12809_v54  ;;  %v10452_v63 = vpop.eup %10451  ;;  %v3091_v54 = vmax.f32 %v3017_v17, 1e-30 }
 0x6e4   : > { %9154 = vmatprep.mubr.msk.f32.mxu0 %vm15540_vm0, %v15539_v34  ;;  %v3196_v56 = vmul.f32 %v10452_v63, %v15600_v26  ;;  %v10454_v45 = vpop.eup %10453  ;;  %v3092_v7 = vmax.f32 %v3020_v2, 1e-30 }
 0x6e5   : > { %9095 = vmatmul.mubr.msk.f32.gmra.mrb[134].mxu1 %vm15308_vm9, %v3174_v44  ;;  %10459 = vrcp.f32 %v3091_v54  ;;  %v3198_v9 = vmul.f32 %v10454_v45, %v12685_v28  ;;  %v10456_v32 = vpop.eup %10455 }
 0x6e6   : > { %9097 = vmatprep.mubr.msk.f32.mxu1 %vm15540_vm0, %v15539_v34  ;;  %10461 = vrcp.f32 %v3092_v7  ;;  %v3200_v8 = vmul.f32 %v10456_v32, %v12764_v12  ;;  %v10458_v31 = vpop.eup %10457 }
 0x6e7   : > { %v13034_v38 = vpop.xlane.xlu0 %2977  ;;  %9155 = vmatmul.mubr.msk.f32.gmra.mrb[96].mxu0 %vm15308_vm9, %v3194_v4  ;;  %v3202_v28 = vmul.f32 %v10458_v31, %v12786_v51 }
 0x6e8   : > { %9157 = vmatprep.mubr.msk.f32.mxu0 %vm15540_vm0, %v15539_v34 }
 0x6eb   : > { %v3023_v1 = vpop.xlane.xlu0 %3022  ;;  %9158 = vmatmul.mubr.msk.f32.gmra.mrb[98].mxu0 %vm15308_vm9, %v3196_v56 }
 0x6ec   : > { %9160 = vmatprep.mubr.msk.f32.mxu0 %vm15540_vm0, %v15539_v34  ;;  %v3093_v5 = vmax.f32 %v3023_v1, 1e-30 }
 0x6ee   : > { %10463 = vrcp.f32 %v3093_v5 }
 0x6ef   : > { %v3026_v39 = vpop.xlane.xlu0 %3025  ;;  %9161 = vmatmul.mubr.msk.f32.gmra.mrb[100].mxu0 %vm15308_vm9, %v3198_v9  ;;  %v10460_v52 = vpop.eup %10459 }
 0x6f0   : > { %9163 = vmatprep.mubr.msk.f32.mxu0 %vm15540_vm0, %v15539_v34  ;;  %v3094_v43 = vmax.f32 %v3026_v39, 1e-30  ;;  %v3204_v12 = vmul.f32 %v10460_v52, %v12817_v24  ;;  %v10462_v17 = vpop.eup %10461 }
 0x6f1   : > { %v3206_v51 = vmul.f32 %v10462_v17, %v12828_v19 }
 0x6f2   : > { %10465 = vrcp.f32 %v3094_v43 }
 0x6f3   : > { %v3029_v6 = vpop.xlane.xlu0 %3028  ;;  %9164 = vmatmul.mubr.msk.f32.gmra.mrb[102].mxu0 %vm15308_vm9, %v3200_v8 }
 0x6f4   : > { %9166 = vmatprep.mubr.msk.f32.mxu0 %vm15540_vm0, %v15539_v34  ;;  %v3095_v25 = vmax.f32 %v3029_v6, 1e-30 }
 0x6f6   : > { %10467 = vrcp.f32 %v3095_v25 }
 0x6f7   : > { %v3032_v0 = vpop.xlane.xlu0 %3031  ;;  %9167 = vmatmul.mubr.msk.f32.gmra.mrb[104].mxu0 %vm15308_vm9, %v3202_v28 }
 0x6f8   : > { %9169 = vmatprep.mubr.msk.f32.mxu0 %vm15540_vm0, %v15539_v34  ;;  %v3096_v22 = vmax.f32 %v3032_v0, 1e-30  ;;  %v10464_v23 = vpop.eup %10463 }
 0x6f9   : > { %v3208_v20 = vmul.f32 %v10464_v23, %v12840_v48 }
 0x6fa   : > { %10469 = vrcp.f32 %v3096_v22  ;;  %v4434_v22 = vld [vmem:[%s15158_s6] sm:$0xff] }
 0x6fb   : > { %v3035_v11 = vpop.xlane.xlu0 %3034  ;;  %9170 = vmatmul.mubr.msk.f32.gmra.mrb[106].mxu0 %vm15308_vm9, %v3204_v12 }
 0x6fc   : > { %9172 = vmatprep.mubr.msk.f32.mxu0 %vm15540_vm0, %v15539_v34  ;;  %v3097_v40 = vmax.f32 %v3035_v11, 1e-30  ;;  %v10466_v30 = vpop.eup %10465 }
 0x6fd   : > { %v3210_v19 = vmul.f32 %v10466_v30, %v12848_v61  ;;  %v3078_v61 = vmax.f32 %v13034_v38, 1e-30 }
 0x6fe   : > { %10471 = vrcp.f32 %v3097_v40  ;;  %v4436_v40 = vld [vmem:[%s15158_s6 + $0x10] sm:$0xff] }
 0x6ff   : > { %9173 = vmatmul.mubr.msk.f32.gmra.mrb[108].mxu0 %vm15308_vm9, %v3206_v51  ;;  %v3038_v24 = vpop.xlane.xlu0 %3037  ;;  %v4435_v51 = vld [vmem:[%s15158_s6 + $0x8] sm:$0xff] }
 0x700   : > { %9175 = vmatprep.mubr.msk.f32.mxu0 %vm15540_vm0, %v15539_v34  ;;  %v3098_v29 = vmax.f32 %v3038_v24, 1e-30  ;;  %v10468_v14 = vpop.eup %10467  ;;  %v9857_v23 = vpack.c.bf16 %v4435_v51, %v4434_v22  ;;  %v4437_v24 = vld [vmem:[%s15158_s6 + $0x18] sm:$0xff] }
 0x701   : > { %v3212_v57 = vmul.f32 %v10468_v14, %v12854_v53 }
 0x702   : > { %10473 = vrcp.f32 %v3098_v29  ;;  %9858 = vmatpush3.bf16.msra.mxu1 %v9857_v23  ;;  %v4438_v29 = vld [vmem:[%s15158_s6 + $0x20] sm:$0xff] }
 0x703   : > { %9176 = vmatmul.mubr.msk.f32.gmra.mrb[110].mxu0 %vm15308_vm9, %v3208_v20  ;;  %9859 = vmatprep.subr.bf16.mxu1 %v15542_v18  ;;  %v9860_v20 = vpack.c.bf16 %v4437_v24, %v4436_v40  ;;  %v4116_v51 = vpop.permute.xlu0 %4115 }
 0x704   : > { %9178 = vmatprep.mubr.msk.f32.mxu0 %vm15540_vm0, %v15539_v34  ;;  %v10470_v48 = vpop.eup %10469 }
 0x705   : > { %v3214_v35 = vmul.f32 %v10470_v48, %v12860_v15 }
 0x706   : > { %9861 = vmatpush3.bf16.msra.mxu1 %v9860_v20 }
 0x707   : > { %9179 = vmatmul.mubr.msk.f32.gmra.mrb[112].mxu0 %vm15308_vm9, %v3210_v19  ;;  %9862 = vmatprep.subr.bf16.mxu1 %v15542_v18  ;;  %v4439_v19 = vld [vmem:[%s15158_s6 + $0x28] sm:$0xff] }
 0x708   : > { %9181 = vmatprep.mubr.msk.f32.mxu0 %vm15540_vm0, %v15539_v34  ;;  %v10472_v27 = vpop.eup %10471 }
 0x709   : > { %v3216_v53 = vmul.f32 %v10472_v27, %v12870_v42 }
 0x70b   : > { %9182 = vmatmul.mubr.msk.f32.gmra.mrb[114].mxu0 %vm15308_vm9, %v3212_v57  ;;  %v9863_v57 = vpack.c.bf16 %v4439_v19, %v4438_v29 }
 0x70c   : > { %9184 = vmatprep.mubr.msk.f32.mxu0 %vm15540_vm0, %v15539_v34  ;;  %v10474_v2 = vpop.eup %10473 }
 0x70d   : > { %v3218_v15 = vmul.f32 %v10474_v2, %v12878_v13  ;;  %9864 = vmatpush3.bf16.msra.mxu1 %v9863_v57 }
 0x70e   : > { %v2975_v62 = vpop.xlane.xlu1 %2974  ;;  %9865 = vmatprep.subr.bf16.mxu1 %v15542_v18 }
 0x70f   : > { %v3077_v33 = vmax.f32 %v2975_v62, 1e-30  ;;  %9185 = vmatmul.mubr.msk.f32.gmra.mrb[116].mxu0 %vm15308_vm9, %v3214_v35  ;;  %v4440_v62 = vld [vmem:[%s15158_s6 + $0x30] sm:$0xff] }
 0x710   : > { %9187 = vmatprep.mubr.msk.f32.mxu0 %vm15540_vm0, %v15539_v34 }
 0x711   : > { %10475 = vrcp.f32 %v3077_v33 }
 0x712   : > { %v2981_v44 = vpop.xlane.xlu1 %2980  ;;  %10477 = vrcp.f32 %v3078_v61  ;;  %v4441_v61 = vld [vmem:[%s15158_s6 + $0x38] sm:$0xff] }
 0x713   : > { %v3079_v16 = vmax.f32 %v2981_v44, 1e-30  ;;  %9188 = vmatmul.mubr.msk.f32.gmra.mrb[118].mxu0 %vm15308_vm9, %v3216_v53  ;;  %v9866_v53 = vpack.c.bf16 %v4441_v61, %v4440_v62 }
 0x714   : > { %9190 = vmatprep.mubr.msk.f32.mxu0 %vm15540_vm0, %v15539_v34 }
 0x715   : > { %10479 = vrcp.f32 %v3079_v16  ;;  %9867 = vmatpush3.bf16.msra.mxu1 %v9866_v53 }
 0x716   : > { %v2984_v55 = vpop.xlane.xlu1 %2983  ;;  %9917 = vmatprep.subr.bf16.mxu1 %v15542_v18 }
 0x717   : > { %v3080_v4 = vmax.f32 %v2984_v55, 1e-30  ;;  %9191 = vmatmul.mubr.msk.f32.gmra.mrb[120].mxu0 %vm15308_vm9, %v3218_v15 }
 0x718   : > { %9284 = vmatprep.mubr.msk.f32.mxu0 %vm15540_vm0, %v15539_v34 }
 0x719   : > { %10481 = vrcp.f32 %v3080_v4 }
 0x71a   : > { %v2987_v42 = vpop.xlane.xlu1 %2986 }
 0x71b   : > { %v10476_v63 = vpop.eup %10475  ;;  %v3081_v38 = vmax.f32 %v2987_v42, 1e-30 }
 0x71c   : > { %v3176_v54 = vmul.f32 %v10476_v63, %v12905_v59  ;;  %v10478_v26 = vpop.eup %10477 }
 0x71d   : > { %10483 = vrcp.f32 %v3081_v38  ;;  %v3178_v45 = vmul.f32 %v10478_v26, %v12834_v37 }
 0x71e   : > { %v2990_v56 = vpop.xlane.xlu1 %2989  ;;  %9098 = vmatmul.mubr.msk.f32.gmra.mrb[136].mxu1 %vm15308_vm9, %v3176_v54 }
 0x71f   : > { %v3082_v13 = vmax.f32 %v2990_v56, 1e-30  ;;  %9100 = vmatprep.mubr.msk.f32.mxu1 %vm15540_vm0, %v15539_v34  ;;  %v10480_v1 = vpop.eup %10479 }
 0x720   : > { %v3180_v59 = vmul.f32 %v10480_v1, %v12915_v46 }
 0x721   : > { %10485 = vrcp.f32 %v3082_v13 }
 0x722   : > { %v2993_v7 = vpop.xlane.xlu1 %2992  ;;  %9101 = vmatmul.mubr.msk.f32.gmra.mrb[138].mxu1 %vm15308_vm9, %v3178_v45 }
 0x723   : > { %v3083_v9 = vmax.f32 %v2993_v7, 1e-30  ;;  %9103 = vmatprep.mubr.msk.f32.mxu1 %vm15540_vm0, %v15539_v34  ;;  %v10482_v32 = vpop.eup %10481 }
 0x724   : > { %v3182_v37 = vmul.f32 %v10482_v32, %v12922_v60 }
 0x725   : > { %10487 = vrcp.f32 %v3083_v9 }
 0x726   : > { %9104 = vmatmul.mubr.msk.f32.gmra.mrb[140].mxu1 %vm15308_vm9, %v3180_v59 }
 0x727   : > { %9106 = vmatprep.mubr.msk.f32.mxu1 %vm15540_vm0, %v15539_v34  ;;  %v10484_v39 = vpop.eup %10483 }
 0x728   : > { %v3184_v5 = vmul.f32 %v10484_v39, %v12931_v41 }
 0x72a   : > { %9107 = vmatmul.mubr.msk.f32.gmra.mrb[142].mxu1 %vm15308_vm9, %v3182_v37 }
 0x72b   : > { %9109 = vmatprep.mubr.msk.f32.mxu1 %vm15540_vm0, %v15539_v34  ;;  %v10486_v8 = vpop.eup %10485 }
 0x72c   : > { %v3186_v46 = vmul.f32 %v10486_v8, %v12938_v58 }
 0x72e   : > { %9110 = vmatmul.mubr.msk.f32.gmra.mrb[144].mxu1 %vm15308_vm9, %v3184_v5 }
 0x72f   : > { %9112 = vmatprep.mubr.msk.f32.mxu1 %vm15540_vm0, %v15539_v34  ;;  %v10488_v31 = vpop.eup %10487 }
 0x730   : > { %v3188_v60 = vmul.f32 %v10488_v31, %v12945_v3 }
 0x732   : > { %9113 = vmatmul.mubr.msk.f32.gmra.mrb[146].mxu1 %vm15308_vm9, %v3186_v46 }
 0x733   : > { %9115 = vmatprep.mubr.msk.f32.mxu1 %vm15540_vm0, %v15539_v34 }
 0x736   : > { %9116 = vmatmul.mubr.msk.f32.gmra.mrb[148].mxu1 %vm15308_vm9, %v3188_v60  ;;  %vm15315_vm9 = vcmask 392192  }
 0x737   : > { %9209 = vmatprep.mubr.msk.f32.mxu1 %vm15540_vm0, %v15539_v34 }
 0x787   : > { %v3790_v41 = vpop.f32.mrb[120].mxu1 }
 0x788   : > { %4169 = vrot.lane.b32.xlu0 %v3790_v41, %s10806_s22  ;;  %v9075_v6 = vpop.f32.mrb[121].mxu1 }
 0x78b   : > { %v3795_v43 = vpop.f32.mrb[122].mxu1 }
 0x78c   : > { %v9078_v58 = vpop.f32.mrb[123].mxu1 }
 0x78f   : > { %v3800_v28 = vpop.f32.mrb[124].mxu1 }
 0x790   : > { %v9081_v52 = vpop.f32.mrb[125].mxu1 }
 0x793   : > { %v3805_v0 = vpop.f32.mrb[126].mxu1 }
 0x794   : > { %v9084_v25 = vpop.f32.mrb[127].mxu1 }
 0x797   : > { %v3810_v12 = vpop.f32.mrb[128].mxu1 }
 0x798   : > { %v9087_v17 = vpop.f32.mrb[129].mxu1 }
 0x79b   : > { %v3815_v11 = vpop.f32.mrb[130].mxu1 }
 0x79c   : > { %v9090_v3 = vpop.f32.mrb[131].mxu1 }
 0x7b2   : > { %v4020_v30 = vpop.f32.mrb[92].mxu0 }
 0x7b3   : > { %4229 = vrot.lane.b32.xlu1 %v4020_v30, %s10807_s19  ;;  %v9150_v14 = vpop.f32.mrb[93].mxu0  ;;  %v13170_v30 = vpop.permute.xlu0 %4119 }
 0x7b4   : > { %v3820_v48 = vpop.f32.mrb[132].mxu1 }
 0x7b5   : > { %v9093_v35 = vpop.f32.mrb[133].mxu1 }
 0x7b6   : > { %v4025_v27 = vpop.f32.mrb[94].mxu0 }
 0x7b7   : > { %v9153_v33 = vpop.f32.mrb[95].mxu0  ;;  %4231 = vrot.lane.b32.xlu0 %v4025_v27, %s10807_s19  ;;  %4171 = vrot.lane.b32.xlu1 %v3795_v43, %s10806_s22  ;;  %v4110_v43 = vpop.permute.xlu1 %4109 }
 0x7b8   : > { %v3825_v2 = vpop.f32.mrb[134].mxu1 }
 0x7b9   : > { %v9096_v44 = vpop.f32.mrb[135].mxu1 }
 0x7ba   : > { %v4030_v16 = vpop.f32.mrb[96].mxu0 }
 0x7bb   : > { %v9156_v15 = vpop.f32.mrb[97].mxu0  ;;  %4233 = vrot.lane.b32.xlu1 %v4030_v16, %s10807_s19  ;;  %4173 = vrot.lane.b32.xlu0 %v3800_v28, %s10806_s22  ;;  %v4112_v25 = vpop.permute.xlu1 %4111  ;;  %v4275_v16 = vsel %vm15313_vm5, %v12850_v49, %v4110_v43 }
 0x7bc   : > { %v13199_v15 = vld [vmem:[%s15157_s5] ss:$0 sm:$0xff] }
 0x7be   : > { %v4035_v55 = vpop.f32.mrb[98].mxu0 }
 0x7bf   : > { %v9159_v4 = vpop.f32.mrb[99].mxu0  ;;  %4235 = vrot.lane.b32.xlu0 %v4035_v55, %s10807_s19  ;;  %4175 = vrot.lane.b32.xlu1 %v3805_v0, %s10806_s22 }
 0x7c2   : > { %v4040_v42 = vpop.f32.mrb[100].mxu0 }
 0x7c3   : > { %v9162_v63 = vpop.f32.mrb[101].mxu0  ;;  %4237 = vrot.lane.b32.xlu1 %v4040_v42, %s10807_s19  ;;  %4177 = vrot.lane.b32.xlu0 %v3810_v12, %s10806_s22 }
 0x7c6   : > { %v4045_v38 = vpop.f32.mrb[102].mxu0 }
 0x7c7   : > { %v9165_v54 = vpop.f32.mrb[103].mxu0  ;;  %4239 = vrot.lane.b32.xlu0 %v4045_v38, %s10807_s19  ;;  %4179 = vrot.lane.b32.xlu1 %v3815_v11, %s10806_s22  ;;  %v4114_v11 = vpop.permute.xlu1 %4113  ;;  %v4276_v38 = vsel %vm15313_vm5, %v12864_v50, %v4112_v25 }
 0x7ca   : > { %v4050_v26 = vpop.f32.mrb[104].mxu0 }
 0x7cb   : > { %v9168_v56 = vpop.f32.mrb[105].mxu0  ;;  %4241 = vrot.lane.b32.xlu1 %v4050_v26, %s10807_s19  ;;  %4181 = vrot.lane.b32.xlu0 %v3820_v48, %s10806_s22  ;;  %v4118_v24 = vpop.permute.xlu1 %4117 }
 0x7cc   : > { %v13178_v48 = vpop.permute.xlu0 %4123 }
 0x7ce   : > { %v4055_v13 = vpop.f32.mrb[106].mxu0 }
 0x7cf   : > { %v9171_v45 = vpop.f32.mrb[107].mxu0  ;;  %4243 = vrot.lane.b32.xlu0 %v4055_v13, %s10807_s19  ;;  %4183 = vrot.lane.b32.xlu1 %v3825_v2, %s10806_s22  ;;  %v13174_v19 = vpop.permute.xlu1 %4121 }
 0x7d0   : > { %v13182_v27 = vpop.permute.xlu0 %4127 }
 0x7d2   : > { %v4060_v1 = vpop.f32.mrb[108].mxu0 }
 0x7d3   : > { %v9174_v7 = vpop.f32.mrb[109].mxu0  ;;  %4245 = vrot.lane.b32.xlu1 %v4060_v1, %s10807_s19  ;;  %v13180_v35 = vpop.permute.xlu1 %4125 }
 0x7d4   : > { %v13186_v61 = vpop.permute.xlu0 %4131  ;;  %v4277_v7 = vsel %vm15313_vm5, %v12874_v21, %v4114_v11 }
 0x7d6   : > { %v4065_v9 = vpop.f32.mrb[110].mxu0 }
 0x7d7   : > { %v9177_v59 = vpop.f32.mrb[111].mxu0  ;;  %v13184_v62 = vpop.permute.xlu1 %4129 }
 0x7d8   : > { %v13190_v53 = vpop.permute.xlu0 %4135 }
 0x7da   : > { %v4070_v32 = vpop.f32.mrb[112].mxu0 }
 0x7db   : > { %v9180_v37 = vpop.f32.mrb[113].mxu0  ;;  %v13188_v33 = vpop.permute.xlu1 %4133 }
 0x7de   : > { %v4075_v39 = vpop.f32.mrb[114].mxu0 }
 0x7df   : > { %v9183_v5 = vpop.f32.mrb[115].mxu0  ;;  %v13192_v2 = vpop.permute.xlu1 %4137 }
 0x7e2   : > { %v4080_v8 = vpop.f32.mrb[116].mxu0 }
 0x7e3   : > { %v9186_v46 = vpop.f32.mrb[117].mxu0 }
 0x7e6   : > { %v4085_v31 = vpop.f32.mrb[118].mxu0 }
 0x7e7   : > { %v9189_v60 = vpop.f32.mrb[119].mxu0 }
 0x7ea   : > { %v4090_v41 = vpop.f32.mrb[120].mxu0 }
 0x7eb   : > { %v9192_v6 = vpop.f32.mrb[121].mxu0 }
 0x7f1   : > { %v3830_v58 = vpop.f32.mrb[136].mxu1 }
 0x7f2   : > { %4185 = vrot.lane.b32.xlu0 %v3830_v58, %s10806_s22  ;;  %v9099_v28 = vpop.f32.mrb[137].mxu1  ;;  %v15601_v58 = vld [vmem:[#allocation15_spill] sm:$0xff] }
 0x7f3   : > { %v4279_v28 = vsel %vm15313_vm5, %v15601_v58, %v4118_v24 }
 0x7f5   : > { %v3835_v52 = vpop.f32.mrb[138].mxu1 }
 0x7f6   : > { %4247 = vrot.lane.b32.xlu0 %v4065_v9, %s10807_s19  ;;  %4187 = vrot.lane.b32.xlu1 %v3835_v52, %s10806_s22  ;;  %v9102_v0 = vpop.f32.mrb[139].mxu1 }
 0x7f9   : > { %v3840_v12 = vpop.f32.mrb[140].mxu1 }
 0x7fa   : > { %4249 = vrot.lane.b32.xlu1 %v4070_v32, %s10807_s19  ;;  %4189 = vrot.lane.b32.xlu0 %v3840_v12, %s10806_s22  ;;  %v9105_v17 = vpop.f32.mrb[141].mxu1  ;;  %v4170_v44 = vpop.permute.xlu0 %4169 }
 0x7fb   : > { %v4291_v55 = vsel %vm15314_vm4, %v4275_v16, %v4170_v44 }
 0x7fd   : > { %v3845_v3 = vpop.f32.mrb[142].mxu1 }
 0x7fe   : > { %4251 = vrot.lane.b32.xlu0 %v4075_v39, %s10807_s19  ;;  %4191 = vrot.lane.b32.xlu1 %v3845_v3, %s10806_s22  ;;  %v9108_v22 = vpop.f32.mrb[143].mxu1 }
 0x801   : > { %v3850_v23 = vpop.f32.mrb[144].mxu1 }
 0x802   : > { %4253 = vrot.lane.b32.xlu1 %v4080_v8, %s10807_s19  ;;  %4193 = vrot.lane.b32.xlu0 %v3850_v23, %s10806_s22  ;;  %v9111_v40 = vpop.f32.mrb[145].mxu1  ;;  %v4278_v8 = vsel %vm15313_vm5, %v12882_v36, %v4116_v51  ;;  %v15602_v51 = vld [vmem:[#allocation16_spill] sm:$0xff] }
 0x803   : > { %v4280_v23 = vsel %vm15313_vm5, %v15602_v51, %v13170_v30  ;;  %v15604_v30 = vld [vmem:[#allocation51_spill] sm:$0xff] }
 0x805   : > { %v3855_v20 = vpop.f32.mrb[146].mxu1 }
 0x806   : > { %4255 = vrot.lane.b32.xlu0 %v4085_v31, %s10807_s19  ;;  %4195 = vrot.lane.b32.xlu1 %v3855_v20, %s10806_s22  ;;  %v9114_v29 = vpop.f32.mrb[147].mxu1 }
 0x809   : > { %v3860_v14 = vpop.f32.mrb[148].mxu1 }
 0x80a   : > { %4257 = vrot.lane.b32.xlu1 %v4090_v41, %s10807_s19  ;;  %4197 = vrot.lane.b32.xlu0 %v3860_v14, %s10806_s22  ;;  %v9117_v57 = vpop.f32.mrb[149].mxu1 }
 0x825   : > { %v4230_v4 = vpop.permute.xlu1 %4229 }
 0x826   : > { %v4307_v42 = vsel %vm15315_vm9, %v4291_v55, %v4230_v4  ;;  %v4281_v4 = vsel %vm15313_vm5, %v15604_v30, %v13174_v19 }
 0x827   : > { %v4329_v63 = vadd.f32 %v13199_v15, %v4307_v42 }
 0x829   : > { %v4359_v54 = vmin.f32 %v4329_v63, 0.0  ;;  %v4232_v26 = vpop.permute.xlu0 %4231  ;;  %v4172_v56 = vpop.permute.xlu1 %4171  ;;  %vm4344_vm1 = vcmp.gt.f32.partialorder %v4329_v63, 0.0 }
 0x82a   : > { %v4292_v49 = vsel %vm15314_vm4, %v4276_v38, %v4172_v56 }
 0x82b   : > { %v4374_v13 = vmul.f32 1.442695, %v4359_v54  ;;  %v4308_v45 = vsel %vm15315_vm9, %v4292_v49, %v4232_v26 }
 0x82c   : > { %v4330_v1 = vadd.f32 %v13199_v15, %v4308_v45 }
 0x82d   : > { %10489 = vpow2.f32 %v4374_v13  ;;  %v4234_v9 = vpop.permute.xlu1 %4233  ;;  %v4174_v59 = vpop.permute.xlu0 %4173 }
 0x82e   : > { %v4360_v32 = vmin.f32 %v4330_v1, 0.0  ;;  %v4293_v37 = vsel %vm15314_vm4, %v4277_v7, %v4174_v59 }
 0x82f   : > { %v4309_v50 = vsel %vm15315_vm9, %v4293_v37, %v4234_v9  ;;  %v15605_v9 = vld [vmem:[#allocation11_spill] sm:$0xff] }
 0x830   : > { %v4376_v39 = vmul.f32 1.442695, %v4360_v32  ;;  %v4331_v5 = vadd.f32 %v13199_v15, %v4309_v50  ;;  %v4282_v19 = vsel %vm15313_vm5, %v15605_v9, %v13178_v48 }
 0x831   : > { %v4236_v46 = vpop.permute.xlu0 %4235  ;;  %v4176_v31 = vpop.permute.xlu1 %4175 }
 0x832   : > { %10491 = vpow2.f32 %v4376_v39  ;;  %v4361_v60 = vmin.f32 %v4331_v5, 0.0  ;;  %v4294_v21 = vsel %vm15314_vm4, %v4278_v8, %v4176_v31 }
 0x833   : > { %v4310_v41 = vsel %vm15315_vm9, %v4294_v21, %v4236_v46 }
 0x834   : > { %v4378_v6 = vmul.f32 1.442695, %v4361_v60  ;;  %v4332_v43 = vadd.f32 %v13199_v15, %v4310_v41 }
 0x835   : > { %v4238_v52 = vpop.permute.xlu1 %4237  ;;  %v4178_v0 = vpop.permute.xlu0 %4177 }
 0x836   : > { %10493 = vpow2.f32 %v4378_v6  ;;  %v4362_v25 = vmin.f32 %v4332_v43, 0.0  ;;  %v4295_v36 = vsel %vm15314_vm4, %v4279_v28, %v4178_v0  ;;  %vm4347_vm5 = vcmp.gt.f32.partialorder %v4332_v43, 0.0 }
 0x837   : > { %v10490_v12 = vpop.eup %10489  ;;  %v4311_v17 = vsel %vm15315_vm9, %v4295_v36, %v4238_v52 }
 0x838   : > { %v7971_v11 = vadd.f32 -1.0, %v10490_v12  ;;  %v4380_v3 = vmul.f32 1.442695, %v4362_v25  ;;  %v4333_v22 = vadd.f32 %v13199_v15, %v4311_v17 }
 0x839   : > { %v4240_v40 = vpop.permute.xlu0 %4239  ;;  %v4180_v24 = vpop.permute.xlu1 %4179 }
 0x83a   : > { %v4419_v20 = vsel %vm4344_vm1, %v4329_v63, %v7971_v11  ;;  %10495 = vpow2.f32 %v4380_v3  ;;  %v4363_v29 = vmin.f32 %v4333_v22, 0.0  ;;  %v4296_v14 = vsel %vm15314_vm4, %v4280_v23, %v4180_v24 }
 0x83b   : > { %v4312_v57 = vsel %vm15315_vm9, %v4296_v14, %v4240_v40  ;;  %9210 = vmatmul.mubr.msk.f32.vlgmr.msra.gmra.mrb[150].mxu1 %vm15603_vm12, %v4419_v20  ;;  %vm4345_vm1 = vcmp.gt.f32.partialorder %v4330_v1, 0.0  ;;  %v15615_v14 = vld [vmem:[#allocation43_spill] sm:$0xff] }
 0x83c   : > { %v10492_v44 = vpop.eup %10491  ;;  %v4382_v16 = vmul.f32 1.442695, %v4363_v29  ;;  %v4334_v55 = vadd.f32 %v13199_v15, %v4312_v57  ;;  %9212 = vmatprep.mubr.msk.f32.mxu1 %vm15540_vm0, %v15539_v34 }
 0x83d   : > { %v4242_v42 = vpop.permute.xlu1 %4241  ;;  %v4182_v63 = vpop.permute.xlu0 %4181  ;;  %v7972_v38 = vadd.f32 -1.0, %v10492_v44 }
 0x83e   : > { %10497 = vpow2.f32 %v4382_v16  ;;  %v4364_v54 = vmin.f32 %v4334_v55, 0.0  ;;  %v4297_v26 = vsel %vm15314_vm4, %v4281_v4, %v4182_v63  ;;  %v15619_v63 = vld [vmem:[#allocation52_spill] sm:$0xff] }
 0x83f   : > { %v4313_v56 = vsel %vm15315_vm9, %v4297_v26, %v4242_v42  ;;  %v4420_v49 = vsel %vm4345_vm1, %v4330_v1, %v7972_v38  ;;  %vm4346_vm1 = vcmp.gt.f32.partialorder %v4331_v5, 0.0 }
 0x840   : > { %v10494_v13 = vpop.eup %10493  ;;  %v4384_v45 = vmul.f32 1.442695, %v4364_v54  ;;  %v4335_v7 = vadd.f32 %v13199_v15, %v4313_v56  ;;  %9213 = vmatmul.mubr.msk.f32.gmra.mrb[152].mxu1 %vm15603_vm12, %v4420_v49 }
 0x841   : > { %v4244_v59 = vpop.permute.xlu0 %4243  ;;  %v4184_v32 = vpop.permute.xlu1 %4183  ;;  %9215 = vmatprep.mubr.msk.f32.mxu1 %vm15540_vm0, %v15539_v34  ;;  %v7973_v37 = vadd.f32 -1.0, %v10494_v13 }
 0x842   : > { %10499 = vpow2.f32 %v4384_v45  ;;  %v4365_v50 = vmin.f32 %v4335_v7, 0.0  ;;  %v4298_v1 = vsel %vm15314_vm4, %v4282_v19, %v4184_v32  ;;  %vm15606_vm4 = vmmov %vm15603_vm12 }
 0x843   : > { %v4314_v39 = vsel %vm15315_vm9, %v4298_v1, %v4244_v59  ;;  %v4421_v8 = vsel %vm4346_vm1, %v4331_v5, %v7973_v37  ;;  %vm4348_vm1 = vcmp.gt.f32.partialorder %v4333_v22, 0.0  ;;  %vm4349_vm9 = vcmp.gt.f32.partialorder %v4334_v55, 0.0 }
 0x844   : > { %v10496_v46 = vpop.eup %10495  ;;  %v4386_v31 = vmul.f32 1.442695, %v4365_v50  ;;  %v4336_v60 = vadd.f32 %v13199_v15, %v4314_v39  ;;  %9216 = vmatmul.mubr.msk.f32.gmra.mrb[154].mxu1 %vm15603_vm12, %v4421_v8  ;;  %vm15607_vm12 = vmmov %vm15606_vm4  ;;  %v15624_v39 = vld [vmem:[#allocation35_spill] sm:$0xff] }
 0x845   : > { %9218 = vmatprep.mubr.msk.f32.mxu1 %vm15540_vm0, %v15539_v34  ;;  %v7974_v48 = vadd.f32 -1.0, %v10496_v46  ;;  %v4246_v23 = vpop.permute.xlu1 %4245 }
 0x846   : > { %10501 = vpow2.f32 %v4386_v31  ;;  %v4366_v21 = vmin.f32 %v4336_v60, 0.0 }
 0x847   : > { %v4422_v41 = vsel %vm4347_vm5, %v4332_v43, %v7974_v48  ;;  %vm15608_vm5 = vmmov %vm15606_vm4 }
 0x848   : > { %v10498_v6 = vpop.eup %10497  ;;  %v4388_v58 = vmul.f32 1.442695, %v4366_v21  ;;  %9219 = vmatmul.mubr.msk.f32.gmra.mrb[156].mxu1 %vm15606_vm4, %v4422_v41  ;;  %vm4350_vm4 = vcmp.gt.f32.partialorder %v4335_v7, 0.0 }
 0x849   : > { %9221 = vmatprep.mubr.msk.f32.mxu1 %vm15540_vm0, %v15539_v34  ;;  %v7975_v5 = vadd.f32 -1.0, %v10498_v6 }
 0x84a   : > { %10503 = vpow2.f32 %v4388_v58 }
 0x84b   : > { %v4423_v28 = vsel %vm4348_vm1, %v4333_v22, %v7975_v5  ;;  %vm15609_vm1 = vmmov %vm15608_vm5  ;;  %v15611_v22 = vld [vmem:[#allocation12_spill] sm:$0xff] }
 0x84c   : > { %v10500_v52 = vpop.eup %10499  ;;  %9222 = vmatmul.mubr.msk.f32.gmra.mrb[158].mxu1 %vm15607_vm12, %v4423_v28  ;;  %vm4351_vm12 = vcmp.gt.f32.partialorder %v4336_v60, 0.0  ;;  %vm15610_vm6 = vmmov %vm15609_vm1 }
 0x84d   : > { %9224 = vmatprep.mubr.msk.f32.mxu1 %vm15540_vm0, %v15539_v34  ;;  %v7976_v0 = vadd.f32 -1.0, %v10500_v52 }
 0x84f   : > { %v4424_v43 = vsel %vm4349_vm9, %v4334_v55, %v7976_v0  ;;  %vm15612_vm9 = vcmask 130048  }
 0x850   : > { %v10502_v25 = vpop.eup %10501  ;;  %9225 = vmatmul.mubr.msk.f32.gmra.mrb[160].mxu1 %vm15608_vm5, %v4424_v43  ;;  %v4283_v51 = vsel %vm15612_vm9, %v15611_v22, %v13180_v35  ;;  %vm15613_vm5 = vcmask 261120  }
 0x851   : > { %9227 = vmatprep.mubr.msk.f32.mxu1 %vm15540_vm0, %v15539_v34  ;;  %v7977_v36 = vadd.f32 -1.0, %v10502_v25 }
 0x853   : > { %v4425_v12 = vsel %vm4350_vm4, %v4335_v7, %v7977_v36  ;;  %vm15614_vm4 = vcmask 392192   ;;  %v15621_v7 = vld [vmem:[#allocation13_spill] sm:$0xff] }
 0x854   : > { %v10504_v17 = vpop.eup %10503  ;;  %9228 = vmatmul.mubr.msk.f32.gmra.mrb[162].mxu1 %vm15609_vm1, %v4425_v12  ;;  %vm15616_vm1 = vmmov %vm15612_vm9 }
 0x855   : > { %9230 = vmatprep.mubr.msk.f32.mxu1 %vm15540_vm0, %v15539_v34  ;;  %v7978_v11 = vadd.f32 -1.0, %v10504_v17  ;;  %v4284_v57 = vsel %vm15616_vm1, %v15615_v14, %v13182_v27  ;;  %vm15620_vm9 = vmmov %vm15616_vm1  ;;  %v4286_v9 = vsel %vm15616_vm1, %v15621_v7, %v13186_v61  ;;  %v4288_v58 = vsel %vm15616_vm1, %v12955_v47, %v13190_v53 }
 0x856   : > { %v4285_v38 = vsel %vm15620_vm9, %v15619_v63, %v13184_v62  ;;  %vm15625_vm9 = vmmov %vm15616_vm1 }
 0x857   : > { %v4426_v3 = vsel %vm4351_vm12, %v4336_v60, %v7978_v11  ;;  %vm15618_vm12 = vmmov %vm15614_vm4  ;;  %v4287_v8 = vsel %vm15625_vm9, %v15624_v39, %v13188_v33 }
 0x858   : > { %9231 = vmatmul.mubr.msk.f32.gmra.mrb[164].mxu1 %vm15610_vm6, %v4426_v3  ;;  %vm15617_vm6 = vmmov %vm15613_vm5 }
 0x859   : > { %9233 = vmatprep.mubr.msk.f32.mxu1 %vm15540_vm0, %v15539_v34  ;;  %vm15627_vm9 = vmmov %vm15614_vm4 }
 0x864   : > { %v4186_v40 = vpop.permute.xlu0 %4185 }
 0x865   : > { %v4299_v24 = vsel %vm15613_vm5, %v4283_v51, %v4186_v40 }
 0x866   : > { %v4315_v20 = vsel %vm15614_vm4, %v4299_v24, %v4246_v23 }
 0x867   : > { %v4337_v29 = vadd.f32 %v13199_v15, %v4315_v20 }
 0x868   : > { %v4248_v44 = vpop.permute.xlu0 %4247  ;;  %v4188_v16 = vpop.permute.xlu1 %4187 }
 0x869   : > { %v4367_v55 = vmin.f32 %v4337_v29, 0.0  ;;  %v4300_v30 = vsel %vm15617_vm6, %v4284_v57, %v4188_v16  ;;  %vm15622_vm6 = vmmov %vm15613_vm5 }
 0x86a   : > { %v4316_v4 = vsel %vm15618_vm12, %v4300_v30, %v4248_v44  ;;  %vm15623_vm12 = vmmov %vm15614_vm4 }
 0x86b   : > { %v4390_v35 = vmul.f32 1.442695, %v4367_v55  ;;  %v4338_v42 = vadd.f32 %v13199_v15, %v4316_v4 }
 0x86c   : > { %v4250_v54 = vpop.permute.xlu1 %4249  ;;  %v4190_v26 = vpop.permute.xlu0 %4189 }
 0x86d   : > { %10505 = vpow2.f32 %v4390_v35  ;;  %v4368_v56 = vmin.f32 %v4338_v42, 0.0  ;;  %v4301_v27 = vsel %vm15613_vm5, %v4285_v38, %v4190_v26 }
 0x86e   : > { %v4317_v49 = vsel %vm15614_vm4, %v4301_v27, %v4250_v54 }
 0x86f   : > { %v4392_v13 = vmul.f32 1.442695, %v4368_v56  ;;  %v4339_v45 = vadd.f32 %v13199_v15, %v4317_v49 }
 0x870   : > { %v4252_v19 = vpop.permute.xlu0 %4251  ;;  %v4192_v59 = vpop.permute.xlu1 %4191 }
 0x871   : > { %10507 = vpow2.f32 %v4392_v13  ;;  %v4369_v32 = vmin.f32 %v4339_v45, 0.0  ;;  %v4302_v62 = vsel %vm15622_vm6, %v4286_v9, %v4192_v59  ;;  %vm15626_vm6 = vmmov %vm15613_vm5  ;;  %v15637_v9 = vld [vmem:[#allocation8_spill] sm:$0xff] }
 0x872   : > { %v4318_v37 = vsel %vm15623_vm12, %v4302_v62, %v4252_v19  ;;  %vm4352_vm12 = vcmp.gt.f32.partialorder %v4337_v29, 0.0 }
 0x873   : > { %v4394_v50 = vmul.f32 1.442695, %v4369_v32  ;;  %v4340_v1 = vadd.f32 %v13199_v15, %v4318_v37 }
 0x874   : > { %v4254_v46 = vpop.permute.xlu1 %4253  ;;  %v4194_v31 = vpop.permute.xlu0 %4193 }
 0x875   : > { %10509 = vpow2.f32 %v4394_v50  ;;  %v4370_v60 = vmin.f32 %v4340_v1, 0.0  ;;  %v4303_v61 = vsel %vm15613_vm5, %v4287_v8, %v4194_v31  ;;  %vm15628_vm5 = vcmask 523264  }
 0x876   : > { %v4319_v48 = vsel %vm15614_vm4, %v4303_v61, %v4254_v46  ;;  %vm15629_vm4 = vmmov %vm15616_vm1 }
 0x877   : > { %v10506_v21 = vpop.eup %10505  ;;  %v4396_v41 = vmul.f32 1.442695, %v4370_v60  ;;  %v4341_v6 = vadd.f32 %v13199_v15, %v4319_v48  ;;  %v4289_v47 = vsel %vm15629_vm4, %v12959_v10, %v13192_v2  ;;  %vm15630_vm1 = vmmov %vm15626_vm6 }
 0x878   : > { %v4256_v5 = vpop.permute.xlu0 %4255  ;;  %v4196_v28 = vpop.permute.xlu1 %4195  ;;  %v7979_v52 = vadd.f32 -1.0, %v10506_v21 }
 0x879   : > { %10511 = vpow2.f32 %v4396_v41  ;;  %v4371_v33 = vmin.f32 %v4341_v6, 0.0  ;;  %v4304_v0 = vsel %vm15626_vm6, %v4288_v58, %v4196_v28  ;;  %vm4353_vm6 = vcmp.gt.f32.partialorder %v4338_v42, 0.0 }
 0x87a   : > { %v4320_v43 = vsel %vm15627_vm9, %v4304_v0, %v4256_v5  ;;  %v4427_v25 = vsel %vm4352_vm12, %v4337_v29, %v7979_v52  ;;  %vm15631_vm12 = vmmov %vm15627_vm9 }
 0x87b   : > { %v10508_v36 = vpop.eup %10507  ;;  %v4398_v12 = vmul.f32 1.442695, %v4371_v33  ;;  %v4342_v17 = vadd.f32 %v13199_v15, %v4320_v43  ;;  %9234 = vmatmul.mubr.msk.f32.gmra.mrb[166].mxu1 %vm15628_vm5, %v4427_v25  ;;  %vm15632_vm9 = vmmov %vm15628_vm5  ;;  %vm4354_vm5 = vcmp.gt.f32.partialorder %v4339_v45, 0.0 }
 0x87c   : > { %v4258_v53 = vpop.permute.xlu1 %4257  ;;  %v4198_v11 = vpop.permute.xlu0 %4197  ;;  %9236 = vmatprep.mubr.msk.f32.mxu1 %vm15540_vm0, %v15539_v34  ;;  %v7980_v3 = vadd.f32 -1.0, %v10508_v36  ;;  %vm15633_vm4 = vmmov %vm15632_vm9 }
 0x87d   : > { %10513 = vpow2.f32 %v4398_v12  ;;  %v4372_v22 = vmin.f32 %v4342_v17, 0.0  ;;  %v4305_v51 = vsel %vm15630_vm1, %v4289_v47, %v4198_v11  ;;  %vm4355_vm1 = vcmp.gt.f32.partialorder %v4340_v1, 0.0 }
 0x87e   : > { %v4321_v23 = vsel %vm15631_vm12, %v4305_v51, %v4258_v53  ;;  %v4428_v40 = vsel %vm4353_vm6, %v4338_v42, %v7980_v3  ;;  %vm15634_vm6 = vmmov %vm15633_vm4  ;;  %vm4356_vm12 = vcmp.gt.f32.partialorder %v4341_v6, 0.0 }
 0x87f   : > { %v10510_v24 = vpop.eup %10509  ;;  %v4400_v20 = vmul.f32 1.442695, %v4372_v22  ;;  %v4343_v29 = vadd.f32 %v13199_v15, %v4321_v23  ;;  %9237 = vmatmul.mubr.msk.f32.gmra.mrb[168].mxu1 %vm15632_vm9, %v4428_v40  ;;  %vm15635_vm9 = vmmov %vm15633_vm4 }
 0x880   : > { %9239 = vmatprep.mubr.msk.f32.mxu1 %vm15540_vm0, %v15539_v34  ;;  %v7981_v10 = vadd.f32 -1.0, %v10510_v24 }
 0x881   : > { %10515 = vpow2.f32 %v4400_v20  ;;  %v4373_v2 = vmin.f32 %v4343_v29, 0.0 }
 0x882   : > { %v4429_v14 = vsel %vm4354_vm5, %v4339_v45, %v7981_v10  ;;  %vm4357_vm5 = vcmp.gt.f32.partialorder %v4342_v17, 0.0 }
 0x883   : > { %v10512_v57 = vpop.eup %10511  ;;  %v4402_v44 = vmul.f32 1.442695, %v4373_v2  ;;  %9240 = vmatmul.mubr.msk.f32.gmra.mrb[170].mxu1 %vm15633_vm4, %v4429_v14  ;;  %v15646_v2 = vld [vmem:[#allocation2_spill] sm:$0xff] }
 0x884   : > { %9242 = vmatprep.mubr.msk.f32.mxu1 %vm15540_vm0, %v15539_v34  ;;  %v7982_v16 = vadd.f32 -1.0, %v10512_v57  ;;  %v15647_v14 = vsub.s32 4, %v15646_v2 }
 0x885   : > { %10517 = vpow2.f32 %v4402_v44  ;;  %v15648_v44 = vsub.s32 5, %v15646_v2 }
 0x886   : > { %v4430_v15 = vsel %vm4355_vm1, %v4340_v1, %v7982_v16  ;;  %vm4358_vm1 = vcmp.gt.f32.partialorder %v4343_v29, 0.0 }
 0x887   : > { %v10514_v55 = vpop.eup %10513  ;;  %9243 = vmatmul.mubr.msk.f32.gmra.mrb[172].mxu1 %vm15634_vm6, %v4430_v15  ;;  %vm15636_vm6 = vmmov %vm15633_vm4 }
 0x888   : > { %9245 = vmatprep.mubr.msk.f32.mxu1 %vm15540_vm0, %v15539_v34  ;;  %v7983_v30 = vadd.f32 -1.0, %v10514_v55  ;;  %v15649_v55 = vsub.s32 6, %v15646_v2 }
 0x88a   : > { %v4431_v4 = vsel %vm4356_vm12, %v4341_v6, %v7983_v30  ;;  %vm15638_vm12 = vnez %v15637_v9 }
 0x88b   : > { %v10516_v35 = vpop.eup %10515  ;;  %9246 = vmatmul.mubr.msk.f32.gmra.mrb[174].mxu1 %vm15635_vm9, %v4431_v4  ;;  %vm15644_vm9 = vmmov %vm15633_vm4  ;;  %v15650_v4 = vsub.s32 7, %v15646_v2 }
 0x88c   : > { %9248 = vmatprep.mubr.msk.f32.mxu1 %vm15540_vm0, %v15539_v34  ;;  %v7984_v42 = vadd.f32 -1.0, %v10516_v35 }
 0x88e   : > { %v4432_v63 = vsel %vm4357_vm5, %v4342_v17, %v7984_v42  ;;  %vm15645_vm5 = vmmov %vm15633_vm4 }
 0x88f   : > { %v10518_v38 = vpop.eup %10517  ;;  %9249 = vmatmul.mubr.msk.f32.gmra.mrb[176].mxu1 %vm15633_vm4, %v4432_v63 }
 0x890   : > { %9251 = vmatprep.mubr.msk.f32.mxu1 %vm15540_vm0, %v15539_v34  ;;  %v7985_v54 = vadd.f32 -1.0, %v10518_v38  ;;  %v15651_v38 = vld [vmem:[#allocation32_spill] sm:$0xff] }
 0x892   : > { %v4433_v26 = vsel %vm4358_vm1, %v4343_v29, %v7985_v54  ;;  %v4627_v29 = vld [vmem:[%s15159_s7] sm:$0xff] }
 0x893   : > { %9252 = vmatmul.mubr.msk.f32.gmra.mrb[178].mxu1 %vm15636_vm6, %v4433_v26 }
 0x894   : > { %9392 = vmatprep.mubr.msk.f32.mxu1 %vm15540_vm0, %v15539_v34 }
 0x90e   : > { %v4553_v56 = vpop.f32.mrb[150].mxu1 }
 0x90f   : > { %v9211_v27 = vpop.f32.mrb[151].mxu1 }
 0x913   : > { %v4558_v49 = vpop.f32.mrb[152].mxu1 }
 0x914   : > { %v13329_v13 = vpack.i.bf16 %v4558_v49, %v4553_v56  ;;  %v9869_v45 = vpack.c.bf16 %v4558_v49, %v4553_v56  ;;  %v9214_v7 = vpop.f32.mrb[153].mxu1 }
 0x916   : > { %9871 = vmatpush3.bf16.xpose.msk.msra.mxu0 %vm15638_vm12, %v9869_v45 }
 0x917   : > { %v4563_v19 = vpop.f32.mrb[154].mxu1  ;;  %9872 = vmatprep.subr.bf16.mxu0 %v15542_v18 }
 0x918   : > { %v9217_v59 = vpop.f32.mrb[155].mxu1 }
 0x91b   : > { %v4568_v32 = vpop.f32.mrb[156].mxu1 }
 0x91c   : > { %v13334_v62 = vpack.i.bf16 %v4568_v32, %v4563_v19  ;;  %v9873_v37 = vpack.c.bf16 %v4568_v32, %v4563_v19  ;;  %v9220_v50 = vpop.f32.mrb[157].mxu1  ;;  %v15652_v19 = vld [vmem:[#allocation33_spill] sm:$0xff] }
 0x91e   : > { %9875 = vmatpush3.bf16.xpose.msk.msra.mxu0 %vm15638_vm12, %v9873_v37 }
 0x91f   : > { %v4573_v1 = vpop.f32.mrb[158].mxu1  ;;  %9876 = vmatprep.subr.bf16.mxu0 %v15542_v18 }
 0x920   : > { %v9223_v39 = vpop.f32.mrb[159].mxu1 }
 0x923   : > { %v4578_v8 = vpop.f32.mrb[160].mxu1 }
 0x924   : > { %v13339_v46 = vpack.i.bf16 %v4578_v8, %v4573_v1  ;;  %v9877_v31 = vpack.c.bf16 %v4578_v8, %v4573_v1  ;;  %v9226_v60 = vpop.f32.mrb[161].mxu1 }
 0x926   : > { %9879 = vmatpush3.bf16.xpose.msk.msra.mxu0 %vm15638_vm12, %v9877_v31 }
 0x927   : > { %v4583_v61 = vpop.f32.mrb[162].mxu1  ;;  %9880 = vmatprep.subr.bf16.mxu0 %v15542_v18 }
 0x928   : > { %v9229_v48 = vpop.f32.mrb[163].mxu1 }
 0x92b   : > { %v4588_v21 = vpop.f32.mrb[164].mxu1 }
 0x92c   : > { %v13344_v41 = vpack.i.bf16 %v4588_v21, %v4583_v61  ;;  %v9881_v6 = vpack.c.bf16 %v4588_v21, %v4583_v61  ;;  %v9232_v58 = vpop.f32.mrb[165].mxu1 }
 0x92e   : > { %15639 = vst [vmem:[#allocation55_spill] sm:$0xff] %v13344_v41  ;;  %9883 = vmatpush3.bf16.xpose.msk.msra.mxu0 %vm15638_vm12, %v9881_v6 }
 0x92f   : > { %9884 = vmatprep.subr.bf16.mxu0 %v15542_v18 }
 0x94e   : > { %v4593_v5 = vpop.f32.mrb[166].mxu1 }
 0x94f   : > { %v9235_v28 = vpop.f32.mrb[167].mxu1 }
 0x952   : > { %v4598_v52 = vpop.f32.mrb[168].mxu1 }
 0x953   : > { %v13349_v33 = vpack.i.bf16 %v4598_v52, %v4593_v5  ;;  %v9885_v0 = vpack.c.bf16 %v4598_v52, %v4593_v5  ;;  %v9238_v43 = vpop.f32.mrb[169].mxu1 }
 0x955   : > { %15640 = vst [vmem:[#allocation44_spill] sm:$0xff] %v13349_v33  ;;  %9887 = vmatpush3.bf16.xpose.msk.msra.mxu0 %vm15638_vm12, %v9885_v0 }
 0x956   : > { %v4603_v25 = vpop.f32.mrb[170].mxu1  ;;  %9888 = vmatprep.subr.bf16.mxu0 %v15542_v18 }
 0x957   : > { %v9241_v36 = vpop.f32.mrb[171].mxu1 }
 0x95a   : > { %v4608_v12 = vpop.f32.mrb[172].mxu1 }
 0x95b   : > { %v13354_v17 = vpack.i.bf16 %v4608_v12, %v4603_v25  ;;  %v9889_v47 = vpack.c.bf16 %v4608_v12, %v4603_v25  ;;  %v9244_v53 = vpop.f32.mrb[173].mxu1 }
 0x95d   : > { %15641 = vst [vmem:[#allocation53_spill] sm:$0xff] %v13354_v17  ;;  %9891 = vmatpush3.bf16.xpose.msk.msra.mxu0 %vm15638_vm12, %v9889_v47 }
 0x95e   : > { %v4613_v11 = vpop.f32.mrb[174].mxu1  ;;  %9892 = vmatprep.subr.bf16.mxu0 %v15542_v18 }
 0x95f   : > { %v9247_v3 = vpop.f32.mrb[175].mxu1 }
 0x962   : > { %v4618_v22 = vpop.f32.mrb[176].mxu1 }
 0x963   : > { %v13359_v51 = vpack.i.bf16 %v4618_v22, %v4613_v11  ;;  %v9893_v23 = vpack.c.bf16 %v4618_v22, %v4613_v11  ;;  %v9250_v40 = vpop.f32.mrb[177].mxu1 }
 0x965   : > { %15642 = vst [vmem:[#allocation37_spill] sm:$0xff] %v13359_v51  ;;  %9895 = vmatpush3.bf16.xpose.msk.msra.mxu0 %vm15638_vm12, %v9893_v23 }
 0x966   : > { %v13363_v24 = vpop.f32.mrb[178].mxu1  ;;  %9282 = vmatprep.subr.mxu0 %v15539_v34 }
 0x967   : > { %15643 = vst [vmem:[#allocation57_spill] sm:$0xff] %v13363_v24  ;;  %v9253_v20 = vpop.f32.mrb[179].mxu1 }
 0x96d   : > { %9283 = vmatpush3.xpose.msk.msra.mxu0 %vm15644_vm9, %v13363_v24 }
 0x96e   : > { %9896 = vmatprep.subr.bf16.mxu0 %v15542_v18 }
 0x970   : > { %9285 = vmatmul.mubr.msk.f32.vlgmr.msra.gmra.mrb[122].mxu0 %vm15645_vm5, %v4627_v29  ;;  %vm15654_vm5 = vcmask 982016  }
 0x971   : > { %9898 = vmatpush3.bf16.msra.mxu0 %v9869_v45  ;;  %9317 = vmatprep.mubr.msk.f32.mxu0 %vm15540_vm0, %v15539_v34 }
 0x972   : > { %9899 = vmatprep.subr.bf16.mxu0 %v15542_v18 }
 0x975   : > { %9901 = vmatpush3.bf16.msra.mxu0 %v9873_v37 }
 0x976   : > { %9902 = vmatprep.subr.bf16.mxu0 %v15542_v18 }
 0x979   : > { %9904 = vmatpush3.bf16.msra.mxu0 %v9877_v31 }
 0x97a   : > { %9905 = vmatprep.subr.bf16.mxu0 %v15542_v18 }
 0x97d   : > { %9907 = vmatpush3.bf16.msra.mxu0 %v9881_v6 }
 0x97e   : > { %9908 = vmatprep.subr.bf16.mxu0 %v15542_v18 }
 0x981   : > { %9910 = vmatpush3.bf16.msra.mxu0 %v9885_v0 }
 0x982   : > { %9911 = vmatprep.subr.bf16.mxu0 %v15542_v18 }
 0x985   : > { %9913 = vmatpush3.bf16.msra.mxu0 %v9889_v47 }
 0x986   : > { %9914 = vmatprep.subr.bf16.mxu0 %v15542_v18 }
 0x989   : > { %9916 = vmatpush3.bf16.msra.mxu0 %v9893_v23 }
 0x98a   : > { %9315 = vmatprep.subr.mxu0 %v15539_v34 }
 0x98d   : > { %9316 = vmatpush3.msra.mxu0 %v13363_v24 }
 0x98e   : > { %9938 = vmatprep.subr.bf16.mxu0 %v15542_v18 }
 0xa43   : > { %v13384_v10 = vpop.f32.mrb[122].mxu0 }
 0xa44   : > { %v4749_v57 = vrot.slane %v13384_v10, %v15647_v14  ;;  %v4812_v16 = vrot.slane %v13384_v10, %v15648_v44  ;;  %v9286_v15 = vpop.f32.mrb[123].mxu0  ;;  %v13395_v30 = vrot.slane %v13384_v10, %v15649_v55  ;;  %v13400_v35 = vrot.slane %v13384_v10, %v15650_v4 }
 0xa45   : > { %v5005_v54 = vrot.slane %v13384_v10, %v15651_v38 }
 0xa46   : > { %4814 = vbcast.lane.b32.xlu1 %v4812_v16, 256  ;;  %4751 = vbcast.lane.b32.xlu0 %v4749_v57, 256 }
 0xa47   : > { %v5006_v27 = vcombine.high %v5005_v54, %v5005_v54  ;;  %v13432_v49 = vrot.slane %v5005_v54, %v15651_v38 }
 0xa49   : > { %v13435_v9 = vrot.slane %v5006_v27, %v15651_v38  ;;  %v13439_v59 = vrot.slane %v13432_v49, %v15652_v19 }
 0xa4a   : > { %4818 = vbcast.lane.b32.xlu1 %v4812_v16, 264  ;;  %4755 = vbcast.lane.b32.xlu0 %v4749_v57, 264 }
 0xa4b   : > { %v13443_v50 = vrot.slane %v13435_v9, %v15652_v19 }
 0xa4e   : > { %4822 = vbcast.lane.b32.xlu1 %v4812_v16, 272  ;;  %4759 = vbcast.lane.b32.xlu0 %v4749_v57, 272 }
 0xa52   : > { %4826 = vbcast.lane.b32.xlu1 %v4812_v16, 280  ;;  %4763 = vbcast.lane.b32.xlu0 %v4749_v57, 280 }
 0xa56   : > { %4830 = vbcast.lane.b32.xlu1 %v4812_v16, 288  ;;  %4767 = vbcast.lane.b32.xlu0 %v4749_v57, 288 }
 0xa5a   : > { %4834 = vbcast.lane.b32.xlu1 %v4812_v16, 296  ;;  %4771 = vbcast.lane.b32.xlu0 %v4749_v57, 296 }
 0xa5e   : > { %4838 = vbcast.lane.b32.xlu1 %v4812_v16, 304  ;;  %4775 = vbcast.lane.b32.xlu0 %v4749_v57, 304 }
 0xa62   : > { %4842 = vbcast.lane.b32.xlu1 %v4812_v16, 312  ;;  %4779 = vbcast.lane.b32.xlu0 %v4749_v57, 312 }
 0xa66   : > { %4846 = vbcast.lane.b32.xlu1 %v4812_v16, 320  ;;  %4783 = vbcast.lane.b32.xlu0 %v4749_v57, 320 }
 0xa6a   : > { %4850 = vbcast.lane.b32.xlu1 %v4812_v16, 328  ;;  %4787 = vbcast.lane.b32.xlu0 %v4749_v57, 328 }
 0xa6e   : > { %4854 = vbcast.lane.b32.xlu1 %v4812_v16, 336  ;;  %4791 = vbcast.lane.b32.xlu0 %v4749_v57, 336 }
 0xa72   : > { %4858 = vbcast.lane.b32.xlu1 %v4812_v16, 344  ;;  %4795 = vbcast.lane.b32.xlu0 %v4749_v57, 344 }
 0xa76   : > { %4862 = vbcast.lane.b32.xlu1 %v4812_v16, 352  ;;  %4799 = vbcast.lane.b32.xlu0 %v4749_v57, 352 }
 0xa7a   : > { %4866 = vbcast.lane.b32.xlu1 %v4812_v16, 360  ;;  %4803 = vbcast.lane.b32.xlu0 %v4749_v57, 360 }
 0xa7e   : > { %4870 = vbcast.lane.b32.xlu1 %v4812_v16, 368  ;;  %4807 = vbcast.lane.b32.xlu0 %v4749_v57, 368 }
 0xa82   : > { %4940 = vbcast.lane.b32.xlu1 %v13400_v35, 256  ;;  %4877 = vbcast.lane.b32.xlu0 %v13395_v30, 256 }
 0xa86   : > { %4944 = vbcast.lane.b32.xlu1 %v13400_v35, 264  ;;  %4881 = vbcast.lane.b32.xlu0 %v13395_v30, 264 }
 0xa8a   : > { %4948 = vbcast.lane.b32.xlu1 %v13400_v35, 272  ;;  %4885 = vbcast.lane.b32.xlu0 %v13395_v30, 272 }
 0xa8e   : > { %4952 = vbcast.lane.b32.xlu1 %v13400_v35, 280  ;;  %4889 = vbcast.lane.b32.xlu0 %v13395_v30, 280 }
 0xa92   : > { %4956 = vbcast.lane.b32.xlu1 %v13400_v35, 288  ;;  %4893 = vbcast.lane.b32.xlu0 %v13395_v30, 288 }
 0xa96   : > { %4960 = vbcast.lane.b32.xlu1 %v13400_v35, 296  ;;  %4897 = vbcast.lane.b32.xlu0 %v13395_v30, 296 }
 0xa9a   : > { %4964 = vbcast.lane.b32.xlu1 %v13400_v35, 304  ;;  %4901 = vbcast.lane.b32.xlu0 %v13395_v30, 304 }
 0xa9e   : > { %4968 = vbcast.lane.b32.xlu1 %v13400_v35, 312  ;;  %4905 = vbcast.lane.b32.xlu0 %v13395_v30, 312 }
 0xaa2   : > { %4972 = vbcast.lane.b32.xlu1 %v13400_v35, 320  ;;  %4909 = vbcast.lane.b32.xlu0 %v13395_v30, 320 }
 0xaa6   : > { %4976 = vbcast.lane.b32.xlu1 %v13400_v35, 328  ;;  %4913 = vbcast.lane.b32.xlu0 %v13395_v30, 328 }
 0xaaa   : > { %4980 = vbcast.lane.b32.xlu1 %v13400_v35, 336  ;;  %4917 = vbcast.lane.b32.xlu0 %v13395_v30, 336 }
 0xaae   : > { %4984 = vbcast.lane.b32.xlu1 %v13400_v35, 344  ;;  %4921 = vbcast.lane.b32.xlu0 %v13395_v30, 344 }
 0xab2   : > { %4988 = vbcast.lane.b32.xlu1 %v13400_v35, 352  ;;  %4925 = vbcast.lane.b32.xlu0 %v13395_v30, 352 }
 0xab6   : > { %4929 = vbcast.lane.b32.xlu0 %v13395_v30, 360 }
 0xab8   : > { %v4815_v42 = vpop.permute.xlu1 %4814  ;;  %v4752_v63 = vpop.permute.xlu0 %4751 }
 0xab9   : > { %v5043_v1 = vadd.f32 %v13439_v59, %v4752_v63  ;;  %v5058_v39 = vadd.f32 %v13443_v50, %v4815_v42 }
 0xabb   : > { %v5163_v60 = vmul.f32 0.2, %v5043_v1  ;;  %v5178_v48 = vmul.f32 0.2, %v5058_v39  ;;  %vm5103_vm4 = vcmp.gt.f32.partialorder %v5043_v1, 0.0  ;;  %vm5118_vm1 = vcmp.gt.f32.partialorder %v5058_v39, 0.0 }
 0xabc   : > { %v4819_v26 = vpop.permute.xlu1 %4818  ;;  %v4756_v56 = vpop.permute.xlu0 %4755 }
 0xabd   : > { %v5044_v61 = vadd.f32 %v13439_v59, %v4756_v56  ;;  %v5059_v21 = vadd.f32 %v13443_v50, %v4819_v26  ;;  %v5223_v52 = vsel %vm5103_vm4, %v5043_v1, %v5163_v60  ;;  %v5238_v25 = vsel %vm5118_vm1, %v5058_v39, %v5178_v48  ;;  %vm15655_vm1 = vmmov %vm15654_vm5 }
 0xabe   : > { %v13453_v47 = vsel %vm11598_vm11, %v5223_v52, -1e+30  ;;  %v13458_v22 = vsel %vm11598_vm11, %v5238_v25, -1e+30 }
 0xabf   : > { %v5164_v5 = vmul.f32 0.2, %v5044_v61  ;;  %v5179_v0 = vmul.f32 0.2, %v5059_v21  ;;  %vm5104_vm6 = vcmp.gt.f32.partialorder %v5044_v61, 0.0  ;;  %vm5119_vm12 = vcmp.gt.f32.partialorder %v5059_v21, 0.0 }
 0xac0   : > { %v4823_v45 = vpop.permute.xlu1 %4822  ;;  %v4760_v7 = vpop.permute.xlu0 %4759  ;;  %v5343_v14 = vsel %vm15654_vm5, %v13453_v47, -inf  ;;  %v5388_v57 = vsel %vm15655_vm1, %v13458_v22, -inf }
 0xac1   : > { %v5045_v28 = vadd.f32 %v13439_v59, %v4760_v7  ;;  %v5060_v43 = vadd.f32 %v13443_v50, %v4823_v45  ;;  %v5224_v23 = vsel %vm5104_vm6, %v5044_v61, %v5164_v5  ;;  %v5239_v29 = vsel %vm5119_vm12, %v5059_v21, %v5179_v0  ;;  %vm15657_vm12 = vmmov %vm15655_vm1  ;;  %v15658_v7 = vld [vmem:[#allocation19_spill] sm:$0xff] }
 0xac2   : > { %v13467_v16 = vsel %vm11603_vm14, %v5224_v23, -1e+30  ;;  %v13472_v4 = vsel %vm11603_vm14, %v5239_v29, -1e+30 }
 0xac3   : > { %v5165_v53 = vmul.f32 0.2, %v5045_v28  ;;  %v5180_v40 = vmul.f32 0.2, %v5060_v43  ;;  %vm5105_vm9 = vcmp.gt.f32.partialorder %v5045_v28, 0.0  ;;  %vm5120_vm4 = vcmp.gt.f32.partialorder %v5060_v43, 0.0 }
 0xac4   : > { %v4827_v32 = vpop.permute.xlu1 %4826  ;;  %v4764_v37 = vpop.permute.xlu0 %4763  ;;  %v5346_v56 = vsel %vm15657_vm12, %v13467_v16, -inf  ;;  %v5391_v45 = vsel %vm15655_vm1, %v13472_v4, -inf }
 0xac5   : > { %v5046_v11 = vadd.f32 %v13439_v59, %v4764_v37  ;;  %v5061_v20 = vadd.f32 %v13443_v50, %v4827_v32  ;;  %v5225_v42 = vsel %vm5105_vm9, %v5045_v28, %v5165_v53  ;;  %v5240_v54 = vsel %vm5120_vm4, %v5060_v43, %v5180_v40  ;;  %vm15659_vm4 = vmmov %vm15655_vm1 }
 0xac6   : > { %v13481_v32 = vsel %vm11609_vm2, %v5225_v42, -1e+30  ;;  %v13486_v39 = vsel %vm11609_vm2, %v5240_v54, -1e+30 }
 0xac7   : > { %v5166_v15 = vmul.f32 0.2, %v5046_v11  ;;  %v5181_v63 = vmul.f32 0.2, %v5061_v20  ;;  %vm5106_vm6 = vcmp.gt.f32.partialorder %v5046_v11, 0.0  ;;  %vm5121_vm5 = vcmp.gt.f32.partialorder %v5061_v20, 0.0 }
 0xac8   : > { %v4831_v8 = vpop.permute.xlu1 %4830  ;;  %v4768_v31 = vpop.permute.xlu0 %4767  ;;  %v5349_v48 = vsel %vm15659_vm4, %v13481_v32, -inf  ;;  %v5394_v21 = vsel %vm15655_vm1, %v13486_v39, -inf }
 0xac9   : > { %v5047_v55 = vadd.f32 %v13439_v59, %v4768_v31  ;;  %v5062_v38 = vadd.f32 %v13443_v50, %v4831_v8  ;;  %v5226_v8 = vsel %vm5106_vm6, %v5046_v11, %v5166_v15  ;;  %v5241_v61 = vsel %vm5121_vm5, %v5061_v20, %v5181_v63  ;;  %vm15662_vm5 = vmmov %vm15655_vm1  ;;  %v15663_v20 = vld [vmem:[#allocation21_spill] sm:$0xff] }
 0xaca   : > { %vm15664_vm2 = vnez %v15663_v20 }
 0xacb   : > { %v5167_v37 = vmul.f32 0.2, %v5047_v55  ;;  %v5182_v31 = vmul.f32 0.2, %v5062_v38  ;;  %vm5107_vm9 = vcmp.gt.f32.partialorder %v5047_v55, 0.0  ;;  %vm5122_vm12 = vcmp.gt.f32.partialorder %v5062_v38, 0.0 }
 0xacc   : > { %v4835_v6 = vpop.permute.xlu1 %4834  ;;  %v4772_v58 = vpop.permute.xlu0 %4771 }
 0xacd   : > { %v5048_v1 = vadd.f32 %v13439_v59, %v4772_v58  ;;  %v5063_v60 = vadd.f32 %v13443_v50, %v4835_v6  ;;  %v15660_v58 = vld [vmem:[#allocation20_spill] sm:$0xff]  ;;  %v5227_v43 = vsel %vm5107_vm9, %v5047_v55, %v5167_v37  ;;  %v5242_v23 = vsel %vm5122_vm12, %v5062_v38, %v5182_v31  ;;  %vm15665_vm12 = vmmov %vm15655_vm1 }
 0xace   : > { %vm15661_vm0 = vnez %v15660_v58  ;;  %v13509_v29 = vsel %vm15664_vm2, %v5227_v43, -1e+30 }
 0xacf   : > { %v13495_v5 = vsel %vm15661_vm0, %v5226_v8, -1e+30  ;;  %v5168_v28 = vmul.f32 0.2, %v5048_v1  ;;  %v13500_v6 = vsel %vm15661_vm0, %v5241_v61, -1e+30 }
 0xad0   : > { %v4776_v36 = vpop.permute.xlu0 %4775  ;;  %v4839_v3 = vpop.permute.xlu1 %4838  ;;  %v5183_v25 = vmul.f32 0.2, %v5063_v60  ;;  %vm5108_vm6 = vcmp.gt.f32.partialorder %v5048_v1, 0.0  ;;  %v5352_v40 = vsel %vm15662_vm5, %v13495_v5, -inf  ;;  %vm5123_vm4 = vcmp.gt.f32.partialorder %v5063_v60, 0.0 }
 0xad1   : > { %v5049_v52 = vadd.f32 %v13439_v59, %v4776_v36  ;;  %v5064_v53 = vadd.f32 %v13443_v50, %v4839_v3  ;;  %v5397_v36 = vsel %vm15655_vm1, %v13500_v6, -inf  ;;  %v13514_v3 = vsel %vm15664_vm2, %v5242_v23, -1e+30 }
 0xad2   : > { %v5228_v15 = vsel %vm5108_vm6, %v5048_v1, %v5168_v28  ;;  %v5243_v63 = vsel %vm5123_vm4, %v5063_v60, %v5183_v25  ;;  %v5355_v54 = vsel %vm15665_vm12, %v13509_v29, -inf  ;;  %vm15667_vm4 = vmmov %vm15655_vm1 }
 0xad3   : > { %v5184_v55 = vmul.f32 0.2, %v5064_v53  ;;  %vm5109_vm9 = vcmp.gt.f32.partialorder %v5049_v52, 0.0  ;;  %vm5124_vm5 = vcmp.gt.f32.partialorder %v5064_v53, 0.0  ;;  %v13523_v37 = vsel %vm11625_vm15, %v5228_v15, -1e+30 }
 0xad4   : > { %v4780_v10 = vpop.permute.xlu0 %4779  ;;  %v4843_v26 = vpop.permute.xlu1 %4842 }
 0xad5   : > { %5344 = vmax.xlane.f32.xlu0 %v5343_v14  ;;  %v5169_v14 = vmul.f32 0.2, %v5049_v52  ;;  %v5065_v42 = vadd.f32 %v13443_v50, %v4843_v26  ;;  %v13528_v26 = vsel %vm11625_vm15, %v5243_v63, -1e+30 }
 0xad6   : > { %5389 = vmax.xlane.f32.xlu1 %v5388_v57  ;;  %v5050_v57 = vadd.f32 %v13439_v59, %v4780_v10  ;;  %v5400_v10 = vsel %vm15655_vm1, %v13514_v3, -inf  ;;  %v5403_v28 = vsel %vm15655_vm1, %v13528_v26, -inf }
 0xad7   : > { %v5229_v31 = vsel %vm5109_vm9, %v5049_v52, %v5169_v14  ;;  %v5185_v60 = vmul.f32 0.2, %v5065_v42  ;;  %vm5125_vm12 = vcmp.gt.f32.partialorder %v5065_v42, 0.0 }
 0xad8   : > { %v4784_v27 = vpop.permute.xlu0 %4783  ;;  %v4847_v0 = vpop.permute.xlu1 %4846  ;;  %v5170_v1 = vmul.f32 0.2, %v5050_v57  ;;  %vm5110_vm6 = vcmp.gt.f32.partialorder %v5050_v57, 0.0  ;;  %v13537_v43 = vsel %vm15470_vm10, %v5229_v31, -1e+30 }
 0xad9   : > { %5347 = vmax.xlane.f32.xlu0 %v5346_v56  ;;  %v5051_v8 = vadd.f32 %v13439_v59, %v4784_v27  ;;  %v5066_v61 = vadd.f32 %v13443_v50, %v4847_v0  ;;  %v15668_v27 = vld [vmem:[#allocation23_spill] sm:$0xff]  ;;  %v5245_v15 = vsel %vm5125_vm12, %v5065_v42, %v5185_v60  ;;  %vm15671_vm12 = vmmov %vm15655_vm1 }
 0xada   : > { %5392 = vmax.xlane.f32.xlu1 %v5391_v45  ;;  %v13556_v42 = vsel %vm15476_vm8, %v5245_v15, -1e+30 }
 0xadb   : > { %v5171_v25 = vmul.f32 0.2, %v5051_v8  ;;  %vm5111_vm9 = vcmp.gt.f32.partialorder %v5051_v8, 0.0 }
 0xadc   : > { %v4788_v11 = vpop.permute.xlu0 %4787  ;;  %v4851_v38 = vpop.permute.xlu1 %4850 }
 0xadd   : > { %5350 = vmax.xlane.f32.xlu0 %v5349_v48  ;;  %v5244_v48 = vsel %vm5124_vm5, %v5064_v53, %v5184_v55  ;;  %v5052_v52 = vadd.f32 %v13439_v59, %v4788_v11  ;;  %v5230_v53 = vsel %vm5110_vm6, %v5050_v57, %v5170_v1  ;;  %vm15669_vm5 = vmmov %vm15655_vm1 }
 0xade   : > { %5395 = vmax.xlane.f32.xlu1 %v5394_v21  ;;  %v5358_v21 = vsel %vm15667_vm4, %v13523_v37, -inf  ;;  %v13542_v0 = vsel %vm15470_vm10, %v5244_v48, -1e+30  ;;  %v5361_v55 = vsel %vm15669_vm5, %v13537_v43, -inf  ;;  %vm5126_vm4 = vcmp.gt.f32.partialorder %v5066_v61, 0.0 }
 0xadf   : > { %v5406_v11 = vsel %vm15655_vm1, %v13542_v0, -inf  ;;  %vm5112_vm6 = vcmp.gt.f32.partialorder %v5052_v52, 0.0 }
 0xae0   : > { %v4792_v56 = vpop.permute.xlu0 %4791  ;;  %v4855_v23 = vpop.permute.xlu1 %4854 }
 0xae1   : > { %5353 = vmax.xlane.f32.xlu0 %v5352_v40  ;;  %v5186_v40 = vmul.f32 0.2, %v5066_v61  ;;  %v5053_v57 = vadd.f32 %v13439_v59, %v4792_v56  ;;  %v5068_v31 = vadd.f32 %v13443_v50, %v4855_v23  ;;  %v5409_v56 = vsel %vm15655_vm1, %v13556_v42, -inf }
 0xae2   : > { %5398 = vmax.xlane.f32.xlu1 %v5397_v36  ;;  %v5067_v36 = vadd.f32 %v13443_v50, %v4851_v38  ;;  %v5231_v38 = vsel %vm5111_vm9, %v5051_v8, %v5171_v25 }
 0xae3   : > { %v5246_v60 = vsel %vm5126_vm4, %v5066_v61, %v5186_v40  ;;  %v5173_v8 = vmul.f32 0.2, %v5053_v57  ;;  %v5188_v40 = vmul.f32 0.2, %v5068_v31  ;;  %vm5113_vm9 = vcmp.gt.f32.partialorder %v5053_v57, 0.0  ;;  %vm15676_vm4 = vmmov %vm15655_vm1 }
 0xae4   : > { %v4796_v14 = vpop.permute.xlu0 %4795  ;;  %v5187_v1 = vmul.f32 0.2, %v5067_v36  ;;  %v4859_v48 = vpop.permute.xlu1 %4858  ;;  %vm5127_vm5 = vcmp.gt.f32.partialorder %v5067_v36, 0.0 }
 0xae5   : > { %5356 = vmax.xlane.f32.xlu0 %v5355_v54  ;;  %v13551_v54 = vsel %vm15476_vm8, %v5230_v53, -1e+30  ;;  %v15672_v53 = vld [vmem:[#allocation25_spill] sm:$0xff]  ;;  %v5054_v25 = vadd.f32 %v13439_v59, %v4796_v14 }
 0xae6   : > { %5401 = vmax.xlane.f32.xlu1 %v5400_v10  ;;  %v5172_v10 = vmul.f32 0.2, %v5052_v52  ;;  %vm15673_vm10 = vnez %v15672_v53 }
 0xae7   : > { %v13565_v15 = vsel %vm15673_vm10, %v5231_v38, -1e+30  ;;  %v13570_v61 = vsel %vm15673_vm10, %v5246_v60, -1e+30  ;;  %v5174_v60 = vmul.f32 0.2, %v5054_v25 }
 0xae8   : > { %15674 = vst [vmem:[#allocation38_spill] sm:$0xff] %v13565_v15  ;;  %15675 = vst [vmem:[#allocation59_spill] sm:$0xff] %v13570_v61  ;;  %v5232_v23 = vsel %vm5112_vm6, %v5052_v52, %v5172_v10  ;;  %v5412_v38 = vsel %vm15655_vm1, %v13570_v61, -inf  ;;  %v5233_v10 = vsel %vm5113_vm9, %v5053_v57, %v5173_v8  ;;  %vm5114_vm6 = vcmp.gt.f32.partialorder %v5054_v25, 0.0 }
 0xae9   : > { %5359 = vmax.xlane.f32.xlu0 %v5358_v21  ;;  %v5364_v21 = vsel %vm15671_vm12, %v13551_v54, -inf  ;;  %vm5128_vm12 = vcmp.gt.f32.partialorder %v5068_v31, 0.0 }
 0xaea   : > { %5404 = vmax.xlane.f32.xlu1 %v5403_v28  ;;  %v4800_v28 = vpop.permute.xlu0 %4799  ;;  %v5248_v2 = vsel %vm5128_vm12, %v5068_v31, %v5188_v40  ;;  %v5234_v31 = vsel %vm5114_vm6, %v5054_v25, %v5174_v60  ;;  %vm15684_vm12 = vmmov %vm15655_vm1 }
 0xaeb   : > { %v5055_v52 = vadd.f32 %v13439_v59, %v4800_v28  ;;  %v13592_v28 = vsel %vm15455_vm3, %v5233_v10, -1e+30  ;;  %v13597_v57 = vsel %vm15455_vm3, %v5248_v2, -1e+30  ;;  %v15776_v10 = vld [vmem:[#allocation29_spill] sm:$0xff] }
 0xaec   : > { %15682 = vst [vmem:[#allocation56_spill] sm:$0xff] %v13592_v28  ;;  %15683 = vst [vmem:[#allocation40_spill] sm:$0xff] %v13597_v57  ;;  %v5373_v40 = vsel %vm15684_vm12, %v13592_v28, -inf }
 0xaed   : > { %5362 = vmax.xlane.f32.xlu0 %v5361_v55  ;;  %v5069_v55 = vadd.f32 %v13443_v50, %v4859_v48  ;;  %vm5115_vm9 = vcmp.gt.f32.partialorder %v5055_v52, 0.0 }
 0xaee   : > { %5407 = vmax.xlane.f32.xlu1 %v5406_v11  ;;  %v5247_v11 = vsel %vm5127_vm5, %v5067_v36, %v5187_v1  ;;  %v4804_v48 = vpop.permute.xlu0 %4803  ;;  %vm15680_vm5 = vmmov %vm15655_vm1 }
 0xaef   : > { %v13584_v36 = vsel %vm15481_vm7, %v5247_v11, -1e+30  ;;  %v5189_v1 = vmul.f32 0.2, %v5069_v55  ;;  %v5056_v11 = vadd.f32 %v13439_v59, %v4804_v48 }
 0xaf0   : > { %15679 = vst [vmem:[#allocation48_spill] sm:$0xff] %v13584_v36 }
 0xaf1   : > { %5365 = vmax.xlane.f32.xlu0 %v5364_v21  ;;  %v5367_v21 = vsel %vm15676_vm4, %v13565_v15, -inf  ;;  %vm5129_vm4 = vcmp.gt.f32.partialorder %v5069_v55, 0.0  ;;  %v5176_v48 = vmul.f32 0.2, %v5056_v11  ;;  %vm5116_vm6 = vcmp.gt.f32.partialorder %v5056_v11, 0.0 }
 0xaf2   : > { %5410 = vmax.xlane.f32.xlu1 %v5409_v56  ;;  %v13579_v56 = vsel %vm15481_vm7, %v5232_v23, -1e+30  ;;  %v5415_v23 = vsel %vm15655_vm1, %v13584_v36, -inf  ;;  %v5249_v8 = vsel %vm5129_vm4, %v5069_v55, %v5189_v1  ;;  %v13605_v36 = vsel %vm15458_vm13, %v5234_v31, -1e+30  ;;  %vm15689_vm4 = vmmov %vm15655_vm1  ;;  %v15690_v1 = vld [vmem:[#allocation29_spill] sm:$0xff] }
 0xaf3   : > { %15678 = vst [vmem:[#allocation14_spill] sm:$0xff] %v13579_v56  ;;  %15687 = vst [vmem:[#allocation61_spill] sm:$0xff] %v13605_v36  ;;  %v13609_v2 = vsel %vm15458_vm13, %v5249_v8, -1e+30  ;;  %v5376_v55 = vsel %vm15689_vm4, %v13605_v36, -inf  ;;  %vm15691_vm12 = vnez %v15690_v1  ;;  %v5236_v31 = vsel %vm5116_vm6, %v5056_v11, %v5176_v48  ;;  %v15694_v8 = vld [vmem:[#allocation30_spill] sm:$0xff] }
 0xaf4   : > { %15688 = vst [vmem:[#allocation42_spill] sm:$0xff] %v13609_v2  ;;  %v5421_v60 = vsel %vm15655_vm1, %v13609_v2, -inf  ;;  %vm15697_vm4 = vmmov %vm15655_vm1  ;;  %v5021_v2 = vcombine.high %v13432_v49, %v13432_v49 }
 0xaf5   : > { %5368 = vmax.xlane.f32.xlu0 %v5367_v21  ;;  %v5370_v21 = vsel %vm15680_vm5, %v13579_v56, -inf  ;;  %vm15685_vm5 = vmmov %vm15655_vm1  ;;  %v5022_v56 = vcombine.high %v13435_v9, %v13435_v9 }
 0xaf6   : > { %5413 = vmax.xlane.f32.xlu1 %v5412_v38  ;;  %v5175_v38 = vmul.f32 0.2, %v5055_v52 }
 0xaf8   : > { %v5235_v25 = vsel %vm5115_vm9, %v5055_v52, %v5175_v38  ;;  %vm15695_vm9 = vnez %v15694_v8 }
 0xaf9   : > { %5371 = vmax.xlane.f32.xlu0 %v5370_v21  ;;  %v5418_v21 = vsel %vm15685_vm5, %v13597_v57, -inf  ;;  %vm15693_vm5 = vmmov %vm15655_vm1  ;;  %v13623_v52 = vsel %vm15695_vm9, %v5236_v31, -1e+30 }
 0xafa   : > { %5416 = vmax.xlane.f32.xlu1 %v5415_v23  ;;  %v13617_v23 = vsel %vm15691_vm12, %v5235_v25, -1e+30  ;;  %15696 = vst [vmem:[#allocation49_spill] sm:$0xff] %v13623_v52  ;;  %v5382_v38 = vsel %vm15697_vm4, %v13623_v52, -inf }
 0xafb   : > { %15692 = vst [vmem:[#allocation63_spill] sm:$0xff] %v13617_v23 }
 0xafd   : > { %5374 = vmax.xlane.f32.xlu0 %v5373_v40  ;;  %v5379_v40 = vsel %vm15693_vm5, %v13617_v23, -inf }
 0xafe   : > { %5419 = vmax.xlane.f32.xlu1 %v5418_v21  ;;  %v4808_v21 = vpop.permute.xlu0 %4807 }
 0xaff   : > { %v5057_v36 = vadd.f32 %v13439_v59, %v4808_v21  ;;  %v13647_v59 = vrot.slane %v5022_v56, %v15652_v19  ;;  %v15701_v56 = vld [vmem:[#allocation31_spill] sm:$0xff] }
 0xb01   : > { %5377 = vmax.xlane.f32.xlu0 %v5376_v55  ;;  %v4863_v55 = vpop.permute.xlu1 %4862  ;;  %v5177_v15 = vmul.f32 0.2, %v5057_v36  ;;  %vm5117_vm5 = vcmp.gt.f32.partialorder %v5057_v36, 0.0 }
 0xb02   : > { %5422 = vmax.xlane.f32.xlu1 %v5421_v60  ;;  %v4878_v25 = vpop.permute.xlu0 %4877  ;;  %v5070_v60 = vadd.f32 %v13443_v50, %v4863_v55  ;;  %v13639_v55 = vrot.slane %v5021_v2, %v15652_v19 }
 0xb04   : > { %v5190_v23 = vmul.f32 0.2, %v5070_v60  ;;  %vm5130_vm6 = vcmp.gt.f32.partialorder %v5070_v60, 0.0 }
 0xb05   : > { %5380 = vmax.xlane.f32.xlu0 %v5379_v40  ;;  %v4867_v11 = vpop.permute.xlu1 %4866 }
 0xb06   : > { %v4882_v48 = vpop.permute.xlu0 %4881  ;;  %v5071_v31 = vadd.f32 %v13443_v50, %v4867_v11  ;;  %v5073_v11 = vadd.f32 %v13639_v55, %v4878_v25 }
 0xb08   : > { %v5191_v57 = vmul.f32 0.2, %v5071_v31  ;;  %vm5131_vm1 = vcmp.gt.f32.partialorder %v5071_v31, 0.0  ;;  %v5193_v21 = vmul.f32 0.2, %v5073_v11 }
 0xb09   : > { %5383 = vmax.xlane.f32.xlu0 %v5382_v38  ;;  %v13630_v40 = vpop.permute.xlu1 %4870 }
 0xb0a   : > { %v4886_v38 = vpop.permute.xlu0 %4885  ;;  %v5251_v61 = vsel %vm5131_vm1, %v5071_v31, %v5191_v57  ;;  %vm15700_vm1 = vmmov %vm15697_vm4 }
 0xb0b   : > { %v13656_v25 = vsel %vm15695_vm9, %v5251_v61, -1e+30  ;;  %vm15704_vm9 = vmmov %vm15700_vm1 }
 0xb0c   : > { %15699 = vst [vmem:[#allocation9_spill] sm:$0xff] %v13656_v25  ;;  %v5427_v19 = vsel %vm15700_vm1, %v13656_v25, -inf }
 0xb0d   : > { %v4941_v28 = vpop.permute.xlu1 %4940 }
 0xb0e   : > { %v4890_v52 = vpop.permute.xlu0 %4889  ;;  %v5088_v2 = vadd.f32 %v13647_v59, %v4941_v28 }
 0xb12   : > { %v4894_v57 = vpop.permute.xlu0 %4893 }
 0xb13   : > { %4992 = vbcast.lane.b32.xlu1 %v13400_v35, 360 }
 0xb16   : > { %v4898_v25 = vpop.permute.xlu0 %4897 }
 0xb1f   : > { %4933 = vbcast.lane.b32.xlu0 %v13395_v30, 368  ;;  %v5250_v30 = vsel %vm5130_vm6, %v5070_v60, %v5190_v23  ;;  %v13649_v23 = vpop.permute.xlu1 %4944  ;;  %v5237_v60 = vsel %vm5117_vm5, %v5057_v36, %v5177_v15  ;;  %vm5133_vm6 = vcmp.gt.f32.partialorder %v5073_v11, 0.0 }
 0xb20   : > { %v13644_v49 = vsel %vm15691_vm12, %v5250_v30, -1e+30  ;;  %vm15702_vm12 = vnez %v15701_v56  ;;  %v5208_v30 = vmul.f32 0.2, %v5088_v2  ;;  %v5253_v28 = vsel %vm5133_vm6, %v5073_v11, %v5193_v21  ;;  %vm15707_vm6 = vmmov %vm15700_vm1 }
 0xb21   : > { %15698 = vst [vmem:[#allocation65_spill] sm:$0xff] %v13644_v49  ;;  %v5424_v9 = vsel %vm15697_vm4, %v13644_v49, -inf  ;;  %v13662_v31 = vsel %vm15702_vm12, %v5237_v60, -1e+30  ;;  %v5074_v49 = vadd.f32 %v13639_v55, %v4882_v48  ;;  %vm5148_vm4 = vcmp.gt.f32.partialorder %v5088_v2, 0.0 }
 0xb22   : > { %15703 = vst [vmem:[#allocation58_spill] sm:$0xff] %v13662_v31  ;;  %v5385_v15 = vsel %vm15704_vm9, %v13662_v31, -inf  ;;  %v13671_v61 = vsel %vm11598_vm11, %v5253_v28, -1e+30  ;;  %v5075_v60 = vadd.f32 %v13639_v55, %v4886_v38  ;;  %v5268_v24 = vsel %vm5148_vm4, %v5088_v2, %v5208_v30  ;;  %v4902_v31 = vpop.permute.xlu0 %4901  ;;  %vm15709_vm4 = vmmov %vm15700_vm1 }
 0xb23   : > { %15705 = vst [vmem:[#allocation10_spill] sm:$0xff] %v13671_v61  ;;  %v5194_v36 = vmul.f32 0.2, %v5074_v49  ;;  %vm5134_vm5 = vcmp.gt.f32.partialorder %v5074_v49, 0.0  ;;  %v5433_v48 = vsel %vm15700_vm1, %v13671_v61, -inf  ;;  %v5076_v28 = vadd.f32 %v13639_v55, %v4890_v52 }
 0xb24   : > { %v13680_v21 = vsel %vm11598_vm11, %v5268_v24, -1e+30  ;;  %vm5135_vm9 = vcmp.gt.f32.partialorder %v5075_v60, 0.0 }
 0xb25   : > { %15706 = vst [vmem:[#allocation68_spill] sm:$0xff] %v13680_v21  ;;  %v5478_v38 = vsel %vm15707_vm6, %v13680_v21, -inf  ;;  %v5196_v30 = vmul.f32 0.2, %v5076_v28  ;;  %vm5136_vm11 = vcmp.gt.f32.partialorder %v5076_v28, 0.0 }
 0xb26   : > { %v13697_v61 = vpop.permute.xlu0 %4905 }
 0xb37   : > { %5425 = vmax.xlane.f32.xlu1 %v5424_v9  ;;  %v13665_v9 = vpop.permute.xlu1 %4948 }
 0xb3b   : > { %5428 = vmax.xlane.f32.xlu1 %v5427_v19  ;;  %v13676_v11 = vpop.permute.xlu1 %4952  ;;  %v5195_v19 = vmul.f32 0.2, %v5075_v60 }
 0xb3d   : > { %v5255_v12 = vsel %vm5135_vm9, %v5075_v60, %v5195_v19  ;;  %vm15712_vm9 = vmmov %vm15709_vm4 }
 0xb3e   : > { %5386 = vmax.xlane.f32.xlu0 %v5385_v15  ;;  %v5254_v15 = vsel %vm5134_vm5, %v5074_v49, %v5194_v36  ;;  %vm15710_vm5 = vnez %v15658_v7 }
 0xb3f   : > { %v13687_v2 = vsel %vm11603_vm14, %v5254_v15, -1e+30  ;;  %v4957_v24 = vpop.permute.xlu1 %4956  ;;  %v13694_v49 = vsel %vm15710_vm5, %v5255_v12, -1e+30  ;;  %v5256_v15 = vsel %vm5136_vm11, %v5076_v28, %v5196_v30  ;;  %vm15714_vm11 = vmmov %vm15709_vm4 }
 0xb40   : > { %15708 = vst [vmem:[#allocation71_spill] sm:$0xff] %v13687_v2  ;;  %v5436_v52 = vsel %vm15709_vm4, %v13687_v2, -inf  ;;  %15711 = vst [vmem:[#allocation60_spill] sm:$0xff] %v13694_v49  ;;  %v13704_v19 = vsel %vm15661_vm0, %v5256_v15, -1e+30 }
 0xb41   : > { %15713 = vst [vmem:[#allocation73_spill] sm:$0xff] %v13704_v19 }
 0xb42   : > { %5434 = vmax.xlane.f32.xlu0 %v5433_v48  ;;  %v5077_v48 = vadd.f32 %v13639_v55, %v4894_v57  ;;  %v5439_v57 = vsel %vm15712_vm9, %v13694_v49, -inf }
 0xb43   : > { %v4961_v60 = vpop.permute.xlu1 %4960 }
 0xb44   : > { %v5197_v36 = vmul.f32 0.2, %v5077_v48  ;;  %vm5137_vm1 = vcmp.gt.f32.partialorder %v5077_v48, 0.0 }
 0xb46   : > { %5479 = vmax.xlane.f32.xlu0 %v5478_v38  ;;  %v5078_v38 = vadd.f32 %v13639_v55, %v4898_v25  ;;  %v5257_v2 = vsel %vm5137_vm1, %v5077_v48, %v5197_v36  ;;  %v13707_v25 = vpop.permute.xlu0 %4909  ;;  %vm15717_vm1 = vmmov %vm15712_vm9 }
 0xb47   : > { %v13713_v28 = vsel %vm15664_vm2, %v5257_v2, -1e+30  ;;  %v4965_v49 = vpop.permute.xlu1 %4964 }
 0xb48   : > { %v5198_v12 = vmul.f32 0.2, %v5078_v38  ;;  %vm5138_vm6 = vcmp.gt.f32.partialorder %v5078_v38, 0.0  ;;  %15715 = vst [vmem:[#allocation62_spill] sm:$0xff] %v13713_v28  ;;  %v5445_v15 = vsel %vm15712_vm9, %v13713_v28, -inf  ;;  %v5094_v7 = vadd.f32 %v13647_v59, %v4965_v49 }
 0xb4a   : > { %5437 = vmax.xlane.f32.xlu0 %v5436_v52  ;;  %v5079_v52 = vadd.f32 %v13639_v55, %v4902_v31  ;;  %v13721_v48 = vpop.permute.xlu0 %4913  ;;  %v5214_v58 = vmul.f32 0.2, %v5094_v7 }
 0xb4b   : > { %v13725_v2 = vpop.permute.xlu1 %4968 }
 0xb4c   : > { %4996 = vbcast.lane.b32.xlu1 %v13400_v35, 368  ;;  %v5442_v35 = vsel %vm15714_vm11, %v13704_v19, -inf  ;;  %v5199_v30 = vmul.f32 0.2, %v5079_v52  ;;  %vm5139_vm4 = vcmp.gt.f32.partialorder %v5079_v52, 0.0  ;;  %vm15720_vm11 = vmmov %vm15717_vm1  ;;  %v5090_v19 = vadd.f32 %v13647_v59, %v13665_v9 }
 0xb4d   : > { %v5095_v20 = vadd.f32 %v13647_v59, %v13725_v2 }
 0xb4e   : > { %5440 = vmax.xlane.f32.xlu0 %v5439_v57  ;;  %v5258_v57 = vsel %vm5138_vm6, %v5078_v38, %v5198_v12  ;;  %v5259_v36 = vsel %vm5139_vm4, %v5079_v52, %v5199_v30  ;;  %vm15718_vm6 = vnez %v15668_v27  ;;  %v13731_v12 = vpop.permute.xlu0 %4917  ;;  %v5072_v52 = vadd.f32 %v13443_v50, %v13630_v40 }
 0xb4f   : > { %v13719_v31 = vsel %vm11625_vm15, %v5258_v57, -1e+30  ;;  %v13729_v38 = vsel %vm15718_vm6, %v5259_v36, -1e+30  ;;  %v13735_v57 = vpop.permute.xlu1 %4972  ;;  %v5210_v40 = vmul.f32 0.2, %v5090_v19 }
 0xb50   : > { %15716 = vst [vmem:[#allocation45_spill] sm:$0xff] %v13719_v31  ;;  %15719 = vst [vmem:[#allocation54_spill] sm:$0xff] %v13729_v38  ;;  %vm5132_vm4 = vcmp.gt.f32.partialorder %v5072_v52, 0.0  ;;  %v5215_v45 = vmul.f32 0.2, %v5095_v20 }
 0xb52   : > { %5443 = vmax.xlane.f32.xlu0 %v5442_v35  ;;  %v5448_v35 = vsel %vm15717_vm1, %v13719_v31, -inf  ;;  %v13739_v30 = vpop.permute.xlu0 %4921  ;;  %v5192_v31 = vmul.f32 0.2, %v5072_v52  ;;  %vm5150_vm1 = vcmp.gt.f32.partialorder %v5090_v19, 0.0 }
 0xb53   : > { %v13743_v28 = vpop.permute.xlu1 %4976  ;;  %v5270_v56 = vsel %vm5150_vm1, %v5090_v19, %v5210_v40 }
 0xb56   : > { %5446 = vmax.xlane.f32.xlu0 %v5445_v15  ;;  %v5451_v15 = vsel %vm15720_vm11, %v13729_v38, -inf  ;;  %v13747_v38 = vpop.permute.xlu0 %4925 }
 0xb57   : > { %v13749_v21 = vpop.permute.xlu1 %4980 }
 0xb5a   : > { %5449 = vmax.xlane.f32.xlu0 %v5448_v35  ;;  %v5089_v35 = vadd.f32 %v13647_v59, %v13649_v23  ;;  %v5091_v23 = vadd.f32 %v13647_v59, %v13676_v11  ;;  %v13757_v1 = vpop.permute.xlu0 %4929 }
 0xb5b   : > { %v13766_v8 = vpop.permute.xlu1 %4984 }
 0xb5c   : > { %v5209_v36 = vmul.f32 0.2, %v5089_v35  ;;  %vm5149_vm9 = vcmp.gt.f32.partialorder %v5089_v35, 0.0 }
 0xb5e   : > { %5452 = vmax.xlane.f32.xlu0 %v5451_v15  ;;  %v5252_v15 = vsel %vm5132_vm4, %v5072_v52, %v5192_v31  ;;  %v5269_v51 = vsel %vm5149_vm9, %v5089_v35, %v5209_v36  ;;  %v5211_v52 = vmul.f32 0.2, %v5091_v23  ;;  %vm5151_vm4 = vcmp.gt.f32.partialorder %v5091_v23, 0.0  ;;  %vm15722_vm9 = vmmov %vm15720_vm11 }
 0xb5f   : > { %v13753_v50 = vsel %vm15702_vm12, %v5252_v15, -1e+30  ;;  %v13763_v31 = vsel %vm11603_vm14, %v5269_v51, -1e+30  ;;  %v5092_v15 = vadd.f32 %v13647_v59, %v4957_v24  ;;  %v13776_v51 = vsel %vm15710_vm5, %v5270_v56, -1e+30  ;;  %vm15723_vm1 = vmmov %vm15722_vm9  ;;  %v13781_v40 = vpop.permute.xlu1 %4988 }
 0xb60   : > { %v5430_v9 = vsel %vm15720_vm11, %v13753_v50, -inf  ;;  %15721 = vst [vmem:[#allocation47_spill] sm:$0xff] %v13763_v31  ;;  %v5481_v35 = vsel %vm15722_vm9, %v13763_v31, -inf  ;;  %v5093_v24 = vadd.f32 %v13647_v59, %v4961_v60  ;;  %v5271_v19 = vsel %vm5151_vm4, %v5091_v23, %v5211_v52  ;;  %vm15725_vm11 = vmmov %vm15723_vm1 }
 0xb61   : > { %v5212_v44 = vmul.f32 0.2, %v5092_v15  ;;  %vm5152_vm14 = vcmp.gt.f32.partialorder %v5092_v15, 0.0  ;;  %v5484_v36 = vsel %vm15723_vm1, %v13776_v51, -inf  ;;  %vm15727_vm4 = vmmov %vm15723_vm1 }
 0xb62   : > { %v13768_v11 = vpop.xlane.xlu0 %5344  ;;  %vm5153_vm5 = vcmp.gt.f32.partialorder %v5093_v24, 0.0  ;;  %vm15729_vm9 = vmmov %vm15723_vm1 }
 0xb63   : > { %v5272_v31 = vsel %vm5152_vm14, %v5092_v15, %v5212_v44  ;;  %v13792_v23 = vpop.xlane.xlu1 %5389  ;;  %vm15731_vm14 = vmmov %vm15723_vm1 }
 0xb64   : > { %v13796_v52 = vsel %vm15664_vm2, %v5272_v31, -1e+30 }
 0xb65   : > { %15726 = vst [vmem:[#allocation50_spill] sm:$0xff] %v13796_v52  ;;  %v5490_v15 = vsel %vm15727_vm4, %v13796_v52, -inf }
 0xb66   : > { %v13788_v56 = vpop.xlane.xlu0 %5347 }
 0xb6a   : > { %v13800_v49 = vpop.xlane.xlu0 %5350 }
 0xb70   : > { %5431 = vmax.xlane.f32.xlu1 %v5430_v9  ;;  %v13785_v9 = vsel %vm15661_vm0, %v5271_v19, -1e+30  ;;  %v5080_v19 = vadd.f32 %v13639_v55, %v13697_v61  ;;  %vm5154_vm0 = vcmp.gt.f32.partialorder %v5094_v7, 0.0 }
 0xb71   : > { %15724 = vst [vmem:[#allocation64_spill] sm:$0xff] %v13785_v9  ;;  %v5487_v60 = vsel %vm15725_vm11, %v13785_v9, -inf  ;;  %v5393_v9 = vpop.xlane.xlu1 %5392  ;;  %vm15734_vm11 = vmmov %vm15723_vm1 }
 0xb72   : > { %v5200_v31 = vmul.f32 0.2, %v5080_v19  ;;  %vm5140_vm2 = vcmp.gt.f32.partialorder %v5080_v19, 0.0 }
 0xb74   : > { %5482 = vmax.xlane.f32.xlu1 %v5481_v35  ;;  %10145 = vrot.lane.b32.xlu0 %v13329_v13, %s10802_s30  ;;  %v5213_v35 = vmul.f32 0.2, %v5093_v24  ;;  %v5260_v2 = vsel %vm5140_vm2, %v5080_v19, %v5200_v31 }
 0xb78   : > { %5485 = vmax.xlane.f32.xlu1 %v5484_v36  ;;  %v5273_v36 = vsel %vm5153_vm5, %v5093_v24, %v5213_v35  ;;  %v5081_v24 = vadd.f32 %v13639_v55, %v13707_v25  ;;  %v13825_v25 = vsel %vm15476_vm8, %v5260_v2, -1e+30 }
 0xb79   : > { %v13806_v44 = vsel %vm11625_vm15, %v5273_v36, -1e+30  ;;  %v5539_v36 = vsub.f32 %v13472_v4, %v5393_v9  ;;  %vm5155_vm15 = vcmp.gt.f32.partialorder %v5095_v20, 0.0  ;;  %15732 = vst [vmem:[#allocation67_spill] sm:$0xff] %v13825_v25  ;;  %v5454_v4 = vsel %vm15723_vm1, %v13825_v25, -inf }
 0xb7a   : > { %15728 = vst [vmem:[#allocation66_spill] sm:$0xff] %v13806_v44  ;;  %v5493_v61 = vsel %vm15729_vm9, %v13806_v44, -inf  ;;  %v5201_v44 = vmul.f32 0.2, %v5081_v24 }
 0xb7b   : > { %v5615_v27 = vmul.f32 1.442695, %v5539_v36 }
 0xb7c   : > { %5488 = vmax.xlane.f32.xlu1 %v5487_v60  ;;  %v5274_v60 = vsel %vm5154_vm0, %v5094_v7, %v5214_v58  ;;  %v5096_v58 = vadd.f32 %v13647_v59, %v13735_v57  ;;  %vm15736_vm0 = vmmov %vm15723_vm1 }
 0xb7d   : > { %v13816_v35 = vsel %vm15718_vm6, %v5274_v60, -1e+30  ;;  %v5275_v60 = vsel %vm5155_vm15, %v5095_v20, %v5215_v45  ;;  %vm5141_vm6 = vcmp.gt.f32.partialorder %v5081_v24, 0.0  ;;  %10519 = vpow2.f32 %v5615_v27  ;;  %vm15739_vm4 = vmmov %vm15736_vm0 }
 0xb7e   : > { %15730 = vst [vmem:[#allocation72_spill] sm:$0xff] %v13816_v35  ;;  %v5496_v7 = vsel %vm15731_vm14, %v13816_v35, -inf  ;;  %v5216_v9 = vmul.f32 0.2, %v5096_v58  ;;  %v13831_v19 = vsel %vm15476_vm8, %v5275_v60, -1e+30  ;;  %v5261_v57 = vsel %vm5141_vm6, %v5081_v24, %v5201_v44  ;;  %vm15738_vm8 = vmmov %vm15736_vm0 }
 0xb7f   : > { %15733 = vst [vmem:[#allocation75_spill] sm:$0xff] %v13831_v19  ;;  %vm5156_vm5 = vcmp.gt.f32.partialorder %v5096_v58, 0.0  ;;  %v5499_v31 = vsel %vm15734_vm11, %v13831_v19, -inf  ;;  %v13837_v20 = vsel %vm15673_vm10, %v5261_v57, -1e+30  ;;  %vm15741_vm9 = vmmov %vm15736_vm0 }
 0xb80   : > { %5491 = vmax.xlane.f32.xlu1 %v5490_v15  ;;  %v5354_v15 = vpop.xlane.xlu0 %5353  ;;  %15735 = vst [vmem:[#allocation69_spill] sm:$0xff] %v13837_v20  ;;  %v5276_v45 = vsel %vm5156_vm5, %v5096_v58, %v5216_v9  ;;  %v5457_v2 = vsel %vm15736_vm0, %v13837_v20, -inf  ;;  %v5523_v9 = vsub.f32 %v13453_v47, %v13768_v11  ;;  %v5524_v47 = vsub.f32 %v13467_v16, %v13788_v56  ;;  %vm15742_vm15 = vmmov %vm15736_vm0 }
 0xb81   : > { %v13845_v63 = vsel %vm15673_vm10, %v5276_v45, -1e+30  ;;  %v5538_v45 = vsub.f32 %v13458_v22, %v13792_v23  ;;  %v5525_v22 = vsub.f32 %v13481_v32, %v13800_v49  ;;  %v5082_v16 = vadd.f32 %v13639_v55, %v13721_v48  ;;  %vm15740_vm10 = vmmov %vm15736_vm0 }
 0xb82   : > { %15737 = vst [vmem:[#allocation76_spill] sm:$0xff] %v13845_v63  ;;  %v5502_v44 = vsel %vm15738_vm8, %v13845_v63, -inf  ;;  %v5585_v20 = vmul.f32 1.442695, %v5524_v47  ;;  %vm15744_vm6 = vmmov %vm15736_vm0 }
 0xb83   : > { %v5202_v32 = vmul.f32 0.2, %v5082_v16  ;;  %vm5142_vm2 = vcmp.gt.f32.partialorder %v5082_v16, 0.0  ;;  %vm15745_vm5 = vmmov %vm15736_vm0 }
 0xb84   : > { %5494 = vmax.xlane.f32.xlu1 %v5493_v61  ;;  %v5357_v61 = vpop.xlane.xlu0 %5356  ;;  %vm15746_vm11 = vmmov %vm15736_vm0 }
 0xb87   : > { %v13849_v24 = vpop.eup %10519 }
 0xb88   : > { %5497 = vmax.xlane.f32.xlu1 %v5496_v7  ;;  %v13839_v36 = vpop.xlane.xlu0 %5359  ;;  %v5751_v58 = vsel %vm15739_vm4, %v13849_v24, 0.0  ;;  %vm15748_vm4 = vmmov %vm15736_vm0 }
 0xb8c   : > { %5455 = vmax.xlane.f32.xlu1 %v5454_v4  ;;  %v13851_v7 = vpop.xlane.xlu0 %5362  ;;  %v5396_v4 = vpop.xlane.xlu1 %5395 }
 0xb8d   : > { %v5540_v47 = vsub.f32 %v13486_v39, %v5396_v4 }
 0xb90   : > { %5500 = vmax.xlane.f32.xlu1 %v5499_v31  ;;  %v13855_v27 = vpop.xlane.xlu0 %5365  ;;  %v5583_v31 = vmul.f32 1.442695, %v5523_v9  ;;  %v5526_v9 = vsub.f32 %v13495_v5, %v5354_v15 }
 0xb92   : > { %10521 = vpow2.f32 %v5583_v31  ;;  %v5589_v56 = vmul.f32 1.442695, %v5526_v9 }
 0xb93   : > { %5458 = vmax.xlane.f32.xlu0 %v5457_v2  ;;  %v13871_v2 = vpop.xlane.xlu1 %5398 }
 0xb94   : > { %v13859_v53 = vpop.xlane.xlu0 %5368 }
 0xb97   : > { %5503 = vmax.xlane.f32.xlu0 %v5502_v44  ;;  %v5402_v11 = vpop.xlane.xlu1 %5401 }
 0xb98   : > { %v13861_v60 = vpop.xlane.xlu0 %5371  ;;  %v5542_v9 = vsub.f32 %v13514_v3, %v5402_v11 }
 0xb9b   : > { %5752 = vadd.xlane.f32.xlu0 %v5751_v58  ;;  %v5613_v58 = vmul.f32 1.442695, %v5538_v45  ;;  %v13884_v23 = vpop.xlane.xlu1 %5404  ;;  %v5527_v45 = vsub.f32 %v13509_v29, %v5357_v61  ;;  %v5097_v61 = vadd.f32 %v13647_v59, %v13743_v28 }
 0xb9c   : > { %v13865_v57 = vpop.xlane.xlu0 %5374  ;;  %v13886_v19 = vpop.eup %10521 }
 0xb9d   : > { %10523 = vpow2.f32 %v5613_v58  ;;  %v5587_v58 = vmul.f32 1.442695, %v5525_v22  ;;  %v5703_v5 = vsel %vm15740_vm10, %v13886_v19, 0.0  ;;  %v5591_v49 = vmul.f32 1.442695, %v5527_v45 }
 0xb9e   : > { %10525 = vpow2.f32 %v5585_v20  ;;  %v5262_v22 = vsel %vm5142_vm2, %v5082_v16, %v5202_v32  ;;  %v5217_v28 = vmul.f32 0.2, %v5097_v61  ;;  %vm5157_vm14 = vcmp.gt.f32.partialorder %v5097_v61, 0.0  ;;  %vm15752_vm2 = vmmov %vm15736_vm0 }
 0xb9f   : > { %v13897_v20 = vpop.xlane.xlu1 %5407  ;;  %10527 = vpow2.f32 %v5589_v56  ;;  %v5617_v56 = vmul.f32 1.442695, %v5540_v47 }
 0xba0   : > { %v13873_v44 = vpop.xlane.xlu0 %5377  ;;  %10529 = vpow2.f32 %v5587_v58  ;;  %v5099_v58 = vadd.f32 %v13647_v59, %v13766_v8 }
 0xba1   : > { %10150 = vrot.lane.b32.xlu1 %v13334_v62, %s10802_s30  ;;  %10531 = vpow2.f32 %v5591_v49  ;;  %v5621_v49 = vmul.f32 1.442695, %v5542_v9  ;;  %v5277_v9 = vsel %vm5157_vm14, %v5097_v61, %v5217_v28  ;;  %vm15759_vm14 = vmmov %vm15736_vm0 }
 0xba2   : > { %10533 = vpow2.f32 %v5617_v56  ;;  %v5219_v47 = vmul.f32 0.2, %v5099_v58  ;;  %vm5159_vm1 = vcmp.gt.f32.partialorder %v5099_v58, 0.0 }
 0xba3   : > { %v13909_v45 = vpop.xlane.xlu1 %5410  ;;  %10535 = vpow2.f32 %v5621_v49 }
 0xba4   : > { %v13879_v63 = vpop.xlane.xlu0 %5380  ;;  %v5279_v61 = vsel %vm5159_vm1, %v5099_v58, %v5219_v47  ;;  %vm15765_vm1 = vmmov %vm15736_vm0 }
 0xba5   : > { %v13959_v58 = vsel %vm15458_vm13, %v5279_v61, -1e+30 }
 0xba6   : > { %15749 = vst [vmem:[#allocation41_spill] sm:$0xff] %v13959_v58 }
 0xba7   : > { %v13895_v15 = vpop.eup %10523  ;;  %v13929_v8 = vpop.xlane.xlu1 %5413 }
 0xba8   : > { %v13888_v31 = vpop.xlane.xlu0 %5383  ;;  %v5748_v29 = vsel %vm15741_vm9, %v13895_v15, 0.0  ;;  %v13904_v48 = vpop.eup %10525  ;;  %vm15755_vm9 = vmmov %vm15736_vm0 }
 0xba9   : > { %v5706_v4 = vsel %vm15742_vm15, %v13904_v48, 0.0  ;;  %v13923_v11 = vpop.eup %10527  ;;  %vm15756_vm15 = vmmov %vm15736_vm0 }
 0xbaa   : > { %v13927_v32 = vpop.eup %10529 }
 0xbab   : > { %v13949_v49 = vpop.xlane.xlu1 %5416 }
 0xbac   : > { %v13900_v25 = vpop.permute.xlu0 %4933 }
 0xbaf   : > { %v13971_v61 = vpop.xlane.xlu1 %5419 }
 0xbb1   : > { %10155 = vrot.lane.b32.xlu0 %v13339_v46, %s10802_s30 }
 0xbb5   : > { %10160 = vrot.lane.b32.xlu0 %v13344_v41, %s10802_s30 }
 0xbc5   : > { %5704 = vadd.xlane.f32.xlu1 %v5703_v5  ;;  %v13919_v5 = vsel %vm15481_vm7, %v5262_v22, -1e+30  ;;  %v5541_v22 = vsub.f32 %v13500_v6, %v13871_v2  ;;  %v5098_v6 = vadd.f32 %v13647_v59, %v13749_v21 }
 0xbc6   : > { %15743 = vst [vmem:[#allocation70_spill] sm:$0xff] %v13919_v5  ;;  %v5460_v16 = vsel %vm15744_vm6, %v13919_v5, -inf  ;;  %v13939_v5 = vpop.eup %10531  ;;  %vm15761_vm6 = vmmov %vm15736_vm0 }
 0xbc7   : > { %v5619_v28 = vmul.f32 1.442695, %v5541_v22  ;;  %v13961_v47 = vpop.eup %10533  ;;  %v5218_v21 = vmul.f32 0.2, %v5098_v6  ;;  %vm5158_vm10 = vcmp.gt.f32.partialorder %v5098_v6, 0.0 }
 0xbc9   : > { %5749 = vadd.xlane.f32.xlu1 %v5748_v29  ;;  %v5083_v29 = vadd.f32 %v13639_v55, %v13731_v12  ;;  %v13945_v12 = vsel %vm15481_vm7, %v5277_v9, -1e+30  ;;  %10537 = vpow2.f32 %v5619_v28  ;;  %vm15751_vm7 = vmmov %vm15736_vm0 }
 0xbca   : > { %15747 = vst [vmem:[#allocation39_spill] sm:$0xff] %v13945_v12  ;;  %v5505_v14 = vsel %vm15748_vm4, %v13945_v12, -inf  ;;  %v5754_v12 = vsel %vm15752_vm2, %v13961_v47, 0.0  ;;  %vm15773_vm4 = vmmov %vm15765_vm1 }
 0xbcb   : > { %v13911_v39 = vpop.xlane.xlu0 %5386  ;;  %v5203_v2 = vmul.f32 0.2, %v5083_v29  ;;  %vm5143_vm8 = vcmp.gt.f32.partialorder %v5083_v29, 0.0  ;;  %vm15780_vm2 = vmmov %vm15765_vm1 }
 0xbcd   : > { %5707 = vadd.xlane.f32.xlu1 %v5706_v4  ;;  %v5712_v4 = vsel %vm15745_vm5, %v13923_v11, 0.0  ;;  %v5263_v9 = vsel %vm5143_vm8, %v5083_v29, %v5203_v2  ;;  %v5278_v29 = vsel %vm5158_vm10, %v5098_v6, %v5218_v21  ;;  %vm15775_vm10 = vmmov %vm15765_vm1 }
 0xbcf   : > { %v13921_v3 = vpop.xlane.xlu0 %5434 }
 0xbd1   : > { %5461 = vmax.xlane.f32.xlu1 %v5460_v16  ;;  %v5709_v16 = vsel %vm15746_vm11, %v13927_v32, 0.0  ;;  %vm15767_vm11 = vmmov %vm15736_vm0 }
 0xbd3   : > { %v13935_v56 = vpop.xlane.xlu0 %5479 }
 0xbd4   : > { %5713 = vadd.xlane.f32.xlu0 %v5712_v4  ;;  %v5715_v4 = vsel %vm15736_vm0, %v13939_v5, 0.0 }
 0xbd5   : > { %5710 = vadd.xlane.f32.xlu1 %v5709_v16  ;;  %v5511_v16 = vsel %vm15751_vm7, %v13959_v58, -inf  ;;  %v13985_v58 = vsel %vm15455_vm3, %v5278_v29, -1e+30 }
 0xbd6   : > { %15757 = vst [vmem:[#allocation46_spill] sm:$0xff] %v13985_v58  ;;  %v5508_v6 = vsel %vm15759_vm14, %v13985_v58, -inf  ;;  %v5528_v58 = vsub.f32 %v13523_v37, %v13839_v36  ;;  %v5084_v37 = vadd.f32 %v13639_v55, %v13739_v30  ;;  %v5545_v30 = vsub.f32 %v13556_v42, %v13909_v45  ;;  %vm15785_vm14 = vmmov %vm15765_vm1 }
 0xbd7   : > { %v13951_v35 = vpop.xlane.xlu0 %5437 }
 0xbd8   : > { %5716 = vadd.xlane.f32.xlu0 %v5715_v4  ;;  %v13967_v4 = vpop.eup %10535  ;;  %vm5144_vm5 = vcmp.gt.f32.partialorder %v5084_v37, 0.0  ;;  %v5627_v42 = vmul.f32 1.442695, %v5545_v30 }
 0xbd9   : > { %5506 = vmax.xlane.f32.xlu1 %v5505_v14  ;;  %v13975_v14 = vsel %vm15455_vm3, %v5263_v9, -1e+30  ;;  %v5760_v28 = vsel %vm15755_vm9, %v13967_v4, 0.0  ;;  %v13993_v21 = vpop.eup %10537  ;;  %vm15781_vm9 = vmmov %vm15765_vm1 }
 0xbda   : > { %15753 = vst [vmem:[#allocation36_spill] sm:$0xff] %v13975_v14 }
 0xbdb   : > { %v13963_v22 = vpop.xlane.xlu0 %5440 }
 0xbdc   : > { %15750 = vst [vmem:[#allocation74_spill] sm:$0xff] %v13963_v22  ;;  %5512 = vmax.xlane.f32.xlu0 %v5511_v16  ;;  %v5463_v16 = vsel %vm15756_vm15, %v13975_v14, -inf  ;;  %vm15784_vm15 = vmmov %vm15765_vm1 }
 0xbdd   : > { %5755 = vadd.xlane.f32.xlu1 %v5754_v12  ;;  %v13987_v12 = vpop.xlane.xlu1 %5422 }
 0xbdf   : > { %v13977_v2 = vpop.xlane.xlu0 %5443 }
 0xbe0   : > { %15754 = vst [vmem:[#allocation34_spill] sm:$0xff] %v13977_v2  ;;  %5761 = vadd.xlane.f32.xlu0 %v5760_v28  ;;  %v5757_v28 = vsel %vm15761_vm6, %v13993_v21, 0.0  ;;  %vm15786_vm6 = vmmov %vm15765_vm1 }
 0xbe1   : > { %5464 = vmax.xlane.f32.xlu1 %v5463_v16  ;;  %v4993_v16 = vpop.permute.xlu1 %4992 }
 0xbe2   : > { %v5101_v36 = vadd.f32 %v13647_v59, %v4993_v16 }
 0xbe3   : > { %v13989_v52 = vpop.xlane.xlu0 %5446 }
 0xbe4   : > { %15758 = vst [vmem:[#allocation77_spill] sm:$0xff] %v13989_v52  ;;  %vm5161_vm3 = vcmp.gt.f32.partialorder %v5101_v36, 0.0 }
 0xbe5   : > { %5509 = vmax.xlane.f32.xlu1 %v5508_v6  ;;  %v14001_v29 = vpop.xlane.xlu1 %5425 }
 0xbe7   : > { %v13995_v9 = vpop.xlane.xlu0 %5449 }
 0xbe8   : > { %15760 = vst [vmem:[#allocation15_spill] sm:$0xff] %v13995_v9 }
 0xbe9   : > { %5758 = vadd.xlane.f32.xlu1 %v5757_v28  ;;  %v14003_v41 = vpop.xlane.xlu1 %5428 }
 0xbeb   : > { %v13999_v34 = vpop.xlane.xlu0 %5452 }
 0xbec   : > { %15762 = vst [vmem:[#allocation16_spill] sm:$0xff] %v13999_v34 }
 0xbed   : > { %v14008_v6 = vpop.permute.xlu1 %4996 }
 0xbef   : > { %v10146_v14 = vpop.permute.xlu0 %10145 }
 0xbf0   : > { %v10148_v2 = vunpack.i.h.bf16 %v10146_v14  ;;  %v10147_v52 = vunpack.i.l.bf16 %v10146_v14 }
 0xbf2   : > { %v9918_v22 = vpack.c.bf16 %v10148_v2, %v10147_v52  ;;  %v5593_v52 = vmul.f32 1.442695, %v5528_v58 }
 0xbf4   : > { %9919 = vmatpush3.bf16.msra.mxu1 %v9918_v22  ;;  %v5529_v22 = vsub.f32 %v13537_v43, %v13851_v7  ;;  %10539 = vpow2.f32 %v5593_v52  ;;  %v5530_v43 = vsub.f32 %v13551_v54, %v13855_v27 }
 0xbf5   : > { %9920 = vmatprep.subr.bf16.mxu1 %v15542_v18 }
 0xbf6   : > { %10170 = vrot.lane.b32.xlu0 %v13354_v17, %s10802_s30  ;;  %v5595_v34 = vmul.f32 1.442695, %v5529_v22  ;;  %v5544_v17 = vsub.f32 %v13542_v0, %v13897_v20  ;;  %v5204_v22 = vmul.f32 0.2, %v5084_v37  ;;  %v5221_v0 = vmul.f32 0.2, %v5101_v36 }
 0xbf7   : > { %v5597_v20 = vmul.f32 1.442695, %v5530_v43 }
 0xbf8   : > { %10541 = vpow2.f32 %v5595_v34  ;;  %v5625_v58 = vmul.f32 1.442695, %v5544_v17  ;;  %v5085_v34 = vadd.f32 %v13639_v55, %v13747_v38  ;;  %v5543_v17 = vsub.f32 %v13528_v26, %v13884_v23 }
 0xbf9   : > { %v5100_v38 = vadd.f32 %v13647_v59, %v13781_v40  ;;  %v5264_v45 = vsel %vm5144_vm5, %v5084_v37, %v5204_v22 }
 0xbfa   : > { %10165 = vrot.lane.b32.xlu1 %v13349_v33, %s10802_s30  ;;  %10543 = vpow2.f32 %v5625_v58  ;;  %v5281_v58 = vsel %vm5161_vm3, %v5101_v36, %v5221_v0  ;;  %v5205_v43 = vmul.f32 0.2, %v5085_v34  ;;  %vm5145_vm0 = vcmp.gt.f32.partialorder %v5085_v34, 0.0  ;;  %vm15787_vm3 = vmmov %vm15765_vm1 }
 0xbfb   : > { %10545 = vpow2.f32 %v5597_v20  ;;  %v14061_v40 = vsel %vm15458_vm13, %v5264_v45, -1e+30  ;;  %v5220_v36 = vmul.f32 0.2, %v5100_v38  ;;  %vm5160_vm7 = vcmp.gt.f32.partialorder %v5100_v38, 0.0 }
 0xbfc   : > { %15772 = vst [vmem:[#allocation13_spill] sm:$0xff] %v14061_v40  ;;  %10547 = vpow2.f32 %v5627_v42  ;;  %v5265_v0 = vsel %vm5145_vm0, %v5085_v34, %v5205_v43  ;;  %v5466_v30 = vsel %vm15775_vm10, %v14061_v40, -inf  ;;  %vm15777_vm13 = vnez %v15776_v10  ;;  %vm15802_vm10 = vmmov %vm15780_vm2 }
 0xbfd   : > { %v14012_v28 = vpop.xlane.xlu1 %5431 }
 0xbfe   : > { %v14033_v7 = vpop.eup %10539 }
 0xbff   : > { %v5718_v54 = vsel %vm15765_vm1, %v14033_v7, 0.0 }
 0xc01   : > { %v14016_v14 = vpop.xlane.xlu1 %5482 }
 0xc02   : > { %v14045_v27 = vpop.eup %10541 }
 0xc03   : > { %v5721_v26 = vsel %vm15767_vm11, %v14045_v27, 0.0  ;;  %vm15796_vm11 = vmmov %vm15780_vm2 }
 0xc04   : > { %v14065_v22 = vpop.eup %10543 }
 0xc05   : > { %v14020_v2 = vpop.xlane.xlu1 %5485 }
 0xc09   : > { %v14022_v9 = vpop.xlane.xlu1 %5488 }
 0xc0d   : > { %v14026_v33 = vpop.xlane.xlu1 %5491 }
 0xc0e   : > { %15763 = vst [vmem:[#allocation51_spill] sm:$0xff] %v14026_v33  ;;  %v15769_v33 = vld [vmem:[#allocation30_spill] sm:$0xff] }
 0xc0f   : > { %vm15770_vm8 = vnez %v15769_v33 }
 0xc11   : > { %v14035_v52 = vpop.xlane.xlu1 %5494 }
 0xc12   : > { %15764 = vst [vmem:[#allocation11_spill] sm:$0xff] %v14035_v52  ;;  %v5623_v52 = vmul.f32 1.442695, %v5543_v17  ;;  %v14073_v17 = vsel %vm15777_vm13, %v5265_v0, -1e+30 }
 0xc13   : > { %15778 = vst [vmem:[#allocation8_spill] sm:$0xff] %v14073_v17  ;;  %v5469_v42 = vsel %vm15781_vm9, %v14073_v17, -inf  ;;  %v15789_v17 = vld [vmem:[#allocation57_spill] sm:$0xff]  ;;  %vm15808_vm9 = vmmov %vm15780_vm2 }
 0xc14   : > { %10549 = vpow2.f32 %v5623_v52  ;;  %v5766_v52 = vsel %vm15780_vm2, %v14065_v22, 0.0 }
 0xc15   : > { %v14047_v16 = vpop.xlane.xlu1 %5497  ;;  %5719 = vadd.xlane.f32.xlu0 %v5718_v54  ;;  %v5280_v54 = vsel %vm5160_vm7, %v5100_v38, %v5220_v36  ;;  %vm15801_vm7 = vmmov %vm15780_vm2 }
 0xc16   : > { %15766 = vst [vmem:[#allocation12_spill] sm:$0xff] %v14047_v16  ;;  %v14057_v16 = vsel %vm15770_vm8, %v5281_v58, -1e+30  ;;  %v14079_v58 = vpop.eup %10545  ;;  %v14085_v0 = vsel %vm15777_vm13, %v5280_v54, -1e+30  ;;  %vm15804_vm13 = vmmov 0  }
 0xc17   : > { %15771 = vst [vmem:[#allocation52_spill] sm:$0xff] %v14057_v16  ;;  %v5517_v37 = vsel %vm15773_vm4, %v14057_v16, -inf  ;;  %15782 = vst [vmem:[#allocation33_spill] sm:$0xff] %v14085_v0 }
 0xc18   : > { %vm15800_vm4 = vmmov %vm15780_vm2 }
 0xc19   : > { %v14053_v23 = vpop.xlane.xlu1 %5455  ;;  %5722 = vadd.xlane.f32.xlu0 %v5721_v26 }
 0xc1a   : > { %15768 = vst [vmem:[#allocation43_spill] sm:$0xff] %v14053_v23 }
 0xc1d   : > { %v14067_v20 = vpop.xlane.xlu1 %5500  ;;  %5518 = vmax.xlane.f32.xlu0 %v5517_v37  ;;  %v5724_v37 = vsel %vm15784_vm15, %v14079_v58, 0.0  ;;  %vm15809_vm15 = vmmov %vm15780_vm2 }
 0xc1e   : > { %15774 = vst [vmem:[#allocation35_spill] sm:$0xff] %v14067_v20  ;;  %5467 = vmax.xlane.f32.xlu1 %v5466_v30  ;;  %v14091_v30 = vpop.eup %10547 }
 0xc1f   : > { %v14095_v16 = vpop.eup %10549  ;;  %v5769_v54 = vsel %vm15786_vm6, %v14091_v30, 0.0  ;;  %vm15813_vm6 = vmmov %vm15780_vm2 }
 0xc20   : > { %v14075_v34 = vpop.xlane.xlu0 %5458 }
 0xc21   : > { %15779 = vst [vmem:[#allocation32_spill] sm:$0xff] %v14075_v34  ;;  %v10151_v43 = vpop.permute.xlu1 %10150  ;;  %5767 = vadd.xlane.f32.xlu0 %v5766_v52  ;;  %v5514_v52 = vsel %vm15785_vm14, %v14085_v0, -inf  ;;  %vm15811_vm14 = vmmov %vm15780_vm2 }
 0xc22   : > { %v10153_v45 = vunpack.i.h.bf16 %v10151_v43  ;;  %v10152_v26 = vunpack.i.l.bf16 %v10151_v43  ;;  %5470 = vmax.xlane.f32.xlu1 %v5469_v42  ;;  %v5763_v43 = vsel %vm15787_vm3, %v14095_v16, 0.0  ;;  %vm15814_vm3 = vmmov %vm15780_vm2 }
 0xc24   : > { %v9921_v38 = vpack.c.bf16 %v10153_v45, %v10152_v26  ;;  %v14087_v36 = vpop.xlane.xlu0 %5503 }
 0xc25   : > { %15783 = vst [vmem:[#allocation17_spill] sm:$0xff] %v14087_v36  ;;  %5725 = vadd.xlane.f32.xlu0 %v5724_v37 }
 0xc26   : > { %5515 = vmax.xlane.f32.xlu1 %v5514_v52  ;;  %9922 = vmatpush3.bf16.msra.mxu1 %v9921_v38 }
 0xc27   : > { %9923 = vmatprep.subr.bf16.mxu1 %v15542_v18 }
 0xc28   : > { %v14098_v10 = vpop.xlane.xlu0 %5752 }
 0xc29   : > { %5770 = vadd.xlane.f32.xlu0 %v5769_v54  ;;  %v15788_v54 = vld [vmem:[#allocation37_spill] sm:$0xff] }
 0xc2a   : > { %5764 = vadd.xlane.f32.xlu1 %v5763_v43  ;;  %v15790_v43 = vld [vmem:[#allocation59_spill] sm:$0xff] }
 0xc2c   : > { %v10156_v42 = vpop.permute.xlu0 %10155 }
 0xc2d   : > { %v10158_v45 = vunpack.i.h.bf16 %v10156_v42  ;;  %v10157_v26 = vunpack.i.l.bf16 %v10156_v42  ;;  %v5546_v42 = vsub.f32 %v15790_v43, %v13929_v8  ;;  %v5087_v8 = vadd.f32 %v13639_v55, %v13900_v25  ;;  %v15795_v25 = vld [vmem:[#allocation48_spill] sm:$0xff] }
 0xc2f   : > { %v9924_v37 = vpack.c.bf16 %v10158_v45, %v10157_v26  ;;  %v5629_v45 = vmul.f32 1.442695, %v5546_v42  ;;  %v15791_v26 = vld [vmem:[#allocation49_spill] sm:$0xff]  ;;  %vm5147_vm5 = vcmp.gt.f32.partialorder %v5087_v8, 0.0 }
 0xc30   : > { %v10161_v0 = vpop.permute.xlu0 %10160 }
 0xc31   : > { %v10163_v34 = vunpack.i.h.bf16 %v10161_v0  ;;  %v10162_v52 = vunpack.i.l.bf16 %v10161_v0  ;;  %9925 = vmatpush3.bf16.msra.mxu1 %v9924_v37  ;;  %v5536_v0 = vsub.f32 %v15791_v26, %v13888_v31  ;;  %v5086_v37 = vadd.f32 %v13639_v55, %v13757_v1 }
 0xc32   : > { %9926 = vmatprep.subr.bf16.mxu1 %v15542_v18  ;;  %10551 = vpow2.f32 %v5629_v45  ;;  %v5207_v45 = vmul.f32 0.2, %v5087_v8 }
 0xc33   : > { %v9927_v38 = vpack.c.bf16 %v10163_v34, %v10162_v52  ;;  %v5609_v34 = vmul.f32 1.442695, %v5536_v0  ;;  %v15792_v52 = vld [vmem:[#allocation58_spill] sm:$0xff]  ;;  %v5206_v36 = vmul.f32 0.2, %v5086_v37  ;;  %vm5146_vm1 = vcmp.gt.f32.partialorder %v5086_v37, 0.0 }
 0xc35   : > { %9928 = vmatpush3.bf16.msra.mxu1 %v9927_v38  ;;  %v5537_v38 = vsub.f32 %v15792_v52, %v13911_v39  ;;  %10553 = vpow2.f32 %v5609_v34  ;;  %v5266_v1 = vsel %vm5146_vm1, %v5086_v37, %v5206_v36  ;;  %v5102_v39 = vadd.f32 %v13647_v59, %v14008_v6  ;;  %vm15816_vm1 = vmmov %vm15780_vm2 }
 0xc36   : > { %9929 = vmatprep.subr.bf16.mxu1 %v15542_v18  ;;  %v14132_v55 = vsel %vm15770_vm8, %v5266_v1, -1e+30  ;;  %v5267_v36 = vsel %vm5147_vm5, %v5087_v8, %v5207_v45  ;;  %vm15797_vm8 = vmmov %vm15780_vm2  ;;  %v15799_v1 = vld [vmem:[#allocation56_spill] sm:$0xff] }
 0xc37   : > { %v5611_v31 = vmul.f32 1.442695, %v5537_v38  ;;  %vm5162_vm0 = vcmp.gt.f32.partialorder %v5102_v39, 0.0  ;;  %v5472_v33 = vsel %vm15797_vm8, %v14132_v55, -inf  ;;  %vm15817_vm5 = vmmov %vm15816_vm1 }
 0xc3b   : > { %10175 = vrot.lane.b32.xlu1 %v15788_v54, %s10802_s30 }
 0xc3f   : > { %6276 = vrot.lane.b32.xlu0 %v15789_v17, %s10802_s30  ;;  %v15793_v17 = vld [vmem:[#allocation38_spill] sm:$0xff] }
 0xc40   : > { %v5531_v23 = vsub.f32 %v15793_v17, %v13859_v53  ;;  %v14128_v53 = vpop.eup %10551 }
 0xc41   : > { %v5772_v59 = vsel %vm15796_vm11, %v14128_v53, 0.0  ;;  %vm15819_vm11 = vmmov %vm15816_vm1 }
 0xc42   : > { %v5599_v42 = vmul.f32 1.442695, %v5531_v23  ;;  %v5547_v23 = vsub.f32 %v15795_v25, %v13949_v49  ;;  %v14146_v49 = vsel %vm15702_vm12, %v5267_v36, -1e+30 }
 0xc44   : > { %v5631_v38 = vmul.f32 1.442695, %v5547_v23 }
 0xc52   : > { %v5705_v40 = vpop.xlane.xlu1 %5704 }
 0xc53   : > { %v5883_v20 = vmax.f32 %v5705_v40, 1e-30  ;;  %v15794_v40 = vld [vmem:[#allocation14_spill] sm:$0xff] }
 0xc54   : > { %v5532_v26 = vsub.f32 %v15794_v40, %v13861_v60  ;;  %v14138_v60 = vpop.eup %10553 }
 0xc55   : > { %10555 = vrcp.f32 %v5883_v20  ;;  %v5222_v20 = vmul.f32 0.2, %v5102_v39  ;;  %v5742_v40 = vsel %vm15800_vm4, %v14138_v60, 0.0 }
 0xc56   : > { %v14122_v43 = vpop.xlane.xlu1 %5749  ;;  %10557 = vpow2.f32 %v5611_v31  ;;  %v5601_v37 = vmul.f32 1.442695, %v5532_v26 }
 0xc57   : > { %10559 = vpow2.f32 %v5599_v42  ;;  %v5282_v31 = vsel %vm5162_vm0, %v5102_v39, %v5222_v20  ;;  %v5533_v42 = vsub.f32 %v15799_v1, %v13865_v57  ;;  %v15803_v57 = vmov 0.0   ;;  %v15805_v20 = vld [vmem:[#allocation40_spill] sm:$0xff]  ;;  %v15807_v1 = vld [vmem:[#allocation61_spill] sm:$0xff]  ;;  %vm15820_vm0 = vmmov %vm15816_vm1 }
 0xc58   : > { %v14160_v39 = vsel %vm15702_vm12, %v5282_v31, -1e+30  ;;  %v5548_v36 = vsub.f32 %v15805_v20, %v13971_v61  ;;  %vm15806_vm12 = vmmov %vm15780_vm2 }
 0xc59   : > { %v5603_v23 = vmul.f32 1.442695, %v5533_v42  ;;  %v5520_v52 = vsel %vm15806_vm12, %v14160_v39, -inf  ;;  %v5534_v42 = vsub.f32 %v15807_v1, %v13873_v44  ;;  %vm15821_vm8 = vmmov %vm15820_vm0 }
 0xc5a   : > { %v5708_v17 = vpop.xlane.xlu1 %5707  ;;  %v5633_v61 = vmul.f32 1.442695, %v5548_v36  ;;  %vm15822_vm4 = vmmov %vm15820_vm0 }
 0xc5b   : > { %v5884_v0 = vmax.f32 %v5708_v17, 1e-30  ;;  %vm15827_vm12 = vmmov %vm15820_vm0 }
 0xc5d   : > { %10561 = vrcp.f32 %v5884_v0  ;;  %v5475_v0 = vsel %vm15802_vm10, %v14146_v49, -inf  ;;  %vm15825_vm10 = vmmov %vm15820_vm0 }
 0xc5e   : > { %v14140_v6 = vpop.xlane.xlu1 %5461  ;;  %5773 = vadd.xlane.f32.xlu0 %v5772_v59  ;;  %10563 = vpow2.f32 %v5601_v37 }
 0xc5f   : > { %v10556_v34 = vpop.eup %10555  ;;  %5473 = vmax.xlane.f32.xlu1 %v5472_v33  ;;  %10565 = vpow2.f32 %v5631_v38 }
 0xc60   : > { %v5944_v8 = vmul.f32 %v10556_v34, %v13886_v19  ;;  %v14153_v26 = vpop.eup %10557 }
 0xc61   : > { %v5714_v45 = vpop.xlane.xlu0 %5713  ;;  %v5745_v59 = vsel %vm15780_vm2, %v14153_v26, 0.0  ;;  %v14168_v33 = vpop.eup %10559  ;;  %vm15826_vm2 = vmmov %vm15820_vm0 }
 0xc62   : > { %9318 = vmatmul.mubr.msk.f32.vlgmr.msra.gmra.mrb[124].mxu0 %vm15801_vm7, %v5944_v8  ;;  %v5711_v17 = vpop.xlane.xlu1 %5710  ;;  %5743 = vadd.xlane.f32.xlu0 %v5742_v40  ;;  %v5886_v25 = vmax.f32 %v5714_v45, 1e-30  ;;  %v5727_v40 = vsel %vm15809_vm15, %v14168_v33, 0.0  ;;  %vm15824_vm7 = vmmov %vm15820_vm0 }
 0xc63   : > { %v5885_v19 = vmax.f32 %v5711_v17, 1e-30  ;;  %5476 = vmax.xlane.f32.xlu1 %v5475_v0  ;;  %9320 = vmatprep.mubr.msk.f32.mxu0 %vm15804_vm13, %v15803_v57  ;;  %v15810_v0 = vld [vmem:[#allocation42_spill] sm:$0xff]  ;;  %vm15831_vm15 = vmmov %vm15820_vm0 }
 0xc65   : > { %10567 = vrcp.f32 %v5885_v19  ;;  %v5717_v37 = vpop.xlane.xlu0 %5716 }
 0xc66   : > { %v14170_v34 = vpop.xlane.xlu1 %5506  ;;  %5746 = vadd.xlane.f32.xlu0 %v5745_v59  ;;  %10569 = vrcp.f32 %v5886_v25  ;;  %v5887_v38 = vmax.f32 %v5717_v37, 1e-30  ;;  %v5549_v25 = vsub.f32 %v15810_v0, %v13987_v12 }
 0xc67   : > { %v10562_v8 = vpop.eup %10561  ;;  %5521 = vmax.xlane.f32.xlu1 %v5520_v52  ;;  %10571 = vpow2.f32 %v5603_v23 }
 0xc68   : > { %v5946_v31 = vmul.f32 %v10562_v8, %v13904_v48  ;;  %v14182_v17 = vpop.eup %10563  ;;  %10573 = vrcp.f32 %v5887_v38  ;;  %v5605_v48 = vmul.f32 1.442695, %v5534_v42  ;;  %v5635_v52 = vmul.f32 1.442695, %v5549_v25  ;;  %v15812_v8 = vld [vmem:[#allocation63_spill] sm:$0xff] }
 0xc69   : > { %10575 = vpow2.f32 %v5633_v61  ;;  %v14188_v44 = vpop.eup %10565  ;;  %v14190_v19 = vpop.xlane.xlu0 %5512  ;;  %v5730_v20 = vsel %vm15811_vm14, %v14182_v17, 0.0  ;;  %v5535_v38 = vsub.f32 %v15812_v8, %v13879_v63  ;;  %vm15832_vm14 = vmmov %vm15820_vm0 }
 0xc6a   : > { %9321 = vmatmul.mubr.msk.f32.gmra.mrb[126].mxu0 %vm15808_vm9, %v5946_v31  ;;  %v14178_v45 = vpop.xlane.xlu1 %5755  ;;  %10577 = vpow2.f32 %v5605_v48  ;;  %v5775_v31 = vsel %vm15814_vm3, %v14188_v44, 0.0  ;;  %vm15829_vm9 = vmmov %vm15820_vm0 }
 0xc6b   : > { %5728 = vadd.xlane.f32.xlu1 %v5727_v40  ;;  %9323 = vmatprep.mubr.msk.f32.mxu0 %vm15804_vm13, %v15803_v57  ;;  %10579 = vpow2.f32 %v5635_v52  ;;  %v5607_v48 = vmul.f32 1.442695, %v5535_v38  ;;  %vm15835_vm3 = vmmov %vm15820_vm0 }
 0xc6d   : > { %v14210_v42 = vpop.xlane.xlu0 %5761  ;;  %10581 = vpow2.f32 %v5607_v48 }
 0xc6e   : > { %v14192_v23 = vpop.xlane.xlu1 %5464 }
 0xc6f   : > { %v10568_v36 = vpop.eup %10567  ;;  %5731 = vadd.xlane.f32.xlu1 %v5730_v20 }
 0xc70   : > { %v5948_v37 = vmul.f32 %v10568_v36, %v13927_v32  ;;  %v10570_v59 = vpop.eup %10569  ;;  %v15815_v32 = vld [vmem:[#allocation65_spill] sm:$0xff] }
 0xc71   : > { %v14204_v61 = vpop.eup %10571  ;;  %v5550_v1 = vsub.f32 %v15815_v32, %v14001_v29  ;;  %v5950_v63 = vmul.f32 %v10570_v59, %v13923_v11  ;;  %v15818_v36 = vld [vmem:[#allocation9_spill] sm:$0xff]  ;;  %v10171_v59 = vpop.permute.xlu0 %10170 }
 0xc72   : > { %9324 = vmatmul.mubr.msk.f32.gmra.mrb[128].mxu0 %vm15813_vm6, %v5948_v37  ;;  %v14200_v12 = vpop.xlane.xlu1 %5509  ;;  %v10574_v40 = vpop.eup %10573  ;;  %v5733_v25 = vsel %vm15817_vm5, %v14204_v61, 0.0  ;;  %v5551_v11 = vsub.f32 %v15818_v36, %v14003_v41  ;;  %vm15834_vm6 = vmmov %vm15820_vm0 }
 0xc73   : > { %5776 = vadd.xlane.f32.xlu1 %v5775_v31  ;;  %9326 = vmatprep.mubr.msk.f32.mxu0 %vm15804_vm13, %v15803_v57  ;;  %v14218_v20 = vpop.eup %10575  ;;  %v5637_v29 = vmul.f32 1.442695, %v5550_v1  ;;  %v5952_v37 = vmul.f32 %v10574_v40, %v13939_v5  ;;  %v5552_v5 = vsub.f32 %v13753_v50, %v14012_v28  ;;  %v10173_v1 = vunpack.i.h.bf16 %v10171_v59  ;;  %v15823_v50 = vld [vmem:[#allocation68_spill] sm:$0xff]  ;;  %vm15837_vm5 = vmmov %vm15820_vm0 }
 0xc74   : > { %v5778_v8 = vsel %vm15820_vm0, %v14218_v20, 0.0  ;;  %v14228_v38 = vpop.eup %10577  ;;  %v5639_v41 = vmul.f32 1.442695, %v5551_v11  ;;  %v5568_v28 = vsub.f32 %v15823_v50, %v13935_v56 }
 0xc75   : > { %10583 = vpow2.f32 %v5637_v29  ;;  %v5736_v48 = vsel %vm15821_vm8, %v14228_v38, 0.0  ;;  %v5641_v29 = vmul.f32 1.442695, %v5552_v5  ;;  %vm15839_vm8 = vmmov %vm15820_vm0 }
 0xc76   : > { %v14213_v0 = vpop.xlane.xlu1 %5758  ;;  %9327 = vmatmul.mubr.msk.f32.gmra.mrb[130].mxu0 %vm15816_vm1, %v5950_v63  ;;  %v10172_v63 = vunpack.i.l.bf16 %v10171_v59  ;;  %10585 = vpow2.f32 %v5639_v41  ;;  %vm15836_vm1 = vmmov %vm15820_vm0 }
 0xc77   : > { %5734 = vadd.xlane.f32.xlu1 %v5733_v25  ;;  %9329 = vmatprep.mubr.msk.f32.mxu0 %vm15804_vm13, %v15803_v57  ;;  %v14238_v25 = vpop.eup %10579  ;;  %10587 = vpow2.f32 %v5641_v29 }
 0xc78   : > { %v9933_v36 = vpack.c.bf16 %v10173_v1, %v10172_v63  ;;  %v5781_v11 = vsel %vm15822_vm4, %v14238_v25, 0.0  ;;  %vm15840_vm4 = vmmov %vm15820_vm0 }
 0xc7a   : > { %v10166_v52 = vpop.permute.xlu1 %10165  ;;  %9330 = vmatmul.mubr.msk.f32.gmra.mrb[132].mxu0 %vm15819_vm11, %v5952_v37  ;;  %v14243_v37 = vpop.eup %10581  ;;  %vm15838_vm11 = vmmov %vm15820_vm0 }
 0xc7b   : > { %v10168_v31 = vunpack.i.h.bf16 %v10166_v52  ;;  %v10167_v32 = vunpack.i.l.bf16 %v10166_v52  ;;  %5779 = vadd.xlane.f32.xlu1 %v5778_v8  ;;  %9332 = vmatprep.mubr.msk.f32.mxu0 %vm15804_vm13, %v15803_v57  ;;  %v5739_v52 = vsel %vm15824_vm7, %v14243_v37, 0.0  ;;  %v5673_v8 = vmul.f32 1.442695, %v5568_v28  ;;  %vm15841_vm7 = vmmov %vm15820_vm0 }
 0xc7c   : > { %10180 = vrot.lane.b32.xlu0 %v13329_v13, %s10801_s29 }
 0xc7d   : > { %v9930_v40 = vpack.c.bf16 %v10168_v31, %v10167_v32  ;;  %10589 = vpow2.f32 %v5673_v8 }
 0xc7f   : > { %5737 = vadd.xlane.f32.xlu1 %v5736_v48  ;;  %9931 = vmatpush3.bf16.msra.mxu1 %v9930_v40  ;;  %v14248_v59 = vpop.eup %10583 }
 0xc80   : > { %9932 = vmatprep.subr.bf16.mxu1 %v15542_v18  ;;  %v5784_v31 = vsel %vm15825_vm10, %v14248_v59, 0.0  ;;  %v14254_v32 = vpop.eup %10585  ;;  %vm15842_vm10 = vmmov %vm15820_vm0 }
 0xc81   : > { %v5787_v41 = vsel %vm15826_vm2, %v14254_v32, 0.0  ;;  %v14258_v5 = vpop.eup %10587  ;;  %vm15843_vm2 = vmmov %vm15820_vm0 }
 0xc82   : > { %v5790_v56 = vsel %vm15827_vm12, %v14258_v5, 0.0  ;;  %vm15845_vm12 = vmmov %vm15820_vm0 }
 0xc83   : > { %5782 = vadd.xlane.f32.xlu1 %v5781_v11  ;;  %9934 = vmatpush3.bf16.msra.mxu1 %v9933_v36 }
 0xc84   : > { %9935 = vmatprep.subr.bf16.mxu1 %v15542_v18 }
 0xc87   : > { %5740 = vadd.xlane.f32.xlu1 %v5739_v52  ;;  %v14262_v1 = vpop.eup %10589 }
 0xc88   : > { %15828 = vst [vmem:[#allocation18_spill] sm:$0xff] %v14262_v1  ;;  %v5838_v63 = vsel %vm15829_vm9, %v14262_v1, 0.0  ;;  %vm15846_vm9 = vmmov %vm15820_vm0 }
 0xc8b   : > { %5785 = vadd.xlane.f32.xlu1 %v5784_v31 }
 0xc8f   : > { %5788 = vadd.xlane.f32.xlu1 %v5787_v41  ;;  %v15830_v41 = vld [vmem:[#allocation10_spill] sm:$0xff] }
 0xc93   : > { %5791 = vadd.xlane.f32.xlu1 %v5790_v56  ;;  %v5553_v56 = vsub.f32 %v15830_v41, %v13921_v3  ;;  %v5899_v3 = vmax.f32 %v14098_v10, 1e-30  ;;  %v5900_v41 = vmax.f32 %v14178_v45, 1e-30  ;;  %v5901_v10 = vmax.f32 %v14213_v0, 1e-30 }
 0xc9b   : > { %5839 = vadd.xlane.f32.xlu0 %v5838_v63 }
 0xca2   : > { %v5720_v40 = vpop.xlane.xlu0 %5719 }
 0xca3   : > { %v5888_v48 = vmax.f32 %v5720_v40, 1e-30 }
 0xca4   : > { %10185 = vrot.lane.b32.xlu1 %v13329_v13, %s10803_s16  ;;  %v5898_v13 = vmax.f32 %v14122_v43, 1e-30 }
 0xca5   : > { %10591 = vrcp.f32 %v5888_v48 }
 0xca6   : > { %v5723_v29 = vpop.xlane.xlu0 %5722 }
 0xca7   : > { %v5889_v36 = vmax.f32 %v5723_v29, 1e-30 }
 0xca9   : > { %10593 = vrcp.f32 %v5889_v36  ;;  %v5643_v36 = vmul.f32 1.442695, %v5553_v56 }
 0xcaa   : > { %v14268_v11 = vpop.xlane.xlu0 %5518 }
 0xcab   : > { %v14270_v50 = vpop.xlane.xlu1 %5467 }
 0xcae   : > { %v14272_v28 = vpop.xlane.xlu0 %5767 }
 0xcaf   : > { %v10592_v52 = vpop.eup %10591  ;;  %v14274_v8 = vpop.xlane.xlu1 %5470 }
 0xcb0   : > { %v5954_v31 = vmul.f32 %v10592_v52, %v14033_v7  ;;  %v15833_v52 = vld [vmem:[#allocation47_spill] sm:$0xff] }
 0xcb1   : > { %10190 = vrot.lane.b32.xlu0 %v13334_v62, %s10801_s29 }
 0xcb2   : > { %9333 = vmatmul.mubr.msk.f32.gmra.mrb[134].mxu0 %vm15831_vm15, %v5954_v31  ;;  %v5726_v63 = vpop.xlane.xlu0 %5725  ;;  %v5569_v31 = vsub.f32 %v15833_v52, %v14016_v14  ;;  %v5902_v14 = vmax.f32 %v14210_v42, 1e-30  ;;  %vm15847_vm15 = vmmov %vm15820_vm0 }
 0xcb3   : > { %v10594_v40 = vpop.eup %10593  ;;  %v5890_v48 = vmax.f32 %v5726_v63, 1e-30  ;;  %v14283_v29 = vpop.xlane.xlu1 %5515  ;;  %9335 = vmatprep.mubr.msk.f32.mxu0 %vm15804_vm13, %v15803_v57 }
 0xcb4   : > { %v5956_v7 = vmul.f32 %v10594_v40, %v14045_v27  ;;  %v5675_v40 = vmul.f32 1.442695, %v5569_v31  ;;  %v5904_v31 = vmax.f32 %v14272_v28, 1e-30 }
 0xcb5   : > { %10595 = vrcp.f32 %v5890_v48 }
 0xcb6   : > { %10597 = vrcp.f32 %v5898_v13  ;;  %9336 = vmatmul.mubr.msk.f32.gmra.mrb[136].mxu0 %vm15832_vm14, %v5956_v7  ;;  %v5771_v48 = vpop.xlane.xlu0 %5770  ;;  %vm15848_vm14 = vmmov %vm15820_vm0 }
 0xcb7   : > { %v5765_v43 = vpop.xlane.xlu1 %5764  ;;  %9338 = vmatprep.mubr.msk.f32.mxu0 %vm15804_vm13, %v15803_v57  ;;  %10599 = vpow2.f32 %v5643_v36 }
 0xcb8   : > { %10601 = vrcp.f32 %v5899_v3 }
 0xcb9   : > { %10603 = vrcp.f32 %v5900_v41 }
 0xcba   : > { %10605 = vpow2.f32 %v5675_v40  ;;  %v6277_v52 = vpop.permute.xlu0 %6276 }
 0xcbb   : > { %v10176_v63 = vpop.permute.xlu1 %10175  ;;  %10607 = vrcp.f32 %v5901_v10 }
 0xcbc   : > { %v10178_v27 = vunpack.i.h.bf16 %v10176_v63  ;;  %v10177_v56 = vunpack.i.l.bf16 %v10176_v63  ;;  %10609 = vrcp.f32 %v5902_v14 }
 0xcbe   : > { %v9936_v13 = vpack.c.bf16 %v10178_v27, %v10177_v56  ;;  %v5905_v27 = vmax.f32 %v5771_v48, 1e-30 }
 0xcbf   : > { %v10596_v7 = vpop.eup %10595 }
 0xcc0   : > { %v10598_v1 = vpop.eup %10597  ;;  %9937 = vmatpush3.bf16.msra.mxu1 %v9936_v13  ;;  %v5958_v36 = vmul.f32 %v10596_v7, %v14079_v58  ;;  %v5903_v58 = vmax.f32 %v5765_v43, 1e-30 }
 0xcc1   : > { %9390 = vmatprep.subr.mxu1 %v15803_v57  ;;  %v14300_v45 = vpop.eup %10599  ;;  %v5974_v3 = vmul.f32 %v10598_v1, %v13895_v15 }
 0xcc2   : > { %9339 = vmatmul.mubr.msk.f32.gmra.mrb[138].mxu0 %vm15834_vm6, %v5958_v36  ;;  %v10602_v0 = vpop.eup %10601  ;;  %v5793_v42 = vsel %vm15836_vm1, %v14300_v45, 0.0  ;;  %10611 = vrcp.f32 %v5903_v58  ;;  %vm15849_vm6 = vmmov %vm15820_vm0 }
 0xcc3   : > { %9341 = vmatprep.mubr.msk.f32.mxu0 %vm15804_vm13, %v15803_v57  ;;  %v5976_v15 = vmul.f32 %v10602_v0, %v13849_v24  ;;  %v10604_v1 = vpop.eup %10603  ;;  %10613 = vrcp.f32 %v5904_v31  ;;  %vm15851_vm1 = vmmov %vm15820_vm0 }
 0xcc4   : > { %9391 = vmatpush3.msra.mxu1 %v6277_v52  ;;  %v14316_v41 = vpop.eup %10605  ;;  %v5978_v43 = vmul.f32 %v10604_v1, %v13961_v47  ;;  %10615 = vrcp.f32 %v5905_v27 }
 0xcc5   : > { %9393 = vmatmul.mubr.msk.f32.vlgmr.msra.gmra.mrb[180].mxu1 %vm15835_vm3, %v5974_v3  ;;  %9959 = vmatprep.subr.bf16.mxu1 %v15542_v18  ;;  %v10608_v63 = vpop.eup %10607  ;;  %v5841_v24 = vsel %vm15820_vm0, %v14316_v41, 0.0  ;;  %vm15850_vm3 = vmmov %vm15820_vm0 }
 0xcc6   : > { %9395 = vmatprep.mubr.msk.f32.mxu1 %vm15804_vm13, %v15803_v57  ;;  %v5980_v28 = vmul.f32 %v10608_v63, %v13993_v21  ;;  %v10610_v56 = vpop.eup %10609 }
 0xcc7   : > { %v5982_v47 = vmul.f32 %v10610_v56, %v13967_v4 }
 0xcc8   : > { %5794 = vadd.xlane.f32.xlu1 %v5793_v42 }
 0xcc9   : > { %9396 = vmatmul.mubr.msk.f32.gmra.mrb[182].mxu1 %vm15837_vm5, %v5976_v15  ;;  %vm15852_vm5 = vmmov %vm15820_vm0 }
 0xcca   : > { %9398 = vmatprep.mubr.msk.f32.mxu1 %vm15804_vm13, %v15803_v57 }
 0xccc   : > { %v10612_v40 = vpop.eup %10611 }
 0xccd   : > { %9399 = vmatmul.mubr.msk.f32.gmra.mrb[184].mxu1 %vm15838_vm11, %v5978_v43  ;;  %v5984_v48 = vmul.f32 %v10612_v40, %v14095_v16  ;;  %v10614_v10 = vpop.eup %10613  ;;  %vm15856_vm11 = vmmov %vm15820_vm0 }
 0xcce   : > { %9401 = vmatprep.mubr.msk.f32.mxu1 %vm15804_vm13, %v15803_v57  ;;  %v5986_v21 = vmul.f32 %v10614_v10, %v14065_v22  ;;  %v10616_v4 = vpop.eup %10615 }
 0xccf   : > { %v5988_v13 = vmul.f32 %v10616_v4, %v14091_v30  ;;  %v5570_v30 = vsub.f32 %v13776_v51, %v14020_v2 }
 0xcd0   : > { %5842 = vadd.xlane.f32.xlu0 %v5841_v24 }
 0xcd1   : > { %9402 = vmatmul.mubr.msk.f32.gmra.mrb[186].mxu1 %vm15839_vm8, %v5980_v28  ;;  %v5677_v0 = vmul.f32 1.442695, %v5570_v30  ;;  %vm15858_vm8 = vmmov %vm15820_vm0 }
 0xcd2   : > { %9404 = vmatprep.mubr.msk.f32.mxu1 %vm15804_vm13, %v15803_v57 }
 0xcd5   : > { %9405 = vmatmul.mubr.msk.f32.gmra.mrb[188].mxu1 %vm15840_vm4, %v5982_v47  ;;  %vm15859_vm4 = vmmov %vm15820_vm0 }
 0xcd6   : > { %9407 = vmatprep.mubr.msk.f32.mxu1 %vm15804_vm13, %v15803_v57 }
 0xcd9   : > { %10195 = vrot.lane.b32.xlu1 %v13334_v62, %s10803_s16  ;;  %9408 = vmatmul.mubr.msk.f32.gmra.mrb[190].mxu1 %vm15841_vm7, %v5984_v48  ;;  %v15844_v62 = vld [vmem:[#allocation71_spill] sm:$0xff]  ;;  %vm15860_vm7 = vmmov %vm15820_vm0 }
 0xcda   : > { %9410 = vmatprep.mubr.msk.f32.mxu1 %vm15804_vm13, %v15803_v57  ;;  %v5554_v16 = vsub.f32 %v15844_v62, %v13951_v35 }
 0xcdc   : > { %v5645_v22 = vmul.f32 1.442695, %v5554_v16 }
 0xcdd   : > { %9411 = vmatmul.mubr.msk.f32.gmra.mrb[192].mxu1 %vm15842_vm10, %v5986_v21  ;;  %vm15861_vm10 = vmmov %vm15820_vm0 }
 0xcde   : > { %9413 = vmatprep.mubr.msk.f32.mxu1 %vm15804_vm13, %v15803_v57 }
 0xce1   : > { %9414 = vmatmul.mubr.msk.f32.gmra.mrb[194].mxu1 %vm15843_vm2, %v5988_v13  ;;  %vm15862_vm2 = vmmov %vm15820_vm0 }
 0xce2   : > { %9416 = vmatprep.mubr.msk.f32.mxu1 %vm15804_vm13, %v15803_v57 }
 0xce6   : > { %10200 = vrot.lane.b32.xlu0 %v13339_v46, %s10801_s29 }
 0xceb   : > { %v5774_v7 = vpop.xlane.xlu0 %5773 }
 0xcec   : > { %v5906_v36 = vmax.f32 %v5774_v7, 1e-30  ;;  %v14350_v14 = vpop.xlane.xlu1 %5473 }
 0xcee   : > { %10617 = vrcp.f32 %v5906_v36 }
 0xcef   : > { %10619 = vpow2.f32 %v5645_v22  ;;  %v14354_v3 = vpop.xlane.xlu0 %5743 }
 0xcf0   : > { %v14356_v52 = vpop.xlane.xlu1 %5476  ;;  %10621 = vpow2.f32 %v5677_v0 }
 0xcf3   : > { %v14358_v58 = vpop.xlane.xlu0 %5746 }
 0xcf4   : > { %v14360_v42 = vpop.xlane.xlu1 %5521 }
 0xcf7   : > { %v10181_v35 = vpop.permute.xlu0 %10180 }
 0xcf8   : > { %v10618_v15 = vpop.eup %10617  ;;  %v10183_v1 = vunpack.i.h.bf16 %v10181_v35  ;;  %v10182_v31 = vunpack.i.l.bf16 %v10181_v35  ;;  %v5729_v43 = vpop.xlane.xlu1 %5728 }
 0xcf9   : > { %v14362_v63 = vpop.eup %10619  ;;  %v5891_v27 = vmax.f32 %v5729_v43, 1e-30  ;;  %v5990_v51 = vmul.f32 %v10618_v15, %v14128_v53 }
 0xcfa   : > { %v9939_v2 = vpack.c.bf16 %v10183_v1, %v10182_v31  ;;  %v5796_v28 = vsel %vm15846_vm9, %v14362_v63, 0.0  ;;  %v14371_v40 = vpop.eup %10621  ;;  %vm15864_vm9 = vmmov %vm15820_vm0 }
 0xcfb   : > { %10623 = vrcp.f32 %v5891_v27  ;;  %9417 = vmatmul.mubr.msk.f32.gmra.mrb[196].mxu1 %vm15845_vm12, %v5990_v51  ;;  %v5844_v10 = vsel %vm15847_vm15, %v14371_v40, 0.0  ;;  %vm15863_vm12 = vmmov %vm15820_vm0 }
 0xcfc   : > { %v5732_v24 = vpop.xlane.xlu1 %5731  ;;  %9940 = vmatpush3.bf16.msra.mxu0 %v9939_v2  ;;  %9419 = vmatprep.mubr.msk.f32.mxu1 %vm15804_vm13, %v15803_v57  ;;  %vm15866_vm15 = vmmov %vm15820_vm0 }
 0xcfd   : > { %v5892_v56 = vmax.f32 %v5732_v24, 1e-30  ;;  %5797 = vadd.xlane.f32.xlu1 %v5796_v28  ;;  %9941 = vmatprep.subr.bf16.mxu0 %v15542_v18  ;;  %v15853_v28 = vld [vmem:[#allocation55_spill] sm:$0xff] }
 0xcff   : > { %10625 = vrcp.f32 %v5892_v56  ;;  %v15854_v56 = vld [vmem:[#allocation74_spill] sm:$0xff] }
 0xd00   : > { %v5777_v47 = vpop.xlane.xlu1 %5776 }
 0xd01   : > { %v5907_v53 = vmax.f32 %v5777_v47, 1e-30 }
 0xd03   : > { %10627 = vrcp.f32 %v5907_v53 }
 0xd04   : > { %v5735_v48 = vpop.xlane.xlu1 %5734 }
 0xd05   : > { %v10624_v21 = vpop.eup %10623  ;;  %v5893_v4 = vmax.f32 %v5735_v48, 1e-30  ;;  %5845 = vadd.xlane.f32.xlu0 %v5844_v10 }
 0xd06   : > { %v5960_v13 = vmul.f32 %v10624_v21, %v14168_v33 }
 0xd07   : > { %10629 = vrcp.f32 %v5893_v4 }
 0xd08   : > { %v5780_v62 = vpop.xlane.xlu1 %5779  ;;  %9342 = vmatmul.mubr.msk.f32.gmra.mrb[140].mxu0 %vm15848_vm14, %v5960_v13  ;;  %vm15876_vm14 = vmmov %vm15820_vm0 }
 0xd09   : > { %v10626_v16 = vpop.eup %10625  ;;  %v5908_v22 = vmax.f32 %v5780_v62, 1e-30  ;;  %9344 = vmatprep.mubr.msk.f32.mxu0 %vm15804_vm13, %v15803_v57 }
 0xd0a   : > { %v5962_v7 = vmul.f32 %v10626_v16, %v14182_v17 }
 0xd0b   : > { %10631 = vrcp.f32 %v5908_v22  ;;  %v15857_v22 = vld [vmem:[#allocation64_spill] sm:$0xff] }
 0xd0c   : > { %v5738_v36 = vpop.xlane.xlu1 %5737  ;;  %9345 = vmatmul.mubr.msk.f32.gmra.mrb[142].mxu0 %vm15849_vm6, %v5962_v7  ;;  %v5571_v7 = vsub.f32 %v15857_v22, %v14022_v9  ;;  %v15875_v22 = vld [vmem:[#allocation50_spill] sm:$0xff]  ;;  %vm15877_vm6 = vmmov %vm15820_vm0 }
 0xd0d   : > { %v10628_v30 = vpop.eup %10627  ;;  %v5894_v0 = vmax.f32 %v5738_v36, 1e-30  ;;  %9347 = vmatprep.mubr.msk.f32.mxu0 %vm15804_vm13, %v15803_v57 }
 0xd0e   : > { %10205 = vrot.lane.b32.xlu1 %v13339_v46, %s10803_s16  ;;  %v5992_v33 = vmul.f32 %v10628_v30, %v14188_v44  ;;  %v5896_v46 = vmax.f32 %v14354_v3, 1e-30 }
 0xd0f   : > { %10633 = vrcp.f32 %v5894_v0 }
 0xd10   : > { %v5783_v35 = vpop.xlane.xlu1 %5782  ;;  %9420 = vmatmul.mubr.msk.f32.gmra.mrb[198].mxu1 %vm15850_vm3, %v5992_v33  ;;  %vm15886_vm3 = vmmov %vm15820_vm0 }
 0xd11   : > { %v10630_v15 = vpop.eup %10629  ;;  %v5909_v17 = vmax.f32 %v5783_v35, 1e-30  ;;  %9422 = vmatprep.mubr.msk.f32.mxu1 %vm15804_vm13, %v15803_v57 }
 0xd12   : > { %v5964_v1 = vmul.f32 %v10630_v15, %v14204_v61  ;;  %v5897_v61 = vmax.f32 %v14358_v58, 1e-30 }
 0xd13   : > { %10635 = vrcp.f32 %v5909_v17  ;;  %v5679_v17 = vmul.f32 1.442695, %v5571_v7 }
 0xd14   : > { %v5741_v31 = vpop.xlane.xlu1 %5740  ;;  %9348 = vmatmul.mubr.msk.f32.gmra.mrb[144].mxu0 %vm15851_vm1, %v5964_v1  ;;  %vm15887_vm1 = vmmov %vm15820_vm0 }
 0xd15   : > { %v10632_v43 = vpop.eup %10631  ;;  %v5895_v27 = vmax.f32 %v5741_v31, 1e-30  ;;  %9350 = vmatprep.mubr.msk.f32.mxu0 %vm15804_vm13, %v15803_v57 }
 0xd16   : > { %v5994_v44 = vmul.f32 %v10632_v43, %v14218_v20  ;;  %v15855_v20 = vld [vmem:[#allocation60_spill] sm:$0xff] }
 0xd17   : > { %10637 = vrcp.f32 %v5895_v27  ;;  %v5555_v47 = vsub.f32 %v15855_v20, %v15854_v56 }
 0xd18   : > { %v5786_v51 = vpop.xlane.xlu1 %5785  ;;  %9423 = vmatmul.mubr.msk.f32.gmra.mrb[200].mxu1 %vm15852_vm5, %v5994_v44  ;;  %10639 = vrcp.f32 %v5896_v46  ;;  %vm15898_vm5 = vmmov %vm15820_vm0 }
 0xd19   : > { %v10634_v2 = vpop.eup %10633  ;;  %v5910_v24 = vmax.f32 %v5786_v51, 1e-30  ;;  %9425 = vmatprep.mubr.msk.f32.mxu1 %vm15804_vm13, %v15803_v57 }
 0xd1a   : > { %v5966_v3 = vmul.f32 %v10634_v2, %v14228_v38  ;;  %v5647_v38 = vmul.f32 1.442695, %v5555_v47 }
 0xd1b   : > { %10641 = vrcp.f32 %v5910_v24  ;;  %10210 = vrot.lane.b32.xlu0 %v15853_v28, %s10801_s29 }
 0xd1c   : > { %v5789_v53 = vpop.xlane.xlu1 %5788  ;;  %9351 = vmatmul.mubr.msk.f32.gmra.mrb[146].mxu0 %vm15856_vm11, %v5966_v3  ;;  %10643 = vrcp.f32 %v5897_v61  ;;  %vm15899_vm11 = vmmov %vm15820_vm0 }
 0xd1d   : > { %v10636_v48 = vpop.eup %10635  ;;  %v5911_v10 = vmax.f32 %v5789_v53, 1e-30  ;;  %9353 = vmatprep.mubr.msk.f32.mxu0 %vm15804_vm13, %v15803_v57 }
 0xd1e   : > { %v5996_v58 = vmul.f32 %v10636_v48, %v14238_v25 }
 0xd1f   : > { %10645 = vrcp.f32 %v5911_v10 }
 0xd20   : > { %v5792_v21 = vpop.xlane.xlu1 %5791  ;;  %9426 = vmatmul.mubr.msk.f32.gmra.mrb[202].mxu1 %vm15820_vm0, %v5996_v58 }
 0xd21   : > { %v10638_v4 = vpop.eup %10637  ;;  %v5912_v13 = vmax.f32 %v5792_v21, 1e-30  ;;  %9428 = vmatprep.mubr.msk.f32.mxu1 %vm15804_vm13, %v15803_v57  ;;  %v15872_v21 = vld [vmem:[#allocation34_spill] sm:$0xff] }
 0xd22   : > { %v5968_v62 = vmul.f32 %v10638_v4, %v14243_v37  ;;  %v10640_v16 = vpop.eup %10639  ;;  %v15873_v4 = vld [vmem:[#allocation73_spill] sm:$0xff] }
 0xd23   : > { %10647 = vrcp.f32 %v5912_v13  ;;  %v5970_v33 = vmul.f32 %v10640_v16, %v14138_v60  ;;  %v5556_v13 = vsub.f32 %v15873_v4, %v15872_v21  ;;  %v15884_v21 = vld [vmem:[#allocation66_spill] sm:$0xff] }
 0xd24   : > { %10649 = vpow2.f32 %v5647_v38  ;;  %v10186_v36 = vpop.permute.xlu1 %10185  ;;  %9354 = vmatmul.mubr.msk.f32.gmra.mrb[148].mxu0 %vm15858_vm8, %v5968_v62  ;;  %v15871_v38 = vld [vmem:[#allocation44_spill] sm:$0xff]  ;;  %vm15902_vm8 = vmmov %vm15820_vm0 }
 0xd25   : > { %v10642_v25 = vpop.eup %10641  ;;  %v10188_v30 = vunpack.i.h.bf16 %v10186_v36  ;;  %v10187_v0 = vunpack.i.l.bf16 %v10186_v36  ;;  %9356 = vmatprep.mubr.msk.f32.mxu0 %vm15804_vm13, %v15803_v57  ;;  %10651 = vpow2.f32 %v5679_v17  ;;  %v5649_v62 = vmul.f32 1.442695, %v5556_v13 }
 0xd26   : > { %v5998_v35 = vmul.f32 %v10642_v25, %v14248_v59  ;;  %v10644_v37 = vpop.eup %10643 }
 0xd27   : > { %v9960_v15 = vpack.c.bf16 %v10188_v30, %v10187_v0  ;;  %v5972_v60 = vmul.f32 %v10644_v37, %v14153_v26  ;;  %10653 = vpow2.f32 %v5649_v62 }
 0xd28   : > { %9357 = vmatmul.mubr.msk.f32.gmra.mrb[150].mxu0 %vm15859_vm4, %v5970_v33  ;;  %v14420_v1 = vpop.xlane.xlu0 %5839  ;;  %9429 = vmatmul.mubr.msk.f32.gmra.mrb[204].mxu1 %vm15860_vm7, %v5998_v35  ;;  %vm15919_vm4 = vmmov %vm15820_vm0 }
 0xd29   : > { %v10646_v9 = vpop.eup %10645  ;;  %9961 = vmatpush3.bf16.msra.mxu1 %v9960_v15  ;;  %9359 = vmatprep.mubr.msk.f32.mxu0 %vm15804_vm13, %v15803_v57  ;;  %vm15922_vm7 = vmmov %vm15820_vm0 }
 0xd2a   : > { %9431 = vmatprep.mubr.msk.f32.mxu1 %vm15804_vm13, %v15803_v57  ;;  %v6000_v59 = vmul.f32 %v10646_v9, %v14254_v32  ;;  %9962 = vmatprep.subr.bf16.mxu1 %v15542_v18 }
 0xd2c   : > { %9360 = vmatmul.mubr.msk.f32.gmra.mrb[152].mxu0 %vm15861_vm10, %v5972_v60  ;;  %v10191_v31 = vpop.permute.xlu0 %10190  ;;  %9432 = vmatmul.mubr.msk.f32.gmra.mrb[206].mxu1 %vm15862_vm2, %v6000_v59  ;;  %vm15923_vm10 = vmmov %vm15820_vm0 }
 0xd2d   : > { %v10648_v43 = vpop.eup %10647  ;;  %v10193_v46 = vunpack.i.h.bf16 %v10191_v31  ;;  %v10192_v27 = vunpack.i.l.bf16 %v10191_v31  ;;  %9434 = vmatprep.mubr.msk.f32.mxu1 %vm15804_vm13, %v15803_v57  ;;  %9467 = vmatprep.mubr.msk.f32.mxu0 %vm15804_vm13, %v15803_v57  ;;  %vm15924_vm2 = vmmov %vm15820_vm0 }
 0xd2e   : > { %v14436_v26 = vpop.eup %10649  ;;  %v6002_v32 = vmul.f32 %v10648_v43, %v14258_v5 }
 0xd2f   : > { %v9942_v44 = vpack.c.bf16 %v10193_v46, %v10192_v27  ;;  %v5799_v51 = vsel %vm15864_vm9, %v14436_v26, 0.0  ;;  %v14447_v61 = vpop.eup %10651  ;;  %v15878_v46 = vld [vmem:[#allocation53_spill] sm:$0xff]  ;;  %vm15928_vm9 = vmmov %vm15820_vm0 }
 0xd30   : > { %9435 = vmatmul.mubr.msk.f32.gmra.mrb[208].mxu1 %vm15863_vm12, %v6002_v32  ;;  %v5847_v5 = vsel %vm15866_vm15, %v14447_v61, 0.0  ;;  %v15880_v32 = vld [vmem:[#allocation77_spill] sm:$0xff]  ;;  %vm15925_vm12 = vmmov %vm15820_vm0 }
 0xd31   : > { %9943 = vmatpush3.bf16.msra.mxu0 %v9942_v44  ;;  %9542 = vmatprep.mubr.msk.f32.mxu1 %vm15804_vm13, %v15803_v57  ;;  %v14472_v9 = vpop.eup %10653  ;;  %v15881_v44 = vld [vmem:[#allocation62_spill] sm:$0xff]  ;;  %vm15930_vm15 = vmmov %vm15820_vm0 }
 0xd32   : > { %5800 = vadd.xlane.f32.xlu1 %v5799_v51  ;;  %9944 = vmatprep.subr.bf16.mxu0 %v15542_v18  ;;  %v5802_v59 = vsel %vm15876_vm14, %v14472_v9, 0.0  ;;  %v5557_v51 = vsub.f32 %v15881_v44, %v15880_v32  ;;  %vm15935_vm14 = vmmov %vm15820_vm0 }
 0xd35   : > { %v14445_v2 = vpop.f32.mrb[124].mxu0 }
 0xd36   : > { %15865 = vst [vmem:[#allocation19_spill] sm:$0xff] %v14445_v2  ;;  %v9319_v24 = vpop.f32.mrb[125].mxu0 }
 0xd3a   : > { %5848 = vadd.xlane.f32.xlu0 %v5847_v5 }
 0xd3d   : > { %v14451_v3 = vpop.f32.mrb[126].mxu0 }
 0xd3e   : > { %15867 = vst [vmem:[#allocation20_spill] sm:$0xff] %v14451_v3  ;;  %v9322_v56 = vpop.f32.mrb[127].mxu0 }
 0xd3f   : > { %v5651_v56 = vmul.f32 1.442695, %v5557_v51 }
 0xd43   : > { %10215 = vrot.lane.b32.xlu1 %v15853_v28, %s10803_s16  ;;  %v15874_v28 = vld [vmem:[#allocation51_spill] sm:$0xff] }
 0xd44   : > { %v5572_v7 = vsub.f32 %v15875_v22, %v15874_v28 }
 0xd45   : > { %v14455_v20 = vpop.f32.mrb[128].mxu0 }
 0xd46   : > { %15868 = vst [vmem:[#allocation21_spill] sm:$0xff] %v14455_v20  ;;  %v9325_v47 = vpop.f32.mrb[129].mxu0  ;;  %v5681_v33 = vmul.f32 1.442695, %v5572_v7 }
 0xd48   : > { %10655 = vpow2.f32 %v5681_v33 }
 0xd49   : > { %v14457_v53 = vpop.f32.mrb[130].mxu0  ;;  %10657 = vpow2.f32 %v5651_v56 }
 0xd4a   : > { %15869 = vst [vmem:[#allocation22_spill] sm:$0xff] %v14457_v53  ;;  %v9328_v48 = vpop.f32.mrb[131].mxu0 }
 0xd4d   : > { %v14459_v10 = vpop.f32.mrb[132].mxu0 }
 0xd4e   : > { %15870 = vst [vmem:[#allocation23_spill] sm:$0xff] %v14459_v10  ;;  %v9331_v58 = vpop.f32.mrb[133].mxu0 }
 0xd4f   : > { %v15883_v58 = vld [vmem:[#allocation11_spill] sm:$0xff] }
 0xd50   : > { %10220 = vrot.lane.b32.xlu0 %v15871_v38, %s10801_s29  ;;  %v5573_v4 = vsub.f32 %v15884_v21, %v15883_v58 }
 0xd52   : > { %v14477_v31 = vpop.eup %10655  ;;  %v5683_v22 = vmul.f32 1.442695, %v5573_v4 }
 0xd53   : > { %v5850_v43 = vsel %vm15877_vm6, %v14477_v31, 0.0  ;;  %vm15937_vm6 = vmmov %vm15820_vm0 }
 0xd54   : > { %10659 = vpow2.f32 %v5683_v22 }
 0xd55   : > { %v14465_v16 = vpop.xlane.xlu1 %5794 }
 0xd59   : > { %v10196_v36 = vpop.permute.xlu1 %10195 }
 0xd5a   : > { %v10198_v25 = vunpack.i.h.bf16 %v10196_v36  ;;  %v10197_v30 = vunpack.i.l.bf16 %v10196_v36 }
 0xd5c   : > { %v9963_v0 = vpack.c.bf16 %v10198_v25, %v10197_v30 }
 0xd5d   : > { %v14469_v35 = vpop.xlane.xlu0 %5842 }
 0xd5e   : > { %9964 = vmatpush3.bf16.msra.mxu1 %v9963_v0 }
 0xd5f   : > { %9965 = vmatprep.subr.bf16.mxu1 %v15542_v18 }
 0xd61   : > { %v10201_v37 = vpop.permute.xlu0 %10200 }
 0xd62   : > { %v10203_v15 = vunpack.i.h.bf16 %v10201_v37  ;;  %v10202_v17 = vunpack.i.l.bf16 %v10201_v37  ;;  %v14500_v37 = vpop.eup %10657 }
 0xd63   : > { %v14509_v44 = vpop.eup %10659 }
 0xd64   : > { %v9945_v60 = vpack.c.bf16 %v10203_v15, %v10202_v17  ;;  %v5853_v56 = vsel %vm15887_vm1, %v14509_v44, 0.0  ;;  %vm15939_vm1 = vmmov %vm15820_vm0 }
 0xd66   : > { %9946 = vmatpush3.bf16.msra.mxu0 %v9945_v60 }
 0xd67   : > { %5803 = vadd.xlane.f32.xlu1 %v5802_v59  ;;  %9947 = vmatprep.subr.bf16.mxu0 %v15542_v18  ;;  %v5805_v59 = vsel %vm15886_vm3, %v14500_v37, 0.0  ;;  %vm15938_vm3 = vmmov %vm15820_vm0 }
 0xd6f   : > { %5851 = vadd.xlane.f32.xlu0 %v5850_v43 }
 0xd78   : > { %10225 = vrot.lane.b32.xlu1 %v15871_v38, %s10803_s16 }
 0xd85   : > { %10230 = vrot.lane.b32.xlu0 %v15878_v46, %s10801_s29  ;;  %v14485_v27 = vpop.f32.mrb[134].mxu0 }
 0xd86   : > { %15879 = vst [vmem:[#allocation24_spill] sm:$0xff] %v14485_v27  ;;  %v9334_v24 = vpop.f32.mrb[135].mxu0 }
 0xd89   : > { %v14489_v5 = vpop.f32.mrb[136].mxu0 }
 0xd8a   : > { %15882 = vst [vmem:[#allocation25_spill] sm:$0xff] %v14489_v5  ;;  %v14491_v47 = vpop.xlane.xlu1 %5797  ;;  %v9337_v48 = vpop.f32.mrb[137].mxu0 }
 0xd8e   : > { %v10206_v38 = vpop.permute.xlu1 %10205 }
 0xd8f   : > { %v10208_v13 = vunpack.i.h.bf16 %v10206_v38  ;;  %v10207_v62 = vunpack.i.l.bf16 %v10206_v38 }
 0xd91   : > { %v9966_v28 = vpack.c.bf16 %v10208_v13, %v10207_v62 }
 0xd92   : > { %v14495_v7 = vpop.xlane.xlu0 %5845 }
 0xd93   : > { %9967 = vmatpush3.bf16.msra.mxu1 %v9966_v28 }
 0xd94   : > { %9968 = vmatprep.subr.bf16.mxu1 %v15542_v18 }
 0xd95   : > { %v14498_v36 = vpop.f32.mrb[138].mxu0 }
 0xd96   : > { %15885 = vst [vmem:[#allocation26_spill] sm:$0xff] %v14498_v36  ;;  %v10211_v25 = vpop.permute.xlu0 %10210  ;;  %v9340_v30 = vpop.f32.mrb[139].mxu0 }
 0xd97   : > { %v10213_v0 = vunpack.i.h.bf16 %v10211_v25  ;;  %v10212_v33 = vunpack.i.l.bf16 %v10211_v25  ;;  %v15889_v30 = vld [vmem:[#allocation15_spill] sm:$0xff] }
 0xd98   : > { %v14502_v15 = vpop.f32.mrb[180].mxu1 }
 0xd99   : > { %v9948_v17 = vpack.c.bf16 %v10213_v0, %v10212_v33  ;;  %v9394_v60 = vpop.f32.mrb[181].mxu1  ;;  %v15890_v0 = vld [vmem:[#allocation45_spill] sm:$0xff] }
 0xd9a   : > { %v5558_v33 = vsub.f32 %v15890_v0, %v15889_v30  ;;  %v15895_v0 = vld [vmem:[#allocation35_spill] sm:$0xff] }
 0xd9b   : > { %9949 = vmatpush3.bf16.msra.mxu0 %v9948_v17 }
 0xd9c   : > { %5806 = vadd.xlane.f32.xlu1 %v5805_v59  ;;  %v14506_v43 = vpop.f32.mrb[182].mxu1  ;;  %9950 = vmatprep.subr.bf16.mxu0 %v15542_v18  ;;  %v5653_v17 = vmul.f32 1.442695, %v5558_v33  ;;  %v15891_v59 = vld [vmem:[#allocation12_spill] sm:$0xff]  ;;  %v15896_v33 = vld [vmem:[#allocation75_spill] sm:$0xff] }
 0xd9d   : > { %v9397_v32 = vpop.f32.mrb[183].mxu1 }
 0xd9e   : > { %10661 = vpow2.f32 %v5653_v17  ;;  %v15892_v32 = vld [vmem:[#allocation72_spill] sm:$0xff]  ;;  %v5575_v17 = vsub.f32 %v15896_v33, %v15895_v0 }
 0xda0   : > { %v14511_v51 = vpop.f32.mrb[184].mxu1 }
 0xda1   : > { %v9400_v24 = vpop.f32.mrb[185].mxu1 }
 0xda4   : > { %5854 = vadd.xlane.f32.xlu0 %v5853_v56  ;;  %v14515_v48 = vpop.f32.mrb[186].mxu1 }
 0xda5   : > { %v9403_v58 = vpop.f32.mrb[187].mxu1 }
 0xda8   : > { %v14517_v21 = vpop.f32.mrb[188].mxu1  ;;  %v14542_v10 = vpop.eup %10661 }
 0xda9   : > { %v9406_v4 = vpop.f32.mrb[189].mxu1 }
 0xdac   : > { %v14519_v38 = vpop.f32.mrb[190].mxu1 }
 0xdad   : > { %10235 = vrot.lane.b32.xlu1 %v15878_v46, %s10803_s16  ;;  %v9409_v13 = vpop.f32.mrb[191].mxu1  ;;  %v5574_v46 = vsub.f32 %v15892_v32, %v15891_v59 }
 0xdaf   : > { %v5685_v13 = vmul.f32 1.442695, %v5574_v46 }
 0xdb0   : > { %v14523_v62 = vpop.f32.mrb[192].mxu1 }
 0xdb1   : > { %v9412_v28 = vpop.f32.mrb[193].mxu1  ;;  %10663 = vpow2.f32 %v5685_v13 }
 0xdb2   : > { %v15893_v28 = vld [vmem:[#allocation43_spill] sm:$0xff] }
 0xdb4   : > { %v14525_v22 = vpop.f32.mrb[194].mxu1 }
 0xdb5   : > { %15888 = vst [vmem:[#allocation27_spill] sm:$0xff] %v14525_v22  ;;  %v9415_v25 = vpop.f32.mrb[195].mxu1 }
 0xdb6   : > { %v15894_v25 = vld [vmem:[#allocation67_spill] sm:$0xff] }
 0xdb7   : > { %v5560_v36 = vsub.f32 %v15894_v25, %v15893_v28 }
 0xdb9   : > { %v5657_v30 = vmul.f32 1.442695, %v5560_v36 }
 0xdba   : > { %10240 = vrot.lane.b32.xlu0 %v15788_v54, %s10801_s29 }
 0xdbb   : > { %10665 = vpow2.f32 %v5657_v30  ;;  %v14549_v36 = vpop.eup %10663 }
 0xdbf   : > { %v14531_v60 = vpop.xlane.xlu1 %5800 }
 0xdc3   : > { %v10216_v24 = vpop.permute.xlu1 %10215 }
 0xdc4   : > { %v10218_v56 = vunpack.i.h.bf16 %v10216_v24  ;;  %v10217_v58 = vunpack.i.l.bf16 %v10216_v24 }
 0xdc5   : > { %v14553_v13 = vpop.eup %10665 }
 0xdc6   : > { %v9969_v4 = vpack.c.bf16 %v10218_v56, %v10217_v58  ;;  %v5687_v56 = vmul.f32 1.442695, %v5575_v17  ;;  %v5814_v30 = vsel %vm15820_vm0, %v14553_v13, 0.0 }
 0xdc7   : > { %v14537_v5 = vpop.xlane.xlu0 %5848 }
 0xdc8   : > { %9970 = vmatpush3.bf16.msra.mxu1 %v9969_v4  ;;  %v5808_v4 = vsel %vm15898_vm5, %v14542_v10, 0.0  ;;  %10667 = vpow2.f32 %v5687_v56  ;;  %vm15940_vm5 = vmmov %vm15820_vm0 }
 0xdc9   : > { %9971 = vmatprep.subr.bf16.mxu1 %v15542_v18 }
 0xdcb   : > { %v10221_v27 = vpop.permute.xlu0 %10220 }
 0xdcc   : > { %v10223_v59 = vunpack.i.h.bf16 %v10221_v27  ;;  %v10222_v32 = vunpack.i.l.bf16 %v10221_v27  ;;  %v5856_v27 = vsel %vm15899_vm11, %v14549_v36, 0.0  ;;  %vm15941_vm11 = vmmov %vm15820_vm0 }
 0xdce   : > { %v9951_v24 = vpack.c.bf16 %v10223_v59, %v10222_v32  ;;  %v14544_v46 = vpop.f32.mrb[196].mxu1 }
 0xdcf   : > { %15897 = vst [vmem:[#allocation28_spill] sm:$0xff] %v14544_v46  ;;  %v9418_v58 = vpop.f32.mrb[197].mxu1 }
 0xdd0   : > { %9952 = vmatpush3.bf16.msra.mxu0 %v9951_v24 }
 0xdd1   : > { %5809 = vadd.xlane.f32.xlu1 %v5808_v4  ;;  %9953 = vmatprep.subr.bf16.mxu0 %v15542_v18 }
 0xdd2   : > { %v14559_v0 = vpop.eup %10667 }
 0xdd3   : > { %v5859_v59 = vsel %vm15902_vm8, %v14559_v0, 0.0  ;;  %vm15942_vm8 = vmmov %vm15820_vm0 }
 0xdd9   : > { %5857 = vadd.xlane.f32.xlu0 %v5856_v27 }
 0xddb   : > { %v14555_v28 = vpop.f32.mrb[140].mxu0 }
 0xddc   : > { %15900 = vst [vmem:[#allocation30_spill] sm:$0xff] %v14555_v28  ;;  %v9343_v25 = vpop.f32.mrb[141].mxu0 }
 0xddd   : > { %5815 = vadd.xlane.f32.xlu0 %v5814_v30  ;;  %v15907_v30 = vld [vmem:[#allocation16_spill] sm:$0xff] }
 0xddf   : > { %v14561_v33 = vpop.f32.mrb[142].mxu0 }
 0xde0   : > { %15901 = vst [vmem:[#allocation29_spill] sm:$0xff] %v14561_v33  ;;  %v9346_v17 = vpop.f32.mrb[143].mxu0 }
 0xde1   : > { %5860 = vadd.xlane.f32.xlu0 %v5859_v59  ;;  %v15908_v17 = vld [vmem:[#allocation54_spill] sm:$0xff] }
 0xde2   : > { %10245 = vrot.lane.b32.xlu1 %v15788_v54, %s10803_s16  ;;  %v5559_v33 = vsub.f32 %v15908_v17, %v15907_v30 }
 0xde3   : > { %v14567_v32 = vpop.f32.mrb[198].mxu1 }
 0xde4   : > { %15903 = vst [vmem:[#allocation37_spill] sm:$0xff] %v14567_v32  ;;  %v9421_v24 = vpop.f32.mrb[199].mxu1  ;;  %v5655_v59 = vmul.f32 1.442695, %v5559_v33 }
 0xde5   : > { %v15910_v24 = vld [vmem:[#allocation57_spill] sm:$0xff] }
 0xde6   : > { %10669 = vpow2.f32 %v5655_v59  ;;  %v15916_v59 = vld [vmem:[#allocation17_spill] sm:$0xff] }
 0xde7   : > { %v14569_v56 = vpop.f32.mrb[144].mxu0 }
 0xde8   : > { %15904 = vst [vmem:[#allocation59_spill] sm:$0xff] %v14569_v56  ;;  %v9349_v58 = vpop.f32.mrb[145].mxu0 }
 0xdeb   : > { %v14571_v4 = vpop.f32.mrb[200].mxu1 }
 0xdec   : > { %15905 = vst [vmem:[#allocation49_spill] sm:$0xff] %v14571_v4  ;;  %v9424_v27 = vpop.f32.mrb[201].mxu1 }
 0xdef   : > { %v14573_v25 = vpop.f32.mrb[146].mxu0 }
 0xdf0   : > { %15906 = vst [vmem:[#allocation58_spill] sm:$0xff] %v14573_v25  ;;  %v9352_v28 = vpop.f32.mrb[147].mxu0 }
 0xdf3   : > { %v14577_v53 = vpop.f32.mrb[202].mxu1 }
 0xdf4   : > { %15909 = vst [vmem:[#allocation38_spill] sm:$0xff] %v14577_v53  ;;  %v14579_v20 = vpop.xlane.xlu1 %5803  ;;  %v9427_v54 = vpop.f32.mrb[203].mxu1 }
 0xdf7   : > { %6736 = vrot.lane.b32.xlu0 %v15910_v24, %s10803_s16  ;;  %v14583_v56 = vpop.f32.mrb[148].mxu0 }
 0xdf8   : > { %15911 = vst [vmem:[#allocation14_spill] sm:$0xff] %v14583_v56  ;;  %v10226_v58 = vpop.permute.xlu1 %10225  ;;  %v9355_v27 = vpop.f32.mrb[149].mxu0 }
 0xdf9   : > { %v10228_v3 = vunpack.i.h.bf16 %v10226_v58  ;;  %v10227_v25 = vunpack.i.l.bf16 %v10226_v58  ;;  %v15917_v27 = vld [vmem:[#allocation76_spill] sm:$0xff] }
 0xdfa   : > { %v5576_v53 = vsub.f32 %v15917_v27, %v15916_v59 }
 0xdfb   : > { %v9972_v2 = vpack.c.bf16 %v10228_v3, %v10227_v25  ;;  %v14585_v4 = vpop.f32.mrb[150].mxu0  ;;  %v14587_v28 = vpop.f32.mrb[204].mxu1 }
 0xdfc   : > { %15912 = vst [vmem:[#allocation48_spill] sm:$0xff] %v14585_v4  ;;  %15913 = vst [vmem:[#allocation31_spill] sm:$0xff] %v14587_v28  ;;  %v14589_v30 = vpop.xlane.xlu0 %5851  ;;  %v9358_v33 = vpop.f32.mrb[151].mxu0 }
 0xdfd   : > { %v9430_v17 = vpop.f32.mrb[205].mxu1  ;;  %9973 = vmatpush3.bf16.msra.mxu1 %v9972_v2  ;;  %v14598_v28 = vpop.eup %10669  ;;  %v5689_v2 = vmul.f32 1.442695, %v5576_v53  ;;  %v15921_v53 = vld [vmem:[#allocation8_spill] sm:$0xff] }
 0xdfe   : > { %9974 = vmatprep.subr.bf16.mxu1 %v15542_v18  ;;  %v15918_v17 = vld [vmem:[#allocation36_spill] sm:$0xff] }
 0xdff   : > { %v14592_v54 = vpop.f32.mrb[152].mxu0  ;;  %v14594_v56 = vpop.f32.mrb[206].mxu1  ;;  %v5563_v22 = vsub.f32 %v15918_v17, %v14192_v23  ;;  %10671 = vpow2.f32 %v5689_v2  ;;  %v15927_v17 = vld [vmem:[#allocation69_spill] sm:$0xff] }
 0xe00   : > { %15914 = vst [vmem:[#allocation56_spill] sm:$0xff] %v14592_v54  ;;  %15915 = vst [vmem:[#allocation40_spill] sm:$0xff] %v14594_v56  ;;  %v10231_v58 = vpop.permute.xlu0 %10230  ;;  %v9361_v3 = vpop.f32.mrb[153].mxu0  ;;  %v5811_v56 = vsel %vm15919_vm4, %v14598_v28, 0.0 }
 0xe01   : > { %v10233_v25 = vunpack.i.h.bf16 %v10231_v58  ;;  %v10232_v4 = vunpack.i.l.bf16 %v10231_v58  ;;  %v9433_v32 = vpop.f32.mrb[207].mxu1  ;;  %v5663_v59 = vmul.f32 1.442695, %v5563_v22  ;;  %v5565_v58 = vsub.f32 %v15921_v53, %v14274_v8  ;;  %v15929_v53 = vld [vmem:[#allocation70_spill] sm:$0xff]  ;;  %vm15944_vm4 = vmmov %vm15820_vm0 }
 0xe02   : > { %v15920_v32 = vld [vmem:[#allocation13_spill] sm:$0xff]  ;;  %v5567_v22 = vsub.f32 %v14146_v49, %v14356_v52 }
 0xe03   : > { %v9954_v46 = vpack.c.bf16 %v10233_v25, %v10232_v4  ;;  %v14600_v33 = vpop.f32.mrb[208].mxu1  ;;  %v5564_v27 = vsub.f32 %v15920_v32, %v14270_v50  ;;  %10673 = vpow2.f32 %v5663_v59  ;;  %v5667_v23 = vmul.f32 1.442695, %v5565_v58 }
 0xe04   : > { %v9436_v54 = vpop.f32.mrb[209].mxu1  ;;  %v5671_v8 = vmul.f32 1.442695, %v5567_v22  ;;  %v5562_v58 = vsub.f32 %v15929_v53, %v14140_v6  ;;  %v15931_v22 = vld [vmem:[#allocation39_spill] sm:$0xff] }
 0xe05   : > { %9955 = vmatpush3.bf16.msra.mxu0 %v9954_v46  ;;  %v5665_v4 = vmul.f32 1.442695, %v5564_v27  ;;  %v5566_v46 = vsub.f32 %v14132_v55, %v14350_v14 }
 0xe06   : > { %5812 = vadd.xlane.f32.xlu1 %v5811_v56  ;;  %9956 = vmatprep.subr.bf16.mxu0 %v15542_v18 }
 0xe07   : > { %10675 = vpow2.f32 %v5665_v4  ;;  %v5669_v56 = vmul.f32 1.442695, %v5566_v46 }
 0xe08   : > { %10677 = vpow2.f32 %v5667_v23 }
 0xe09   : > { %v14613_v54 = vpop.eup %10671  ;;  %10679 = vpow2.f32 %v5669_v56  ;;  %v5661_v56 = vmul.f32 1.442695, %v5562_v58 }
 0xe0a   : > { %v5862_v50 = vsel %vm15922_vm7, %v14613_v54, 0.0  ;;  %10681 = vpow2.f32 %v5671_v8  ;;  %vm15945_vm7 = vmmov %vm15820_vm0 }
 0xe0d   : > { %v14619_v3 = vpop.eup %10673 }
 0xe0e   : > { %v5823_v55 = vsel %vm15923_vm10, %v14619_v3, 0.0  ;;  %vm15946_vm10 = vmmov %vm15820_vm0 }
 0xe11   : > { %v14625_v14 = vpop.eup %10675 }
 0xe12   : > { %v5826_v49 = vsel %vm15924_vm2, %v14625_v14, 0.0  ;;  %v14629_v52 = vpop.eup %10677  ;;  %vm15947_vm2 = vmmov %vm15820_vm0 }
 0xe13   : > { %v5829_v25 = vsel %vm15925_vm12, %v14629_v52, 0.0  ;;  %v14633_v2 = vpop.eup %10679  ;;  %vm15948_vm12 = vmmov %vm15820_vm0 }
 0xe14   : > { %v5832_v32 = vsel %vm15928_vm9, %v14633_v2, 0.0  ;;  %v14639_v27 = vpop.eup %10681  ;;  %vm15949_vm9 = vmmov %vm15820_vm0 }
 0xe15   : > { %v5835_v46 = vsel %vm15930_vm15, %v14639_v27, 0.0  ;;  %vm15950_vm15 = vmmov %vm15820_vm0 }
 0xe16   : > { %5863 = vadd.xlane.f32.xlu0 %v5862_v50  ;;  %v5577_v50 = vsub.f32 %v15931_v22, %v14170_v34 }
 0xe17   : > { %6506 = vrot.lane.b32.xlu1 %v15910_v24, %s10801_s29  ;;  %v15926_v24 = vld [vmem:[#allocation32_spill] sm:$0xff]  ;;  %s15977_s29 = sadd.s32 4294967295, %s10795_s18  }
 0xe18   : > { %v5561_v59 = vsub.f32 %v15927_v17, %v15926_v24  ;;  %v5691_v24 = vmul.f32 1.442695, %v5577_v50  ;;  %v15932_v17 = vld [vmem:[#allocation46_spill] sm:$0xff]  ;;  %s508_s30 = smul.u32 5, %s15977_s29 }
 0xe19   : > { %v5578_v6 = vsub.f32 %v15932_v17, %v14200_v12  ;;  %v15934_v12 = vld [vmem:[#allocation33_spill] sm:$0xff] }
 0xe1a   : > { %5824 = vadd.xlane.f32.xlu0 %v5823_v55  ;;  %v5659_v4 = vmul.f32 1.442695, %v5561_v59  ;;  %p509_p4 = scmp.lt.s32.totalorder %s508_s30, 9 }
 0xe1b   : > { %v5693_v53 = vmul.f32 1.442695, %v5578_v6 }
 0xe1c   : > { %10683 = vpow2.f32 %v5659_v4  ;;  %s16076_s30 = smov (!%p509_p4, %s508_s30), 9 }
 0xe1d   : > { %10685 = vpow2.f32 %v5661_v56  ;;  %s7757_s16 = sshll.u32 %s16076_s30, 3 }
 0xe1e   : > { %5827 = vadd.xlane.f32.xlu0 %v5826_v49  ;;  %10687 = vpow2.f32 %v5691_v24  ;;  %s512_s17 = scalar_lea.vmem %s15153_s1, %s7757_s16  ;;  %s518_s29 = scalar_lea.vmem %s15167_s15, %s7757_s16 }
 0xe1f   : > { %10689 = vpow2.f32 %v5693_v53 }
 0xe22   : > { %5830 = vadd.xlane.f32.xlu0 %v5829_v25 }
 0xe26   : > { %5833 = vadd.xlane.f32.xlu0 %v5832_v32  ;;  %v15933_v32 = vld [vmem:[#allocation41_spill] sm:$0xff]  ;;  %v14656_v22 = vpop.eup %10683 }
 0xe27   : > { %v5579_v4 = vsub.f32 %v15933_v32, %v14190_v19  ;;  %v15936_v19 = vld [vmem:[#allocation52_spill] sm:$0xff]  ;;  %v5582_v32 = vsub.f32 %v14160_v39, %v14360_v42 }
 0xe29   : > { %v14643_v23 = vpop.xlane.xlu1 %5806  ;;  %v5695_v50 = vmul.f32 1.442695, %v5579_v4 }
 0xe2a   : > { %5836 = vadd.xlane.f32.xlu0 %v5835_v46 }
 0xe2b   : > { %10691 = vpow2.f32 %v5695_v50 }
 0xe2d   : > { %v10236_v8 = vpop.permute.xlu1 %10235 }
 0xe2e   : > { %v10238_v55 = vunpack.i.h.bf16 %v10236_v8  ;;  %v10237_v49 = vunpack.i.l.bf16 %v10236_v8  ;;  %v5580_v8 = vsub.f32 %v15934_v12, %v14283_v29 }
 0xe30   : > { %v9975_v25 = vpack.c.bf16 %v10238_v55, %v10237_v49  ;;  %v5817_v55 = vsel %vm15935_vm14, %v14656_v22, 0.0  ;;  %v14662_v49 = vpop.eup %10685  ;;  %v5697_v24 = vmul.f32 1.442695, %v5580_v8  ;;  %vm15951_vm14 = vmmov %vm15820_vm0 }
 0xe31   : > { %v14651_v59 = vpop.xlane.xlu0 %5854  ;;  %v5820_v17 = vsel %vm15937_vm6, %v14662_v49, 0.0  ;;  %v14669_v6 = vpop.eup %10687  ;;  %vm15952_vm6 = vmmov %vm15820_vm0 }
 0xe32   : > { %9976 = vmatpush3.bf16.msra.mxu1 %v9975_v25  ;;  %v5581_v25 = vsub.f32 %v15936_v19, %v14268_v11  ;;  %10693 = vpow2.f32 %v5697_v24  ;;  %v5865_v4 = vsel %vm15938_vm3, %v14669_v6, 0.0  ;;  %v14677_v53 = vpop.eup %10689  ;;  %v5701_v11 = vmul.f32 1.442695, %v5582_v32  ;;  %vm15953_vm3 = vmmov %vm15820_vm0 }
 0xe33   : > { %9977 = vmatprep.subr.bf16.mxu1 %v15542_v18 }
 0xe34   : > { %v5699_v29 = vmul.f32 1.442695, %v5581_v25 }
 0xe35   : > { %v10241_v34 = vpop.permute.xlu0 %10240 }
 0xe36   : > { %v10243_v58 = vunpack.i.h.bf16 %v10241_v34  ;;  %v10242_v46 = vunpack.i.l.bf16 %v10241_v34  ;;  %10695 = vpow2.f32 %v5699_v29  ;;  %v5868_v34 = vsel %vm15939_vm1, %v14677_v53, 0.0  ;;  %vm15954_vm1 = vmmov %vm15820_vm0 }
 0xe37   : > { %10697 = vpow2.f32 %v5701_v11 }
 0xe38   : > { %v9957_v56 = vpack.c.bf16 %v10243_v58, %v10242_v46  ;;  %v14681_v58 = vpop.eup %10691 }
 0xe3a   : > { %9958 = vmatpush3.bf16.msra.mxu0 %v9957_v56 }
 0xe3b   : > { %5818 = vadd.xlane.f32.xlu1 %v5817_v55  ;;  %9465 = vmatprep.subr.mxu0 %v15803_v57  ;;  %v5928_v55 = vmax.f32 %v14420_v1, 1e-30  ;;  %v5931_v1 = vmax.f32 %v14537_v5, 1e-30 }
 0xe3c   : > { %v14685_v46 = vpop.eup %10693 }
 0xe3d   : > { %v5874_v39 = vsel %vm15941_vm11, %v14685_v46, 0.0  ;;  %10699 = vrcp.f32 %v5928_v55  ;;  %vm15956_vm11 = vmmov %vm15820_vm0 }
 0xe3f   : > { %5821 = vadd.xlane.f32.xlu1 %v5820_v17  ;;  %v5929_v17 = vmax.f32 %v14469_v35, 1e-30  ;;  %v5932_v35 = vmax.f32 %v14589_v30, 1e-30 }
 0xe40   : > { %6953 = vrot.lane.b32.xlu0 %v14502_v15, %s10805_s21  ;;  %v5871_v15 = vsel %vm15940_vm5, %v14681_v58, 0.0  ;;  %v14689_v42 = vpop.eup %10695  ;;  %vm15955_vm5 = vmmov %vm15820_vm0 }
 0xe41   : > { %v5877_v56 = vsel %vm15820_vm0, %v14689_v42, 0.0  ;;  %v14693_v50 = vpop.eup %10697  ;;  %10701 = vrcp.f32 %v5929_v17 }
 0xe42   : > { %v5880_v12 = vsel %vm15942_vm8, %v14693_v50, 0.0  ;;  %vm15957_vm8 = vmmov %vm15820_vm0 }
 0xe43   : > { %5866 = vadd.xlane.f32.xlu1 %v5865_v4  ;;  %v5930_v4 = vmax.f32 %v14495_v7, 1e-30  ;;  %v5933_v7 = vmax.f32 %v14651_v59, 1e-30 }
 0xe45   : > { %10703 = vrcp.f32 %v5930_v4  ;;  %v5914_v4 = vmax.f32 %v14491_v47, 1e-30  ;;  %v5916_v47 = vmax.f32 %v14579_v20, 1e-30 }
 0xe46   : > { %10705 = vrcp.f32 %v5931_v1 }
 0xe47   : > { %5869 = vadd.xlane.f32.xlu1 %v5868_v34  ;;  %10707 = vrcp.f32 %v5932_v35 }
 0xe48   : > { %10709 = vrcp.f32 %v5933_v7 }
 0xe4b   : > { %5872 = vadd.xlane.f32.xlu1 %v5871_v15  ;;  %v10700_v15 = vpop.eup %10699 }
 0xe4c   : > { %v10702_v55 = vpop.eup %10701 }
 0xe4d   : > { %v6036_v5 = vmul.f32 %v10702_v55, %v14316_v41 }
 0xe4f   : > { %5875 = vadd.xlane.f32.xlu1 %v5874_v39  ;;  %v15943_v39 = vld [vmem:[#allocation18_spill] sm:$0xff] }
 0xe53   : > { %5878 = vadd.xlane.f32.xlu1 %v5877_v56  ;;  %v6034_v56 = vmul.f32 %v10700_v15, %v15943_v39  ;;  %v5917_v15 = vmax.f32 %v14643_v23, 1e-30 }
 0xe57   : > { %5881 = vadd.xlane.f32.xlu1 %v5880_v12 }
 0xe5e   : > { %v14697_v8 = vpop.xlane.xlu1 %5809 }
 0xe62   : > { %v10246_v19 = vpop.permute.xlu1 %10245 }
 0xe63   : > { %v10248_v25 = vunpack.i.h.bf16 %v10246_v19  ;;  %v10247_v24 = vunpack.i.l.bf16 %v10246_v19 }
 0xe65   : > { %v9978_v29 = vpack.c.bf16 %v10248_v25, %v10247_v24 }
 0xe66   : > { %v5858_v32 = vpop.xlane.xlu0 %5857 }
 0xe67   : > { %9979 = vmatpush3.bf16.msra.mxu1 %v9978_v29  ;;  %v5934_v30 = vmax.f32 %v5858_v32, 1e-30  ;;  %v5913_v29 = vmax.f32 %v14465_v16, 1e-30  ;;  %v5915_v16 = vmax.f32 %v14531_v60, 1e-30 }
 0xe68   : > { %6955 = vrot.lane.b32.xlu1 %v14506_v43, %s10805_s21  ;;  %9540 = vmatprep.subr.mxu1 %v15803_v57  ;;  %v10704_v43 = vpop.eup %10703  ;;  %v5918_v60 = vmax.f32 %v14697_v8, 1e-30 }
 0xe69   : > { %v6038_v19 = vmul.f32 %v10704_v43, %v14371_v40  ;;  %v10706_v25 = vpop.eup %10705  ;;  %10711 = vrcp.f32 %v5934_v30 }
 0xe6a   : > { %v14705_v11 = vpop.xlane.xlu0 %5815  ;;  %v6040_v41 = vmul.f32 %v10706_v25, %v14447_v61  ;;  %v10708_v24 = vpop.eup %10707 }
 0xe6b   : > { %v6042_v17 = vmul.f32 %v10708_v24, %v14477_v31  ;;  %v10710_v40 = vpop.eup %10709  ;;  %v5920_v55 = vmax.f32 %v14705_v11, 1e-30 }
 0xe6c   : > { %v6044_v32 = vmul.f32 %v10710_v40, %v14509_v44 }
 0xe6e   : > { %v5861_v34 = vpop.xlane.xlu0 %5860 }
 0xe6f   : > { %v5935_v59 = vmax.f32 %v5861_v34, 1e-30 }
 0xe71   : > { %10713 = vrcp.f32 %v5935_v59 }
 0xe72   : > { %v6737_v12 = vpop.permute.xlu0 %6736  ;;  %10715 = vrcp.f32 %v5913_v29 }
 0xe73   : > { %9541 = vmatpush3.msra.mxu1 %v6737_v12  ;;  %v10712_v61 = vpop.eup %10711  ;;  %10717 = vrcp.f32 %v5914_v4 }
 0xe74   : > { %9543 = vmatmul.mubr.msk.f32.vlgmr.msra.gmra.mrb[210].mxu1 %vm15944_vm4, %v6034_v56  ;;  %10001 = vmatprep.subr.bf16.mxu1 %v15542_v18  ;;  %v6046_v31 = vmul.f32 %v10712_v61, %v14549_v36  ;;  %10719 = vrcp.f32 %v5915_v16  ;;  %vm15958_vm4 = vmmov %vm15820_vm0 }
 0xe75   : > { %9545 = vmatprep.mubr.msk.f32.mxu1 %vm15804_vm13, %v15803_v57  ;;  %10721 = vrcp.f32 %v5916_v47 }
 0xe76   : > { %10723 = vrcp.f32 %v5917_v15 }
 0xe77   : > { %10725 = vrcp.f32 %v5918_v60 }
 0xe78   : > { %9546 = vmatmul.mubr.msk.f32.gmra.mrb[212].mxu1 %vm15945_vm7, %v6036_v5  ;;  %vm15959_vm7 = vmmov %vm15820_vm0 }
 0xe79   : > { %9548 = vmatprep.mubr.msk.f32.mxu1 %vm15804_vm13, %v15803_v57 }
 0xe7b   : > { %v10714_v1 = vpop.eup %10713 }
 0xe7c   : > { %9549 = vmatmul.mubr.msk.f32.gmra.mrb[214].mxu1 %vm15946_vm10, %v6038_v19  ;;  %v6048_v44 = vmul.f32 %v10714_v1, %v14559_v0  ;;  %v10716_v34 = vpop.eup %10715  ;;  %vm15960_vm10 = vmmov %vm15820_vm0 }
 0xe7d   : > { %9551 = vmatprep.mubr.msk.f32.mxu1 %vm15804_vm13, %v15803_v57  ;;  %v6004_v35 = vmul.f32 %v10716_v34, %v14300_v45  ;;  %v10718_v56 = vpop.eup %10717 }
 0xe7e   : > { %v6006_v20 = vmul.f32 %v10718_v56, %v14362_v63  ;;  %v10720_v0 = vpop.eup %10719 }
 0xe7f   : > { %v6008_v23 = vmul.f32 %v10720_v0, %v14436_v26  ;;  %v10722_v12 = vpop.eup %10721 }
 0xe80   : > { %9552 = vmatmul.mubr.msk.f32.gmra.mrb[216].mxu1 %vm15947_vm2, %v6040_v41  ;;  %v6010_v8 = vmul.f32 %v10722_v12, %v14472_v9  ;;  %v10724_v7 = vpop.eup %10723  ;;  %vm15961_vm2 = vmmov %vm15820_vm0 }
 0xe81   : > { %9554 = vmatprep.mubr.msk.f32.mxu1 %vm15804_vm13, %v15803_v57  ;;  %v6012_v26 = vmul.f32 %v10724_v7, %v14500_v37  ;;  %v10726_v11 = vpop.eup %10725 }
 0xe82   : > { %v6014_v43 = vmul.f32 %v10726_v11, %v14542_v10 }
 0xe84   : > { %9555 = vmatmul.mubr.msk.f32.gmra.mrb[218].mxu1 %vm15948_vm12, %v6042_v17  ;;  %vm15962_vm12 = vmmov %vm15820_vm0 }
 0xe85   : > { %9557 = vmatprep.mubr.msk.f32.mxu1 %vm15804_vm13, %v15803_v57 }
 0xe88   : > { %9558 = vmatmul.mubr.msk.f32.gmra.mrb[220].mxu1 %vm15949_vm9, %v6044_v32  ;;  %vm15963_vm9 = vmmov %vm15820_vm0 }
 0xe89   : > { %9560 = vmatprep.mubr.msk.f32.mxu1 %vm15804_vm13, %v15803_v57 }
 0xe8c   : > { %9561 = vmatmul.mubr.msk.f32.gmra.mrb[222].mxu1 %vm15950_vm15, %v6046_v31  ;;  %vm15964_vm15 = vmmov %vm15820_vm0 }
 0xe8d   : > { %9563 = vmatprep.mubr.msk.f32.mxu1 %vm15804_vm13, %v15803_v57 }
 0xe90   : > { %9564 = vmatmul.mubr.msk.f32.gmra.mrb[224].mxu1 %vm15951_vm14, %v6048_v44  ;;  %vm15965_vm14 = vmmov %vm15820_vm0 }
 0xe91   : > { %9566 = vmatprep.mubr.msk.f32.mxu1 %vm15804_vm13, %v15803_v57 }
 0xe93   : > { %v5813_v36 = vpop.xlane.xlu1 %5812 }
 0xe94   : > { %v5919_v45 = vmax.f32 %v5813_v36, 1e-30 }
 0xe96   : > { %10727 = vrcp.f32 %v5919_v45 }
 0xe97   : > { %v6507_v39 = vpop.permute.xlu1 %6506  ;;  %10729 = vrcp.f32 %v5920_v55 }
 0xe98   : > { %9466 = vmatpush3.msra.mxu0 %v6507_v39 }
 0xe99   : > { %9468 = vmatmul.mubr.msk.f32.vlgmr.msra.gmra.mrb[154].mxu0 %vm15952_vm6, %v6004_v35  ;;  %9980 = vmatprep.subr.bf16.mxu0 %v15542_v18  ;;  %vm15966_vm6 = vmmov %vm15820_vm0 }
 0xe9a   : > { %9470 = vmatprep.mubr.msk.f32.mxu0 %vm15804_vm13, %v15803_v57 }
 0xe9d   : > { %9471 = vmatmul.mubr.msk.f32.gmra.mrb[156].mxu0 %vm15953_vm3, %v6006_v20  ;;  %vm15967_vm3 = vmmov %vm15820_vm0 }
 0xe9e   : > { %9473 = vmatprep.mubr.msk.f32.mxu0 %vm15804_vm13, %v15803_v57 }
 0xea0   : > { %v10728_v9 = vpop.eup %10727 }
 0xea1   : > { %9474 = vmatmul.mubr.msk.f32.gmra.mrb[158].mxu0 %vm15954_vm1, %v6008_v23  ;;  %v10730_v30 = vpop.eup %10729  ;;  %v6016_v19 = vmul.f32 %v10728_v9, %v14598_v28  ;;  %vm15968_vm1 = vmmov %vm15820_vm0 }
 0xea2   : > { %9476 = vmatprep.mubr.msk.f32.mxu0 %vm15804_vm13, %v15803_v57  ;;  %v6018_v10 = vmul.f32 %v10730_v30, %v14553_v13 }
 0xea3   : > { %v5864_v63 = vpop.xlane.xlu0 %5863 }
 0xea4   : > { %v5936_v5 = vmax.f32 %v5864_v63, 1e-30 }
 0xea5   : > { %9477 = vmatmul.mubr.msk.f32.gmra.mrb[160].mxu0 %vm15955_vm5, %v6010_v8  ;;  %vm15969_vm5 = vmmov %vm15820_vm0 }
 0xea6   : > { %10731 = vrcp.f32 %v5936_v5  ;;  %9479 = vmatprep.mubr.msk.f32.mxu0 %vm15804_vm13, %v15803_v57 }
 0xea7   : > { %v5825_v28 = vpop.xlane.xlu0 %5824 }
 0xea8   : > { %v5923_v17 = vmax.f32 %v5825_v28, 1e-30 }
 0xea9   : > { %9480 = vmatmul.mubr.msk.f32.gmra.mrb[162].mxu0 %vm15956_vm11, %v6012_v26  ;;  %vm15970_vm11 = vmmov %vm15820_vm0 }
 0xeaa   : > { %9482 = vmatprep.mubr.msk.f32.mxu0 %vm15804_vm13, %v15803_v57 }
 0xeab   : > { %v5828_v59 = vpop.xlane.xlu0 %5827 }
 0xeac   : > { %v5924_v13 = vmax.f32 %v5828_v59, 1e-30 }
 0xead   : > { %9483 = vmatmul.mubr.msk.f32.gmra.mrb[164].mxu0 %vm15820_vm0, %v6014_v43 }
 0xeae   : > { %9485 = vmatprep.mubr.msk.f32.mxu0 %vm15804_vm13, %v15803_v57 }
 0xeaf   : > { %v5831_v29 = vpop.xlane.xlu0 %5830 }
 0xeb0   : > { %v10732_v25 = vpop.eup %10731  ;;  %v5925_v16 = vmax.f32 %v5831_v29, 1e-30 }
 0xeb1   : > { %9486 = vmatmul.mubr.msk.f32.gmra.mrb[166].mxu0 %vm15957_vm8, %v6016_v19  ;;  %v6050_v37 = vmul.f32 %v10732_v25, %v14613_v54  ;;  %vm15971_vm8 = vmmov %vm15820_vm0 }
 0xeb2   : > { %9488 = vmatprep.mubr.msk.f32.mxu0 %vm15804_vm13, %v15803_v57 }
 0xeb3   : > { %9567 = vmatmul.mubr.msk.f32.gmra.mrb[226].mxu1 %vm15958_vm4, %v6050_v37  ;;  %v5834_v4 = vpop.xlane.xlu0 %5833  ;;  %vm15981_vm4 = vcmask 130048  }
 0xeb4   : > { %9569 = vmatprep.mubr.msk.f32.mxu1 %vm15804_vm13, %v15803_v57  ;;  %v5926_v15 = vmax.f32 %v5834_v4, 1e-30 }
 0xeb5   : > { %9489 = vmatmul.mubr.msk.f32.gmra.mrb[168].mxu0 %vm15959_vm7, %v6018_v10  ;;  %vm15982_vm7 = vcmask 261120  }
 0xeb6   : > { %9491 = vmatprep.mubr.msk.f32.mxu0 %vm15804_vm13, %v15803_v57 }
 0xeb7   : > { %v5837_v39 = vpop.xlane.xlu0 %5836 }
 0xeb8   : > { %v5927_v0 = vmax.f32 %v5837_v39, 1e-30 }
 0xec8   : > { %v5819_v41 = vpop.xlane.xlu1 %5818 }
 0xec9   : > { %v5921_v24 = vmax.f32 %v5819_v41, 1e-30 }
 0xecb   : > { %10733 = vrcp.f32 %v5921_v24 }
 0xecc   : > { %v5822_v54 = vpop.xlane.xlu1 %5821 }
 0xecd   : > { %v5922_v40 = vmax.f32 %v5822_v54, 1e-30 }
 0xecf   : > { %10735 = vrcp.f32 %v5922_v40 }
 0xed0   : > { %v5867_v32 = vpop.xlane.xlu1 %5866  ;;  %10737 = vrcp.f32 %v5923_v17 }
 0xed1   : > { %v5937_v61 = vmax.f32 %v5867_v32, 1e-30 }
 0xed3   : > { %10739 = vrcp.f32 %v5937_v61 }
 0xed4   : > { %v5870_v31 = vpop.xlane.xlu1 %5869  ;;  %10741 = vrcp.f32 %v5924_v13 }
 0xed5   : > { %v10734_v1 = vpop.eup %10733  ;;  %v5938_v44 = vmax.f32 %v5870_v31, 1e-30 }
 0xed6   : > { %v6020_v47 = vmul.f32 %v10734_v1, %v14656_v22 }
 0xed7   : > { %10743 = vrcp.f32 %v5938_v44 }
 0xed8   : > { %v5873_v36 = vpop.xlane.xlu1 %5872  ;;  %9492 = vmatmul.mubr.msk.f32.gmra.mrb[170].mxu0 %vm15960_vm10, %v6020_v47  ;;  %10745 = vrcp.f32 %v5925_v16  ;;  %vm15983_vm10 = vcmask 392192  }
 0xed9   : > { %v10736_v34 = vpop.eup %10735  ;;  %v5939_v35 = vmax.f32 %v5873_v36, 1e-30  ;;  %9494 = vmatprep.mubr.msk.f32.mxu0 %vm15804_vm13, %v15803_v57 }
 0xeda   : > { %v6022_v56 = vmul.f32 %v10736_v34, %v14662_v49  ;;  %v10738_v60 = vpop.eup %10737 }
 0xedb   : > { %10747 = vrcp.f32 %v5939_v35  ;;  %v6024_v23 = vmul.f32 %v10738_v60, %v14619_v3 }
 0xedc   : > { %v5876_v20 = vpop.xlane.xlu1 %5875  ;;  %9495 = vmatmul.mubr.msk.f32.gmra.mrb[172].mxu0 %vm15961_vm2, %v6022_v56  ;;  %10749 = vrcp.f32 %v5926_v15  ;;  %vm15985_vm2 = vmmov %vm15981_vm4 }
 0xedd   : > { %v10740_v22 = vpop.eup %10739  ;;  %v5940_v45 = vmax.f32 %v5876_v20, 1e-30  ;;  %9497 = vmatprep.mubr.msk.f32.mxu0 %vm15804_vm13, %v15803_v57 }
 0xede   : > { %v6052_v12 = vmul.f32 %v10740_v22, %v14669_v6  ;;  %v10742_v55 = vpop.eup %10741 }
 0xedf   : > { %10751 = vrcp.f32 %v5940_v45  ;;  %v6026_v3 = vmul.f32 %v10742_v55, %v14625_v14 }
 0xee0   : > { %v5879_v63 = vpop.xlane.xlu1 %5878  ;;  %9498 = vmatmul.mubr.msk.f32.gmra.mrb[174].mxu0 %vm15962_vm12, %v6024_v23  ;;  %9570 = vmatmul.mubr.msk.f32.gmra.mrb[228].mxu1 %vm15963_vm9, %v6052_v12  ;;  %10753 = vrcp.f32 %v5927_v0  ;;  %v15974_v23 = vld [vmem:[#allocation37_spill] sm:$0xff]  ;;  %vm15986_vm12 = vmmov %vm15982_vm7 }
 0xee1   : > { %v10744_v49 = vpop.eup %10743  ;;  %v5941_v8 = vmax.f32 %v5879_v63, 1e-30  ;;  %9500 = vmatprep.mubr.msk.f32.mxu0 %vm15804_vm13, %v15803_v57  ;;  %9572 = vmatprep.mubr.msk.f32.mxu1 %vm15804_vm13, %v15803_v57  ;;  %vm15987_vm9 = vmmov %vm15983_vm10 }
 0xee2   : > { %v6054_v6 = vmul.f32 %v10744_v49, %v14677_v53  ;;  %v10746_v7 = vpop.eup %10745 }
 0xee3   : > { %10755 = vrcp.f32 %v5941_v8  ;;  %v6028_v43 = vmul.f32 %v10746_v7, %v14629_v52 }
 0xee4   : > { %v5882_v5 = vpop.xlane.xlu1 %5881  ;;  %9501 = vmatmul.mubr.msk.f32.gmra.mrb[176].mxu0 %vm15964_vm15, %v6026_v3  ;;  %9573 = vmatmul.mubr.msk.f32.gmra.mrb[230].mxu1 %vm15965_vm14, %v6054_v6  ;;  %v15975_v6 = vld [vmem:[#allocation49_spill] sm:$0xff]  ;;  %vm15989_vm15 = vmmov %vm15985_vm2 }
 0xee5   : > { %v10748_v26 = vpop.eup %10747  ;;  %v5942_v11 = vmax.f32 %v5882_v5, 1e-30  ;;  %9503 = vmatprep.mubr.msk.f32.mxu0 %vm15804_vm13, %v15803_v57  ;;  %9575 = vmatprep.mubr.msk.f32.mxu1 %vm15804_vm13, %v15803_v57  ;;  %vm15990_vm14 = vmmov %vm15982_vm7 }
 0xee6   : > { %v6056_v14 = vmul.f32 %v10748_v26, %v14681_v58  ;;  %v10750_v53 = vpop.eup %10749 }
 0xee7   : > { %10757 = vrcp.f32 %v5942_v11  ;;  %v6030_v30 = vmul.f32 %v10750_v53, %v14633_v2 }
 0xee8   : > { %9504 = vmatmul.mubr.msk.f32.gmra.mrb[178].mxu0 %vm15966_vm6, %v6028_v43  ;;  %9576 = vmatmul.mubr.msk.f32.gmra.mrb[232].mxu1 %vm15967_vm3, %v6056_v14  ;;  %v15976_v43 = vld [vmem:[#allocation38_spill] sm:$0xff]  ;;  %vm15991_vm6 = vmmov %vm15987_vm9 }
 0xee9   : > { %v10752_v9 = vpop.eup %10751  ;;  %9506 = vmatprep.mubr.msk.f32.mxu0 %vm15804_vm13, %v15803_v57  ;;  %9578 = vmatprep.mubr.msk.f32.mxu1 %vm15804_vm13, %v15803_v57  ;;  %vm15993_vm3 = vmmov %vm15985_vm2 }
 0xeea   : > { %v6058_v19 = vmul.f32 %v10752_v9, %v14685_v46  ;;  %v10754_v52 = vpop.eup %10753 }
 0xeeb   : > { %v6032_v25 = vmul.f32 %v10754_v52, %v14639_v27 }
 0xeec   : > { %9507 = vmatmul.mubr.msk.f32.gmra.mrb[180].mxu0 %vm15968_vm1, %v6030_v30  ;;  %9579 = vmatmul.mubr.msk.f32.gmra.mrb[234].mxu1 %vm15969_vm5, %v6058_v19  ;;  %vm15994_vm1 = vmmov %vm15982_vm7 }
 0xeed   : > { %v10756_v58 = vpop.eup %10755  ;;  %9509 = vmatprep.mubr.msk.f32.mxu0 %vm15804_vm13, %v15803_v57  ;;  %9581 = vmatprep.mubr.msk.f32.mxu1 %vm15804_vm13, %v15803_v57  ;;  %vm15995_vm5 = vmmov %vm15991_vm6 }
 0xeee   : > { %v6060_v37 = vmul.f32 %v10756_v58, %v14689_v42 }
 0xef0   : > { %9510 = vmatmul.mubr.msk.f32.gmra.mrb[182].mxu0 %vm15970_vm11, %v6032_v25  ;;  %9582 = vmatmul.mubr.msk.f32.gmra.mrb[236].mxu1 %vm15820_vm0, %v6060_v37  ;;  %v15978_v37 = vld [vmem:[#allocation31_spill] sm:$0xff]  ;;  %vm15997_vm11 = vmmov %vm15985_vm2 }
 0xef1   : > { %v10758_v2 = vpop.eup %10757  ;;  %9584 = vmatprep.mubr.msk.f32.mxu1 %vm15804_vm13, %v15803_v57  ;;  %9617 = vmatprep.mubr.msk.f32.mxu0 %vm15804_vm13, %v15803_v57 }
 0xef2   : > { %v6062_v46 = vmul.f32 %v10758_v2, %v14693_v50 }
 0xef4   : > { %9585 = vmatmul.mubr.msk.f32.gmra.mrb[238].mxu1 %vm15971_vm8, %v6062_v46 }
 0xef5   : > { %9648 = vmatprep.mubr.msk.f32.mxu1 %vm15804_vm13, %v15803_v57 }
 0xf47   : > { %v6864_v27 = vpop.f32.mrb[210].mxu1 }
 0xf48   : > { %v9544_v42 = vpop.f32.mrb[211].mxu1 }
 0xf4b   : > { %v6869_v10 = vpop.f32.mrb[212].mxu1 }
 0xf4c   : > { %v9547_v28 = vpop.f32.mrb[213].mxu1 }
 0xf4f   : > { %v6874_v59 = vpop.f32.mrb[214].mxu1 }
 0xf50   : > { %v9550_v41 = vpop.f32.mrb[215].mxu1 }
 0xf53   : > { %v6879_v24 = vpop.f32.mrb[216].mxu1 }
 0xf54   : > { %v9553_v54 = vpop.f32.mrb[217].mxu1 }
 0xf55   : > { %v7501_v54 = vld [vmem:[%s512_s17 + $0x8] sm:$0xff] }
 0xf57   : > { %v6884_v17 = vpop.f32.mrb[218].mxu1 }
 0xf58   : > { %v9556_v40 = vpop.f32.mrb[219].mxu1 }
 0xf59   : > { %v7503_v40 = vld [vmem:[%s512_s17 + $0x18] sm:$0xff] }
 0xf5b   : > { %v6889_v29 = vpop.f32.mrb[220].mxu1 }
 0xf5c   : > { %v9559_v32 = vpop.f32.mrb[221].mxu1 }
 0xf5d   : > { %v6954_v32 = vpop.permute.xlu0 %6953 }
 0xf5f   : > { %v6894_v13 = vpop.f32.mrb[222].mxu1 }
 0xf60   : > { %v9562_v61 = vpop.f32.mrb[223].mxu1 }
 0xf61   : > { %v15980_v61 = vld [vmem:[#allocation19_spill] sm:$0xff] }
 0xf63   : > { %v6899_v50 = vpop.f32.mrb[224].mxu1 }
 0xf64   : > { %v9565_v4 = vpop.f32.mrb[225].mxu1 }
 0xf65   : > { %v14910_v4 = vld [vmem:[%s15160_s8] ss:$0 sm:$0xff] }
 0xf6c   : > { %v6634_v31 = vpop.f32.mrb[154].mxu0 }
 0xf6d   : > { %v9469_v1 = vpop.f32.mrb[155].mxu0  ;;  %7013 = vrot.lane.b32.xlu1 %v6634_v31, %s10806_s22 }
 0xf70   : > { %v6639_v16 = vpop.f32.mrb[156].mxu0 }
 0xf71   : > { %v9472_v44 = vpop.f32.mrb[157].mxu0  ;;  %7015 = vrot.lane.b32.xlu0 %v6639_v16, %s10806_s22  ;;  %7073 = vrot.lane.b32.xlu1 %v6864_v27, %s10807_s19 }
 0xf74   : > { %v6644_v47 = vpop.f32.mrb[158].mxu0 }
 0xf75   : > { %v9475_v36 = vpop.f32.mrb[159].mxu0  ;;  %6957 = vrot.lane.b32.xlu1 %v14511_v51, %s10805_s21  ;;  %7075 = vrot.lane.b32.xlu0 %v6869_v10, %s10807_s19  ;;  %v15979_v10 = vld [vmem:[#allocation40_spill] sm:$0xff] }
 0xf76   : > { %v15984_v36 = vld [vmem:[#allocation20_spill] sm:$0xff] }
 0xf78   : > { %v6649_v34 = vpop.f32.mrb[160].mxu0 }
 0xf79   : > { %v9478_v15 = vpop.f32.mrb[161].mxu0  ;;  %7017 = vrot.lane.b32.xlu1 %v6644_v47, %s10806_s22  ;;  %6959 = vrot.lane.b32.xlu0 %v14515_v48, %s10805_s21 }
 0xf7c   : > { %v6654_v35 = vpop.f32.mrb[162].mxu0 }
 0xf7d   : > { %v9481_v39 = vpop.f32.mrb[163].mxu0  ;;  %7019 = vrot.lane.b32.xlu0 %v6649_v34, %s10806_s22  ;;  %7077 = vrot.lane.b32.xlu1 %v6874_v59, %s10807_s19 }
 0xf80   : > { %v6659_v56 = vpop.f32.mrb[164].mxu0 }
 0xf81   : > { %v9484_v60 = vpop.f32.mrb[165].mxu0  ;;  %6961 = vrot.lane.b32.xlu1 %v14517_v21, %s10805_s21  ;;  %7079 = vrot.lane.b32.xlu0 %v6879_v24, %s10807_s19  ;;  %v15972_v21 = vld [vmem:[#allocation27_spill] sm:$0xff]  ;;  %v7500_v24 = vld [vmem:[%s512_s17] sm:$0xff] }
 0xf84   : > { %v6664_v51 = vpop.f32.mrb[166].mxu0 }
 0xf85   : > { %v9487_v20 = vpop.f32.mrb[167].mxu0  ;;  %7021 = vrot.lane.b32.xlu1 %v6654_v35, %s10806_s22  ;;  %6963 = vrot.lane.b32.xlu0 %v14519_v38, %s10805_s21  ;;  %v15973_v38 = vld [vmem:[#allocation28_spill] sm:$0xff] }
 0xf86   : > { %v6904_v48 = vpop.f32.mrb[226].mxu1 }
 0xf87   : > { %v9568_v22 = vpop.f32.mrb[227].mxu1 }
 0xf88   : > { %v6669_v0 = vpop.f32.mrb[168].mxu0 }
 0xf89   : > { %v9490_v45 = vpop.f32.mrb[169].mxu0  ;;  %7023 = vrot.lane.b32.xlu0 %v6659_v56, %s10806_s22  ;;  %7081 = vrot.lane.b32.xlu1 %v6884_v17, %s10807_s19  ;;  %v7502_v17 = vld [vmem:[%s512_s17 + $0x10] sm:$0xff] }
 0xf8a   : > { %v7380_v45 = vld [vmem:[%s15161_s9] sm:$0xff] }
 0xf8d   : > { %6965 = vrot.lane.b32.xlu1 %v14523_v62, %s10805_s21  ;;  %7083 = vrot.lane.b32.xlu0 %v6889_v29, %s10807_s19  ;;  %v6956_v29 = vpop.permute.xlu1 %6955 }
 0xf8e   : > { %v7119_v34 = vsel %vm15985_vm2, %v15984_v36, %v6956_v29 }
 0xf91   : > { %7025 = vrot.lane.b32.xlu1 %v6664_v51, %s10806_s22  ;;  %6967 = vrot.lane.b32.xlu0 %v15972_v21, %s10805_s21  ;;  %v7381_v21 = vld [vmem:[%s15161_s9 + $0x8] sm:$0xff] }
 0xf95   : > { %7027 = vrot.lane.b32.xlu0 %v6669_v0, %s10806_s22  ;;  %7085 = vrot.lane.b32.xlu1 %v6894_v13, %s10807_s19 }
 0xf99   : > { %6969 = vrot.lane.b32.xlu1 %v15973_v38, %s10805_s21  ;;  %7087 = vrot.lane.b32.xlu0 %v6899_v50, %s10807_s19  ;;  %v7118_v50 = vsel %vm15981_vm4, %v15980_v61, %v6954_v32  ;;  %v10002_v38 = vpack.c.bf16 %v7381_v21, %v7380_v45  ;;  %vm15998_vm4 = vmmov %vm15994_vm1 }
 0xf9b   : > { %10003 = vmatpush3.bf16.msra.mxu1 %v10002_v38 }
 0xf9c   : > { %10004 = vmatprep.subr.bf16.mxu1 %v15542_v18 }
 0xf9d   : > { %6971 = vrot.lane.b32.xlu0 %v15974_v23, %s10805_s21  ;;  %v7382_v23 = vld [vmem:[%s15161_s9 + $0x10] sm:$0xff] }
 0xfab   : > { %v6674_v62 = vpop.f32.mrb[170].mxu0 }
 0xfac   : > { %v9493_v12 = vpop.f32.mrb[171].mxu0  ;;  %7029 = vrot.lane.b32.xlu1 %v6674_v62, %s10806_s22  ;;  %v7383_v62 = vld [vmem:[%s15161_s9 + $0x18] sm:$0xff] }
 0xfaf   : > { %v6679_v55 = vpop.f32.mrb[172].mxu0 }
 0xfb0   : > { %v9496_v63 = vpop.f32.mrb[173].mxu0  ;;  %7031 = vrot.lane.b32.xlu0 %v6679_v55, %s10806_s22  ;;  %7089 = vrot.lane.b32.xlu1 %v6904_v48, %s10807_s19  ;;  %v15988_v55 = vld [vmem:[#allocation21_spill] sm:$0xff] }
 0xfb3   : > { %v6684_v49 = vpop.f32.mrb[174].mxu0  ;;  %v6909_v8 = vpop.f32.mrb[228].mxu1 }
 0xfb4   : > { %v9499_v3 = vpop.f32.mrb[175].mxu0  ;;  %6973 = vrot.lane.b32.xlu1 %v15975_v6, %s10805_s21  ;;  %7091 = vrot.lane.b32.xlu0 %v6909_v8, %s10807_s19  ;;  %v9571_v7 = vpop.f32.mrb[229].mxu1 }
 0xfb5   : > { %v7384_v7 = vld [vmem:[%s15161_s9 + $0x20] sm:$0xff] }
 0xfb7   : > { %v6689_v5 = vpop.f32.mrb[176].mxu0  ;;  %v6914_v26 = vpop.f32.mrb[230].mxu1 }
 0xfb8   : > { %v9502_v11 = vpop.f32.mrb[177].mxu0  ;;  %7033 = vrot.lane.b32.xlu1 %v6684_v49, %s10806_s22  ;;  %6975 = vrot.lane.b32.xlu0 %v15976_v43, %s10805_s21  ;;  %v9574_v14 = vpop.f32.mrb[231].mxu1  ;;  %v10005_v49 = vpack.c.bf16 %v7383_v62, %v7382_v23  ;;  %v15992_v43 = vld [vmem:[#allocation22_spill] sm:$0xff]  ;;  %v16004_v23 = vld [vmem:[#allocation25_spill] sm:$0xff] }
 0xfba   : > { %10006 = vmatpush3.bf16.msra.mxu1 %v10005_v49 }
 0xfbb   : > { %v6694_v53 = vpop.f32.mrb[178].mxu0  ;;  %v6919_v9 = vpop.f32.mrb[232].mxu1  ;;  %10007 = vmatprep.subr.bf16.mxu1 %v15542_v18 }
 0xfbc   : > { %v9505_v30 = vpop.f32.mrb[179].mxu0  ;;  %7035 = vrot.lane.b32.xlu0 %v6689_v5, %s10806_s22  ;;  %7093 = vrot.lane.b32.xlu1 %v6914_v26, %s10807_s19  ;;  %v9577_v19 = vpop.f32.mrb[233].mxu1  ;;  %v7385_v5 = vld [vmem:[%s15161_s9 + $0x28] sm:$0xff] }
 0xfbf   : > { %v6699_v52 = vpop.f32.mrb[180].mxu0  ;;  %v6924_v58 = vpop.f32.mrb[234].mxu1 }
 0xfc0   : > { %v9508_v25 = vpop.f32.mrb[181].mxu0  ;;  %6977 = vrot.lane.b32.xlu1 %v15978_v37, %s10805_s21  ;;  %7095 = vrot.lane.b32.xlu0 %v6919_v9, %s10807_s19  ;;  %v9580_v2 = vpop.f32.mrb[235].mxu1 }
 0xfc1   : > { %v7387_v25 = vld [vmem:[%s15161_s9 + $0x38] sm:$0xff] }
 0xfc3   : > { %v6704_v46 = vpop.f32.mrb[182].mxu0  ;;  %v6929_v27 = vpop.f32.mrb[236].mxu1 }
 0xfc4   : > { %v9511_v42 = vpop.f32.mrb[183].mxu0  ;;  %7037 = vrot.lane.b32.xlu1 %v6694_v53, %s10806_s22  ;;  %6979 = vrot.lane.b32.xlu0 %v15979_v10, %s10805_s21  ;;  %v9583_v28 = vpop.f32.mrb[237].mxu1  ;;  %v10008_v53 = vpack.c.bf16 %v7385_v5, %v7384_v7  ;;  %v16008_v5 = vld [vmem:[#allocation26_spill] sm:$0xff] }
 0xfc6   : > { %10009 = vmatpush3.bf16.msra.mxu1 %v10008_v53 }
 0xfc7   : > { %v6934_v59 = vpop.f32.mrb[238].mxu1  ;;  %10010 = vmatprep.subr.bf16.mxu1 %v15542_v18 }
 0xfc8   : > { %7039 = vrot.lane.b32.xlu0 %v6699_v52, %s10806_s22  ;;  %7097 = vrot.lane.b32.xlu1 %v6924_v58, %s10807_s19  ;;  %v9586_v41 = vpop.f32.mrb[239].mxu1  ;;  %v7386_v58 = vld [vmem:[%s15161_s9 + $0x30] sm:$0xff] }
 0xfc9   : > { %v10011_v42 = vpack.c.bf16 %v7387_v25, %v7386_v58 }
 0xfcb   : > { %10012 = vmatpush3.bf16.msra.mxu1 %v10011_v42 }
 0xfcc   : > { %6981 = vrot.lane.b32.xlu1 %v14600_v33, %s10805_s21  ;;  %7099 = vrot.lane.b32.xlu0 %v6929_v27, %s10807_s19  ;;  %v7504_v33 = vld [vmem:[%s512_s17 + $0x20] sm:$0xff] }
 0xfcd   : > { %10016 = vmatprep.subr.bf16.mxu1 %v15542_v18 }
 0xfd0   : > { %7041 = vrot.lane.b32.xlu0 %v6704_v46, %s10806_s22  ;;  %7101 = vrot.lane.b32.xlu1 %v6934_v59, %s10807_s19 }
 0xfd4   : > { %7508 = vperm.xlu0 %10037, %v7500_v24   ;;  %7513 = vperm.xlu1 %10038, %v7501_v54  }
 0xfd8   : > { %7518 = vperm.xlu0 %10037, %v7502_v17   ;;  %7523 = vperm.xlu1 %10038, %v7503_v40   ;;  %v15996_v40 = vld [vmem:[#allocation23_spill] sm:$0xff] }
 0xfdc   : > { %7528 = vperm.xlu0 %10037, %v7504_v33  }
 0xfdf   : > { %v7014_v13 = vpop.permute.xlu1 %7013 }
 0xfe0   : > { %v7133_v31 = vsel %vm15982_vm7, %v7118_v50, %v7014_v13  ;;  %vm15999_vm7 = vmmov %vm15995_vm5 }
 0xfe3   : > { %v7016_v1 = vpop.permute.xlu0 %7015  ;;  %v7074_v16 = vpop.permute.xlu1 %7073 }
 0xfe4   : > { %v7148_v44 = vsel %vm15983_vm10, %v7133_v31, %v7074_v16  ;;  %v7134_v15 = vsel %vm15986_vm12, %v7119_v34, %v7016_v1  ;;  %vm16001_vm10 = vmmov %vm15985_vm2 }
 0xfe5   : > { %v14915_v47 = vadd.f32 %v14910_v4, %v7148_v44  ;;  %v16000_v44 = vld [vmem:[#allocation24_spill] sm:$0xff]  ;;  %vm16002_vm2 = vmmov %vm15994_vm1 }
 0xfe6   : > { %vm16003_vm12 = vmmov %vm15995_vm5 }
 0xfe7   : > { %v7200_v35 = vmin.f32 %v14915_v47, 0.0  ;;  %v6958_v39 = vpop.permute.xlu1 %6957  ;;  %v7076_v56 = vpop.permute.xlu0 %7075  ;;  %vm7185_vm0 = vcmp.gt.f32.partialorder %v14915_v47, 0.0 }
 0xfe8   : > { %v7149_v60 = vsel %vm15987_vm9, %v7134_v15, %v7076_v56  ;;  %v7120_v63 = vsel %vm15989_vm15, %v15988_v55, %v6958_v39  ;;  %vm16005_vm9 = vmmov %vm15993_vm3 }
 0xfe9   : > { %v7215_v51 = vmul.f32 1.442695, %v7200_v35  ;;  %v7171_v20 = vadd.f32 %v14910_v4, %v7149_v60 }
 0xfeb   : > { %10759 = vpow2.f32 %v7215_v51  ;;  %v7201_v48 = vmin.f32 %v7171_v20, 0.0  ;;  %v7018_v22 = vpop.permute.xlu1 %7017  ;;  %v6960_v0 = vpop.permute.xlu0 %6959  ;;  %vm7186_vm8 = vcmp.gt.f32.partialorder %v7171_v20, 0.0 }
 0xfec   : > { %v7135_v8 = vsel %vm15990_vm14, %v7120_v63, %v7018_v22  ;;  %v7121_v14 = vsel %vm15993_vm3, %v15992_v43, %v6960_v0  ;;  %vm16007_vm3 = vmmov %vm15995_vm5 }
 0xfed   : > { %v7217_v12 = vmul.f32 1.442695, %v7201_v48 }
 0xfef   : > { %10761 = vpow2.f32 %v7217_v12  ;;  %v7020_v3 = vpop.permute.xlu0 %7019  ;;  %v7078_v6 = vpop.permute.xlu1 %7077 }
 0xff0   : > { %v7150_v26 = vsel %vm15991_vm6, %v7135_v8, %v7078_v6  ;;  %v7136_v9 = vsel %vm15994_vm1, %v7121_v14, %v7020_v3  ;;  %vm16006_vm6 = vmmov %vm15994_vm1 }
 0xff1   : > { %v14947_v11 = vadd.f32 %v14910_v4, %v7150_v26  ;;  %vm16009_vm1 = vmmov %vm16005_vm9 }
 0xff3   : > { %v7202_v30 = vmin.f32 %v14947_v11, 0.0  ;;  %v6962_v19 = vpop.permute.xlu1 %6961  ;;  %v7080_v52 = vpop.permute.xlu0 %7079  ;;  %vm7187_vm15 = vcmp.gt.f32.partialorder %v14947_v11, 0.0 }
 0xff4   : > { %v7151_v37 = vsel %vm15995_vm5, %v7136_v9, %v7080_v52  ;;  %v7122_v33 = vsel %vm15997_vm11, %v15996_v40, %v6962_v19  ;;  %vm16010_vm5 = vmmov %vm16002_vm2 }
 0xff5   : > { %v10760_v2 = vpop.eup %10759  ;;  %v7219_v46 = vmul.f32 1.442695, %v7202_v30  ;;  %v7173_v27 = vadd.f32 %v14910_v4, %v7151_v37  ;;  %vm16011_vm11 = vmmov %vm16007_vm3 }
 0xff6   : > { %v8078_v41 = vadd.f32 -1.0, %v10760_v2 }
 0xff7   : > { %10763 = vpow2.f32 %v7219_v46  ;;  %v7203_v10 = vmin.f32 %v7173_v27, 0.0  ;;  %v7022_v28 = vpop.permute.xlu1 %7021  ;;  %v6964_v59 = vpop.permute.xlu0 %6963  ;;  %vm7188_vm14 = vcmp.gt.f32.partialorder %v7173_v27, 0.0 }
 0xff8   : > { %v7137_v29 = vsel %vm15998_vm4, %v7122_v33, %v7022_v28  ;;  %v7260_v61 = vsel %vm7185_vm0, %v14915_v47, %v8078_v41  ;;  %v7123_v36 = vsel %vm16001_vm10, %v16000_v44, %v6964_v59  ;;  %vm16013_vm10 = vmmov %vm16009_vm1  ;;  %v16015_v44 = vld [vmem:[#allocation29_spill] sm:$0xff] }
 0xff9   : > { %v10762_v24 = vpop.eup %10761  ;;  %v7221_v54 = vmul.f32 1.442695, %v7203_v10 }
 0xffa   : > { %v8079_v17 = vadd.f32 -1.0, %v10762_v24 }
 0xffb   : > { %10765 = vpow2.f32 %v7221_v54  ;;  %v7024_v32 = vpop.permute.xlu0 %7023  ;;  %v7082_v13 = vpop.permute.xlu1 %7081 }
 0xffc   : > { %v7261_v50 = vsel %vm7186_vm8, %v7171_v20, %v8079_v17  ;;  %v7152_v31 = vsel %vm15999_vm7, %v7137_v29, %v7082_v13  ;;  %v7138_v34 = vsel %vm16002_vm2, %v7123_v36, %v7024_v32  ;;  %v16012_v29 = vld [vmem:[#allocation30_spill] sm:$0xff] }
 0xffd   : > { %v7174_v1 = vadd.f32 %v14910_v4, %v7152_v31  ;;  %v9981_v16 = vpack.c.bf16 %v7261_v50, %v7260_v61 }
 0xfff   : > { %v7204_v15 = vmin.f32 %v7174_v1, 0.0  ;;  %9982 = vmatpush3.bf16.msra.mxu0 %v9981_v16  ;;  %v6966_v35 = vpop.permute.xlu1 %6965  ;;  %v7084_v39 = vpop.permute.xlu0 %7083  ;;  %vm7189_vm0 = vcmp.gt.f32.partialorder %v7174_v1, 0.0 }
0x1000   : > { %v7153_v56 = vsel %vm16003_vm12, %v7138_v34, %v7084_v39  ;;  %9983 = vmatprep.subr.bf16.mxu0 %v15542_v18  ;;  %v7124_v62 = vsel %vm16005_vm9, %v16004_v23, %v6966_v35  ;;  %vm16014_vm12 = vmmov %vm16007_vm3 }
0x1001   : > { %v10764_v47 = vpop.eup %10763  ;;  %v7223_v60 = vmul.f32 1.442695, %v7204_v15  ;;  %v7175_v51 = vadd.f32 %v14910_v4, %v7153_v56  ;;  %vm16016_vm9 = vmmov %vm16009_vm1 }
0x1002   : > { %v8080_v0 = vadd.f32 -1.0, %v10764_v47 }
0x1003   : > { %10767 = vpow2.f32 %v7223_v60  ;;  %v7205_v20 = vmin.f32 %v7175_v51, 0.0  ;;  %v7026_v48 = vpop.permute.xlu1 %7025  ;;  %v6968_v22 = vpop.permute.xlu0 %6967  ;;  %vm7190_vm8 = vcmp.gt.f32.partialorder %v7175_v51, 0.0 }
0x1004   : > { %v7139_v12 = vsel %vm16006_vm6, %v7124_v62, %v7026_v48  ;;  %v7262_v49 = vsel %vm7187_vm15, %v14947_v11, %v8080_v0  ;;  %v7125_v26 = vsel %vm16009_vm1, %v16008_v5, %v6968_v22  ;;  %vm16017_vm15 = vmmov %vm16002_vm2  ;;  %v16019_v0 = vld [vmem:[#allocation59_spill] sm:$0xff] }
0x1005   : > { %v10766_v45 = vpop.eup %10765  ;;  %v7225_v21 = vmul.f32 1.442695, %v7205_v20  ;;  %vm16020_vm6 = vmmov %vm16009_vm1 }
0x1006   : > { %v8081_v38 = vadd.f32 -1.0, %v10766_v45  ;;  %vm16022_vm1 = vmmov %vm16011_vm11 }
0x1007   : > { %10769 = vpow2.f32 %v7225_v21  ;;  %v7028_v55 = vpop.permute.xlu0 %7027  ;;  %v7086_v63 = vpop.permute.xlu1 %7085 }
0x1008   : > { %v7263_v8 = vsel %vm7188_vm14, %v7173_v27, %v8081_v38  ;;  %v7154_v3 = vsel %vm16007_vm3, %v7139_v12, %v7086_v63  ;;  %v7140_v43 = vsel %vm16010_vm5, %v7125_v26, %v7028_v55  ;;  %vm16018_vm14 = vmmov %vm16007_vm3  ;;  %v16023_v55 = vld [vmem:[#allocation58_spill] sm:$0xff] }
0x1009   : > { %v7176_v6 = vadd.f32 %v14910_v4, %v7154_v3  ;;  %v9984_v7 = vpack.c.bf16 %v7263_v8, %v7262_v49  ;;  %vm16021_vm3 = vmmov %vm16002_vm2 }
0x100a   : > { %vm16024_vm5 = vmmov %vm16020_vm6 }
0x100b   : > { %v7206_v14 = vmin.f32 %v7176_v6, 0.0  ;;  %9985 = vmatpush3.bf16.msra.mxu0 %v9984_v7  ;;  %v7088_v53 = vpop.permute.xlu0 %7087  ;;  %v6970_v28 = vpop.permute.xlu1 %6969  ;;  %vm7191_vm4 = vcmp.gt.f32.partialorder %v7176_v6, 0.0 }
0x100c   : > { %v7155_v9 = vsel %vm16011_vm11, %v7140_v43, %v7088_v53  ;;  %9986 = vmatprep.subr.bf16.mxu0 %v15542_v18  ;;  %v7126_v32 = vsel %vm16013_vm10, %v16012_v29, %v6970_v28  ;;  %vm16025_vm11 = vmmov %vm16002_vm2 }
0x100d   : > { %v10768_v30 = vpop.eup %10767  ;;  %v7227_v11 = vmul.f32 1.442695, %v7206_v14  ;;  %v7177_v19 = vadd.f32 %v14910_v4, %v7155_v9  ;;  %vm16029_vm10 = vmmov %vm16002_vm2 }
0x100e   : > { %v8082_v58 = vadd.f32 -1.0, %v10768_v30 }
0x100f   : > { %10771 = vpow2.f32 %v7227_v11  ;;  %v7207_v52 = vmin.f32 %v7177_v19, 0.0  ;;  %v6972_v54 = vpop.permute.xlu0 %6971  ;;  %vm7192_vm7 = vcmp.gt.f32.partialorder %v7177_v19, 0.0 }
0x1010   : > { %v7264_v46 = vsel %vm7189_vm0, %v7174_v1, %v8082_v58  ;;  %v7127_v36 = vsel %vm16016_vm9, %v16015_v44, %v6972_v54  ;;  %vm16026_vm0 = vmmov %vm16022_vm1  ;;  %v16027_v58 = vld [vmem:[#allocation14_spill] sm:$0xff] }
0x1011   : > { %v10770_v25 = vpop.eup %10769  ;;  %v7229_v37 = vmul.f32 1.442695, %v7207_v52  ;;  %vm16033_vm9 = vmmov %vm16021_vm3 }
0x1012   : > { %v8083_v2 = vadd.f32 -1.0, %v10770_v25 }
0x1013   : > { %10773 = vpow2.f32 %v7229_v37 }
0x1014   : > { %v7265_v27 = vsel %vm7190_vm8, %v7175_v51, %v8083_v2  ;;  %vm16028_vm8 = vmmov %vm16024_vm5 }
0x1015   : > { %v9987_v42 = vpack.c.bf16 %v7265_v27, %v7264_v46 }
0x1017   : > { %9988 = vmatpush3.bf16.msra.mxu0 %v9987_v42 }
0x1018   : > { %9989 = vmatprep.subr.bf16.mxu0 %v15542_v18 }
0x1019   : > { %v10772_v10 = vpop.eup %10771 }
0x101a   : > { %v8084_v59 = vadd.f32 -1.0, %v10772_v10 }
0x101c   : > { %v7266_v40 = vsel %vm7191_vm4, %v7176_v6, %v8084_v59 }
0x101d   : > { %v10774_v41 = vpop.eup %10773 }
0x101e   : > { %v8085_v24 = vadd.f32 -1.0, %v10774_v41  ;;  %v7030_v17 = vpop.permute.xlu1 %7029  ;;  %v16031_v41 = vld [vmem:[#allocation48_spill] sm:$0xff] }
0x101f   : > { %v7141_v61 = vsel %vm16002_vm2, %v7126_v32, %v7030_v17  ;;  %vm16030_vm2 = vmmov %vm16026_vm0 }
0x1020   : > { %v7267_v33 = vsel %vm7192_vm7, %v7177_v19, %v8085_v24 }
0x1021   : > { %v9990_v13 = vpack.c.bf16 %v7267_v33, %v7266_v40 }
0x1022   : > { %v7032_v50 = vpop.permute.xlu0 %7031  ;;  %v7090_v31 = vpop.permute.xlu1 %7089 }
0x1023   : > { %v7156_v1 = vsel %vm16014_vm12, %v7141_v61, %v7090_v31  ;;  %9991 = vmatpush3.bf16.msra.mxu0 %v9990_v13  ;;  %v7142_v34 = vsel %vm16017_vm15, %v7127_v36, %v7032_v50  ;;  %vm16032_vm12 = vmmov %vm16024_vm5  ;;  %v16035_v50 = vld [vmem:[#allocation56_spill] sm:$0xff] }
0x1024   : > { %v7178_v16 = vadd.f32 %v14910_v4, %v7156_v1  ;;  %9992 = vmatprep.subr.bf16.mxu0 %v15542_v18  ;;  %vm16034_vm15 = vmmov %vm16026_vm0 }
0x1026   : > { %v7208_v15 = vmin.f32 %v7178_v16, 0.0  ;;  %v6974_v35 = vpop.permute.xlu1 %6973  ;;  %v7092_v39 = vpop.permute.xlu0 %7091  ;;  %vm7193_vm4 = vcmp.gt.f32.partialorder %v7178_v16, 0.0 }
0x1027   : > { %v7157_v56 = vsel %vm16018_vm14, %v7142_v34, %v7092_v39  ;;  %v7128_v45 = vsel %vm16020_vm6, %v16019_v0, %v6974_v35  ;;  %vm16036_vm14 = vmmov %vm16024_vm5 }
0x1028   : > { %v7231_v47 = vmul.f32 1.442695, %v7208_v15  ;;  %v7179_v60 = vadd.f32 %v14910_v4, %v7157_v56  ;;  %vm16037_vm6 = vmmov %vm16021_vm3 }
0x102a   : > { %10775 = vpow2.f32 %v7231_v47  ;;  %v7209_v51 = vmin.f32 %v7179_v60, 0.0  ;;  %v7034_v20 = vpop.permute.xlu1 %7033  ;;  %v6976_v48 = vpop.permute.xlu0 %6975  ;;  %vm7194_vm7 = vcmp.gt.f32.partialorder %v7179_v60, 0.0 }
0x102b   : > { %v7143_v21 = vsel %vm16021_vm3, %v7128_v45, %v7034_v20  ;;  %v7129_v63 = vsel %vm16024_vm5, %v16023_v55, %v6976_v48  ;;  %vm16038_vm3 = vmmov %vm16026_vm0 }
0x102c   : > { %v7233_v22 = vmul.f32 1.442695, %v7209_v51 }
0x102e   : > { %10777 = vpow2.f32 %v7233_v22  ;;  %v7036_v38 = vpop.permute.xlu0 %7035  ;;  %v7094_v23 = vpop.permute.xlu1 %7093  ;;  %v16039_v22 = vld [vmem:[#allocation2_spill] sm:$0xff] }
0x102f   : > { %v7158_v62 = vsel %vm16022_vm1, %v7143_v21, %v7094_v23  ;;  %v7144_v49 = vsel %vm16025_vm11, %v7129_v63, %v7036_v38  ;;  %v1525_v0 = vadd.s32 1, %v16039_v22  ;;  %v16040_v23 = vld [vmem:[#allocation4_spill] sm:$0xff]  ;;  %v16041_v63 = vmul.u32 3, %v16039_v22 }
0x1030   : > { %v7180_v12 = vadd.f32 %v14910_v4, %v7158_v62  ;;  %v1526_v62 = vadd.s32 1, %v16040_v23 }
0x1031   : > { %v1530_v38 = vmul.u32 3, %v1525_v0 }
0x1032   : > { %v7210_v8 = vmin.f32 %v7180_v12, 0.0  ;;  %v6978_v3 = vpop.permute.xlu1 %6977  ;;  %v7096_v6 = vpop.permute.xlu0 %7095  ;;  %vm7195_vm1 = vcmp.gt.f32.partialorder %v7180_v12, 0.0 }
0x1033   : > { %v7159_v7 = vsel %vm16026_vm0, %v7144_v49, %v7096_v6  ;;  %v7130_v25 = vsel %vm16028_vm8, %v16027_v58, %v6978_v3  ;;  %v16042_v49 = vld [vmem:[#allocation3_spill] sm:$0xff]  ;;  %v1531_v6 = vmul.u32 3, %v1526_v62  ;;  %v16053_v58 = vld [vmem:[#allocation6_spill] sm:$0xff] }
0x1034   : > { %v10776_v5 = vpop.eup %10775  ;;  %v7235_v26 = vmul.f32 1.442695, %v7210_v8  ;;  %v7181_v43 = vadd.f32 %v14910_v4, %v7159_v7  ;;  %vm15034_vm11 = vcmp.ge.s32.totalorder %v16042_v49, %v16041_v63  ;;  %vm15039_vm0 = vcmp.lt.s32.totalorder %v16042_v49, %v1530_v38  ;;  %v16047_v7 = vld [vmem:[#allocation5_spill] sm:$0xff] }
0x1035   : > { %v8086_v30 = vadd.f32 -1.0, %v10776_v5  ;;  %v1527_v5 = vadd.s32 1, %v16047_v7 }
0x1036   : > { %10779 = vpow2.f32 %v7235_v26  ;;  %v7211_v14 = vmin.f32 %v7181_v43, 0.0  ;;  %v7038_v53 = vpop.permute.xlu1 %7037  ;;  %v6980_v9 = vpop.permute.xlu0 %6979  ;;  %vm7196_vm5 = vcmp.gt.f32.partialorder %v7181_v43, 0.0 }
0x1037   : > { %v7145_v37 = vsel %vm16029_vm10, %v7130_v25, %v7038_v53  ;;  %v7268_v27 = vsel %vm7193_vm4, %v7178_v16, %v8086_v30  ;;  %v7131_v24 = vsel %vm16032_vm12, %v16031_v41, %v6980_v9  ;;  %v16048_v9 = vmul.u32 3, %v16040_v23 }
0x1038   : > { %v10778_v11 = vpop.eup %10777  ;;  %v7237_v19 = vmul.f32 1.442695, %v7211_v14  ;;  %v1528_v25 = vadd.s32 1, %v16053_v58 }
0x1039   : > { %v8087_v52 = vadd.f32 -1.0, %v10778_v11  ;;  %vm15051_vm10 = vcmp.ge.s32.totalorder %v16042_v49, %v16048_v9 }
0x103a   : > { %10781 = vpow2.f32 %v7237_v19  ;;  %v7040_v2 = vpop.permute.xlu0 %7039  ;;  %v7098_v46 = vpop.permute.xlu1 %7097 }
0x103b   : > { %v7269_v42 = vsel %vm7194_vm7, %v7179_v60, %v8087_v52  ;;  %v7160_v10 = vsel %vm16030_vm2, %v7145_v37, %v7098_v46  ;;  %v7146_v54 = vsel %vm16033_vm9, %v7131_v24, %v7040_v2  ;;  %vm1540_vm7 = vmand %vm15034_vm11, %vm15039_vm0  ;;  %vm15056_vm2 = vcmp.lt.s32.totalorder %v16042_v49, %v1531_v6 }
0x103c   : > { %v7182_v28 = vadd.f32 %v14910_v4, %v7160_v10  ;;  %v9993_v59 = vpack.c.bf16 %v7269_v42, %v7268_v27  ;;  %v1532_v52 = vmul.u32 3, %v1527_v5  ;;  %v1545_v37 = vsel %vm1540_vm7, 0.33333334, %v15803_v57  ;;  %vm1541_vm9 = vmand %vm15051_vm10, %vm15056_vm2  ;;  %v16055_v42 = vld [vmem:[#allocation7_spill] sm:$0xff] }
0x103d   : > { %v16054_v46 = vmul.u32 3, %v16047_v7  ;;  %v1533_v27 = vmul.u32 3, %v1528_v25  ;;  %v1529_v10 = vadd.s32 1, %v16055_v42 }
0x103e   : > { %v7212_v17 = vmin.f32 %v7182_v28, 0.0  ;;  %9994 = vmatpush3.bf16.msra.mxu0 %v9993_v59  ;;  %v6982_v40 = vpop.permute.xlu1 %6981  ;;  %v7100_v33 = vpop.permute.xlu0 %7099  ;;  %vm7197_vm8 = vcmp.gt.f32.partialorder %v7182_v28, 0.0  ;;  %v16057_v59 = vmul.u32 3, %v16053_v58  ;;  %v16059_v24 = vmul.u32 3, %v16055_v42 }
0x103f   : > { %v7161_v29 = vsel %vm16034_vm15, %v7146_v54, %v7100_v33  ;;  %9995 = vmatprep.subr.bf16.mxu0 %v15542_v18  ;;  %v7132_v31 = vsel %vm16036_vm14, %v16035_v50, %v6982_v40  ;;  %vm1522_vm15 = vcmp.ge.s32.totalorder %v16042_v49, %v16054_v46  ;;  %vm1537_vm14 = vcmp.lt.s32.totalorder %v16042_v49, %v1532_v52  ;;  %v7564_v40 = vld [vmem:[%s15165_s13] sm:$0xff]  ;;  %v7565_v33 = vld [vmem:[%s15165_s13 + $0x8] sm:$0xff] }
0x1040   : > { %v10780_v32 = vpop.eup %10779  ;;  %v7239_v13 = vmul.f32 1.442695, %v7212_v17  ;;  %v7183_v61 = vadd.f32 %v14910_v4, %v7161_v29  ;;  %v1534_v41 = vmul.u32 3, %v1529_v10  ;;  %v10014_v29 = vpack.c.bf16 %v7565_v33, %v7564_v40 }
0x1041   : > { %v8088_v36 = vadd.f32 -1.0, %v10780_v32 }
0x1042   : > { %10783 = vpow2.f32 %v7239_v13  ;;  %v7213_v1 = vmin.f32 %v7183_v61, 0.0  ;;  %v7042_v16 = vpop.permute.xlu0 %7041  ;;  %v7102_v44 = vpop.permute.xlu1 %7101  ;;  %vm7198_vm4 = vcmp.gt.f32.partialorder %v7183_v61, 0.0 }
0x1043   : > { %v7147_v34 = vsel %vm16037_vm6, %v7132_v31, %v7042_v16  ;;  %v7270_v60 = vsel %vm7195_vm1, %v7180_v12, %v8088_v36  ;;  %vm16056_vm6 = vcmask 982016   ;;  %vm1523_vm1 = vcmp.ge.s32.totalorder %v16042_v49, %v16057_v59 }
0x1044   : > { %v10782_v15 = vpop.eup %10781  ;;  %v7241_v35 = vmul.f32 1.442695, %v7213_v1  ;;  %v7162_v39 = vsel %vm16038_vm3, %v7147_v34, %v7102_v44  ;;  %vm1542_vm3 = vmand %vm1522_vm15, %vm1537_vm14 }
0x1045   : > { %v8089_v56 = vadd.f32 -1.0, %v10782_v15  ;;  %v7184_v47 = vadd.f32 %v14910_v4, %v7162_v39  ;;  %vm16058_vm11 = vmmov %vm16056_vm6  ;;  %v8104_v15 = vld [vmem:[%s15163_s11] ss:$0 sm:$0xff] }
0x1046   : > { %10785 = vpow2.f32 %v7241_v35  ;;  %vm16060_vm7 = vmmov %vm16056_vm6 }
0x1047   : > { %v7271_v51 = vsel %vm7196_vm5, %v7181_v43, %v8089_v56  ;;  %v7214_v20 = vmin.f32 %v7184_v47, 0.0  ;;  %vm7199_vm12 = vcmp.gt.f32.partialorder %v7184_v47, 0.0  ;;  %vm1538_vm5 = vcmp.lt.s32.totalorder %v16042_v49, %v1533_v27  ;;  %vm16061_vm2 = vmmov %vm16056_vm6  ;;  %v8105_v56 = vld [vmem:[%s15164_s12] ss:$0 sm:$0xff] }
0x1048   : > { %v9996_v48 = vpack.c.bf16 %v7271_v51, %v7270_v60  ;;  %vm1543_vm0 = vmand %vm1523_vm1, %vm1538_vm5  ;;  %vm16068_vm1 = vcmask 130048  }
0x1049   : > { %v7243_v45 = vmul.f32 1.442695, %v7214_v20  ;;  %v1548_v54 = vsel %vm1543_vm0, 0.33333334, %v15803_v57  ;;  %vm16069_vm5 = vmmov %vm16068_vm1 }
0x104a   : > { %9997 = vmatpush3.bf16.msra.mxu0 %v9996_v48  ;;  %v8098_v48 = vld [vmem:[%s15162_s10] ss:$0 sm:$0xff]  ;;  %vm16071_vm0 = vmmov %vm16068_vm1 }
0x104b   : > { %10787 = vpow2.f32 %v7243_v45  ;;  %9998 = vmatprep.subr.bf16.mxu0 %v15542_v18 }
0x104c   : > { %v10784_v21 = vpop.eup %10783 }
0x104d   : > { %v8090_v55 = vadd.f32 -1.0, %v10784_v21 }
0x104f   : > { %v7272_v26 = vsel %vm7197_vm8, %v7182_v28, %v8090_v55  ;;  %v1546_v28 = vsel %vm1541_vm9, 0.33333334, %v15803_v57  ;;  %vm1524_vm8 = vcmp.ge.s32.totalorder %v16042_v49, %v16059_v24  ;;  %vm16063_vm9 = vcmask 523264  }
0x1050   : > { %v10786_v4 = vpop.eup %10785  ;;  %vm16064_vm15 = vmmov %vm16063_vm9 }
0x1051   : > { %v8091_v3 = vadd.f32 -1.0, %v10786_v4  ;;  %vm16065_vm14 = vmmov %vm16063_vm9 }
0x1053   : > { %v7273_v43 = vsel %vm7198_vm4, %v7183_v61, %v8091_v3  ;;  %vm1539_vm4 = vcmp.lt.s32.totalorder %v16042_v49, %v1534_v41  ;;  %v7509_v35 = vpop.permute.xlu0 %7508 }
0x1054   : > { %v9999_v14 = vpack.c.bf16 %v7273_v43, %v7272_v26  ;;  %vm1544_vm10 = vmand %vm1524_vm8, %vm1539_vm4  ;;  %v7537_v39 = vmul.f32 %v8104_v15, %v7509_v35 }
0x1055   : > { %v10788_v53 = vpop.eup %10787  ;;  %v1549_v17 = vsel %vm1544_vm10, 0.33333334, %v15803_v57  ;;  %vm16072_vm8 = vmmov %vm16071_vm0 }
0x1056   : > { %10000 = vmatpush3.bf16.msra.mxu0 %v9999_v14  ;;  %v8092_v11 = vadd.f32 -1.0, %v10788_v53  ;;  %v7549_v60 = vadd.f32 %v8105_v56, %v7537_v39 }
0x1057   : > { %9615 = vmatprep.subr.mxu0 %v15803_v57  ;;  %v7519_v20 = vpop.permute.xlu0 %7518 }
0x1058   : > { %v7274_v2 = vsel %vm7199_vm12, %v7184_v47, %v8092_v11  ;;  %vm16062_vm12 = vmmov %vm16061_vm2  ;;  %v7514_v47 = vpop.permute.xlu1 %7513  ;;  %v7554_v0 = vmax.f32 %v7549_v60, 0.0  ;;  %v7539_v21 = vmul.f32 %v8104_v15, %v7519_v20 }
0x1059   : > { %v7538_v51 = vmul.f32 %v8104_v15, %v7514_v47 }
0x105a   : > { %9616 = vmatpush3.msra.mxu0 %v7274_v2  ;;  %v7551_v49 = vadd.f32 %v8105_v56, %v7539_v21 }
0x105b   : > { %9618 = vmatmul.mubr.msk.f32.vlgmr.msra.gmra.mrb[184].mxu0 %vm16056_vm6, %v1545_v37  ;;  %10013 = vmatprep.subr.bf16.mxu0 %v15542_v18  ;;  %v1547_v18 = vsel %vm1542_vm3, 0.33333334, %v15803_v57  ;;  %vm16066_vm6 = vmmov %vm16063_vm9  ;;  %v7550_v45 = vadd.f32 %v8105_v56, %v7538_v51  ;;  %v7529_v6 = vpop.permute.xlu0 %7528 }
0x105c   : > { %9620 = vmatprep.mubr.msk.f32.mxu0 %vm15804_vm13, %v15803_v57  ;;  %10015 = vmatpush3.bf16.msra.mxu0 %v10014_v29  ;;  %vm16067_vm3 = vmmov %vm16066_vm6  ;;  %v7524_v62 = vpop.permute.xlu1 %7523  ;;  %v7556_v26 = vmax.f32 %v7551_v49, 0.0  ;;  %v7541_v14 = vmul.f32 %v8104_v15, %v7529_v6 }
0x105d   : > { %v7555_v63 = vmax.f32 %v7550_v45, 0.0  ;;  %v7540_v12 = vmul.f32 %v8104_v15, %v7524_v62 }
0x105e   : > { %v7553_v52 = vadd.f32 %v8105_v56, %v7541_v14 }
0x105f   : > { %9621 = vmatmul.mubr.msk.f32.gmra.mrb[186].mxu0 %vm16058_vm11, %v1546_v28  ;;  %v7552_v43 = vadd.f32 %v8105_v56, %v7540_v12  ;;  %vm16070_vm11 = vmmov %vm16068_vm1  ;;  %v8106_v28 = vld [vmem:[%s15166_s14] ss:$0 sm:$0xff] }
0x1060   : > { %9623 = vmatprep.mubr.msk.f32.mxu0 %vm15804_vm13, %v15803_v57  ;;  %v7558_v46 = vmax.f32 %v7553_v52, 0.0 }
0x1061   : > { %v7557_v19 = vmax.f32 %v7552_v43, 0.0 }
0x1063   : > { %9624 = vmatmul.mubr.msk.f32.gmra.mrb[188].mxu0 %vm16060_vm7, %v1547_v18 }
0x1064   : > { %9626 = vmatprep.mubr.msk.f32.mxu0 %vm15804_vm13, %v15803_v57 }
0x1067   : > { %9627 = vmatmul.mubr.msk.f32.gmra.mrb[190].mxu0 %vm16061_vm2, %v1548_v54 }
0x1068   : > { %9629 = vmatprep.mubr.msk.f32.mxu0 %vm15804_vm13, %v15803_v57 }
0x106b   : > { %9630 = vmatmul.mubr.msk.f32.gmra.mrb[192].mxu0 %vm16062_vm12, %v1549_v17 }
0x106c   : > { %9667 = vmatprep.mubr.msk.f32.mxu0 %vm15804_vm13, %v15803_v57 }
0x112e   : > { %v7356_v32 = vpop.f32.mrb[184].mxu0 }
0x112f   : > { %9649 = vmatmul.mubr.msk.f32.vlgmr.msra.gmra.mrb[240].mxu1 %vm16063_vm9, %v7356_v32  ;;  %v9619_v13 = vpop.f32.mrb[185].mxu0 }
0x1130   : > { %9651 = vmatprep.mubr.msk.f32.mxu1 %vm15804_vm13, %v15803_v57  ;;  %10017 = vmatpush3.bf16.msra.mxu1 %v10014_v29 }
0x1132   : > { %v7361_v61 = vpop.f32.mrb[186].mxu0 }
0x1133   : > { %9652 = vmatmul.mubr.msk.f32.gmra.mrb[242].mxu1 %vm16064_vm15, %v7361_v61  ;;  %v9622_v50 = vpop.f32.mrb[187].mxu0 }
0x1134   : > { %9654 = vmatprep.mubr.msk.f32.mxu1 %vm15804_vm13, %v15803_v57 }
0x1136   : > { %v7366_v31 = vpop.f32.mrb[188].mxu0 }
0x1137   : > { %9655 = vmatmul.mubr.msk.f32.gmra.mrb[244].mxu1 %vm16065_vm14, %v7366_v31  ;;  %v9625_v1 = vpop.f32.mrb[189].mxu0 }
0x1138   : > { %9657 = vmatprep.mubr.msk.f32.mxu1 %vm15804_vm13, %v15803_v57 }
0x113a   : > { %v7371_v16 = vpop.f32.mrb[190].mxu0 }
0x113b   : > { %9658 = vmatmul.mubr.msk.f32.gmra.mrb[246].mxu1 %vm16066_vm6, %v7371_v16  ;;  %v9628_v44 = vpop.f32.mrb[191].mxu0 }
0x113c   : > { %9660 = vmatprep.mubr.msk.f32.mxu1 %vm15804_vm13, %v15803_v57 }
0x113e   : > { %v7376_v36 = vpop.f32.mrb[192].mxu0 }
0x113f   : > { %9661 = vmatmul.mubr.msk.f32.gmra.mrb[248].mxu1 %vm16067_vm3, %v7376_v36  ;;  %v9631_v34 = vpop.f32.mrb[193].mxu0 }
0x1140   : > { %9679 = vmatprep.mubr.msk.f32.mxu1 %vm15804_vm13, %v15803_v57 }
0x1202   : > { %v7476_v22 = vpop.f32.mrb[240].mxu1 }
0x1203   : > { %v7477_v38 = vadd.f32 %v8098_v48, %v7476_v22  ;;  %v9650_v23 = vpop.f32.mrb[241].mxu1 }
0x1205   : > { %v7559_v55 = vadd.f32 %v7554_v0, %v7477_v38 }
0x1206   : > { %v7481_v4 = vpop.f32.mrb[242].mxu1 }
0x1207   : > { %v7482_v8 = vadd.f32 %v8098_v48, %v7481_v4  ;;  %9668 = vmatmul.mubr.msk.f32.vlgmr.msra.gmra.mrb[194].mxu0 %vm16068_vm1, %v7559_v55  ;;  %v9653_v3 = vpop.f32.mrb[243].mxu1 }
0x1208   : > { %9670 = vmatprep.mubr.msk.f32.mxu0 %vm15804_vm13, %v15803_v57 }
0x1209   : > { %v7560_v7 = vadd.f32 %v7555_v63, %v7482_v8 }
0x120a   : > { %v7486_v5 = vpop.f32.mrb[244].mxu1 }
0x120b   : > { %v7487_v53 = vadd.f32 %v8098_v48, %v7486_v5  ;;  %9671 = vmatmul.mubr.msk.f32.gmra.mrb[196].mxu0 %vm16069_vm5, %v7560_v7  ;;  %v9656_v9 = vpop.f32.mrb[245].mxu1 }
0x120c   : > { %9673 = vmatprep.mubr.msk.f32.mxu0 %vm15804_vm13, %v15803_v57 }
0x120d   : > { %v7561_v30 = vadd.f32 %v7556_v26, %v7487_v53 }
0x120e   : > { %v7491_v11 = vpop.f32.mrb[246].mxu1 }
0x120f   : > { %v7492_v58 = vadd.f32 %v8098_v48, %v7491_v11  ;;  %9674 = vmatmul.mubr.msk.f32.gmra.mrb[198].mxu0 %vm16070_vm11, %v7561_v30  ;;  %v9659_v25 = vpop.f32.mrb[247].mxu1 }
0x1210   : > { %9676 = vmatprep.mubr.msk.f32.mxu0 %vm15804_vm13, %v15803_v57 }
0x1211   : > { %v7562_v37 = vadd.f32 %v7557_v19, %v7492_v58 }
0x1212   : > { %v7496_v2 = vpop.f32.mrb[248].mxu1 }
0x1213   : > { %v7497_v27 = vadd.f32 %v8098_v48, %v7496_v2  ;;  %9677 = vmatmul.mubr.msk.f32.gmra.mrb[200].mxu0 %vm16071_vm0, %v7562_v37  ;;  %v9662_v42 = vpop.f32.mrb[249].mxu1 }
0x1215   : > { %v7563_v10 = vadd.f32 %v7558_v46, %v7497_v27 }
0x1217   : > { %9680 = vmatmul.mubr.msk.f32.vlgmr.msra.gmra.mrb[250].mxu1 %vm16072_vm8, %v7563_v10 }
0x12da   : > { %v7654_v57 = vpop.f32.mrb[194].mxu0 }
0x12db   : > { %v7655_v59 = vadd.f32 %v8106_v28, %v7654_v57  ;;  %v9669_v41 = vpop.f32.mrb[195].mxu0 }
0x12dd   : > { %7678 = vst [vmem:[%s518_s29] sm:$0xff] %v7655_v59 }
0x12de   : > { %v7659_v18 = vpop.f32.mrb[196].mxu0 }
0x12df   : > { %v7660_v24 = vadd.f32 %v8106_v28, %v7659_v18  ;;  %v9672_v54 = vpop.f32.mrb[197].mxu0 }
0x12e1   : > { %7679 = vst [vmem:[%s518_s29 + $0x8] sm:$0xff] %v7660_v24 }
0x12e2   : > { %v7664_v17 = vpop.f32.mrb[198].mxu0 }
0x12e3   : > { %v7665_v40 = vadd.f32 %v8106_v28, %v7664_v17  ;;  %v9675_v33 = vpop.f32.mrb[199].mxu0 }
0x12e5   : > { %7680 = vst [vmem:[%s518_s29 + $0x10] sm:$0xff] %v7665_v40 }
0x12e6   : > { %v7669_v29 = vpop.f32.mrb[200].mxu0 }
0x12e7   : > { %v7670_v32 = vadd.f32 %v8106_v28, %v7669_v29  ;;  %v9678_v13 = vpop.f32.mrb[201].mxu0 }
0x12e9   : > { %7681 = vst [vmem:[%s518_s29 + $0x18] sm:$0xff] %v7670_v32 }
0x12ea   : > { %v7674_v61 = vpop.f32.mrb[250].mxu1 }
0x12eb   : > { %v7675_v50 = vadd.f32 %v8106_v28, %v7674_v61  ;;  %v9681_v31 = vpop.f32.mrb[251].mxu1 }
0x12ed   : > { %7682 = vst [vmem:[%s518_s29 + $0x20] sm:$0xff] %v7675_v50 }
0x12ee PF: > { %s25_s18 = sadd.s32 1, %s10795_s18  }
0x12ef   : > { %p22_p5 = scmp.ge.s32.totalorder %s25_s18, 4  }
0x12f1   :  { %24 = sbr.rel (!%p22_p5) target bundleno = 1 (0x1), region = 113 }

</bundles_post_ra>
